<compile_context>
chip_gen: v5e
topology: v5e:2x2
jax: 0.10.0
libtpu: 0.0.40
codegen_flags: <defaults>
</compile_context>

<pallas_src>
import functools
import math

import jax
import jax.numpy as jnp
from jax.experimental import pallas as pl
from jax.experimental.pallas import tpu as pltpu


def _pick_tile(n, candidates):
    """Largest candidate tile that evenly divides n, else the full extent."""
    for c in candidates:
        if n % c == 0:
            return c
    return n


# ---------------------------------------------------------------------------
# Linear kernel: y = x @ W + b, tiled over (M, N); K kept whole per block.
# ---------------------------------------------------------------------------
def _linear_kernel(x_ref, w_ref, b_ref, o_ref):
    acc = jnp.dot(x_ref[...], w_ref[...], preferred_element_type=jnp.float32)
    o_ref[...] = (acc + b_ref[...].astype(jnp.float32)).astype(o_ref.dtype)


def _linear(x2d, w, b, *, out_dtype=None):
    M, K = x2d.shape
    Kw, N = w.shape
    assert Kw == K
    out_dtype = out_dtype or x2d.dtype
    tm = _pick_tile(M, (512, 256, 128))
    tn = _pick_tile(N, (512, 256, 128))
    # TODO(synk): for very large C (K >= ~4k) add a K grid axis + f32 VMEM
    # accumulator instead of keeping the whole contraction in one block.
    return pl.pallas_call(
        _linear_kernel,
        out_shape=jax.ShapeDtypeStruct((M, N), out_dtype),
        grid_spec=pltpu.PrefetchScalarGridSpec(
            num_scalar_prefetch=0,
            grid=(M // tm, N // tn),
            in_specs=[
                pl.BlockSpec((tm, K), lambda i, j: (i, 0)),
                pl.BlockSpec((K, tn), lambda i, j: (0, j)),
                pl.BlockSpec((1, tn), lambda i, j: (0, j)),
            ],
            out_specs=pl.BlockSpec((tm, tn), lambda i, j: (i, j)),
        ),
        compiler_params=pltpu.CompilerParams(
            dimension_semantics=("parallel", "parallel")),
    )(x2d, w, b.reshape(1, N))


# ---------------------------------------------------------------------------
# Flash-style attention: grid (B, H, Lq/tq, Lk/tk), online softmax.
# ---------------------------------------------------------------------------
def _flash_kernel(q_ref, k_ref, v_ref, o_ref, m_sc, l_sc, acc_sc, *, scale):
    kv_step = pl.program_id(3)

    @pl.when(kv_step == 0)
    def _init():
        m_sc[...] = jnp.full(m_sc.shape, -jnp.inf, dtype=m_sc.dtype)
        l_sc[...] = jnp.zeros(l_sc.shape, dtype=l_sc.dtype)
        acc_sc[...] = jnp.zeros(acc_sc.shape, dtype=acc_sc.dtype)

    q = q_ref[0, 0]                                   # [tq, D], native dtype
    k = k_ref[0, 0]                                   # [tk, D]
    v = v_ref[0, 0]                                   # [tk, D]

    # q @ k^T without an explicit transpose: contract over D for both.
    s = jax.lax.dot_general(
        q, k, (((1,), (1,)), ((), ())),
        preferred_element_type=jnp.float32) * scale   # [tq, tk] f32

    m_prev = m_sc[...]                                # [tq, 1]
    m_new = jnp.maximum(m_prev, s.max(axis=-1, keepdims=True))
    alpha = jnp.exp(m_prev - m_new)                   # [tq, 1]
    p = jnp.exp(s - m_new)                            # unnormalized probs

    l_sc[...] = alpha * l_sc[...] + p.sum(axis=-1, keepdims=True)
    acc_sc[...] = alpha * acc_sc[...] + jnp.dot(
        p.astype(v.dtype), v, preferred_element_type=jnp.float32)
    m_sc[...] = m_new

    @pl.when(kv_step == pl.num_programs(3) - 1)
    def _finalize():
        inv_l = pl.reciprocal(l_sc[...], approx=True)     # EUP, not VALU divide
        o_ref[0, 0] = (acc_sc[...] * inv_l).astype(o_ref.dtype)


def _flash_attention(q, k, v):
    B, H, L, D = q.shape
    scale = 1.0 / math.sqrt(D)
    # 256-wide score tiles fill the v6e/v7x 2x256 MXU; 128 also fine on v5e.
    tq = _pick_tile(L, (256, 128))
    tk = _pick_tile(L, (256, 128))
    kernel = functools.partial(_flash_kernel, scale=scale)
    return pl.pallas_call(
        kernel,
        out_shape=jax.ShapeDtypeStruct((B, H, L, D), q.dtype),
        grid_spec=pltpu.PrefetchScalarGridSpec(
            num_scalar_prefetch=0,
            grid=(B, H, L // tq, L // tk),
            in_specs=[
                pl.BlockSpec((1, 1, tq, D), lambda b, h, i, j: (b, h, i, 0)),
                pl.BlockSpec((1, 1, tk, D), lambda b, h, i, j: (b, h, j, 0)),
                pl.BlockSpec((1, 1, tk, D), lambda b, h, i, j: (b, h, j, 0)),
            ],
            out_specs=pl.BlockSpec((1, 1, tq, D),
                                   lambda b, h, i, j: (b, h, i, 0)),
            scratch_shapes=[
                pltpu.VMEM((tq, 1), jnp.float32),   # running max m
                pltpu.VMEM((tq, 1), jnp.float32),   # running denom l
                pltpu.VMEM((tq, D), jnp.float32),   # output accumulator
            ],
        ),
        compiler_params=pltpu.CompilerParams(
            dimension_semantics=("parallel", "parallel", "parallel",
                                 "arbitrary")),
    )(q, k, v)


# ---------------------------------------------------------------------------
# Full module forward: self-attention, full mode.
# ---------------------------------------------------------------------------
def multi_head_attention(x, w_qkv, b_qkv, w_out, b_out, *, num_heads: int):
    """Self multi-head attention (full mode). x: [B, L, C]."""
    B, L, C = x.shape
    assert C % num_heads == 0
    D = C // num_heads
    assert w_qkv.shape == (C, 3 * C)
    assert w_out.shape == (C, C)

    # 1) QKV projection: one lane-dense [B*L, 3C] matmul.
    qkv = _linear(x.reshape(B * L, C), w_qkv, b_qkv)          # [B*L, 3C]

    # Layout plumbing (outside the kernels): split q/k/v and move heads to a
    # leading axis so the attention kernel sees full-D, aligned tiles and
    # never slices heads on the lane dimension.
    qkv = qkv.reshape(B, L, 3, num_heads, D)
    q = jnp.transpose(qkv[:, :, 0], (0, 2, 1, 3))             # [B, H, L, D]
    k = jnp.transpose(qkv[:, :, 1], (0, 2, 1, 3))
    v = jnp.transpose(qkv[:, :, 2], (0, 2, 1, 3))

    # 2) Flash-style attention with online softmax.
    h = _flash_attention(q, k, v)                             # [B, H, L, D]

    # 3) Output projection: one lane-dense [B*L, C] matmul.
    h = jnp.transpose(h, (0, 2, 1, 3)).reshape(B * L, C)      # [B*L, C]
    out = _linear(h, w_out, b_out)
    return out.reshape(B, L, C)


def _reference(x, w_qkv, b_qkv, w_out, b_out, num_heads):
    """Pure-JAX reference mirroring the PyTorch forward."""
    B, L, C = x.shape
    D = C // num_heads
    qkv = x @ w_qkv + b_qkv                                   # [B, L, 3C]
    qkv = qkv.reshape(B, L, 3, num_heads, D)
    q, k, v = qkv[:, :, 0], qkv[:, :, 1], qkv[:, :, 2]        # [B, L, H, D]
    s = jnp.einsum("blhd,bmhd->bhlm", q, k) / math.sqrt(D)
    p = jax.nn.softmax(s, axis=-1)
    h = jnp.einsum("bhlm,bmhd->blhd", p, v).reshape(B, L, C)
    return h @ w_out + b_out


if __name__ == "__main__":
    # Shapes chosen so the flash tiling (2 q-tiles x 2 kv-steps per head) and
    # the (8,128)-aligned matmul tiling are actually exercised.
    B, L, C = 2, 512, 512
    num_heads = 4

    key = jax.random.PRNGKey(0)
    kx, k1, k2, k3, k4 = jax.random.split(key, 5)

    x = jax.random.normal(kx, (B, L, C), dtype=jnp.float32)
    # Deterministic synthetic parameters (nn.Linear shapes, stored [in, out]).
    w_qkv = jax.random.normal(k1, (C, 3 * C), dtype=jnp.float32) / math.sqrt(C)
    b_qkv = jax.random.normal(k2, (3 * C,), dtype=jnp.float32) * 0.02
    w_out = jax.random.normal(k3, (C, C), dtype=jnp.float32) / math.sqrt(C)
    b_out = jax.random.normal(k4, (C,), dtype=jnp.float32) * 0.02

    out = jax.block_until_ready(
        multi_head_attention(x, w_qkv, b_qkv, w_out, b_out,
                             num_heads=num_heads))
    ref = _reference(x, w_qkv, b_qkv, w_out, b_out, num_heads)

    assert out.shape == (B, L, C)
    err = float(jnp.max(jnp.abs(out - ref)))
    assert jnp.allclose(out, ref, atol=1e-2, rtol=1e-2), \
        f"mismatch vs JAX reference, max|diff|={err}"

    # TODO(synk): use_rope / qk_rms_norm / cross-attention / windowed branches
    # not exercised (module defaults are self + full + no rope + no rms norm).
    print("KERNEL_OK")
</pallas_src>

<mosaic_0001>
module attributes {stable_mosaic.version = 11 : i64} {
  func.func @_linear_kernel(%arg0: i32, %arg1: i32, %arg2: memref<512x512xf32, #tpu.memory_space<vmem>>, %arg3: memref<512x512xf32, #tpu.memory_space<vmem>>, %arg4: memref<1x512xf32, #tpu.memory_space<vmem>>, %arg5: memref<512x512xf32, #tpu.memory_space<vmem>>) attributes {dimension_semantics = [#tpu.dimension_semantics<parallel>, #tpu.dimension_semantics<parallel>], iteration_bounds = array<i64: 2, 3>, scalar_prefetch = 0 : i64, scratch_operands = 0 : i64, tpu.core_type = #tpu.core_type<tc>, window_params = [{transform_indices = @transform_0, window_bounds = array<i64: 512, 512>}, {transform_indices = @transform_1, window_bounds = array<i64: 512, 512>}, {transform_indices = @transform_2, window_bounds = array<i64: 1, 512>}, {transform_indices = @transform_3, window_bounds = array<i64: 512, 512>}]} {
    %c0 = arith.constant 0 : index
    %c0_0 = arith.constant 0 : index
    %0 = vector.load %arg2[%c0, %c0_0] : memref<512x512xf32, #tpu.memory_space<vmem>>, vector<512x512xf32>
    %c0_1 = arith.constant 0 : index
    %c0_2 = arith.constant 0 : index
    %1 = vector.load %arg3[%c0_1, %c0_2] : memref<512x512xf32, #tpu.memory_space<vmem>>, vector<512x512xf32>
    %cst = arith.constant dense<0.000000e+00> : vector<512x512xf32>
    %2 = tpu.matmul %0, %1, %cst {dimension_numbers = #tpu.dot_dimension_numbers<[1], [0], [0], [1], [0, 0, 1, 1], [], []>} : vector<512x512xf32>, vector<512x512xf32>, vector<512x512xf32> -> vector<512x512xf32>
    %c0_3 = arith.constant 0 : index
    %c0_4 = arith.constant 0 : index
    %3 = vector.load %arg4[%c0_3, %c0_4] : memref<1x512xf32, #tpu.memory_space<vmem>>, vector<1x512xf32>
    %4 = vector.broadcast %3 : vector<1x512xf32> to vector<512x512xf32>
    %5 = arith.addf %2, %4 : vector<512x512xf32>
    %c0_5 = arith.constant 0 : index
    %c0_6 = arith.constant 0 : index
    %6 = vector.load %arg5[%c0_5, %c0_6] : memref<512x512xf32, #tpu.memory_space<vmem>>, vector<512x512xf32>
    tpu.vector_store %arg5[%c0_5, %c0_6], %5 {strides = array<i32>} : memref<512x512xf32, #tpu.memory_space<vmem>>, vector<512x512xf32>,
    return
  }
  func.func @transform_0(%arg0: i32, %arg1: i32) -> (i32, i32) {
    %c0_i32 = arith.constant 0 : i32
    %c0_i32_0 = arith.constant 0 : i32
    return %arg0, %c0_i32 : i32, i32
  }
  func.func @transform_1(%arg0: i32, %arg1: i32) -> (i32, i32) {
    %c0_i32 = arith.constant 0 : i32
    %c0_i32_0 = arith.constant 0 : i32
    return %c0_i32, %arg1 : i32, i32
  }
  func.func @transform_2(%arg0: i32, %arg1: i32) -> (i32, i32) {
    %c0_i32 = arith.constant 0 : i32
    %c0_i32_0 = arith.constant 0 : i32
    return %c0_i32, %arg1 : i32, i32
  }
  func.func @transform_3(%arg0: i32, %arg1: i32) -> (i32, i32) {
    %c0_i32 = arith.constant 0 : i32
    return %arg0, %arg1 : i32, i32
  }
}

</mosaic_0001>

<bundles_post_ra>
// kernel: tpu_custom_call.1
= control target key start
LH: loop header
LB: loop body
LE: loop exit
PB: predicated region body
PF: predicated region fallthrough
CT: control target
= control target key end

     0   :  { %s7874_s0 = inlined_call_operand.hbm [shape: f32[1024,512], index: 0, kind: input, shape index: {}]   ;;  %s7875_s1 = inlined_call_operand.hbm [shape: f32[512,1536], index: 1, kind: input, shape index: {}]   ;;  %s7876_s2 = inlined_call_operand.hbm [shape: f32[1,1536], index: 2, kind: input, shape index: {}]   ;;  %s7877_s3 = inlined_call_operand.hbm [shape: f32[1024,1536], index: 3, kind: output, shape index: {}]  }
   0x1   :  { %7889 = sst [smem:[#allocation24_spill]] %s7875_s1 }
   0x2   :  { %7890 = sst [smem:[#allocation25_spill]] %s7877_s3 }
   0x3   :  { %8 = vsyncpa [#allocation3], 0 }
   0x4   :  { %10 = vsyncpa [#allocation3 + $0x1], 0 }
   0x5   :  { %11 = vsyncpa [#allocation6], 0 }
   0x6   :  { %13 = vsyncpa [#allocation6 + $0x1], 0 }
   0x7   :  { %14 = vsyncpa [#allocation4], 0 }
   0x8   :  { %16 = vsyncpa [#allocation4 + $0x1], 0  ;;  %s5770_s12 = smov 0   ;;  %s5772_s13 = smov 0  }
   0x9   :  { %s5774_s14 = smov 0   ;;  %s5776_s15 = smov 0  }
   0xa   :  { %s5778_s16 = smov 0   ;;  %s5780_s17 = smov 0  }
   0xb   :  { %s5782_s18 = smov 0   ;;  %s5784_s19 = smov 0  }
   0xc   :  { %s5786_s20 = smov 0   ;;  %s5788_s21 = smov 0  }
   0xd   :  { %s5790_s22 = smov 0   ;;  %s5792_s23 = smov 0  }
   0xe   :  { %s5794_s24 = smov 0   ;;  %s5796_s25 = smov 0  }
   0xf LB: > { %7891 = sst [smem:[#allocation12_spill]] %s5690_s12  ;;  %s31_s26 = sadd.s32 1, %s5734_s23  ;;  %s5742_s25 = sphi %s5796_s25, %s22_s25   ;;  %s5738_s24 = sphi %s5794_s24, %s7929_s24   ;;  %s5734_s23 = sphi %s5792_s23, %s7938_s23   ;;  %s5730_s22 = sphi %s5790_s22, %s7927_s22   ;;  %s5726_s21 = sphi %s5788_s21, %s7937_s21   ;;  %s5722_s20 = sphi %s5786_s20, %s7926_s20   ;;  %s5718_s19 = sphi %s5784_s19, %s7936_s19   ;;  %s5714_s18 = sphi %s5782_s18, %s7935_s18   ;;  %s5710_s17 = sphi %s5780_s17, %s7934_s17   ;;  %s5706_s16 = sphi %s5778_s16, %s7933_s16   ;;  %s5702_s15 = sphi %s5776_s15, %s7932_s15   ;;  %s5698_s14 = sphi %s5774_s14, %s7923_s14   ;;  %s5694_s13 = sphi %s5772_s13, %s7931_s13   ;;  %s5690_s12 = sphi %s5770_s12, %s7930_s12  }
  0x10   : > { %7892 = sst [smem:[#allocation13_spill]] %s5698_s14  ;;  %p49_p0 = scmp.eq.s32.totalorder %s5742_s25, 0 }
  0x11   : > { %7893 = sst [smem:[#allocation14_spill]] %s5722_s20  ;;  %p5844_p1 = scmp.ge.s32.totalorder %s31_s26, 3 }
  0x12   : > { %7894 = sst [smem:[#allocation15_spill]] %s5726_s21  ;;  %p74_p2 = scmp.ne.s32.totalorder %s5710_s17, %s5706_s16 }
  0x13   : > { %7895 = sst [smem:[#allocation16_spill]] %s5730_s22  ;;  %p80_p3 = scmp.ne.s32.totalorder %s5706_s16, %s5702_s15 }
  0x14   : > { %7896 = sst [smem:[#allocation17_spill]] %s5738_s24  ;;  %p4611_p4 = scmp.lt.s32.totalorder %s5742_s25, 6 }
  0x15   : > { %p76_p5 = por %p74_p2, %p49_p0  ;;  %s181_s29 = sand.u32 1, %s5742_s25  }
  0x16   : > { %s7878_s30 = sand.u32 1, %s5710_s17   ;;  %s4587_s5 = sshll.u32 %s5734_s23, 5 }
  0x17   : > { %s4568_s4 = sshll.u32 %s7878_s30, 11  ;;  %s7898_s1 = sld [smem:[#allocation24_spill]] }
  0x18   : > { %s185_s10 = scalar_lea.vmem [#allocation5], %s4568_s4  ;;  %p5866_p6 = pnand %p4611_p4, %p76_p5 }
  0x19   : > { %s193_s11 = sshll.u32 %s185_s10, 4  ;;  %p4573_p7 = scmp.ge.s32.totalorder %s5742_s25, 1  ;;  %s194_s11 = int_to_ptr.vmem [resolvable:$true] %s193_s11 }
  0x1a   : > { %p220_p8 = scmp.lt.s32.totalorder %s5742_s25, 7  ;;  %s5872_s4 = scalar_lea.sflag [#allocation6], %s181_s29 }
  0x1b   : > { %s7879_s6 = smov 512   ;;  %s7880_s7 = smov 32  }
  0x1c   : > { %p5879_p9 = pnand %p4573_p7, %p220_p8  ;;  %s5884_s10 = sadd.s32 4294967295, %s5742_s25  }
  0x1d   : > { %s190_s8 = scalar_lea.hbm %s7898_s1, %s4587_s5  ;;  %s5744_s5 = smov 1536  }
  0x1e   : > { %s191_s9 = sshll.u32 %s190_s8, 4  ;;  %s4561_s29 = sadd.s32 4294967294, %s5742_s25   ;;  %s192_s9 = int_to_ptr.hbm [resolvable:$true] %s191_s9 }
  0x1f   : > { %4603 = dma.hbm_to_vmem [thread:$0]  (!%p5866_p6), %s192_s9, 32768, %s194_s11, %s5872_s4, %s5744_s5, %s7879_s6, %s7880_s7  }
  0x20   : > { %s7940_s26 = smov (%p5844_p1, %s31_s26), 0  ;;  %s34_s28 = sadd.s32 1, %s5738_s24 }
  0x21   : > { %7901 = sst [smem:[#allocation18_spill]] %s7940_s26  ;;  %s41_s9 = sadd.s32 1, %s5722_s20 }
  0x22   : > { %s7942_s28 = smov (!%p5844_p1, %s34_s28), %s5738_s24  ;;  %p48_p10 = scmp.ne.s32.totalorder %s5722_s20, %s5718_s19 }
  0x23   : > { %p54_p11 = scmp.ne.s32.totalorder %s5718_s19, %s5714_s18  ;;  %p36_p12 = scmp.ge.s32.totalorder %s7942_s28, 2 }
  0x24   : > { %p55_p13 = scmp.eq.s32.totalorder %s5884_s10, 0  ;;  %p5905_p2 = por %p49_p0, %p48_p10 }
  0x25   : > { %s64_s5 = ssub.s32 %s5734_s23, %s7940_s26  ;;  %s7944_s28 = smov (%p36_p12, %s7942_s28), 0 }
  0x26   : > { %7903 = sst [smem:[#allocation19_spill]] %s7944_s28  ;;  %p5913_p1 = por %p55_p13, %p54_p11 }
  0x27   : > { %p65_p5 = scmp.eq.s32.totalorder %s64_s5, 0  ;;  %s38_s18 = ssub.s32 %s5738_s24, %s7944_s28 }
  0x28   : > { %p5922_p7 = por %p80_p3, %p55_p13  ;;  %p39_p0 = scmp.eq.s32.totalorder %s38_s18, 0 }
  0x29   : > { %s118_s7 = sor.u32 %s64_s5, %s38_s18  ;;  %s7906_s1 = sadd.s32 1, %s5710_s17 }
  0x2a   : > { %s5929_s26 = scalar_select %p65_p5, %s5710_s17, %s7906_s1  }
  0x2b   : > { %s5932_s3 = scalar_select %p39_p0, %s5722_s20, %s41_s9  }
  0x2c   : > { %7907 = sst [smem:[#allocation20_spill]] %s5929_s26  ;;  %p119_p8 = scmp.eq.s32.totalorder %s118_s7, 0 }
  0x2d   : > { %7908 = sst [smem:[#allocation21_spill]] %s5932_s3  ;;  %s121_s21 = sadd.s32 1, %s5698_s14 }
  0x2e   : > { %p131_p10 = scmp.ne.s32.totalorder %s5698_s14, %s5694_s13  ;;  %p132_p11 = scmp.eq.s32.totalorder %s5884_s10, 5 }
  0x2f   : > { %s5939_s15 = scalar_select %p119_p8, %s5698_s14, %s121_s21  }
  0x30   : > { %p5941_p3 = por %p132_p11, %p131_p10  ;;  %p137_p12 = scmp.ne.s32.totalorder %s5694_s13, %s5690_s12 }
  0x31   : > { %7909 = sst [smem:[#allocation22_spill]] %s5939_s15  ;;  %p138_p13 = scmp.eq.s32.totalorder %s4561_s29, 5 }
  0x32   : > { %s158_s1 = sand.u32 1, %s5722_s20   ;;  %s4586_s7 = sshll.u32 %s5738_s24, 11 }
  0x33   : > { %s4564_s5 = sshll.u32 %s158_s1, 11  ;;  %p5948_p5 = por %p138_p13, %p137_p12 }
  0x34   : > { %s162_s18 = scalar_lea.vmem [#allocation2], %s4564_s5  ;;  %s168_s21 = scalar_lea.hbm %s7874_s0, %s4586_s7 }
  0x35   : > { %s7911_s9 = scalar_select %p5948_p5, 1, 0 }
  0x36   : > { %s171_s3 = sshll.u32 %s162_s18, 4  ;;  %s169_s15 = sshll.u32 %s168_s21, 4  ;;  %s172_s3 = int_to_ptr.vmem [resolvable:$true] %s171_s3  ;;  %s170_s15 = int_to_ptr.hbm [resolvable:$true] %s169_s15 }
  0x37   : > { %7912 = sst [smem:[#allocation23_spill]] %s7911_s9  ;;  %p4598_p0 = pnand %p4611_p4, %p5905_p2 }
  0x38   : > { %s7913_s29 = sand.u32 1, %s5710_s17   ;;  %s159_s14 = scalar_lea.sflag [#allocation3], %s158_s1 }
  0x39   : > { %s4571_s20 = sshll.u32 %s7913_s29, 2  ;;  %s7914_s12 = smov 32  }
  0x3a   : > { %s7915_s9 = smov 512   ;;  %s4572_s5 = sshll.u32 %s5734_s23, 2 }
  0x3b   : > { %4600 = dma.hbm_to_vmem [thread:$0]  (!%p4598_p0), %s170_s15, 32768, %s172_s3, %s159_s14, %s7915_s9, %s7915_s9, %s7914_s12  }
  0x3c   : > { %s207_s18 = scalar_lea.vmem [#allocation7], %s4571_s20  ;;  %s211_s7 = scalar_lea.hbm %s7876_s2, %s4572_s5 }
  0x3d   : > { %s215_s24 = sshll.u32 %s207_s18, 4  ;;  %s213_s21 = sshll.u32 %s211_s7, 4  ;;  %s216_s24 = int_to_ptr.vmem [resolvable:$true] %s215_s24  ;;  %s214_s21 = int_to_ptr.hbm [resolvable:$true] %s213_s21 }
  0x3e   : > { %4606 = dma.hbm_to_vmem [thread:$0]  (!%p5866_p6), %s214_s21, 64, %s216_s24, %s5872_s4  }
  0x3f   : > { %224 = sbr.rel (%p5879_p9) target bundleno = 2317 (0x90d), region = 32  ;;  %s226_s11 = sand.u32 (!%p5879_p9), 1, %s5718_s19  }
  0x40   : > { %s4574_s1 = sshll.u32 (!%p5879_p9), %s226_s11, 11  ;;  %s227_s3 = scalar_lea.sflag (!%p5879_p9), [#allocation3], %s226_s11 }
  0x41   : > { %s5975_s12 = scalar_lea.vmem (!%p5879_p9), [#allocation2], %s4574_s1 }
  0x44   : > { %5677 = dma.done.wait (%p5913_p1), %s227_s3, 32768  }
  0x45   : > { %5679 = vsyncadd (%p5913_p1), %s227_s3, 4294934528  ;;  %s236_s14 = sand.u32 1, %s5884_s10   ;;  %s238_s20 = sand.u32 1, %s5706_s16  }
  0x46   : > { %s4575_s24 = sshll.u32 %s238_s20, 11  ;;  %s237_s30 = scalar_lea.sflag [#allocation6], %s236_s14 }
  0x47   : > { %s5985_s4 = scalar_lea.vmem [#allocation5], %s4575_s24 }
  0x48   : > { %5681 = dma.done.wait (%p5922_p7), %s237_s30, 32832  }
  0x49   : > { %5683 = vsyncadd (%p5922_p7), %s237_s30, 4294934464  ;;  %v733_v0 = vld [vmem:[%s5985_s4 + $0x5e0] sm:$0xff]  ;;  %v291_v62 = vld [vmem:[%s5975_s12 + $0x10] sm:$0xff]  ;;  %s4576_s6 = sshll.u32 %s238_s20, 2  ;;  %s281_s10 = sand.u32 1, %s5694_s13  }
  0x4a   : > { %v605_v1 = vld [vmem:[%s5985_s4 + $0x1e0] sm:$0xff]  ;;  %1229 = vmatpush.msra.mxu2 %v733_v0  ;;  %v734_v0 = vld [vmem:[%s5985_s4 + $0x5e8] sm:$0xff]  ;;  %s6140_s8 = scalar_lea.vmem [#allocation7], %s4576_s6  ;;  %s4577_s27 = sshll.u32 %s281_s10, 11 }
  0x4b   : > { %v729_v2 = vld [vmem:[%s5985_s4 + $0x5c0] sm:$0xff]  ;;  %811 = vmatpush.msra.mxu0 %v605_v1  ;;  %s6162_s15 = scalar_lea.vmem [#allocation8], %s4577_s27  ;;  %s7916_s9 = sld [smem:[#allocation16_spill]] }
  0x4c   : > { %v797_v3 = vld [vmem:[%s5985_s4 + $0x7e0] sm:$0xff]  ;;  %1230 = vmatpush.msra.mxu2 %v729_v2  ;;  %v292_v2 = vld [vmem:[%s5975_s12 + $0x18] sm:$0xff]  ;;  %s7917_s29 = sld [smem:[#allocation15_spill]]  ;;  %s4427_s3 = sshll.u32 %s6162_s15, 4  ;;  %s4428_s3 = int_to_ptr.vmem [resolvable:$true] %s4427_s3 }
  0x4d   : > { %v601_v4 = vld [vmem:[%s5985_s4 + $0x1c0] sm:$0xff]  ;;  %1438 = vmatpush.msra.mxu3 %v797_v3  ;;  %v606_v3 = vld [vmem:[%s5985_s4 + $0x1e8] sm:$0xff]  ;;  %s7918_s11 = sld [smem:[#allocation25_spill]]  ;;  %s4412_s14 = scalar_lea.sflag [#allocation4], %s281_s10 }
  0x4e   : > { %v669_v5 = vld [vmem:[%s5985_s4 + $0x3e0] sm:$0xff]  ;;  %812 = vmatpush.msra.mxu0 %v601_v4  ;;  %v798_v4 = vld [vmem:[%s5985_s4 + $0x7e8] sm:$0xff] }
  0x4f   : > { %1020 = vmatpush.msra.mxu1 %v669_v5  ;;  %v725_v6 = vld [vmem:[%s5985_s4 + $0x5a0] sm:$0xff] }
  0x50   : > { %v793_v7 = vld [vmem:[%s5985_s4 + $0x7c0] sm:$0xff]  ;;  %1231 = vmatpush.msra.mxu2 %v725_v6  ;;  %v290_v6 = vld [vmem:[%s5975_s12 + $0x8] sm:$0xff] }
  0x51   : > { %v597_v8 = vld [vmem:[%s5985_s4 + $0x1a0] sm:$0xff]  ;;  %1439 = vmatpush.msra.mxu3 %v793_v7  ;;  %v730_v7 = vld [vmem:[%s5985_s4 + $0x5c8] sm:$0xff]  ;;  %s4588_s5 = smul.u32 768, %s7916_s9 }
  0x52   : > { %v665_v9 = vld [vmem:[%s5985_s4 + $0x3c0] sm:$0xff]  ;;  %813 = vmatpush.msra.mxu0 %v597_v8  ;;  %v670_v8 = vld [vmem:[%s5985_s4 + $0x3e8] sm:$0xff]  ;;  %s4580_s18 = sshll.u32 %s7917_s29, 2 }
  0x53   : > { %v789_v10 = vld [vmem:[%s5985_s4 + $0x7a0] sm:$0xff]  ;;  %1021 = vmatpush.msra.mxu1 %v665_v9  ;;  %v602_v9 = vld [vmem:[%s5985_s4 + $0x1c8] sm:$0xff]  ;;  %s4424_s22 = sadd.s32 %s4588_s5, %s4580_s18  ;;  %s5612_s6 = scalar_lea.hbm %s7918_s11, 12288 }
  0x54   : > { %v721_v11 = vld [vmem:[%s5985_s4 + $0x580] sm:$0xff]  ;;  %1440 = vmatpush.msra.mxu3 %v789_v10  ;;  %v794_v10 = vld [vmem:[%s5985_s4 + $0x7c8] sm:$0xff]  ;;  %s4582_s26 = sshll.u32 %s4424_s22, 3 }
  0x55   : > { %v593_v12 = vld [vmem:[%s5985_s4 + $0x180] sm:$0xff]  ;;  %1232 = vmatpush.msra.mxu2 %v721_v11  ;;  %v666_v11 = vld [vmem:[%s5985_s4 + $0x3c8] sm:$0xff]  ;;  %s4426_s1 = scalar_lea.hbm %s7918_s11, %s4582_s26 }
  0x56   : > { %v661_v13 = vld [vmem:[%s5985_s4 + $0x3a0] sm:$0xff]  ;;  %814 = vmatpush.msra.mxu0 %v593_v12  ;;  %v295_v12 = vld [vmem:[%s5975_s12 + $0x30] sm:$0xff] }
  0x57   : > { %v785_v14 = vld [vmem:[%s5985_s4 + $0x780] sm:$0xff]  ;;  %1022 = vmatpush.msra.mxu1 %v661_v13 }
  0x58   : > { %v657_v15 = vld [vmem:[%s5985_s4 + $0x380] sm:$0xff]  ;;  %1441 = vmatpush.msra.mxu3 %v785_v14  ;;  %v296_v14 = vld [vmem:[%s5975_s12 + $0x38] sm:$0xff] }
  0x59   : > { %v717_v16 = vld [vmem:[%s5985_s4 + $0x560] sm:$0xff]  ;;  %1023 = vmatpush.msra.mxu1 %v657_v15  ;;  %v294_v15 = vld [vmem:[%s5975_s12 + $0x28] sm:$0xff] }
  0x5a   : > { %v589_v17 = vld [vmem:[%s5985_s4 + $0x160] sm:$0xff]  ;;  %1233 = vmatpush.msra.mxu2 %v717_v16  ;;  %v299_v16 = vld [vmem:[%s5975_s12 + $0x50] sm:$0xff] }
  0x5b   : > { %v781_v18 = vld [vmem:[%s5985_s4 + $0x760] sm:$0xff]  ;;  %815 = vmatpush.msra.mxu0 %v589_v17 }
  0x5c   : > { %v653_v19 = vld [vmem:[%s5985_s4 + $0x360] sm:$0xff]  ;;  %1442 = vmatpush.msra.mxu3 %v781_v18  ;;  %v300_v18 = vld [vmem:[%s5975_s12 + $0x58] sm:$0xff] }
  0x5d   : > { %v713_v20 = vld [vmem:[%s5985_s4 + $0x540] sm:$0xff]  ;;  %1024 = vmatpush.msra.mxu1 %v653_v19  ;;  %v298_v19 = vld [vmem:[%s5975_s12 + $0x48] sm:$0xff] }
  0x5e   : > { %v585_v21 = vld [vmem:[%s5985_s4 + $0x140] sm:$0xff]  ;;  %1234 = vmatpush.msra.mxu2 %v713_v20  ;;  %v303_v20 = vld [vmem:[%s5975_s12 + $0x70] sm:$0xff] }
  0x5f   : > { %v777_v22 = vld [vmem:[%s5985_s4 + $0x740] sm:$0xff]  ;;  %816 = vmatpush.msra.mxu0 %v585_v21 }
  0x60   : > { %v649_v23 = vld [vmem:[%s5985_s4 + $0x340] sm:$0xff]  ;;  %1443 = vmatpush.msra.mxu3 %v777_v22  ;;  %v304_v22 = vld [vmem:[%s5975_s12 + $0x78] sm:$0xff] }
  0x61   : > { %v709_v24 = vld [vmem:[%s5985_s4 + $0x520] sm:$0xff]  ;;  %1025 = vmatpush.msra.mxu1 %v649_v23  ;;  %v302_v23 = vld [vmem:[%s5975_s12 + $0x68] sm:$0xff] }
  0x62   : > { %v581_v25 = vld [vmem:[%s5985_s4 + $0x120] sm:$0xff]  ;;  %1235 = vmatpush.msra.mxu2 %v709_v24  ;;  %v307_v24 = vld [vmem:[%s5975_s12 + $0x90] sm:$0xff] }
  0x63   : > { %v773_v26 = vld [vmem:[%s5985_s4 + $0x720] sm:$0xff]  ;;  %817 = vmatpush.msra.mxu0 %v581_v25 }
  0x64   : > { %v645_v27 = vld [vmem:[%s5985_s4 + $0x320] sm:$0xff]  ;;  %1444 = vmatpush.msra.mxu3 %v773_v26  ;;  %v308_v26 = vld [vmem:[%s5975_s12 + $0x98] sm:$0xff] }
  0x65   : > { %v705_v28 = vld [vmem:[%s5985_s4 + $0x500] sm:$0xff]  ;;  %1026 = vmatpush.msra.mxu1 %v645_v27  ;;  %v726_v27 = vld [vmem:[%s5985_s4 + $0x5a8] sm:$0xff] }
  0x66   : > { %v577_v29 = vld [vmem:[%s5985_s4 + $0x100] sm:$0xff]  ;;  %1236 = vmatpush.msra.mxu2 %v705_v28  ;;  %v306_v28 = vld [vmem:[%s5975_s12 + $0x88] sm:$0xff] }
  0x67   : > { %v769_v30 = vld [vmem:[%s5985_s4 + $0x700] sm:$0xff]  ;;  %818 = vmatpush.msra.mxu0 %v577_v29  ;;  %v598_v29 = vld [vmem:[%s5985_s4 + $0x1a8] sm:$0xff] }
  0x68   : > { %v641_v31 = vld [vmem:[%s5985_s4 + $0x300] sm:$0xff]  ;;  %1445 = vmatpush.msra.mxu3 %v769_v30  ;;  %v790_v30 = vld [vmem:[%s5985_s4 + $0x7a8] sm:$0xff] }
  0x69   : > { %v701_v32 = vld [vmem:[%s5985_s4 + $0x4e0] sm:$0xff]  ;;  %1027 = vmatpush.msra.mxu1 %v641_v31  ;;  %v662_v31 = vld [vmem:[%s5985_s4 + $0x3a8] sm:$0xff] }
  0x6a   : > { %v573_v33 = vld [vmem:[%s5985_s4 + $0xe0] sm:$0xff]  ;;  %1237 = vmatpush.msra.mxu2 %v701_v32  ;;  %v311_v32 = vld [vmem:[%s5975_s12 + $0xb0] sm:$0xff] }
  0x6b   : > { %v765_v34 = vld [vmem:[%s5985_s4 + $0x6e0] sm:$0xff]  ;;  %819 = vmatpush.msra.mxu0 %v573_v33 }
  0x6c   : > { %v637_v35 = vld [vmem:[%s5985_s4 + $0x2e0] sm:$0xff]  ;;  %1446 = vmatpush.msra.mxu3 %v765_v34  ;;  %v312_v34 = vld [vmem:[%s5975_s12 + $0xb8] sm:$0xff] }
  0x6d   : > { %v697_v36 = vld [vmem:[%s5985_s4 + $0x4c0] sm:$0xff]  ;;  %1028 = vmatpush.msra.mxu1 %v637_v35  ;;  %v310_v35 = vld [vmem:[%s5975_s12 + $0xa8] sm:$0xff] }
  0x6e   : > { %v569_v37 = vld [vmem:[%s5985_s4 + $0xc0] sm:$0xff]  ;;  %1238 = vmatpush.msra.mxu2 %v697_v36  ;;  %v315_v36 = vld [vmem:[%s5975_s12 + $0xd0] sm:$0xff] }
  0x6f   : > { %v761_v38 = vld [vmem:[%s5985_s4 + $0x6c0] sm:$0xff]  ;;  %820 = vmatpush.msra.mxu0 %v569_v37 }
  0x70   : > { %v633_v39 = vld [vmem:[%s5985_s4 + $0x2c0] sm:$0xff]  ;;  %1447 = vmatpush.msra.mxu3 %v761_v38  ;;  %v316_v38 = vld [vmem:[%s5975_s12 + $0xd8] sm:$0xff] }
  0x71   : > { %v693_v40 = vld [vmem:[%s5985_s4 + $0x4a0] sm:$0xff]  ;;  %1029 = vmatpush.msra.mxu1 %v633_v39  ;;  %v314_v39 = vld [vmem:[%s5975_s12 + $0xc8] sm:$0xff] }
  0x72   : > { %v565_v41 = vld [vmem:[%s5985_s4 + $0xa0] sm:$0xff]  ;;  %1239 = vmatpush.msra.mxu2 %v693_v40  ;;  %v319_v40 = vld [vmem:[%s5975_s12 + $0xf0] sm:$0xff] }
  0x73   : > { %v757_v42 = vld [vmem:[%s5985_s4 + $0x6a0] sm:$0xff]  ;;  %821 = vmatpush.msra.mxu0 %v565_v41 }
  0x74   : > { %v629_v43 = vld [vmem:[%s5985_s4 + $0x2a0] sm:$0xff]  ;;  %1448 = vmatpush.msra.mxu3 %v757_v42  ;;  %v320_v42 = vld [vmem:[%s5975_s12 + $0xf8] sm:$0xff] }
  0x75   : > { %v689_v44 = vld [vmem:[%s5985_s4 + $0x480] sm:$0xff]  ;;  %1030 = vmatpush.msra.mxu1 %v629_v43  ;;  %v318_v43 = vld [vmem:[%s5975_s12 + $0xe8] sm:$0xff] }
  0x76   : > { %v561_v45 = vld [vmem:[%s5985_s4 + $0x80] sm:$0xff]  ;;  %1240 = vmatpush.msra.mxu2 %v689_v44  ;;  %v323_v44 = vld [vmem:[%s5975_s12 + $0x110] sm:$0xff] }
  0x77   : > { %v753_v46 = vld [vmem:[%s5985_s4 + $0x680] sm:$0xff]  ;;  %822 = vmatpush.msra.mxu0 %v561_v45 }
  0x78   : > { %v625_v47 = vld [vmem:[%s5985_s4 + $0x280] sm:$0xff]  ;;  %1449 = vmatpush.msra.mxu3 %v753_v46  ;;  %v324_v46 = vld [vmem:[%s5975_s12 + $0x118] sm:$0xff] }
  0x79   : > { %v685_v48 = vld [vmem:[%s5985_s4 + $0x460] sm:$0xff]  ;;  %1031 = vmatpush.msra.mxu1 %v625_v47  ;;  %v722_v47 = vld [vmem:[%s5985_s4 + $0x588] sm:$0xff] }
  0x7a   : > { %v557_v49 = vld [vmem:[%s5985_s4 + $0x60] sm:$0xff]  ;;  %1241 = vmatpush.msra.mxu2 %v685_v48  ;;  %v322_v48 = vld [vmem:[%s5975_s12 + $0x108] sm:$0xff] }
  0x7b   : > { %v749_v50 = vld [vmem:[%s5985_s4 + $0x660] sm:$0xff]  ;;  %823 = vmatpush.msra.mxu0 %v557_v49  ;;  %v594_v49 = vld [vmem:[%s5985_s4 + $0x188] sm:$0xff] }
  0x7c   : > { %v621_v51 = vld [vmem:[%s5985_s4 + $0x260] sm:$0xff]  ;;  %1450 = vmatpush.msra.mxu3 %v749_v50  ;;  %v786_v50 = vld [vmem:[%s5985_s4 + $0x788] sm:$0xff] }
  0x7d   : > { %v681_v52 = vld [vmem:[%s5985_s4 + $0x440] sm:$0xff]  ;;  %1032 = vmatpush.msra.mxu1 %v621_v51  ;;  %v658_v51 = vld [vmem:[%s5985_s4 + $0x388] sm:$0xff] }
  0x7e   : > { %v553_v53 = vld [vmem:[%s5985_s4 + $0x40] sm:$0xff]  ;;  %1242 = vmatpush.msra.mxu2 %v681_v52  ;;  %v327_v52 = vld [vmem:[%s5975_s12 + $0x130] sm:$0xff] }
  0x7f   : > { %v745_v54 = vld [vmem:[%s5985_s4 + $0x640] sm:$0xff]  ;;  %824 = vmatpush.msra.mxu0 %v553_v53 }
  0x80   : > { %v617_v55 = vld [vmem:[%s5985_s4 + $0x240] sm:$0xff]  ;;  %1451 = vmatpush.msra.mxu3 %v745_v54  ;;  %v328_v54 = vld [vmem:[%s5975_s12 + $0x138] sm:$0xff] }
  0x81   : > { %v677_v56 = vld [vmem:[%s5985_s4 + $0x420] sm:$0xff]  ;;  %1033 = vmatpush.msra.mxu1 %v617_v55  ;;  %v326_v55 = vld [vmem:[%s5975_s12 + $0x128] sm:$0xff] }
  0x82   : > { %v549_v57 = vld [vmem:[%s5985_s4 + $0x20] sm:$0xff]  ;;  %1243 = vmatpush.msra.mxu2 %v677_v56  ;;  %v331_v56 = vld [vmem:[%s5975_s12 + $0x150] sm:$0xff] }
  0x83   : > { %v741_v58 = vld [vmem:[%s5985_s4 + $0x620] sm:$0xff]  ;;  %825 = vmatpush.msra.mxu0 %v549_v57 }
  0x84   : > { %v613_v59 = vld [vmem:[%s5985_s4 + $0x220] sm:$0xff]  ;;  %1452 = vmatpush.msra.mxu3 %v741_v58  ;;  %v332_v58 = vld [vmem:[%s5975_s12 + $0x158] sm:$0xff] }
  0x85   : > { %v673_v60 = vld [vmem:[%s5985_s4 + $0x400] sm:$0xff]  ;;  %1034 = vmatpush.msra.mxu1 %v613_v59  ;;  %v330_v59 = vld [vmem:[%s5975_s12 + $0x148] sm:$0xff] }
  0x86   : > { %v545_v61 = vld [vmem:[%s5985_s4] sm:$0xff]  ;;  %1244 = vmatpush.msra.mxu2 %v673_v60  ;;  %v335_v60 = vld [vmem:[%s5975_s12 + $0x170] sm:$0xff] }
  0x87   : > { %v737_v63 = vld [vmem:[%s5985_s4 + $0x600] sm:$0xff]  ;;  %826 = vmatpush.msra.mxu0 %v545_v61  ;;  %1245 = vmatmul.f32.vlgmr.msra.gmra.mxu2 %v291_v62  ;;  %v336_v62 = vld [vmem:[%s5975_s12 + $0x178] sm:$0xff] }
  0x88   : > { %v289_v1 = vld [vmem:[%s5975_s12] sm:$0xff]  ;;  %1453 = vmatpush.msra.mxu3 %v737_v63  ;;  %2065 = vmatpush.msrb.mxu2 %v734_v0  ;;  %v334_v63 = vld [vmem:[%s5975_s12 + $0x168] sm:$0xff]  ;;  %v339_v0 = vld [vmem:[%s5975_s12 + $0x190] sm:$0xff] }
  0x89   : > { %v609_v5 = vld [vmem:[%s5985_s4 + $0x200] sm:$0xff]  ;;  %827 = vmatmul.f32.vlgmr.msra.gmra.mxu0 %v289_v1  ;;  %1454 = vmatmul.f32.vlgmr.msra.gmra.mxu3 %v292_v2  ;;  %v340_v2 = vld [vmem:[%s5975_s12 + $0x198] sm:$0xff] }
  0x8a   : > { %1647 = vmatpush.msrb.mxu0 %v606_v3  ;;  %2274 = vmatpush.msrb.mxu3 %v798_v4  ;;  %v293_v13 = vld [vmem:[%s5975_s12 + $0x20] sm:$0xff]  ;;  %v718_v3 = vld [vmem:[%s5985_s4 + $0x568] sm:$0xff] }
  0x8b   : > { %1035 = vmatpush.msra.mxu1 %v609_v5  ;;  %2066 = vmatpush.msrb.mxu2 %v730_v7  ;;  %v297_v17 = vld [vmem:[%s5975_s12 + $0x40] sm:$0xff]  ;;  %v338_v4 = vld [vmem:[%s5975_s12 + $0x188] sm:$0xff] }
  0x8c   : > { %1036 = vmatmul.f32.vlgmr.msra.gmra.mxu1 %v290_v6  ;;  %1648 = vmatpush.msrb.mxu0 %v602_v9  ;;  %v301_v21 = vld [vmem:[%s5975_s12 + $0x60] sm:$0xff]  ;;  %v590_v5 = vld [vmem:[%s5985_s4 + $0x168] sm:$0xff] }
  0x8d   : > { %1856 = vmatpush.msrb.mxu1 %v670_v8  ;;  %2275 = vmatpush.msrb.mxu3 %v794_v10  ;;  %v305_v25 = vld [vmem:[%s5975_s12 + $0x80] sm:$0xff]  ;;  %v782_v6 = vld [vmem:[%s5985_s4 + $0x768] sm:$0xff]  ;;  %v343_v8 = vld [vmem:[%s5975_s12 + $0x1b0] sm:$0xff] }
  0x8e   : > { %2067 = vmatpush.msrb.mxu2 %v726_v27  ;;  %1649 = vmatpush.msrb.mxu0 %v598_v29  ;;  %v309_v33 = vld [vmem:[%s5975_s12 + $0xa0] sm:$0xff]  ;;  %v654_v7 = vld [vmem:[%s5985_s4 + $0x368] sm:$0xff]  ;;  %v344_v10 = vld [vmem:[%s5975_s12 + $0x1b8] sm:$0xff] }
  0x8f   : > { %1857 = vmatpush.msrb.mxu1 %v666_v11  ;;  %1248 = vmatmul.f32.gmra.mxu2 %v295_v12  ;;  %v313_v37 = vld [vmem:[%s5975_s12 + $0xc0] sm:$0xff]  ;;  %v342_v11 = vld [vmem:[%s5975_s12 + $0x1a8] sm:$0xff]  ;;  %v347_v12 = vld [vmem:[%s5975_s12 + $0x1d0] sm:$0xff] }
  0x90   : > { %2276 = vmatpush.msrb.mxu3 %v790_v30  ;;  %v317_v41 = vld [vmem:[%s5975_s12 + $0xe0] sm:$0xff]  ;;  %2068 = vmatpush.msrb.mxu2 %v722_v47  ;;  %v714_v27 = vld [vmem:[%s5985_s4 + $0x548] sm:$0xff] }
  0x91   : > { %830 = vmatmul.f32.gmra.mxu0 %v293_v13  ;;  %1457 = vmatmul.f32.gmra.mxu3 %v296_v14  ;;  %v321_v45 = vld [vmem:[%s5975_s12 + $0x100] sm:$0xff]  ;;  %v348_v14 = vld [vmem:[%s5975_s12 + $0x1d8] sm:$0xff]  ;;  %v354_v29 = vld [vmem:[%s5975_s12 + $0x208] sm:$0xff] }
  0x92   : > { %1858 = vmatpush.msrb.mxu1 %v662_v31  ;;  %1650 = vmatpush.msrb.mxu0 %v594_v49  ;;  %v325_v53 = vld [vmem:[%s5975_s12 + $0x120] sm:$0xff]  ;;  %v586_v31 = vld [vmem:[%s5985_s4 + $0x148] sm:$0xff]  ;;  %v363_v49 = vld [vmem:[%s5975_s12 + $0x250] sm:$0xff] }
  0x93   : > { %2277 = vmatpush.msrb.mxu3 %v786_v50  ;;  %v329_v57 = vld [vmem:[%s5975_s12 + $0x140] sm:$0xff]  ;;  %2069 = vmatpush.msrb.mxu2 %v718_v3 }
  0x94   : > { %1039 = vmatmul.f32.gmra.mxu1 %v294_v15  ;;  %v333_v61 = vld [vmem:[%s5975_s12 + $0x160] sm:$0xff]  ;;  %1651 = vmatpush.msrb.mxu0 %v590_v5  ;;  %v346_v15 = vld [vmem:[%s5975_s12 + $0x1c8] sm:$0xff] }
  0x95   : > { %1859 = vmatpush.msrb.mxu1 %v658_v51  ;;  %v337_v1 = vld [vmem:[%s5975_s12 + $0x180] sm:$0xff]  ;;  %2278 = vmatpush.msrb.mxu3 %v782_v6 }
  0x96   : > { %v341_v9 = vld [vmem:[%s5975_s12 + $0x1a0] sm:$0xff]  ;;  %2070 = vmatpush.msrb.mxu2 %v714_v27  ;;  %1652 = vmatpush.msrb.mxu0 %v586_v31  ;;  %v376_v31 = vld [vmem:[%s5975_s12 + $0x2b8] sm:$0xff] }
  0x97   : > { %1251 = vmatmul.f32.gmra.mxu2 %v299_v16  ;;  %1860 = vmatpush.msrb.mxu1 %v654_v7  ;;  %v345_v13 = vld [vmem:[%s5975_s12 + $0x1c0] sm:$0xff]  ;;  %v351_v16 = vld [vmem:[%s5975_s12 + $0x1f0] sm:$0xff] }
  0x99   : > { %833 = vmatmul.f32.gmra.mxu0 %v297_v17  ;;  %1460 = vmatmul.f32.gmra.mxu3 %v300_v18  ;;  %v349_v17 = vld [vmem:[%s5975_s12 + $0x1e0] sm:$0xff]  ;;  %v352_v18 = vld [vmem:[%s5975_s12 + $0x1f8] sm:$0xff] }
  0x9c   : > { %1042 = vmatmul.f32.gmra.mxu1 %v298_v19  ;;  %v801_v19 = vld [vmem:[%s6140_s8] sm:$0xf] }
  0x9f   : > { %1254 = vmatmul.f32.gmra.mxu2 %v303_v20  ;;  %v350_v20 = vld [vmem:[%s5975_s12 + $0x1e8] sm:$0xff] }
  0xa1   : > { %836 = vmatmul.f32.gmra.mxu0 %v301_v21  ;;  %1463 = vmatmul.f32.gmra.mxu3 %v304_v22  ;;  %v6144_v21 = vperm.slane %v801_v19, 0  ;;  %v355_v22 = vld [vmem:[%s5975_s12 + $0x210] sm:$0xff]  ;;  %v582_v19 = vld [vmem:[%s5985_s4 + $0x128] sm:$0xff] }
  0xa2   : > { %1653 = vmatpush.msrb.mxu0 %v582_v19  ;;  %v392_v19 = vld [vmem:[%s5975_s12 + $0x338] sm:$0xff] }
  0xa4   : > { %1045 = vmatmul.f32.gmra.mxu1 %v302_v23 }
  0xa7   : > { %1257 = vmatmul.f32.gmra.mxu2 %v307_v24  ;;  %v353_v24 = vld [vmem:[%s5975_s12 + $0x200] sm:$0xff] }
  0xa9   : > { %839 = vmatmul.f32.gmra.mxu0 %v305_v25  ;;  %1466 = vmatmul.f32.gmra.mxu3 %v308_v26  ;;  %v356_v26 = vld [vmem:[%s5975_s12 + $0x218] sm:$0xff] }
  0xac   : > { %1048 = vmatmul.f32.gmra.mxu1 %v306_v28 }
  0xaf   : > { %1260 = vmatmul.f32.gmra.mxu2 %v311_v32  ;;  %v778_v32 = vld [vmem:[%s5985_s4 + $0x748] sm:$0xff] }
  0xb0   : > { %2279 = vmatpush.msrb.mxu3 %v778_v32 }
  0xb1   : > { %842 = vmatmul.f32.gmra.mxu0 %v309_v33  ;;  %1469 = vmatmul.f32.gmra.mxu3 %v312_v34 }
  0xb4   : > { %1051 = vmatmul.f32.gmra.mxu1 %v310_v35  ;;  %v650_v35 = vld [vmem:[%s5985_s4 + $0x348] sm:$0xff] }
  0xb5   : > { %1861 = vmatpush.msrb.mxu1 %v650_v35 }
  0xb7   : > { %1263 = vmatmul.f32.gmra.mxu2 %v315_v36 }
  0xb9   : > { %845 = vmatmul.f32.gmra.mxu0 %v313_v37  ;;  %1472 = vmatmul.f32.gmra.mxu3 %v316_v38  ;;  %v359_v37 = vld [vmem:[%s5975_s12 + $0x230] sm:$0xff] }
  0xbc   : > { %1054 = vmatmul.f32.gmra.mxu1 %v314_v39 }
  0xbf   : > { %1266 = vmatmul.f32.gmra.mxu2 %v319_v40  ;;  %v357_v40 = vld [vmem:[%s5975_s12 + $0x220] sm:$0xff] }
  0xc1   : > { %848 = vmatmul.f32.gmra.mxu0 %v317_v41  ;;  %1475 = vmatmul.f32.gmra.mxu3 %v320_v42  ;;  %v360_v42 = vld [vmem:[%s5975_s12 + $0x238] sm:$0xff] }
  0xc4   : > { %1057 = vmatmul.f32.gmra.mxu1 %v318_v43 }
  0xc7   : > { %1269 = vmatmul.f32.gmra.mxu2 %v323_v44  ;;  %v358_v44 = vld [vmem:[%s5975_s12 + $0x228] sm:$0xff] }
  0xc9   : > { %851 = vmatmul.f32.gmra.mxu0 %v321_v45  ;;  %1478 = vmatmul.f32.gmra.mxu3 %v324_v46 }
  0xcc   : > { %1060 = vmatmul.f32.gmra.mxu1 %v322_v48 }
  0xcf   : > { %1272 = vmatmul.f32.gmra.mxu2 %v327_v52  ;;  %v361_v52 = vld [vmem:[%s5975_s12 + $0x240] sm:$0xff] }
  0xd1   : > { %854 = vmatmul.f32.gmra.mxu0 %v325_v53  ;;  %1481 = vmatmul.f32.gmra.mxu3 %v328_v54  ;;  %v364_v54 = vld [vmem:[%s5975_s12 + $0x258] sm:$0xff] }
  0xd4   : > { %1063 = vmatmul.f32.gmra.mxu1 %v326_v55 }
  0xd7   : > { %1275 = vmatmul.f32.gmra.mxu2 %v331_v56  ;;  %v362_v56 = vld [vmem:[%s5975_s12 + $0x248] sm:$0xff] }
  0xd9   : > { %857 = vmatmul.f32.gmra.mxu0 %v329_v57  ;;  %1484 = vmatmul.f32.gmra.mxu3 %v332_v58 }
  0xdc   : > { %1066 = vmatmul.f32.gmra.mxu1 %v330_v59 }
  0xdf   : > { %1278 = vmatmul.f32.gmra.mxu2 %v335_v60 }
  0xe1   : > { %860 = vmatmul.f32.gmra.mxu0 %v333_v61  ;;  %1487 = vmatmul.f32.gmra.mxu3 %v336_v62  ;;  %v367_v61 = vld [vmem:[%s5975_s12 + $0x270] sm:$0xff] }
  0xe4   : > { %1069 = vmatmul.f32.gmra.mxu1 %v334_v63 }
  0xe7   : > { %1281 = vmatmul.f32.gmra.mxu2 %v339_v0  ;;  %v365_v0 = vld [vmem:[%s5975_s12 + $0x260] sm:$0xff] }
  0xe9   : > { %863 = vmatmul.f32.gmra.mxu0 %v337_v1  ;;  %1490 = vmatmul.f32.gmra.mxu3 %v340_v2  ;;  %v368_v2 = vld [vmem:[%s5975_s12 + $0x278] sm:$0xff] }
  0xec   : > { %1072 = vmatmul.f32.gmra.mxu1 %v338_v4  ;;  %v366_v4 = vld [vmem:[%s5975_s12 + $0x268] sm:$0xff] }
  0xef   : > { %1284 = vmatmul.f32.gmra.mxu2 %v343_v8 }
  0xf1   : > { %866 = vmatmul.f32.gmra.mxu0 %v341_v9  ;;  %1493 = vmatmul.f32.gmra.mxu3 %v344_v10  ;;  %v371_v9 = vld [vmem:[%s5975_s12 + $0x290] sm:$0xff] }
  0xf4   : > { %1075 = vmatmul.f32.gmra.mxu1 %v342_v11 }
  0xf7   : > { %1287 = vmatmul.f32.gmra.mxu2 %v347_v12  ;;  %v369_v12 = vld [vmem:[%s5975_s12 + $0x280] sm:$0xff] }
  0xf9   : > { %869 = vmatmul.f32.gmra.mxu0 %v345_v13  ;;  %1496 = vmatmul.f32.gmra.mxu3 %v348_v14  ;;  %v372_v14 = vld [vmem:[%s5975_s12 + $0x298] sm:$0xff] }
  0xfc   : > { %1078 = vmatmul.f32.gmra.mxu1 %v346_v15  ;;  %v710_v15 = vld [vmem:[%s5985_s4 + $0x528] sm:$0xff] }
  0xfd   : > { %2071 = vmatpush.msrb.mxu2 %v710_v15 }
  0xff   : > { %1290 = vmatmul.f32.gmra.mxu2 %v351_v16 }
 0x101   : > { %872 = vmatmul.f32.gmra.mxu0 %v349_v17  ;;  %1499 = vmatmul.f32.gmra.mxu3 %v352_v18  ;;  %v370_v17 = vld [vmem:[%s5975_s12 + $0x288] sm:$0xff] }
 0x104   : > { %1081 = vmatmul.f32.gmra.mxu1 %v350_v20  ;;  %v774_v20 = vld [vmem:[%s5985_s4 + $0x728] sm:$0xff] }
 0x105   : > { %2280 = vmatpush.msrb.mxu3 %v774_v20 }
 0x106   : > { %v828_v23 = vpop.f32.mrf.mxu0 }
 0x107   : > { %v829_v25 = vadd.f32 %v828_v23, %v6144_v21  ;;  %1293 = vmatmul.f32.gmra.mxu2 %v355_v22 }
 0x109   : > { %v1037_v28 = vpop.f32.mrf.mxu1  ;;  %875 = vmatmul.f32.gmra.mxu0 %v353_v24  ;;  %1502 = vmatmul.f32.gmra.mxu3 %v356_v26  ;;  %v646_v24 = vld [vmem:[%s5985_s4 + $0x328] sm:$0xff]  ;;  %v375_v26 = vld [vmem:[%s5975_s12 + $0x2b0] sm:$0xff] }
 0x10a   : > { %v1038_v30 = vadd.f32 %v1037_v28, %v829_v25  ;;  %v1246_v33 = vpop.f32.mrf.mxu2  ;;  %1862 = vmatpush.msrb.mxu1 %v646_v24 }
 0x10c   : > { %v1247_v34 = vadd.f32 %v1246_v33, %v1038_v30  ;;  %1084 = vmatmul.f32.gmra.mxu1 %v354_v29  ;;  %v1455_v36 = vpop.f32.mrf.mxu3  ;;  %v373_v29 = vld [vmem:[%s5975_s12 + $0x2a0] sm:$0xff]  ;;  %v374_v33 = vld [vmem:[%s5975_s12 + $0x2a8] sm:$0xff] }
 0x10e   : > { %v1456_v38 = vadd.f32 %v1455_v36, %v1247_v34  ;;  %v831_v39 = vpop.f32.mrf.mxu0 }
 0x10f   : > { %v832_v41 = vadd.f32 %v831_v39, %v6144_v21  ;;  %1296 = vmatmul.f32.gmra.mxu2 %v359_v37 }
 0x110   : > { %4155 = vst [vmem:[%s6162_s15] sm:$0xff] %v1456_v38  ;;  %v379_v38 = vld [vmem:[%s5975_s12 + $0x2d0] sm:$0xff] }
 0x111   : > { %v1040_v43 = vpop.f32.mrf.mxu1  ;;  %878 = vmatmul.f32.gmra.mxu0 %v357_v40  ;;  %1505 = vmatmul.f32.gmra.mxu3 %v360_v42 }
 0x112   : > { %v1041_v45 = vadd.f32 %v1040_v43, %v832_v41  ;;  %v1249_v46 = vpop.f32.mrf.mxu2  ;;  %v377_v41 = vld [vmem:[%s5975_s12 + $0x2c0] sm:$0xff]  ;;  %v380_v43 = vld [vmem:[%s5975_s12 + $0x2d8] sm:$0xff] }
 0x114   : > { %v1250_v47 = vadd.f32 %v1249_v46, %v1041_v45  ;;  %1087 = vmatmul.f32.gmra.mxu1 %v358_v44  ;;  %v1458_v48 = vpop.f32.mrf.mxu3  ;;  %v378_v45 = vld [vmem:[%s5975_s12 + $0x2c8] sm:$0xff] }
 0x116   : > { %v1459_v50 = vadd.f32 %v1458_v48, %v1250_v47  ;;  %v834_v51 = vpop.f32.mrf.mxu0 }
 0x117   : > { %v835_v53 = vadd.f32 %v834_v51, %v6144_v21  ;;  %1299 = vmatmul.f32.gmra.mxu2 %v363_v49 }
 0x118   : > { %4159 = vst [vmem:[%s6162_s15 + $0x20] sm:$0xff] %v1459_v50  ;;  %v383_v50 = vld [vmem:[%s5975_s12 + $0x2f0] sm:$0xff] }
 0x119   : > { %v1043_v55 = vpop.f32.mrf.mxu1  ;;  %881 = vmatmul.f32.gmra.mxu0 %v361_v52  ;;  %1508 = vmatmul.f32.gmra.mxu3 %v364_v54 }
 0x11a   : > { %v1044_v57 = vadd.f32 %v1043_v55, %v835_v53  ;;  %v1252_v58 = vpop.f32.mrf.mxu2  ;;  %v381_v53 = vld [vmem:[%s5975_s12 + $0x2e0] sm:$0xff]  ;;  %v384_v55 = vld [vmem:[%s5975_s12 + $0x2f8] sm:$0xff] }
 0x11c   : > { %v1253_v59 = vadd.f32 %v1252_v58, %v1044_v57  ;;  %1090 = vmatmul.f32.gmra.mxu1 %v362_v56  ;;  %v1461_v60 = vpop.f32.mrf.mxu3  ;;  %v382_v57 = vld [vmem:[%s5975_s12 + $0x2e8] sm:$0xff] }
 0x11e   : > { %v1462_v62 = vadd.f32 %v1461_v60, %v1253_v59  ;;  %v837_v63 = vpop.f32.mrf.mxu0 }
 0x11f   : > { %v838_v1 = vadd.f32 %v837_v63, %v6144_v21  ;;  %1302 = vmatmul.f32.gmra.mxu2 %v367_v61 }
 0x120   : > { %4163 = vst [vmem:[%s6162_s15 + $0x40] sm:$0xff] %v1462_v62  ;;  %v387_v62 = vld [vmem:[%s5975_s12 + $0x310] sm:$0xff] }
 0x121   : > { %v1046_v3 = vpop.f32.mrf.mxu1  ;;  %884 = vmatmul.f32.gmra.mxu0 %v365_v0  ;;  %1511 = vmatmul.f32.gmra.mxu3 %v368_v2 }
 0x122   : > { %v1047_v5 = vadd.f32 %v1046_v3, %v838_v1  ;;  %v1255_v6 = vpop.f32.mrf.mxu2  ;;  %v385_v1 = vld [vmem:[%s5975_s12 + $0x300] sm:$0xff]  ;;  %v388_v3 = vld [vmem:[%s5975_s12 + $0x318] sm:$0xff] }
 0x124   : > { %v1256_v7 = vadd.f32 %v1255_v6, %v1047_v5  ;;  %1093 = vmatmul.f32.gmra.mxu1 %v366_v4  ;;  %v1464_v8 = vpop.f32.mrf.mxu3  ;;  %v706_v4 = vld [vmem:[%s5985_s4 + $0x508] sm:$0xff] }
 0x125   : > { %v386_v6 = vld [vmem:[%s5975_s12 + $0x308] sm:$0xff]  ;;  %2072 = vmatpush.msrb.mxu2 %v706_v4 }
 0x126   : > { %v1465_v10 = vadd.f32 %v1464_v8, %v1256_v7  ;;  %v840_v11 = vpop.f32.mrf.mxu0  ;;  %v578_v8 = vld [vmem:[%s5985_s4 + $0x108] sm:$0xff] }
 0x127   : > { %v841_v13 = vadd.f32 %v840_v11, %v6144_v21  ;;  %1305 = vmatmul.f32.gmra.mxu2 %v371_v9  ;;  %v770_v9 = vld [vmem:[%s5985_s4 + $0x708] sm:$0xff]  ;;  %1654 = vmatpush.msrb.mxu0 %v578_v8  ;;  %v408_v8 = vld [vmem:[%s5975_s12 + $0x3b8] sm:$0xff] }
 0x128   : > { %4167 = vst [vmem:[%s6162_s15 + $0x60] sm:$0xff] %v1465_v10  ;;  %2281 = vmatpush.msrb.mxu3 %v770_v9 }
 0x129   : > { %v1049_v16 = vpop.f32.mrf.mxu1  ;;  %887 = vmatmul.f32.gmra.mxu0 %v369_v12  ;;  %1514 = vmatmul.f32.gmra.mxu3 %v372_v14  ;;  %v642_v12 = vld [vmem:[%s5985_s4 + $0x308] sm:$0xff]  ;;  %v391_v14 = vld [vmem:[%s5975_s12 + $0x330] sm:$0xff] }
 0x12a   : > { %v1050_v18 = vadd.f32 %v1049_v16, %v841_v13  ;;  %v1258_v22 = vpop.f32.mrf.mxu2  ;;  %1863 = vmatpush.msrb.mxu1 %v642_v12 }
 0x12c   : > { %v1259_v23 = vadd.f32 %v1258_v22, %v1050_v18  ;;  %1096 = vmatmul.f32.gmra.mxu1 %v370_v17  ;;  %v1467_v25 = vpop.f32.mrf.mxu3  ;;  %v389_v17 = vld [vmem:[%s5975_s12 + $0x320] sm:$0xff]  ;;  %v390_v22 = vld [vmem:[%s5975_s12 + $0x328] sm:$0xff] }
 0x12e   : > { %v1468_v27 = vadd.f32 %v1467_v25, %v1259_v23  ;;  %v843_v28 = vpop.f32.mrf.mxu0 }
 0x12f   : > { %v844_v30 = vadd.f32 %v843_v28, %v6144_v21  ;;  %1308 = vmatmul.f32.gmra.mxu2 %v375_v26 }
 0x130   : > { %4171 = vst [vmem:[%s6162_s15 + $0x80] sm:$0xff] %v1468_v27  ;;  %v395_v27 = vld [vmem:[%s5975_s12 + $0x350] sm:$0xff] }
 0x131   : > { %v1052_v32 = vpop.f32.mrf.mxu1  ;;  %890 = vmatmul.f32.gmra.mxu0 %v373_v29  ;;  %1517 = vmatmul.f32.gmra.mxu3 %v376_v31 }
 0x132   : > { %v1053_v34 = vadd.f32 %v1052_v32, %v844_v30  ;;  %v1261_v35 = vpop.f32.mrf.mxu2  ;;  %v393_v30 = vld [vmem:[%s5975_s12 + $0x340] sm:$0xff]  ;;  %v396_v32 = vld [vmem:[%s5975_s12 + $0x358] sm:$0xff] }
 0x134   : > { %v1262_v36 = vadd.f32 %v1261_v35, %v1053_v34  ;;  %1099 = vmatmul.f32.gmra.mxu1 %v374_v33  ;;  %v1470_v37 = vpop.f32.mrf.mxu3  ;;  %v394_v34 = vld [vmem:[%s5975_s12 + $0x348] sm:$0xff] }
 0x136   : > { %v1471_v39 = vadd.f32 %v1470_v37, %v1262_v36  ;;  %v846_v40 = vpop.f32.mrf.mxu0 }
 0x137   : > { %v847_v42 = vadd.f32 %v846_v40, %v6144_v21  ;;  %1311 = vmatmul.f32.gmra.mxu2 %v379_v38 }
 0x138   : > { %4175 = vst [vmem:[%s6162_s15 + $0xa0] sm:$0xff] %v1471_v39  ;;  %v399_v39 = vld [vmem:[%s5975_s12 + $0x370] sm:$0xff] }
 0x139   : > { %v1055_v44 = vpop.f32.mrf.mxu1  ;;  %893 = vmatmul.f32.gmra.mxu0 %v377_v41  ;;  %1520 = vmatmul.f32.gmra.mxu3 %v380_v43 }
 0x13a   : > { %v1056_v46 = vadd.f32 %v1055_v44, %v847_v42  ;;  %v1264_v47 = vpop.f32.mrf.mxu2  ;;  %v397_v42 = vld [vmem:[%s5975_s12 + $0x360] sm:$0xff]  ;;  %v400_v44 = vld [vmem:[%s5975_s12 + $0x378] sm:$0xff] }
 0x13c   : > { %v1265_v48 = vadd.f32 %v1264_v47, %v1056_v46  ;;  %1102 = vmatmul.f32.gmra.mxu1 %v378_v45  ;;  %v1473_v49 = vpop.f32.mrf.mxu3  ;;  %v398_v46 = vld [vmem:[%s5975_s12 + $0x368] sm:$0xff] }
 0x13e   : > { %v1474_v51 = vadd.f32 %v1473_v49, %v1265_v48  ;;  %v849_v52 = vpop.f32.mrf.mxu0 }
 0x13f   : > { %v850_v54 = vadd.f32 %v849_v52, %v6144_v21  ;;  %1314 = vmatmul.f32.gmra.mxu2 %v383_v50 }
 0x140   : > { %4179 = vst [vmem:[%s6162_s15 + $0xc0] sm:$0xff] %v1474_v51  ;;  %v403_v51 = vld [vmem:[%s5975_s12 + $0x390] sm:$0xff] }
 0x141   : > { %v1058_v56 = vpop.f32.mrf.mxu1  ;;  %896 = vmatmul.f32.gmra.mxu0 %v381_v53  ;;  %1523 = vmatmul.f32.gmra.mxu3 %v384_v55 }
 0x142   : > { %v1059_v58 = vadd.f32 %v1058_v56, %v850_v54  ;;  %v1267_v59 = vpop.f32.mrf.mxu2  ;;  %v401_v54 = vld [vmem:[%s5975_s12 + $0x380] sm:$0xff]  ;;  %v404_v56 = vld [vmem:[%s5975_s12 + $0x398] sm:$0xff] }
 0x144   : > { %v1268_v60 = vadd.f32 %v1267_v59, %v1059_v58  ;;  %1105 = vmatmul.f32.gmra.mxu1 %v382_v57  ;;  %v1476_v61 = vpop.f32.mrf.mxu3  ;;  %v702_v57 = vld [vmem:[%s5985_s4 + $0x4e8] sm:$0xff] }
 0x145   : > { %v402_v59 = vld [vmem:[%s5975_s12 + $0x388] sm:$0xff]  ;;  %2073 = vmatpush.msrb.mxu2 %v702_v57 }
 0x146   : > { %v1477_v63 = vadd.f32 %v1476_v61, %v1268_v60  ;;  %v852_v0 = vpop.f32.mrf.mxu0  ;;  %v574_v61 = vld [vmem:[%s5985_s4 + $0xe8] sm:$0xff] }
 0x147   : > { %v853_v2 = vadd.f32 %v852_v0, %v6144_v21  ;;  %1317 = vmatmul.f32.gmra.mxu2 %v387_v62  ;;  %v766_v62 = vld [vmem:[%s5985_s4 + $0x6e8] sm:$0xff]  ;;  %1655 = vmatpush.msrb.mxu0 %v574_v61  ;;  %v424_v61 = vld [vmem:[%s5975_s12 + $0x438] sm:$0xff] }
 0x148   : > { %4183 = vst [vmem:[%s6162_s15 + $0xe0] sm:$0xff] %v1477_v63  ;;  %2282 = vmatpush.msrb.mxu3 %v766_v62 }
 0x149   : > { %v1061_v5 = vpop.f32.mrf.mxu1  ;;  %899 = vmatmul.f32.gmra.mxu0 %v385_v1  ;;  %1526 = vmatmul.f32.gmra.mxu3 %v388_v3  ;;  %v638_v1 = vld [vmem:[%s5985_s4 + $0x2e8] sm:$0xff]  ;;  %v407_v3 = vld [vmem:[%s5975_s12 + $0x3b0] sm:$0xff] }
 0x14a   : > { %v1062_v7 = vadd.f32 %v1061_v5, %v853_v2  ;;  %v1270_v10 = vpop.f32.mrf.mxu2  ;;  %1864 = vmatpush.msrb.mxu1 %v638_v1 }
 0x14c   : > { %v1271_v11 = vadd.f32 %v1270_v10, %v1062_v7  ;;  %1108 = vmatmul.f32.gmra.mxu1 %v386_v6  ;;  %v1479_v13 = vpop.f32.mrf.mxu3  ;;  %v405_v6 = vld [vmem:[%s5975_s12 + $0x3a0] sm:$0xff]  ;;  %v406_v10 = vld [vmem:[%s5975_s12 + $0x3a8] sm:$0xff] }
 0x14e   : > { %v1480_v15 = vadd.f32 %v1479_v13, %v1271_v11  ;;  %v855_v16 = vpop.f32.mrf.mxu0 }
 0x14f   : > { %v856_v18 = vadd.f32 %v855_v16, %v6144_v21  ;;  %1320 = vmatmul.f32.gmra.mxu2 %v391_v14 }
 0x150   : > { %4187 = vst [vmem:[%s6162_s15 + $0x100] sm:$0xff] %v1480_v15  ;;  %v411_v15 = vld [vmem:[%s5975_s12 + $0x3d0] sm:$0xff] }
 0x151   : > { %v1064_v20 = vpop.f32.mrf.mxu1  ;;  %902 = vmatmul.f32.gmra.mxu0 %v389_v17  ;;  %1529 = vmatmul.f32.gmra.mxu3 %v392_v19 }
 0x152   : > { %v1065_v23 = vadd.f32 %v1064_v20, %v856_v18  ;;  %v1273_v24 = vpop.f32.mrf.mxu2  ;;  %v409_v18 = vld [vmem:[%s5975_s12 + $0x3c0] sm:$0xff]  ;;  %v412_v20 = vld [vmem:[%s5975_s12 + $0x3d8] sm:$0xff] }
 0x154   : > { %v1274_v25 = vadd.f32 %v1273_v24, %v1065_v23  ;;  %1111 = vmatmul.f32.gmra.mxu1 %v390_v22  ;;  %v1482_v26 = vpop.f32.mrf.mxu3  ;;  %v410_v23 = vld [vmem:[%s5975_s12 + $0x3c8] sm:$0xff] }
 0x156   : > { %v1483_v28 = vadd.f32 %v1482_v26, %v1274_v25  ;;  %v858_v29 = vpop.f32.mrf.mxu0 }
 0x157   : > { %v859_v31 = vadd.f32 %v858_v29, %v6144_v21  ;;  %1323 = vmatmul.f32.gmra.mxu2 %v395_v27 }
 0x158   : > { %4191 = vst [vmem:[%s6162_s15 + $0x120] sm:$0xff] %v1483_v28  ;;  %v415_v28 = vld [vmem:[%s5975_s12 + $0x3f0] sm:$0xff] }
 0x159   : > { %v1067_v33 = vpop.f32.mrf.mxu1  ;;  %905 = vmatmul.f32.gmra.mxu0 %v393_v30  ;;  %1532 = vmatmul.f32.gmra.mxu3 %v396_v32 }
 0x15a   : > { %v1068_v35 = vadd.f32 %v1067_v33, %v859_v31  ;;  %v1276_v36 = vpop.f32.mrf.mxu2  ;;  %v413_v31 = vld [vmem:[%s5975_s12 + $0x3e0] sm:$0xff]  ;;  %v416_v33 = vld [vmem:[%s5975_s12 + $0x3f8] sm:$0xff] }
 0x15c   : > { %v1277_v37 = vadd.f32 %v1276_v36, %v1068_v35  ;;  %1114 = vmatmul.f32.gmra.mxu1 %v394_v34  ;;  %v1485_v38 = vpop.f32.mrf.mxu3  ;;  %v414_v35 = vld [vmem:[%s5975_s12 + $0x3e8] sm:$0xff] }
 0x15e   : > { %v1486_v40 = vadd.f32 %v1485_v38, %v1277_v37  ;;  %v861_v41 = vpop.f32.mrf.mxu0 }
 0x15f   : > { %v862_v43 = vadd.f32 %v861_v41, %v6144_v21  ;;  %1326 = vmatmul.f32.gmra.mxu2 %v399_v39 }
 0x160   : > { %4195 = vst [vmem:[%s6162_s15 + $0x140] sm:$0xff] %v1486_v40  ;;  %v419_v40 = vld [vmem:[%s5975_s12 + $0x410] sm:$0xff] }
 0x161   : > { %v1070_v45 = vpop.f32.mrf.mxu1  ;;  %908 = vmatmul.f32.gmra.mxu0 %v397_v42  ;;  %1535 = vmatmul.f32.gmra.mxu3 %v400_v44 }
 0x162   : > { %v1071_v47 = vadd.f32 %v1070_v45, %v862_v43  ;;  %v1279_v48 = vpop.f32.mrf.mxu2  ;;  %v417_v43 = vld [vmem:[%s5975_s12 + $0x400] sm:$0xff]  ;;  %v420_v45 = vld [vmem:[%s5975_s12 + $0x418] sm:$0xff] }
 0x164   : > { %v1280_v49 = vadd.f32 %v1279_v48, %v1071_v47  ;;  %1117 = vmatmul.f32.gmra.mxu1 %v398_v46  ;;  %v1488_v50 = vpop.f32.mrf.mxu3  ;;  %v698_v46 = vld [vmem:[%s5985_s4 + $0x4c8] sm:$0xff] }
 0x165   : > { %v418_v48 = vld [vmem:[%s5975_s12 + $0x408] sm:$0xff]  ;;  %2074 = vmatpush.msrb.mxu2 %v698_v46 }
 0x166   : > { %v1489_v52 = vadd.f32 %v1488_v50, %v1280_v49  ;;  %v864_v53 = vpop.f32.mrf.mxu0  ;;  %v570_v50 = vld [vmem:[%s5985_s4 + $0xc8] sm:$0xff] }
 0x167   : > { %v865_v55 = vadd.f32 %v864_v53, %v6144_v21  ;;  %1329 = vmatmul.f32.gmra.mxu2 %v403_v51  ;;  %v762_v51 = vld [vmem:[%s5985_s4 + $0x6c8] sm:$0xff]  ;;  %1656 = vmatpush.msrb.mxu0 %v570_v50  ;;  %v440_v50 = vld [vmem:[%s5975_s12 + $0x4b8] sm:$0xff] }
 0x168   : > { %4199 = vst [vmem:[%s6162_s15 + $0x160] sm:$0xff] %v1489_v52  ;;  %2283 = vmatpush.msrb.mxu3 %v762_v51 }
 0x169   : > { %v1073_v58 = vpop.f32.mrf.mxu1  ;;  %911 = vmatmul.f32.gmra.mxu0 %v401_v54  ;;  %1538 = vmatmul.f32.gmra.mxu3 %v404_v56  ;;  %v634_v54 = vld [vmem:[%s5985_s4 + $0x2c8] sm:$0xff]  ;;  %v423_v56 = vld [vmem:[%s5975_s12 + $0x430] sm:$0xff] }
 0x16a   : > { %v1074_v60 = vadd.f32 %v1073_v58, %v865_v55  ;;  %v1282_v63 = vpop.f32.mrf.mxu2  ;;  %1865 = vmatpush.msrb.mxu1 %v634_v54 }
 0x16c   : > { %v1283_v0 = vadd.f32 %v1282_v63, %v1074_v60  ;;  %1120 = vmatmul.f32.gmra.mxu1 %v402_v59  ;;  %v1491_v2 = vpop.f32.mrf.mxu3  ;;  %v421_v59 = vld [vmem:[%s5975_s12 + $0x420] sm:$0xff]  ;;  %v422_v63 = vld [vmem:[%s5975_s12 + $0x428] sm:$0xff] }
 0x16e   : > { %v1492_v4 = vadd.f32 %v1491_v2, %v1283_v0  ;;  %v867_v5 = vpop.f32.mrf.mxu0 }
 0x16f   : > { %v868_v7 = vadd.f32 %v867_v5, %v6144_v21  ;;  %1332 = vmatmul.f32.gmra.mxu2 %v407_v3 }
 0x170   : > { %4203 = vst [vmem:[%s6162_s15 + $0x180] sm:$0xff] %v1492_v4  ;;  %v427_v4 = vld [vmem:[%s5975_s12 + $0x450] sm:$0xff] }
 0x171   : > { %v1076_v9 = vpop.f32.mrf.mxu1  ;;  %914 = vmatmul.f32.gmra.mxu0 %v405_v6  ;;  %1541 = vmatmul.f32.gmra.mxu3 %v408_v8 }
 0x172   : > { %v1077_v11 = vadd.f32 %v1076_v9, %v868_v7  ;;  %v1285_v12 = vpop.f32.mrf.mxu2  ;;  %v425_v7 = vld [vmem:[%s5975_s12 + $0x440] sm:$0xff]  ;;  %v428_v9 = vld [vmem:[%s5975_s12 + $0x458] sm:$0xff] }
 0x174   : > { %v1286_v13 = vadd.f32 %v1285_v12, %v1077_v11  ;;  %1123 = vmatmul.f32.gmra.mxu1 %v406_v10  ;;  %v1494_v14 = vpop.f32.mrf.mxu3  ;;  %v426_v11 = vld [vmem:[%s5975_s12 + $0x448] sm:$0xff] }
 0x176   : > { %v1495_v16 = vadd.f32 %v1494_v14, %v1286_v13  ;;  %v870_v17 = vpop.f32.mrf.mxu0 }
 0x177   : > { %v871_v19 = vadd.f32 %v870_v17, %v6144_v21  ;;  %1335 = vmatmul.f32.gmra.mxu2 %v411_v15 }
 0x178   : > { %4207 = vst [vmem:[%s6162_s15 + $0x1a0] sm:$0xff] %v1495_v16  ;;  %v431_v16 = vld [vmem:[%s5975_s12 + $0x470] sm:$0xff] }
 0x179   : > { %v1079_v22 = vpop.f32.mrf.mxu1  ;;  %917 = vmatmul.f32.gmra.mxu0 %v409_v18  ;;  %1544 = vmatmul.f32.gmra.mxu3 %v412_v20 }
 0x17a   : > { %v1080_v24 = vadd.f32 %v1079_v22, %v871_v19  ;;  %v1288_v25 = vpop.f32.mrf.mxu2  ;;  %v429_v19 = vld [vmem:[%s5975_s12 + $0x460] sm:$0xff]  ;;  %v432_v22 = vld [vmem:[%s5975_s12 + $0x478] sm:$0xff] }
 0x17c   : > { %v1289_v26 = vadd.f32 %v1288_v25, %v1080_v24  ;;  %1126 = vmatmul.f32.gmra.mxu1 %v410_v23  ;;  %v1497_v27 = vpop.f32.mrf.mxu3  ;;  %v430_v24 = vld [vmem:[%s5975_s12 + $0x468] sm:$0xff] }
 0x17e   : > { %v1498_v29 = vadd.f32 %v1497_v27, %v1289_v26  ;;  %v873_v30 = vpop.f32.mrf.mxu0 }
 0x17f   : > { %v874_v32 = vadd.f32 %v873_v30, %v6144_v21  ;;  %1338 = vmatmul.f32.gmra.mxu2 %v415_v28 }
 0x180   : > { %4211 = vst [vmem:[%s6162_s15 + $0x1c0] sm:$0xff] %v1498_v29  ;;  %v435_v29 = vld [vmem:[%s5975_s12 + $0x490] sm:$0xff] }
 0x181   : > { %v1082_v34 = vpop.f32.mrf.mxu1  ;;  %920 = vmatmul.f32.gmra.mxu0 %v413_v31  ;;  %1547 = vmatmul.f32.gmra.mxu3 %v416_v33 }
 0x182   : > { %v1083_v36 = vadd.f32 %v1082_v34, %v874_v32  ;;  %v1291_v37 = vpop.f32.mrf.mxu2  ;;  %v433_v32 = vld [vmem:[%s5975_s12 + $0x480] sm:$0xff]  ;;  %v436_v34 = vld [vmem:[%s5975_s12 + $0x498] sm:$0xff] }
 0x184   : > { %v1292_v38 = vadd.f32 %v1291_v37, %v1083_v36  ;;  %1129 = vmatmul.f32.gmra.mxu1 %v414_v35  ;;  %v1500_v39 = vpop.f32.mrf.mxu3  ;;  %v694_v35 = vld [vmem:[%s5985_s4 + $0x4a8] sm:$0xff] }
 0x185   : > { %v434_v37 = vld [vmem:[%s5975_s12 + $0x488] sm:$0xff]  ;;  %2075 = vmatpush.msrb.mxu2 %v694_v35 }
 0x186   : > { %v1501_v41 = vadd.f32 %v1500_v39, %v1292_v38  ;;  %v876_v42 = vpop.f32.mrf.mxu0  ;;  %v566_v39 = vld [vmem:[%s5985_s4 + $0xa8] sm:$0xff] }
 0x187   : > { %v877_v44 = vadd.f32 %v876_v42, %v6144_v21  ;;  %1341 = vmatmul.f32.gmra.mxu2 %v419_v40  ;;  %v758_v40 = vld [vmem:[%s5985_s4 + $0x6a8] sm:$0xff]  ;;  %1657 = vmatpush.msrb.mxu0 %v566_v39  ;;  %v456_v39 = vld [vmem:[%s5975_s12 + $0x538] sm:$0xff] }
 0x188   : > { %4215 = vst [vmem:[%s6162_s15 + $0x1e0] sm:$0xff] %v1501_v41  ;;  %2284 = vmatpush.msrb.mxu3 %v758_v40 }
 0x189   : > { %v1085_v47 = vpop.f32.mrf.mxu1  ;;  %923 = vmatmul.f32.gmra.mxu0 %v417_v43  ;;  %1550 = vmatmul.f32.gmra.mxu3 %v420_v45  ;;  %v630_v43 = vld [vmem:[%s5985_s4 + $0x2a8] sm:$0xff]  ;;  %v439_v45 = vld [vmem:[%s5975_s12 + $0x4b0] sm:$0xff] }
 0x18a   : > { %v1086_v49 = vadd.f32 %v1085_v47, %v877_v44  ;;  %v1294_v52 = vpop.f32.mrf.mxu2  ;;  %1866 = vmatpush.msrb.mxu1 %v630_v43 }
 0x18c   : > { %v1295_v53 = vadd.f32 %v1294_v52, %v1086_v49  ;;  %1132 = vmatmul.f32.gmra.mxu1 %v418_v48  ;;  %v1503_v55 = vpop.f32.mrf.mxu3  ;;  %v437_v48 = vld [vmem:[%s5975_s12 + $0x4a0] sm:$0xff]  ;;  %v438_v52 = vld [vmem:[%s5975_s12 + $0x4a8] sm:$0xff] }
 0x18e   : > { %v1504_v57 = vadd.f32 %v1503_v55, %v1295_v53  ;;  %v879_v58 = vpop.f32.mrf.mxu0 }
 0x18f   : > { %v880_v60 = vadd.f32 %v879_v58, %v6144_v21  ;;  %1344 = vmatmul.f32.gmra.mxu2 %v423_v56 }
 0x190   : > { %4219 = vst [vmem:[%s6162_s15 + $0x200] sm:$0xff] %v1504_v57  ;;  %v443_v57 = vld [vmem:[%s5975_s12 + $0x4d0] sm:$0xff] }
 0x191   : > { %v1088_v62 = vpop.f32.mrf.mxu1  ;;  %926 = vmatmul.f32.gmra.mxu0 %v421_v59  ;;  %1553 = vmatmul.f32.gmra.mxu3 %v424_v61 }
 0x192   : > { %v1089_v0 = vadd.f32 %v1088_v62, %v880_v60  ;;  %v1297_v1 = vpop.f32.mrf.mxu2  ;;  %v441_v60 = vld [vmem:[%s5975_s12 + $0x4c0] sm:$0xff]  ;;  %v444_v62 = vld [vmem:[%s5975_s12 + $0x4d8] sm:$0xff] }
 0x194   : > { %v1298_v2 = vadd.f32 %v1297_v1, %v1089_v0  ;;  %1135 = vmatmul.f32.gmra.mxu1 %v422_v63  ;;  %v1506_v3 = vpop.f32.mrf.mxu3  ;;  %v442_v0 = vld [vmem:[%s5975_s12 + $0x4c8] sm:$0xff] }
 0x196   : > { %v1507_v5 = vadd.f32 %v1506_v3, %v1298_v2  ;;  %v882_v6 = vpop.f32.mrf.mxu0 }
 0x197   : > { %v883_v8 = vadd.f32 %v882_v6, %v6144_v21  ;;  %1347 = vmatmul.f32.gmra.mxu2 %v427_v4 }
 0x198   : > { %4223 = vst [vmem:[%s6162_s15 + $0x220] sm:$0xff] %v1507_v5  ;;  %v447_v5 = vld [vmem:[%s5975_s12 + $0x4f0] sm:$0xff] }
 0x199   : > { %v1091_v10 = vpop.f32.mrf.mxu1  ;;  %929 = vmatmul.f32.gmra.mxu0 %v425_v7  ;;  %1556 = vmatmul.f32.gmra.mxu3 %v428_v9 }
 0x19a   : > { %v1092_v12 = vadd.f32 %v1091_v10, %v883_v8  ;;  %v1300_v13 = vpop.f32.mrf.mxu2  ;;  %v445_v8 = vld [vmem:[%s5975_s12 + $0x4e0] sm:$0xff]  ;;  %v448_v10 = vld [vmem:[%s5975_s12 + $0x4f8] sm:$0xff] }
 0x19c   : > { %v1301_v14 = vadd.f32 %v1300_v13, %v1092_v12  ;;  %1138 = vmatmul.f32.gmra.mxu1 %v426_v11  ;;  %v1509_v15 = vpop.f32.mrf.mxu3  ;;  %v446_v12 = vld [vmem:[%s5975_s12 + $0x4e8] sm:$0xff] }
 0x19e   : > { %v1510_v17 = vadd.f32 %v1509_v15, %v1301_v14  ;;  %v885_v18 = vpop.f32.mrf.mxu0 }
 0x19f   : > { %v886_v20 = vadd.f32 %v885_v18, %v6144_v21  ;;  %1350 = vmatmul.f32.gmra.mxu2 %v431_v16 }
 0x1a0   : > { %4227 = vst [vmem:[%s6162_s15 + $0x240] sm:$0xff] %v1510_v17  ;;  %v451_v17 = vld [vmem:[%s5975_s12 + $0x510] sm:$0xff] }
 0x1a1   : > { %v1094_v23 = vpop.f32.mrf.mxu1  ;;  %932 = vmatmul.f32.gmra.mxu0 %v429_v19  ;;  %1559 = vmatmul.f32.gmra.mxu3 %v432_v22 }
 0x1a2   : > { %v1095_v25 = vadd.f32 %v1094_v23, %v886_v20  ;;  %v1303_v26 = vpop.f32.mrf.mxu2  ;;  %v449_v20 = vld [vmem:[%s5975_s12 + $0x500] sm:$0xff]  ;;  %v452_v23 = vld [vmem:[%s5975_s12 + $0x518] sm:$0xff] }
 0x1a4   : > { %v1304_v27 = vadd.f32 %v1303_v26, %v1095_v25  ;;  %1141 = vmatmul.f32.gmra.mxu1 %v430_v24  ;;  %v1512_v28 = vpop.f32.mrf.mxu3  ;;  %v690_v24 = vld [vmem:[%s5985_s4 + $0x488] sm:$0xff] }
 0x1a5   : > { %v450_v26 = vld [vmem:[%s5975_s12 + $0x508] sm:$0xff]  ;;  %2076 = vmatpush.msrb.mxu2 %v690_v24 }
 0x1a6   : > { %v1513_v30 = vadd.f32 %v1512_v28, %v1304_v27  ;;  %v888_v31 = vpop.f32.mrf.mxu0  ;;  %v562_v28 = vld [vmem:[%s5985_s4 + $0x88] sm:$0xff] }
 0x1a7   : > { %v889_v33 = vadd.f32 %v888_v31, %v6144_v21  ;;  %1353 = vmatmul.f32.gmra.mxu2 %v435_v29  ;;  %v754_v29 = vld [vmem:[%s5985_s4 + $0x688] sm:$0xff]  ;;  %1658 = vmatpush.msrb.mxu0 %v562_v28  ;;  %v472_v28 = vld [vmem:[%s5975_s12 + $0x5b8] sm:$0xff] }
 0x1a8   : > { %4231 = vst [vmem:[%s6162_s15 + $0x260] sm:$0xff] %v1513_v30  ;;  %2285 = vmatpush.msrb.mxu3 %v754_v29 }
 0x1a9   : > { %v1097_v36 = vpop.f32.mrf.mxu1  ;;  %935 = vmatmul.f32.gmra.mxu0 %v433_v32  ;;  %1562 = vmatmul.f32.gmra.mxu3 %v436_v34  ;;  %v626_v32 = vld [vmem:[%s5985_s4 + $0x288] sm:$0xff]  ;;  %v455_v34 = vld [vmem:[%s5975_s12 + $0x530] sm:$0xff] }
 0x1aa   : > { %v1098_v38 = vadd.f32 %v1097_v36, %v889_v33  ;;  %v1306_v41 = vpop.f32.mrf.mxu2  ;;  %1867 = vmatpush.msrb.mxu1 %v626_v32 }
 0x1ac   : > { %v1307_v42 = vadd.f32 %v1306_v41, %v1098_v38  ;;  %1144 = vmatmul.f32.gmra.mxu1 %v434_v37  ;;  %v1515_v44 = vpop.f32.mrf.mxu3  ;;  %v453_v37 = vld [vmem:[%s5975_s12 + $0x520] sm:$0xff]  ;;  %v454_v41 = vld [vmem:[%s5975_s12 + $0x528] sm:$0xff] }
 0x1ae   : > { %v1516_v46 = vadd.f32 %v1515_v44, %v1307_v42  ;;  %v891_v47 = vpop.f32.mrf.mxu0 }
 0x1af   : > { %v892_v49 = vadd.f32 %v891_v47, %v6144_v21  ;;  %1356 = vmatmul.f32.gmra.mxu2 %v439_v45 }
 0x1b0   : > { %4235 = vst [vmem:[%s6162_s15 + $0x280] sm:$0xff] %v1516_v46  ;;  %v459_v46 = vld [vmem:[%s5975_s12 + $0x550] sm:$0xff] }
 0x1b1   : > { %v1100_v51 = vpop.f32.mrf.mxu1  ;;  %938 = vmatmul.f32.gmra.mxu0 %v437_v48  ;;  %1565 = vmatmul.f32.gmra.mxu3 %v440_v50 }
 0x1b2   : > { %v1101_v53 = vadd.f32 %v1100_v51, %v892_v49  ;;  %v1309_v54 = vpop.f32.mrf.mxu2  ;;  %v457_v49 = vld [vmem:[%s5975_s12 + $0x540] sm:$0xff]  ;;  %v460_v51 = vld [vmem:[%s5975_s12 + $0x558] sm:$0xff] }
 0x1b4   : > { %v1310_v55 = vadd.f32 %v1309_v54, %v1101_v53  ;;  %1147 = vmatmul.f32.gmra.mxu1 %v438_v52  ;;  %v1518_v56 = vpop.f32.mrf.mxu3  ;;  %v458_v53 = vld [vmem:[%s5975_s12 + $0x548] sm:$0xff] }
 0x1b6   : > { %v1519_v58 = vadd.f32 %v1518_v56, %v1310_v55  ;;  %v894_v59 = vpop.f32.mrf.mxu0 }
 0x1b7   : > { %v895_v61 = vadd.f32 %v894_v59, %v6144_v21  ;;  %1359 = vmatmul.f32.gmra.mxu2 %v443_v57 }
 0x1b8   : > { %4239 = vst [vmem:[%s6162_s15 + $0x2a0] sm:$0xff] %v1519_v58  ;;  %v463_v58 = vld [vmem:[%s5975_s12 + $0x570] sm:$0xff] }
 0x1b9   : > { %v1103_v63 = vpop.f32.mrf.mxu1  ;;  %941 = vmatmul.f32.gmra.mxu0 %v441_v60  ;;  %1568 = vmatmul.f32.gmra.mxu3 %v444_v62 }
 0x1ba   : > { %v1104_v1 = vadd.f32 %v1103_v63, %v895_v61  ;;  %v1312_v2 = vpop.f32.mrf.mxu2  ;;  %v461_v61 = vld [vmem:[%s5975_s12 + $0x560] sm:$0xff]  ;;  %v464_v63 = vld [vmem:[%s5975_s12 + $0x578] sm:$0xff] }
 0x1bc   : > { %v1313_v3 = vadd.f32 %v1312_v2, %v1104_v1  ;;  %1150 = vmatmul.f32.gmra.mxu1 %v442_v0  ;;  %v1521_v4 = vpop.f32.mrf.mxu3  ;;  %v462_v1 = vld [vmem:[%s5975_s12 + $0x568] sm:$0xff] }
 0x1be   : > { %v1522_v6 = vadd.f32 %v1521_v4, %v1313_v3  ;;  %v897_v7 = vpop.f32.mrf.mxu0 }
 0x1bf   : > { %v898_v9 = vadd.f32 %v897_v7, %v6144_v21  ;;  %1362 = vmatmul.f32.gmra.mxu2 %v447_v5 }
 0x1c0   : > { %4243 = vst [vmem:[%s6162_s15 + $0x2c0] sm:$0xff] %v1522_v6  ;;  %v467_v6 = vld [vmem:[%s5975_s12 + $0x590] sm:$0xff] }
 0x1c1   : > { %v1106_v11 = vpop.f32.mrf.mxu1  ;;  %944 = vmatmul.f32.gmra.mxu0 %v445_v8  ;;  %1571 = vmatmul.f32.gmra.mxu3 %v448_v10 }
 0x1c2   : > { %v1107_v13 = vadd.f32 %v1106_v11, %v898_v9  ;;  %v1315_v14 = vpop.f32.mrf.mxu2  ;;  %v465_v9 = vld [vmem:[%s5975_s12 + $0x580] sm:$0xff]  ;;  %v468_v11 = vld [vmem:[%s5975_s12 + $0x598] sm:$0xff] }
 0x1c4   : > { %v1316_v15 = vadd.f32 %v1315_v14, %v1107_v13  ;;  %1153 = vmatmul.f32.gmra.mxu1 %v446_v12  ;;  %v1524_v16 = vpop.f32.mrf.mxu3  ;;  %v686_v12 = vld [vmem:[%s5985_s4 + $0x468] sm:$0xff] }
 0x1c5   : > { %v466_v14 = vld [vmem:[%s5975_s12 + $0x588] sm:$0xff]  ;;  %2077 = vmatpush.msrb.mxu2 %v686_v12 }
 0x1c6   : > { %v1525_v18 = vadd.f32 %v1524_v16, %v1316_v15  ;;  %v900_v19 = vpop.f32.mrf.mxu0  ;;  %v558_v16 = vld [vmem:[%s5985_s4 + $0x68] sm:$0xff] }
 0x1c7   : > { %v901_v22 = vadd.f32 %v900_v19, %v6144_v21  ;;  %1365 = vmatmul.f32.gmra.mxu2 %v451_v17  ;;  %v750_v17 = vld [vmem:[%s5985_s4 + $0x668] sm:$0xff]  ;;  %1659 = vmatpush.msrb.mxu0 %v558_v16  ;;  %v488_v16 = vld [vmem:[%s5975_s12 + $0x638] sm:$0xff] }
 0x1c8   : > { %4247 = vst [vmem:[%s6162_s15 + $0x2e0] sm:$0xff] %v1525_v18  ;;  %2286 = vmatpush.msrb.mxu3 %v750_v17 }
 0x1c9   : > { %v1109_v25 = vpop.f32.mrf.mxu1  ;;  %947 = vmatmul.f32.gmra.mxu0 %v449_v20  ;;  %1574 = vmatmul.f32.gmra.mxu3 %v452_v23  ;;  %v622_v20 = vld [vmem:[%s5985_s4 + $0x268] sm:$0xff]  ;;  %v471_v23 = vld [vmem:[%s5975_s12 + $0x5b0] sm:$0xff] }
 0x1ca   : > { %v1110_v27 = vadd.f32 %v1109_v25, %v901_v22  ;;  %v1318_v30 = vpop.f32.mrf.mxu2  ;;  %1868 = vmatpush.msrb.mxu1 %v622_v20 }
 0x1cc   : > { %v1319_v31 = vadd.f32 %v1318_v30, %v1110_v27  ;;  %1156 = vmatmul.f32.gmra.mxu1 %v450_v26  ;;  %v1527_v33 = vpop.f32.mrf.mxu3  ;;  %v469_v26 = vld [vmem:[%s5975_s12 + $0x5a0] sm:$0xff]  ;;  %v470_v30 = vld [vmem:[%s5975_s12 + $0x5a8] sm:$0xff] }
 0x1ce   : > { %v1528_v35 = vadd.f32 %v1527_v33, %v1319_v31  ;;  %v903_v36 = vpop.f32.mrf.mxu0 }
 0x1cf   : > { %v904_v38 = vadd.f32 %v903_v36, %v6144_v21  ;;  %1368 = vmatmul.f32.gmra.mxu2 %v455_v34 }
 0x1d0   : > { %4251 = vst [vmem:[%s6162_s15 + $0x300] sm:$0xff] %v1528_v35  ;;  %v475_v35 = vld [vmem:[%s5975_s12 + $0x5d0] sm:$0xff] }
 0x1d1   : > { %v1112_v40 = vpop.f32.mrf.mxu1  ;;  %950 = vmatmul.f32.gmra.mxu0 %v453_v37  ;;  %1577 = vmatmul.f32.gmra.mxu3 %v456_v39 }
 0x1d2   : > { %v1113_v42 = vadd.f32 %v1112_v40, %v904_v38  ;;  %v1321_v43 = vpop.f32.mrf.mxu2  ;;  %v473_v38 = vld [vmem:[%s5975_s12 + $0x5c0] sm:$0xff]  ;;  %v476_v40 = vld [vmem:[%s5975_s12 + $0x5d8] sm:$0xff] }
 0x1d4   : > { %v1322_v44 = vadd.f32 %v1321_v43, %v1113_v42  ;;  %1159 = vmatmul.f32.gmra.mxu1 %v454_v41  ;;  %v1530_v45 = vpop.f32.mrf.mxu3  ;;  %v474_v42 = vld [vmem:[%s5975_s12 + $0x5c8] sm:$0xff] }
 0x1d6   : > { %v1531_v47 = vadd.f32 %v1530_v45, %v1322_v44  ;;  %v906_v48 = vpop.f32.mrf.mxu0 }
 0x1d7   : > { %v907_v50 = vadd.f32 %v906_v48, %v6144_v21  ;;  %1371 = vmatmul.f32.gmra.mxu2 %v459_v46 }
 0x1d8   : > { %4255 = vst [vmem:[%s6162_s15 + $0x320] sm:$0xff] %v1531_v47  ;;  %v479_v47 = vld [vmem:[%s5975_s12 + $0x5f0] sm:$0xff] }
 0x1d9   : > { %v1115_v52 = vpop.f32.mrf.mxu1  ;;  %953 = vmatmul.f32.gmra.mxu0 %v457_v49  ;;  %1580 = vmatmul.f32.gmra.mxu3 %v460_v51 }
 0x1da   : > { %v1116_v54 = vadd.f32 %v1115_v52, %v907_v50  ;;  %v1324_v55 = vpop.f32.mrf.mxu2  ;;  %v477_v50 = vld [vmem:[%s5975_s12 + $0x5e0] sm:$0xff]  ;;  %v480_v52 = vld [vmem:[%s5975_s12 + $0x5f8] sm:$0xff] }
 0x1dc   : > { %v1325_v56 = vadd.f32 %v1324_v55, %v1116_v54  ;;  %1162 = vmatmul.f32.gmra.mxu1 %v458_v53  ;;  %v1533_v57 = vpop.f32.mrf.mxu3  ;;  %v478_v54 = vld [vmem:[%s5975_s12 + $0x5e8] sm:$0xff] }
 0x1de   : > { %v1534_v59 = vadd.f32 %v1533_v57, %v1325_v56  ;;  %v909_v60 = vpop.f32.mrf.mxu0 }
 0x1df   : > { %v910_v62 = vadd.f32 %v909_v60, %v6144_v21  ;;  %1374 = vmatmul.f32.gmra.mxu2 %v463_v58 }
 0x1e0   : > { %4259 = vst [vmem:[%s6162_s15 + $0x340] sm:$0xff] %v1534_v59  ;;  %v483_v59 = vld [vmem:[%s5975_s12 + $0x610] sm:$0xff] }
 0x1e1   : > { %v1118_v0 = vpop.f32.mrf.mxu1  ;;  %956 = vmatmul.f32.gmra.mxu0 %v461_v61  ;;  %1583 = vmatmul.f32.gmra.mxu3 %v464_v63 }
 0x1e2   : > { %v1119_v2 = vadd.f32 %v1118_v0, %v910_v62  ;;  %v1327_v3 = vpop.f32.mrf.mxu2  ;;  %v481_v62 = vld [vmem:[%s5975_s12 + $0x600] sm:$0xff]  ;;  %v484_v0 = vld [vmem:[%s5975_s12 + $0x618] sm:$0xff] }
 0x1e4   : > { %v1328_v4 = vadd.f32 %v1327_v3, %v1119_v2  ;;  %1165 = vmatmul.f32.gmra.mxu1 %v462_v1  ;;  %v1536_v5 = vpop.f32.mrf.mxu3  ;;  %v682_v1 = vld [vmem:[%s5985_s4 + $0x448] sm:$0xff] }
 0x1e5   : > { %v482_v3 = vld [vmem:[%s5975_s12 + $0x608] sm:$0xff]  ;;  %2078 = vmatpush.msrb.mxu2 %v682_v1 }
 0x1e6   : > { %v1537_v7 = vadd.f32 %v1536_v5, %v1328_v4  ;;  %v912_v8 = vpop.f32.mrf.mxu0  ;;  %v554_v5 = vld [vmem:[%s5985_s4 + $0x48] sm:$0xff] }
 0x1e7   : > { %v913_v10 = vadd.f32 %v912_v8, %v6144_v21  ;;  %1377 = vmatmul.f32.gmra.mxu2 %v467_v6  ;;  %v746_v6 = vld [vmem:[%s5985_s4 + $0x648] sm:$0xff]  ;;  %1660 = vmatpush.msrb.mxu0 %v554_v5  ;;  %v504_v5 = vld [vmem:[%s5975_s12 + $0x6b8] sm:$0xff] }
 0x1e8   : > { %4263 = vst [vmem:[%s6162_s15 + $0x360] sm:$0xff] %v1537_v7  ;;  %2287 = vmatpush.msrb.mxu3 %v746_v6 }
 0x1e9   : > { %v1121_v13 = vpop.f32.mrf.mxu1  ;;  %959 = vmatmul.f32.gmra.mxu0 %v465_v9  ;;  %1586 = vmatmul.f32.gmra.mxu3 %v468_v11  ;;  %v618_v9 = vld [vmem:[%s5985_s4 + $0x248] sm:$0xff]  ;;  %v487_v11 = vld [vmem:[%s5975_s12 + $0x630] sm:$0xff] }
 0x1ea   : > { %v1122_v15 = vadd.f32 %v1121_v13, %v913_v10  ;;  %v1330_v18 = vpop.f32.mrf.mxu2  ;;  %1869 = vmatpush.msrb.mxu1 %v618_v9 }
 0x1ec   : > { %v1331_v19 = vadd.f32 %v1330_v18, %v1122_v15  ;;  %1168 = vmatmul.f32.gmra.mxu1 %v466_v14  ;;  %v1539_v22 = vpop.f32.mrf.mxu3  ;;  %v485_v14 = vld [vmem:[%s5975_s12 + $0x620] sm:$0xff]  ;;  %v486_v18 = vld [vmem:[%s5975_s12 + $0x628] sm:$0xff] }
 0x1ee   : > { %v1540_v24 = vadd.f32 %v1539_v22, %v1331_v19  ;;  %v915_v25 = vpop.f32.mrf.mxu0 }
 0x1ef   : > { %v916_v27 = vadd.f32 %v915_v25, %v6144_v21  ;;  %1380 = vmatmul.f32.gmra.mxu2 %v471_v23 }
 0x1f0   : > { %4267 = vst [vmem:[%s6162_s15 + $0x380] sm:$0xff] %v1540_v24  ;;  %v491_v24 = vld [vmem:[%s5975_s12 + $0x650] sm:$0xff] }
 0x1f1   : > { %v1124_v29 = vpop.f32.mrf.mxu1  ;;  %962 = vmatmul.f32.gmra.mxu0 %v469_v26  ;;  %1589 = vmatmul.f32.gmra.mxu3 %v472_v28 }
 0x1f2   : > { %v1125_v31 = vadd.f32 %v1124_v29, %v916_v27  ;;  %v1333_v32 = vpop.f32.mrf.mxu2  ;;  %v489_v27 = vld [vmem:[%s5975_s12 + $0x640] sm:$0xff]  ;;  %v492_v29 = vld [vmem:[%s5975_s12 + $0x658] sm:$0xff] }
 0x1f4   : > { %v1334_v33 = vadd.f32 %v1333_v32, %v1125_v31  ;;  %1171 = vmatmul.f32.gmra.mxu1 %v470_v30  ;;  %v1542_v34 = vpop.f32.mrf.mxu3  ;;  %v490_v31 = vld [vmem:[%s5975_s12 + $0x648] sm:$0xff] }
 0x1f6   : > { %v1543_v36 = vadd.f32 %v1542_v34, %v1334_v33  ;;  %v918_v37 = vpop.f32.mrf.mxu0 }
 0x1f7   : > { %v919_v39 = vadd.f32 %v918_v37, %v6144_v21  ;;  %1383 = vmatmul.f32.gmra.mxu2 %v475_v35 }
 0x1f8   : > { %4271 = vst [vmem:[%s6162_s15 + $0x3a0] sm:$0xff] %v1543_v36  ;;  %v495_v36 = vld [vmem:[%s5975_s12 + $0x670] sm:$0xff] }
 0x1f9   : > { %v1127_v41 = vpop.f32.mrf.mxu1  ;;  %965 = vmatmul.f32.gmra.mxu0 %v473_v38  ;;  %1592 = vmatmul.f32.gmra.mxu3 %v476_v40 }
 0x1fa   : > { %v1128_v43 = vadd.f32 %v1127_v41, %v919_v39  ;;  %v1336_v44 = vpop.f32.mrf.mxu2  ;;  %v493_v39 = vld [vmem:[%s5975_s12 + $0x660] sm:$0xff]  ;;  %v496_v41 = vld [vmem:[%s5975_s12 + $0x678] sm:$0xff] }
 0x1fc   : > { %v1337_v45 = vadd.f32 %v1336_v44, %v1128_v43  ;;  %1174 = vmatmul.f32.gmra.mxu1 %v474_v42  ;;  %v1545_v46 = vpop.f32.mrf.mxu3  ;;  %v494_v43 = vld [vmem:[%s5975_s12 + $0x668] sm:$0xff] }
 0x1fe   : > { %v1546_v48 = vadd.f32 %v1545_v46, %v1337_v45  ;;  %v921_v49 = vpop.f32.mrf.mxu0 }
 0x1ff   : > { %v922_v51 = vadd.f32 %v921_v49, %v6144_v21  ;;  %1386 = vmatmul.f32.gmra.mxu2 %v479_v47 }
 0x200   : > { %4275 = vst [vmem:[%s6162_s15 + $0x3c0] sm:$0xff] %v1546_v48  ;;  %v499_v48 = vld [vmem:[%s5975_s12 + $0x690] sm:$0xff] }
 0x201   : > { %v1130_v53 = vpop.f32.mrf.mxu1  ;;  %968 = vmatmul.f32.gmra.mxu0 %v477_v50  ;;  %1595 = vmatmul.f32.gmra.mxu3 %v480_v52 }
 0x202   : > { %v1131_v55 = vadd.f32 %v1130_v53, %v922_v51  ;;  %v1339_v56 = vpop.f32.mrf.mxu2  ;;  %v497_v51 = vld [vmem:[%s5975_s12 + $0x680] sm:$0xff]  ;;  %v500_v53 = vld [vmem:[%s5975_s12 + $0x698] sm:$0xff] }
 0x204   : > { %v1340_v57 = vadd.f32 %v1339_v56, %v1131_v55  ;;  %1177 = vmatmul.f32.gmra.mxu1 %v478_v54  ;;  %v1548_v58 = vpop.f32.mrf.mxu3  ;;  %v678_v54 = vld [vmem:[%s5985_s4 + $0x428] sm:$0xff] }
 0x205   : > { %v498_v56 = vld [vmem:[%s5975_s12 + $0x688] sm:$0xff]  ;;  %2079 = vmatpush.msrb.mxu2 %v678_v54 }
 0x206   : > { %v1549_v60 = vadd.f32 %v1548_v58, %v1340_v57  ;;  %v924_v61 = vpop.f32.mrf.mxu0  ;;  %v550_v58 = vld [vmem:[%s5985_s4 + $0x28] sm:$0xff] }
 0x207   : > { %v925_v63 = vadd.f32 %v924_v61, %v6144_v21  ;;  %1389 = vmatmul.f32.gmra.mxu2 %v483_v59  ;;  %v742_v59 = vld [vmem:[%s5985_s4 + $0x628] sm:$0xff]  ;;  %1661 = vmatpush.msrb.mxu0 %v550_v58  ;;  %v520_v58 = vld [vmem:[%s5975_s12 + $0x738] sm:$0xff] }
 0x208   : > { %4279 = vst [vmem:[%s6162_s15 + $0x3e0] sm:$0xff] %v1549_v60  ;;  %2288 = vmatpush.msrb.mxu3 %v742_v59 }
 0x209   : > { %v1133_v2 = vpop.f32.mrf.mxu1  ;;  %971 = vmatmul.f32.gmra.mxu0 %v481_v62  ;;  %1598 = vmatmul.f32.gmra.mxu3 %v484_v0  ;;  %v614_v62 = vld [vmem:[%s5985_s4 + $0x228] sm:$0xff]  ;;  %v503_v0 = vld [vmem:[%s5975_s12 + $0x6b0] sm:$0xff] }
 0x20a   : > { %v1134_v4 = vadd.f32 %v1133_v2, %v925_v63  ;;  %v1342_v7 = vpop.f32.mrf.mxu2  ;;  %1870 = vmatpush.msrb.mxu1 %v614_v62 }
 0x20c   : > { %v1343_v8 = vadd.f32 %v1342_v7, %v1134_v4  ;;  %1180 = vmatmul.f32.gmra.mxu1 %v482_v3  ;;  %v1551_v10 = vpop.f32.mrf.mxu3  ;;  %v501_v3 = vld [vmem:[%s5975_s12 + $0x6a0] sm:$0xff]  ;;  %v502_v7 = vld [vmem:[%s5975_s12 + $0x6a8] sm:$0xff] }
 0x20e   : > { %v1552_v12 = vadd.f32 %v1551_v10, %v1343_v8  ;;  %v927_v13 = vpop.f32.mrf.mxu0 }
 0x20f   : > { %v928_v15 = vadd.f32 %v927_v13, %v6144_v21  ;;  %1392 = vmatmul.f32.gmra.mxu2 %v487_v11 }
 0x210   : > { %4283 = vst [vmem:[%s6162_s15 + $0x400] sm:$0xff] %v1552_v12  ;;  %v507_v12 = vld [vmem:[%s5975_s12 + $0x6d0] sm:$0xff] }
 0x211   : > { %v1136_v17 = vpop.f32.mrf.mxu1  ;;  %974 = vmatmul.f32.gmra.mxu0 %v485_v14  ;;  %1601 = vmatmul.f32.gmra.mxu3 %v488_v16 }
 0x212   : > { %v1137_v19 = vadd.f32 %v1136_v17, %v928_v15  ;;  %v1345_v20 = vpop.f32.mrf.mxu2  ;;  %v505_v15 = vld [vmem:[%s5975_s12 + $0x6c0] sm:$0xff]  ;;  %v508_v17 = vld [vmem:[%s5975_s12 + $0x6d8] sm:$0xff] }
 0x214   : > { %v1346_v22 = vadd.f32 %v1345_v20, %v1137_v19  ;;  %1183 = vmatmul.f32.gmra.mxu1 %v486_v18  ;;  %v1554_v23 = vpop.f32.mrf.mxu3  ;;  %v506_v19 = vld [vmem:[%s5975_s12 + $0x6c8] sm:$0xff] }
 0x216   : > { %v1555_v25 = vadd.f32 %v1554_v23, %v1346_v22  ;;  %v930_v26 = vpop.f32.mrf.mxu0 }
 0x217   : > { %v931_v28 = vadd.f32 %v930_v26, %v6144_v21  ;;  %1395 = vmatmul.f32.gmra.mxu2 %v491_v24 }
 0x218   : > { %4287 = vst [vmem:[%s6162_s15 + $0x420] sm:$0xff] %v1555_v25  ;;  %v511_v25 = vld [vmem:[%s5975_s12 + $0x6f0] sm:$0xff] }
 0x219   : > { %v1139_v30 = vpop.f32.mrf.mxu1  ;;  %977 = vmatmul.f32.gmra.mxu0 %v489_v27  ;;  %1604 = vmatmul.f32.gmra.mxu3 %v492_v29 }
 0x21a   : > { %v1140_v32 = vadd.f32 %v1139_v30, %v931_v28  ;;  %v1348_v33 = vpop.f32.mrf.mxu2  ;;  %v509_v28 = vld [vmem:[%s5975_s12 + $0x6e0] sm:$0xff]  ;;  %v512_v30 = vld [vmem:[%s5975_s12 + $0x6f8] sm:$0xff] }
 0x21c   : > { %v1349_v34 = vadd.f32 %v1348_v33, %v1140_v32  ;;  %1186 = vmatmul.f32.gmra.mxu1 %v490_v31  ;;  %v1557_v35 = vpop.f32.mrf.mxu3  ;;  %v510_v32 = vld [vmem:[%s5975_s12 + $0x6e8] sm:$0xff] }
 0x21e   : > { %v1558_v37 = vadd.f32 %v1557_v35, %v1349_v34  ;;  %v933_v38 = vpop.f32.mrf.mxu0 }
 0x21f   : > { %v934_v40 = vadd.f32 %v933_v38, %v6144_v21  ;;  %1398 = vmatmul.f32.gmra.mxu2 %v495_v36 }
 0x220   : > { %4291 = vst [vmem:[%s6162_s15 + $0x440] sm:$0xff] %v1558_v37  ;;  %v515_v37 = vld [vmem:[%s5975_s12 + $0x710] sm:$0xff] }
 0x221   : > { %v1142_v42 = vpop.f32.mrf.mxu1  ;;  %980 = vmatmul.f32.gmra.mxu0 %v493_v39  ;;  %1607 = vmatmul.f32.gmra.mxu3 %v496_v41 }
 0x222   : > { %v1143_v44 = vadd.f32 %v1142_v42, %v934_v40  ;;  %v1351_v45 = vpop.f32.mrf.mxu2  ;;  %v513_v40 = vld [vmem:[%s5975_s12 + $0x700] sm:$0xff]  ;;  %v516_v42 = vld [vmem:[%s5975_s12 + $0x718] sm:$0xff] }
 0x224   : > { %v1352_v46 = vadd.f32 %v1351_v45, %v1143_v44  ;;  %1189 = vmatmul.f32.gmra.mxu1 %v494_v43  ;;  %v1560_v47 = vpop.f32.mrf.mxu3  ;;  %v674_v43 = vld [vmem:[%s5985_s4 + $0x408] sm:$0xff] }
 0x225   : > { %v514_v45 = vld [vmem:[%s5975_s12 + $0x708] sm:$0xff]  ;;  %2080 = vmatpush.msrb.mxu2 %v674_v43 }
 0x226   : > { %v1561_v49 = vadd.f32 %v1560_v47, %v1352_v46  ;;  %v936_v50 = vpop.f32.mrf.mxu0  ;;  %v546_v47 = vld [vmem:[%s5985_s4 + $0x8] sm:$0xff] }
 0x227   : > { %v937_v52 = vadd.f32 %v936_v50, %v6144_v21  ;;  %1401 = vmatmul.f32.gmra.mxu2 %v499_v48  ;;  %v738_v48 = vld [vmem:[%s5985_s4 + $0x608] sm:$0xff]  ;;  %1662 = vmatpush.msrb.mxu0 %v546_v47  ;;  %v536_v47 = vld [vmem:[%s5975_s12 + $0x7b8] sm:$0xff] }
 0x228   : > { %4295 = vst [vmem:[%s6162_s15 + $0x460] sm:$0xff] %v1561_v49  ;;  %2289 = vmatpush.msrb.mxu3 %v738_v48 }
 0x229   : > { %v1145_v55 = vpop.f32.mrf.mxu1  ;;  %983 = vmatmul.f32.gmra.mxu0 %v497_v51  ;;  %1610 = vmatmul.f32.gmra.mxu3 %v500_v53  ;;  %v610_v51 = vld [vmem:[%s5985_s4 + $0x208] sm:$0xff]  ;;  %v519_v53 = vld [vmem:[%s5975_s12 + $0x730] sm:$0xff] }
 0x22a   : > { %v1146_v57 = vadd.f32 %v1145_v55, %v937_v52  ;;  %v1354_v60 = vpop.f32.mrf.mxu2  ;;  %1871 = vmatpush.msrb.mxu1 %v610_v51 }
 0x22c   : > { %v1355_v61 = vadd.f32 %v1354_v60, %v1146_v57  ;;  %1192 = vmatmul.f32.gmra.mxu1 %v498_v56  ;;  %v1563_v63 = vpop.f32.mrf.mxu3  ;;  %v517_v56 = vld [vmem:[%s5975_s12 + $0x720] sm:$0xff]  ;;  %v518_v60 = vld [vmem:[%s5975_s12 + $0x728] sm:$0xff] }
 0x22e   : > { %v1564_v1 = vadd.f32 %v1563_v63, %v1355_v61  ;;  %v939_v2 = vpop.f32.mrf.mxu0 }
 0x22f   : > { %v940_v4 = vadd.f32 %v939_v2, %v6144_v21  ;;  %1404 = vmatmul.f32.gmra.mxu2 %v503_v0 }
 0x230   : > { %4299 = vst [vmem:[%s6162_s15 + $0x480] sm:$0xff] %v1564_v1  ;;  %v523_v1 = vld [vmem:[%s5975_s12 + $0x750] sm:$0xff] }
 0x231   : > { %v1148_v6 = vpop.f32.mrf.mxu1  ;;  %986 = vmatmul.f32.gmra.mxu0 %v501_v3  ;;  %1613 = vmatmul.f32.gmra.mxu3 %v504_v5 }
 0x232   : > { %v1149_v8 = vadd.f32 %v1148_v6, %v940_v4  ;;  %v1357_v9 = vpop.f32.mrf.mxu2  ;;  %v521_v4 = vld [vmem:[%s5975_s12 + $0x740] sm:$0xff]  ;;  %v524_v6 = vld [vmem:[%s5975_s12 + $0x758] sm:$0xff] }
 0x234   : > { %v1358_v10 = vadd.f32 %v1357_v9, %v1149_v8  ;;  %1195 = vmatmul.f32.gmra.mxu1 %v502_v7  ;;  %v1566_v11 = vpop.f32.mrf.mxu3  ;;  %v522_v8 = vld [vmem:[%s5975_s12 + $0x748] sm:$0xff] }
 0x236   : > { %v1567_v13 = vadd.f32 %v1566_v11, %v1358_v10  ;;  %v942_v14 = vpop.f32.mrf.mxu0 }
 0x237   : > { %v943_v16 = vadd.f32 %v942_v14, %v6144_v21  ;;  %1407 = vmatmul.f32.gmra.mxu2 %v507_v12 }
 0x238   : > { %4303 = vst [vmem:[%s6162_s15 + $0x4a0] sm:$0xff] %v1567_v13  ;;  %v527_v13 = vld [vmem:[%s5975_s12 + $0x770] sm:$0xff] }
 0x239   : > { %v1151_v18 = vpop.f32.mrf.mxu1  ;;  %989 = vmatmul.f32.gmra.mxu0 %v505_v15  ;;  %1616 = vmatmul.f32.gmra.mxu3 %v508_v17 }
 0x23a   : > { %v1152_v20 = vadd.f32 %v1151_v18, %v943_v16  ;;  %v1360_v22 = vpop.f32.mrf.mxu2  ;;  %v525_v16 = vld [vmem:[%s5975_s12 + $0x760] sm:$0xff]  ;;  %v528_v18 = vld [vmem:[%s5975_s12 + $0x778] sm:$0xff] }
 0x23c   : > { %v1361_v23 = vadd.f32 %v1360_v22, %v1152_v20  ;;  %1198 = vmatmul.f32.gmra.mxu1 %v506_v19  ;;  %v1569_v24 = vpop.f32.mrf.mxu3  ;;  %v526_v20 = vld [vmem:[%s5975_s12 + $0x768] sm:$0xff] }
 0x23e   : > { %v1570_v26 = vadd.f32 %v1569_v24, %v1361_v23  ;;  %v945_v27 = vpop.f32.mrf.mxu0 }
 0x23f   : > { %v946_v29 = vadd.f32 %v945_v27, %v6144_v21  ;;  %1410 = vmatmul.f32.gmra.mxu2 %v511_v25 }
 0x240   : > { %4307 = vst [vmem:[%s6162_s15 + $0x4c0] sm:$0xff] %v1570_v26  ;;  %v531_v26 = vld [vmem:[%s5975_s12 + $0x790] sm:$0xff] }
 0x241   : > { %v1154_v31 = vpop.f32.mrf.mxu1  ;;  %992 = vmatmul.f32.gmra.mxu0 %v509_v28  ;;  %1619 = vmatmul.f32.gmra.mxu3 %v512_v30 }
 0x242   : > { %v1155_v33 = vadd.f32 %v1154_v31, %v946_v29  ;;  %v1363_v34 = vpop.f32.mrf.mxu2  ;;  %v529_v29 = vld [vmem:[%s5975_s12 + $0x780] sm:$0xff]  ;;  %v532_v31 = vld [vmem:[%s5975_s12 + $0x798] sm:$0xff] }
 0x244   : > { %v1364_v35 = vadd.f32 %v1363_v34, %v1155_v33  ;;  %1201 = vmatmul.f32.gmra.mxu1 %v510_v32  ;;  %v1572_v36 = vpop.f32.mrf.mxu3  ;;  %v735_v32 = vld [vmem:[%s5985_s4 + $0x5f0] sm:$0xff]  ;;  %v530_v34 = vld [vmem:[%s5975_s12 + $0x788] sm:$0xff] }
 0x245   : > { %2901 = vmatpush.msra.mxu2 %v735_v32 }
 0x246   : > { %v1573_v38 = vadd.f32 %v1572_v36, %v1364_v35  ;;  %v948_v39 = vpop.f32.mrf.mxu0  ;;  %v607_v36 = vld [vmem:[%s5985_s4 + $0x1f0] sm:$0xff] }
 0x247   : > { %v949_v41 = vadd.f32 %v948_v39, %v6144_v21  ;;  %1413 = vmatmul.f32.gmra.mxu2 %v515_v37  ;;  %v799_v37 = vld [vmem:[%s5985_s4 + $0x7f0] sm:$0xff]  ;;  %2483 = vmatpush.msra.mxu0 %v607_v36  ;;  %v4736_v36 = vld [vmem:[%s5975_s12 + $0x20] sm:$0xff] }
 0x248   : > { %4311 = vst [vmem:[%s6162_s15 + $0x4e0] sm:$0xff] %v1573_v38  ;;  %3110 = vmatpush.msra.mxu3 %v799_v37 }
 0x249   : > { %v1157_v44 = vpop.f32.mrf.mxu1  ;;  %995 = vmatmul.f32.gmra.mxu0 %v513_v40  ;;  %1622 = vmatmul.f32.gmra.mxu3 %v516_v42  ;;  %v671_v40 = vld [vmem:[%s5985_s4 + $0x3f0] sm:$0xff] }
 0x24a   : > { %v1158_v46 = vadd.f32 %v1157_v44, %v949_v41  ;;  %v1366_v49 = vpop.f32.mrf.mxu2  ;;  %v535_v42 = vld [vmem:[%s5975_s12 + $0x7b0] sm:$0xff]  ;;  %2692 = vmatpush.msra.mxu1 %v671_v40 }
 0x24c   : > { %v1367_v50 = vadd.f32 %v1366_v49, %v1158_v46  ;;  %1204 = vmatmul.f32.gmra.mxu1 %v514_v45  ;;  %v1575_v52 = vpop.f32.mrf.mxu3  ;;  %v533_v45 = vld [vmem:[%s5975_s12 + $0x7a0] sm:$0xff]  ;;  %v534_v49 = vld [vmem:[%s5975_s12 + $0x7a8] sm:$0xff] }
 0x24e   : > { %v1576_v54 = vadd.f32 %v1575_v52, %v1367_v50  ;;  %v951_v55 = vpop.f32.mrf.mxu0 }
 0x24f   : > { %v952_v57 = vadd.f32 %v951_v55, %v6144_v21  ;;  %1416 = vmatmul.f32.gmra.mxu2 %v519_v53 }
 0x250   : > { %4315 = vst [vmem:[%s6162_s15 + $0x500] sm:$0xff] %v1576_v54  ;;  %v539_v54 = vld [vmem:[%s5975_s12 + $0x7d0] sm:$0xff] }
 0x251   : > { %v1160_v59 = vpop.f32.mrf.mxu1  ;;  %998 = vmatmul.f32.gmra.mxu0 %v517_v56  ;;  %1625 = vmatmul.f32.gmra.mxu3 %v520_v58 }
 0x252   : > { %v1161_v61 = vadd.f32 %v1160_v59, %v952_v57  ;;  %v1369_v62 = vpop.f32.mrf.mxu2  ;;  %v537_v57 = vld [vmem:[%s5975_s12 + $0x7c0] sm:$0xff]  ;;  %v540_v59 = vld [vmem:[%s5975_s12 + $0x7d8] sm:$0xff] }
 0x254   : > { %v1370_v63 = vadd.f32 %v1369_v62, %v1161_v61  ;;  %1207 = vmatmul.f32.gmra.mxu1 %v518_v60  ;;  %v1578_v0 = vpop.f32.mrf.mxu3  ;;  %v538_v61 = vld [vmem:[%s5975_s12 + $0x7c8] sm:$0xff] }
 0x256   : > { %v1579_v2 = vadd.f32 %v1578_v0, %v1370_v63  ;;  %v954_v3 = vpop.f32.mrf.mxu0 }
 0x257   : > { %v955_v5 = vadd.f32 %v954_v3, %v6144_v21  ;;  %1419 = vmatmul.f32.gmra.mxu2 %v523_v1 }
 0x258   : > { %4319 = vst [vmem:[%s6162_s15 + $0x520] sm:$0xff] %v1579_v2  ;;  %v543_v2 = vld [vmem:[%s5975_s12 + $0x7f0] sm:$0xff] }
 0x259   : > { %v1163_v7 = vpop.f32.mrf.mxu1  ;;  %1001 = vmatmul.f32.gmra.mxu0 %v521_v4  ;;  %1628 = vmatmul.f32.gmra.mxu3 %v524_v6 }
 0x25a   : > { %v1164_v9 = vadd.f32 %v1163_v7, %v955_v5  ;;  %v1372_v10 = vpop.f32.mrf.mxu2  ;;  %v541_v5 = vld [vmem:[%s5975_s12 + $0x7e0] sm:$0xff]  ;;  %v544_v7 = vld [vmem:[%s5975_s12 + $0x7f8] sm:$0xff] }
 0x25c   : > { %v1373_v11 = vadd.f32 %v1372_v10, %v1164_v9  ;;  %1210 = vmatmul.f32.gmra.mxu1 %v522_v8  ;;  %v1581_v12 = vpop.f32.mrf.mxu3  ;;  %v542_v9 = vld [vmem:[%s5975_s12 + $0x7e8] sm:$0xff] }
 0x25e   : > { %v1582_v14 = vadd.f32 %v1581_v12, %v1373_v11  ;;  %v957_v15 = vpop.f32.mrf.mxu0 }
 0x25f   : > { %v958_v17 = vadd.f32 %v957_v15, %v6144_v21  ;;  %1422 = vmatmul.f32.gmra.mxu2 %v527_v13 }
 0x260   : > { %4323 = vst [vmem:[%s6162_s15 + $0x540] sm:$0xff] %v1582_v14 }
 0x261   : > { %v1166_v19 = vpop.f32.mrf.mxu1  ;;  %1004 = vmatmul.f32.gmra.mxu0 %v525_v16  ;;  %1631 = vmatmul.f32.gmra.mxu3 %v528_v18  ;;  %v731_v18 = vld [vmem:[%s5985_s4 + $0x5d0] sm:$0xff] }
 0x262   : > { %v1167_v22 = vadd.f32 %v1166_v19, %v958_v17  ;;  %v1375_v23 = vpop.f32.mrf.mxu2  ;;  %v4731_v17 = vld [vmem:[%s5975_s12 + $0x10] sm:$0xff]  ;;  %2902 = vmatpush.msra.mxu2 %v731_v18 }
 0x264   : > { %v1376_v24 = vadd.f32 %v1375_v23, %v1167_v22  ;;  %1213 = vmatmul.f32.gmra.mxu1 %v526_v20  ;;  %v1584_v25 = vpop.f32.mrf.mxu3  ;;  %v4732_v20 = vld [vmem:[%s5975_s12] sm:$0xff]  ;;  %v4733_v23 = vld [vmem:[%s5975_s12 + $0x18] sm:$0xff] }
 0x266   : > { %v1585_v27 = vadd.f32 %v1584_v25, %v1376_v24  ;;  %v960_v28 = vpop.f32.mrf.mxu0  ;;  %v603_v24 = vld [vmem:[%s5985_s4 + $0x1d0] sm:$0xff] }
 0x267   : > { %v961_v30 = vadd.f32 %v960_v28, %v6144_v21  ;;  %1425 = vmatmul.f32.gmra.mxu2 %v531_v26  ;;  %v795_v25 = vld [vmem:[%s5985_s4 + $0x7d0] sm:$0xff]  ;;  %2484 = vmatpush.msra.mxu0 %v603_v24  ;;  %v4734_v28 = vld [vmem:[%s5975_s12 + $0x8] sm:$0xff] }
 0x268   : > { %4327 = vst [vmem:[%s6162_s15 + $0x560] sm:$0xff] %v1585_v27  ;;  %3111 = vmatpush.msra.mxu3 %v795_v25  ;;  %v4752_v25 = vld [vmem:[%s5975_s12 + $0xa0] sm:$0xff] }
 0x269   : > { %v1169_v33 = vpop.f32.mrf.mxu1  ;;  %1007 = vmatmul.f32.gmra.mxu0 %v529_v29  ;;  %1634 = vmatmul.f32.gmra.mxu3 %v532_v31  ;;  %v667_v29 = vld [vmem:[%s5985_s4 + $0x3d0] sm:$0xff] }
 0x26a   : > { %v1170_v35 = vadd.f32 %v1169_v33, %v961_v30  ;;  %v1378_v38 = vpop.f32.mrf.mxu2  ;;  %2693 = vmatpush.msra.mxu1 %v667_v29 }
 0x26c   : > { %v1379_v39 = vadd.f32 %v1378_v38, %v1170_v35  ;;  %1216 = vmatmul.f32.gmra.mxu1 %v530_v34  ;;  %v1587_v41 = vpop.f32.mrf.mxu3  ;;  %v4735_v34 = vld [vmem:[%s5975_s12 + $0x30] sm:$0xff]  ;;  %v4737_v38 = vld [vmem:[%s5975_s12 + $0x38] sm:$0xff] }
 0x26e   : > { %v1588_v43 = vadd.f32 %v1587_v41, %v1379_v39  ;;  %v963_v44 = vpop.f32.mrf.mxu0  ;;  %v4738_v41 = vld [vmem:[%s5975_s12 + $0x28] sm:$0xff] }
 0x26f   : > { %v964_v46 = vadd.f32 %v963_v44, %v6144_v21  ;;  %1428 = vmatmul.f32.gmra.mxu2 %v535_v42 }
 0x270   : > { %4331 = vst [vmem:[%s6162_s15 + $0x580] sm:$0xff] %v1588_v43 }
 0x271   : > { %v1172_v48 = vpop.f32.mrf.mxu1  ;;  %1010 = vmatmul.f32.gmra.mxu0 %v533_v45  ;;  %1637 = vmatmul.f32.gmra.mxu3 %v536_v47 }
 0x272   : > { %v1173_v50 = vadd.f32 %v1172_v48, %v964_v46  ;;  %v1381_v51 = vpop.f32.mrf.mxu2  ;;  %v4739_v46 = vld [vmem:[%s5975_s12 + $0x50] sm:$0xff]  ;;  %v4740_v48 = vld [vmem:[%s5975_s12 + $0x40] sm:$0xff] }
 0x274   : > { %v1382_v52 = vadd.f32 %v1381_v51, %v1173_v50  ;;  %1219 = vmatmul.f32.gmra.mxu1 %v534_v49  ;;  %v1590_v53 = vpop.f32.mrf.mxu3  ;;  %v4741_v50 = vld [vmem:[%s5975_s12 + $0x58] sm:$0xff] }
 0x276   : > { %v1591_v55 = vadd.f32 %v1590_v53, %v1382_v52  ;;  %v966_v56 = vpop.f32.mrf.mxu0  ;;  %v4742_v53 = vld [vmem:[%s5975_s12 + $0x48] sm:$0xff] }
 0x277   : > { %v967_v58 = vadd.f32 %v966_v56, %v6144_v21  ;;  %1431 = vmatmul.f32.gmra.mxu2 %v539_v54 }
 0x278   : > { %4335 = vst [vmem:[%s6162_s15 + $0x5a0] sm:$0xff] %v1591_v55 }
 0x279   : > { %v1175_v60 = vpop.f32.mrf.mxu1  ;;  %1013 = vmatmul.f32.gmra.mxu0 %v537_v57  ;;  %1640 = vmatmul.f32.gmra.mxu3 %v540_v59 }
 0x27a   : > { %v1176_v62 = vadd.f32 %v1175_v60, %v967_v58  ;;  %v1384_v63 = vpop.f32.mrf.mxu2  ;;  %v4743_v58 = vld [vmem:[%s5975_s12 + $0x70] sm:$0xff]  ;;  %v4744_v60 = vld [vmem:[%s5975_s12 + $0x60] sm:$0xff] }
 0x27c   : > { %v1385_v0 = vadd.f32 %v1384_v63, %v1176_v62  ;;  %1222 = vmatmul.f32.gmra.mxu1 %v538_v61  ;;  %v1593_v1 = vpop.f32.mrf.mxu3  ;;  %v4745_v62 = vld [vmem:[%s5975_s12 + $0x78] sm:$0xff] }
 0x27e   : > { %v1594_v3 = vadd.f32 %v1593_v1, %v1385_v0  ;;  %v969_v4 = vpop.f32.mrf.mxu0  ;;  %v4746_v1 = vld [vmem:[%s5975_s12 + $0x68] sm:$0xff] }
 0x27f   : > { %v970_v6 = vadd.f32 %v969_v4, %v6144_v21  ;;  %1434 = vmatmul.f32.gmra.mxu2 %v543_v2 }
 0x280   : > { %4339 = vst [vmem:[%s6162_s15 + $0x5c0] sm:$0xff] %v1594_v3 }
 0x281   : > { %v1178_v8 = vpop.f32.mrf.mxu1  ;;  %1016 = vmatmul.f32.gmra.mxu0 %v541_v5  ;;  %1643 = vmatmul.f32.gmra.mxu3 %v544_v7  ;;  %v727_v7 = vld [vmem:[%s5985_s4 + $0x5b0] sm:$0xff] }
 0x282   : > { %v1179_v10 = vadd.f32 %v1178_v8, %v970_v6  ;;  %v1387_v11 = vpop.f32.mrf.mxu2  ;;  %v4747_v6 = vld [vmem:[%s5975_s12 + $0x90] sm:$0xff]  ;;  %2903 = vmatpush.msra.mxu2 %v727_v7 }
 0x284   : > { %v1388_v12 = vadd.f32 %v1387_v11, %v1179_v10  ;;  %1225 = vmatmul.f32.gmra.mxu1 %v542_v9  ;;  %v1596_v13 = vpop.f32.mrf.mxu3  ;;  %v4748_v9 = vld [vmem:[%s5975_s12 + $0x80] sm:$0xff]  ;;  %v4749_v11 = vld [vmem:[%s5975_s12 + $0x98] sm:$0xff] }
 0x286   : > { %v1597_v14 = vadd.f32 %v1596_v13, %v1388_v12  ;;  %v972_v15 = vpop.f32.mrf.mxu0  ;;  %v599_v12 = vld [vmem:[%s5985_s4 + $0x1b0] sm:$0xff] }
 0x287   : > { %v973_v16 = vadd.f32 %v972_v15, %v6144_v21  ;;  %2081 = vmatmul.f32.vlgmr.msrb.gmra.mxu2 %v4731_v17  ;;  %v791_v13 = vld [vmem:[%s5985_s4 + $0x7b0] sm:$0xff]  ;;  %2485 = vmatpush.msra.mxu0 %v599_v12 }
 0x288   : > { %4343 = vst [vmem:[%s6162_s15 + $0x5e0] sm:$0xff] %v1597_v14  ;;  %3112 = vmatpush.msra.mxu3 %v791_v13  ;;  %v663_v17 = vld [vmem:[%s5985_s4 + $0x3b0] sm:$0xff]  ;;  %v4768_v13 = vld [vmem:[%s5975_s12 + $0x120] sm:$0xff] }
 0x289   : > { %v1181_v19 = vpop.f32.mrf.mxu1  ;;  %1663 = vmatmul.f32.vlgmr.msrb.gmra.mxu0 %v4732_v20  ;;  %2290 = vmatmul.f32.vlgmr.msrb.gmra.mxu3 %v4733_v23  ;;  %v4751_v23 = vld [vmem:[%s5975_s12 + $0xb0] sm:$0xff] }
 0x28a   : > { %v1182_v22 = vadd.f32 %v1181_v19, %v973_v16  ;;  %v1390_v26 = vpop.f32.mrf.mxu2  ;;  %v4750_v16 = vld [vmem:[%s5975_s12 + $0x88] sm:$0xff]  ;;  %2694 = vmatpush.msra.mxu1 %v663_v17 }
 0x28c   : > { %v1391_v27 = vadd.f32 %v1390_v26, %v1182_v22  ;;  %1872 = vmatmul.f32.vlgmr.msrb.gmra.mxu1 %v4734_v28  ;;  %v1599_v30 = vpop.f32.mrf.mxu3 }
 0x28e   : > { %v1600_v31 = vadd.f32 %v1599_v30, %v1391_v27  ;;  %v975_v32 = vpop.f32.mrf.mxu0  ;;  %v4753_v27 = vld [vmem:[%s5975_s12 + $0xb8] sm:$0xff]  ;;  %v4754_v30 = vld [vmem:[%s5975_s12 + $0xa8] sm:$0xff] }
 0x28f   : > { %v976_v33 = vadd.f32 %v975_v32, %v6144_v21  ;;  %2084 = vmatmul.f32.gmra.mxu2 %v4735_v34 }
 0x290   : > { %4347 = vst [vmem:[%s6162_s15 + $0x600] sm:$0xff] %v1600_v31 }
 0x291   : > { %v1184_v35 = vpop.f32.mrf.mxu1  ;;  %1666 = vmatmul.f32.gmra.mxu0 %v4736_v36  ;;  %2293 = vmatmul.f32.gmra.mxu3 %v4737_v38 }
 0x292   : > { %v1185_v37 = vadd.f32 %v1184_v35, %v976_v33  ;;  %v1393_v39 = vpop.f32.mrf.mxu2  ;;  %v4755_v35 = vld [vmem:[%s5975_s12 + $0xd0] sm:$0xff] }
 0x294   : > { %v1394_v40 = vadd.f32 %v1393_v39, %v1185_v37  ;;  %1875 = vmatmul.f32.gmra.mxu1 %v4738_v41  ;;  %v1602_v42 = vpop.f32.mrf.mxu3  ;;  %v4756_v37 = vld [vmem:[%s5975_s12 + $0xc0] sm:$0xff]  ;;  %v4757_v39 = vld [vmem:[%s5975_s12 + $0xd8] sm:$0xff] }
 0x296   : > { %v1603_v43 = vadd.f32 %v1602_v42, %v1394_v40  ;;  %v978_v44 = vpop.f32.mrf.mxu0  ;;  %v4758_v42 = vld [vmem:[%s5975_s12 + $0xc8] sm:$0xff] }
 0x297   : > { %v979_v45 = vadd.f32 %v978_v44, %v6144_v21  ;;  %2087 = vmatmul.f32.gmra.mxu2 %v4739_v46 }
 0x298   : > { %4351 = vst [vmem:[%s6162_s15 + $0x620] sm:$0xff] %v1603_v43 }
 0x299   : > { %v1187_v47 = vpop.f32.mrf.mxu1  ;;  %1669 = vmatmul.f32.gmra.mxu0 %v4740_v48  ;;  %2296 = vmatmul.f32.gmra.mxu3 %v4741_v50 }
 0x29a   : > { %v1188_v49 = vadd.f32 %v1187_v47, %v979_v45  ;;  %v1396_v51 = vpop.f32.mrf.mxu2  ;;  %v4759_v47 = vld [vmem:[%s5975_s12 + $0xf0] sm:$0xff] }
 0x29c   : > { %v1397_v52 = vadd.f32 %v1396_v51, %v1188_v49  ;;  %1878 = vmatmul.f32.gmra.mxu1 %v4742_v53  ;;  %v1605_v54 = vpop.f32.mrf.mxu3  ;;  %v4760_v49 = vld [vmem:[%s5975_s12 + $0xe0] sm:$0xff]  ;;  %v4761_v51 = vld [vmem:[%s5975_s12 + $0xf8] sm:$0xff] }
 0x29e   : > { %v1606_v55 = vadd.f32 %v1605_v54, %v1397_v52  ;;  %v981_v56 = vpop.f32.mrf.mxu0  ;;  %v4762_v54 = vld [vmem:[%s5975_s12 + $0xe8] sm:$0xff] }
 0x29f   : > { %v982_v57 = vadd.f32 %v981_v56, %v6144_v21  ;;  %2090 = vmatmul.f32.gmra.mxu2 %v4743_v58 }
 0x2a0   : > { %4355 = vst [vmem:[%s6162_s15 + $0x640] sm:$0xff] %v1606_v55 }
 0x2a1   : > { %v1190_v59 = vpop.f32.mrf.mxu1  ;;  %1672 = vmatmul.f32.gmra.mxu0 %v4744_v60  ;;  %2299 = vmatmul.f32.gmra.mxu3 %v4745_v62  ;;  %v723_v60 = vld [vmem:[%s5985_s4 + $0x590] sm:$0xff]  ;;  %v4764_v62 = vld [vmem:[%s5975_s12 + $0x100] sm:$0xff] }
 0x2a2   : > { %v1191_v61 = vadd.f32 %v1190_v59, %v982_v57  ;;  %v1399_v63 = vpop.f32.mrf.mxu2  ;;  %v4763_v59 = vld [vmem:[%s5975_s12 + $0x110] sm:$0xff]  ;;  %2904 = vmatpush.msra.mxu2 %v723_v60 }
 0x2a4   : > { %v1400_v0 = vadd.f32 %v1399_v63, %v1191_v61  ;;  %1881 = vmatmul.f32.gmra.mxu1 %v4746_v1  ;;  %v1608_v2 = vpop.f32.mrf.mxu3  ;;  %v595_v1 = vld [vmem:[%s5985_s4 + $0x190] sm:$0xff] }
 0x2a5   : > { %2486 = vmatpush.msra.mxu0 %v595_v1 }
 0x2a6   : > { %v1609_v3 = vadd.f32 %v1608_v2, %v1400_v0  ;;  %v984_v4 = vpop.f32.mrf.mxu0  ;;  %v4765_v0 = vld [vmem:[%s5975_s12 + $0x118] sm:$0xff]  ;;  %v787_v2 = vld [vmem:[%s5985_s4 + $0x790] sm:$0xff] }
 0x2a7   : > { %v985_v5 = vadd.f32 %v984_v4, %v6144_v21  ;;  %2093 = vmatmul.f32.gmra.mxu2 %v4747_v6  ;;  %3113 = vmatpush.msra.mxu3 %v787_v2  ;;  %v659_v6 = vld [vmem:[%s5985_s4 + $0x390] sm:$0xff]  ;;  %v4784_v2 = vld [vmem:[%s5975_s12 + $0x1a0] sm:$0xff] }
 0x2a8   : > { %4359 = vst [vmem:[%s6162_s15 + $0x660] sm:$0xff] %v1609_v3  ;;  %2695 = vmatpush.msra.mxu1 %v659_v6 }
 0x2a9   : > { %v1193_v8 = vpop.f32.mrf.mxu1  ;;  %1675 = vmatmul.f32.gmra.mxu0 %v4748_v9  ;;  %2302 = vmatmul.f32.gmra.mxu3 %v4749_v11  ;;  %v4767_v11 = vld [vmem:[%s5975_s12 + $0x130] sm:$0xff] }
 0x2aa   : > { %v1194_v10 = vadd.f32 %v1193_v8, %v985_v5  ;;  %v1402_v14 = vpop.f32.mrf.mxu2  ;;  %v4766_v5 = vld [vmem:[%s5975_s12 + $0x108] sm:$0xff] }
 0x2ac   : > { %v1403_v15 = vadd.f32 %v1402_v14, %v1194_v10  ;;  %1884 = vmatmul.f32.gmra.mxu1 %v4750_v16  ;;  %v1611_v18 = vpop.f32.mrf.mxu3 }
 0x2ae   : > { %v1612_v19 = vadd.f32 %v1611_v18, %v1403_v15  ;;  %v987_v20 = vpop.f32.mrf.mxu0  ;;  %v4769_v15 = vld [vmem:[%s5975_s12 + $0x138] sm:$0xff]  ;;  %v4770_v18 = vld [vmem:[%s5975_s12 + $0x128] sm:$0xff] }
 0x2af   : > { %v988_v22 = vadd.f32 %v987_v20, %v6144_v21  ;;  %2096 = vmatmul.f32.gmra.mxu2 %v4751_v23 }
 0x2b0   : > { %4363 = vst [vmem:[%s6162_s15 + $0x680] sm:$0xff] %v1612_v19 }
 0x2b1   : > { %v1196_v24 = vpop.f32.mrf.mxu1  ;;  %1678 = vmatmul.f32.gmra.mxu0 %v4752_v25  ;;  %2305 = vmatmul.f32.gmra.mxu3 %v4753_v27 }
 0x2b2   : > { %v1197_v26 = vadd.f32 %v1196_v24, %v988_v22  ;;  %v1405_v28 = vpop.f32.mrf.mxu2  ;;  %v4771_v24 = vld [vmem:[%s5975_s12 + $0x150] sm:$0xff] }
 0x2b4   : > { %v1406_v29 = vadd.f32 %v1405_v28, %v1197_v26  ;;  %1887 = vmatmul.f32.gmra.mxu1 %v4754_v30  ;;  %v1614_v31 = vpop.f32.mrf.mxu3  ;;  %v4772_v26 = vld [vmem:[%s5975_s12 + $0x140] sm:$0xff]  ;;  %v4773_v28 = vld [vmem:[%s5975_s12 + $0x158] sm:$0xff] }
 0x2b6   : > { %v1615_v32 = vadd.f32 %v1614_v31, %v1406_v29  ;;  %v990_v33 = vpop.f32.mrf.mxu0  ;;  %v4774_v31 = vld [vmem:[%s5975_s12 + $0x148] sm:$0xff] }
 0x2b7   : > { %v991_v34 = vadd.f32 %v990_v33, %v6144_v21  ;;  %2099 = vmatmul.f32.gmra.mxu2 %v4755_v35 }
 0x2b8   : > { %4367 = vst [vmem:[%s6162_s15 + $0x6a0] sm:$0xff] %v1615_v32 }
 0x2b9   : > { %v1199_v36 = vpop.f32.mrf.mxu1  ;;  %1681 = vmatmul.f32.gmra.mxu0 %v4756_v37  ;;  %2308 = vmatmul.f32.gmra.mxu3 %v4757_v39 }
 0x2ba   : > { %v1200_v38 = vadd.f32 %v1199_v36, %v991_v34  ;;  %v1408_v40 = vpop.f32.mrf.mxu2  ;;  %v4775_v36 = vld [vmem:[%s5975_s12 + $0x170] sm:$0xff] }
 0x2bc   : > { %v1409_v41 = vadd.f32 %v1408_v40, %v1200_v38  ;;  %1890 = vmatmul.f32.gmra.mxu1 %v4758_v42  ;;  %v1617_v43 = vpop.f32.mrf.mxu3  ;;  %v4776_v38 = vld [vmem:[%s5975_s12 + $0x160] sm:$0xff]  ;;  %v4777_v40 = vld [vmem:[%s5975_s12 + $0x178] sm:$0xff] }
 0x2be   : > { %v1618_v44 = vadd.f32 %v1617_v43, %v1409_v41  ;;  %v993_v45 = vpop.f32.mrf.mxu0  ;;  %v4778_v43 = vld [vmem:[%s5975_s12 + $0x168] sm:$0xff] }
 0x2bf   : > { %v994_v46 = vadd.f32 %v993_v45, %v6144_v21  ;;  %2102 = vmatmul.f32.gmra.mxu2 %v4759_v47 }
 0x2c0   : > { %4371 = vst [vmem:[%s6162_s15 + $0x6c0] sm:$0xff] %v1618_v44 }
 0x2c1   : > { %v1202_v48 = vpop.f32.mrf.mxu1  ;;  %1684 = vmatmul.f32.gmra.mxu0 %v4760_v49  ;;  %2311 = vmatmul.f32.gmra.mxu3 %v4761_v51  ;;  %v719_v49 = vld [vmem:[%s5985_s4 + $0x570] sm:$0xff]  ;;  %v4780_v51 = vld [vmem:[%s5975_s12 + $0x180] sm:$0xff] }
 0x2c2   : > { %v1203_v50 = vadd.f32 %v1202_v48, %v994_v46  ;;  %v1411_v52 = vpop.f32.mrf.mxu2  ;;  %v4779_v48 = vld [vmem:[%s5975_s12 + $0x190] sm:$0xff]  ;;  %2905 = vmatpush.msra.mxu2 %v719_v49 }
 0x2c3   : > { %v651_v49 = vld [vmem:[%s5985_s4 + $0x350] sm:$0xff] }
 0x2c4   : > { %v1412_v53 = vadd.f32 %v1411_v52, %v1203_v50  ;;  %1893 = vmatmul.f32.gmra.mxu1 %v4762_v54  ;;  %v1620_v55 = vpop.f32.mrf.mxu3  ;;  %v591_v54 = vld [vmem:[%s5985_s4 + $0x170] sm:$0xff] }
 0x2c5   : > { %2487 = vmatpush.msra.mxu0 %v591_v54  ;;  %v4800_v54 = vld [vmem:[%s5975_s12 + $0x230] sm:$0xff] }
 0x2c6   : > { %v1621_v56 = vadd.f32 %v1620_v55, %v1412_v53  ;;  %v996_v57 = vpop.f32.mrf.mxu0  ;;  %v4781_v53 = vld [vmem:[%s5975_s12 + $0x198] sm:$0xff]  ;;  %v783_v55 = vld [vmem:[%s5985_s4 + $0x770] sm:$0xff] }
 0x2c7   : > { %v997_v58 = vadd.f32 %v996_v57, %v6144_v21  ;;  %2105 = vmatmul.f32.gmra.mxu2 %v4763_v59  ;;  %3114 = vmatpush.msra.mxu3 %v783_v55  ;;  %v655_v59 = vld [vmem:[%s5985_s4 + $0x370] sm:$0xff] }
 0x2c8   : > { %4375 = vst [vmem:[%s6162_s15 + $0x6e0] sm:$0xff] %v1621_v56  ;;  %2696 = vmatpush.msra.mxu1 %v655_v59 }
 0x2c9   : > { %v1205_v61 = vpop.f32.mrf.mxu1  ;;  %1687 = vmatmul.f32.gmra.mxu0 %v4764_v62  ;;  %2314 = vmatmul.f32.gmra.mxu3 %v4765_v0  ;;  %v4783_v0 = vld [vmem:[%s5975_s12 + $0x1b0] sm:$0xff] }
 0x2ca   : > { %v1206_v63 = vadd.f32 %v1205_v61, %v997_v58  ;;  %v1414_v3 = vpop.f32.mrf.mxu2  ;;  %v4782_v58 = vld [vmem:[%s5975_s12 + $0x188] sm:$0xff]  ;;  %2697 = vmatpush.msra.mxu1 %v651_v49 }
 0x2cc   : > { %v1415_v4 = vadd.f32 %v1414_v3, %v1206_v63  ;;  %1896 = vmatmul.f32.gmra.mxu1 %v4766_v5  ;;  %v1623_v7 = vpop.f32.mrf.mxu3 }
 0x2ce   : > { %v1624_v8 = vadd.f32 %v1623_v7, %v1415_v4  ;;  %v999_v9 = vpop.f32.mrf.mxu0  ;;  %v4785_v4 = vld [vmem:[%s5975_s12 + $0x1b8] sm:$0xff]  ;;  %v4786_v7 = vld [vmem:[%s5975_s12 + $0x1a8] sm:$0xff] }
 0x2cf   : > { %v1000_v10 = vadd.f32 %v999_v9, %v6144_v21  ;;  %2108 = vmatmul.f32.gmra.mxu2 %v4767_v11 }
 0x2d0   : > { %4379 = vst [vmem:[%s6162_s15 + $0x700] sm:$0xff] %v1624_v8 }
 0x2d1   : > { %v1208_v12 = vpop.f32.mrf.mxu1  ;;  %1690 = vmatmul.f32.gmra.mxu0 %v4768_v13  ;;  %2317 = vmatmul.f32.gmra.mxu3 %v4769_v15 }
 0x2d2   : > { %v1209_v14 = vadd.f32 %v1208_v12, %v1000_v10  ;;  %v1417_v16 = vpop.f32.mrf.mxu2  ;;  %v4787_v12 = vld [vmem:[%s5975_s12 + $0x1d0] sm:$0xff] }
 0x2d4   : > { %v1418_v17 = vadd.f32 %v1417_v16, %v1209_v14  ;;  %1899 = vmatmul.f32.gmra.mxu1 %v4770_v18  ;;  %v1626_v19 = vpop.f32.mrf.mxu3  ;;  %v4788_v14 = vld [vmem:[%s5975_s12 + $0x1c0] sm:$0xff]  ;;  %v4789_v16 = vld [vmem:[%s5975_s12 + $0x1d8] sm:$0xff] }
 0x2d6   : > { %v1627_v20 = vadd.f32 %v1626_v19, %v1418_v17  ;;  %v1002_v22 = vpop.f32.mrf.mxu0  ;;  %v4790_v19 = vld [vmem:[%s5975_s12 + $0x1c8] sm:$0xff] }
 0x2d7   : > { %v1003_v23 = vadd.f32 %v1002_v22, %v6144_v21  ;;  %2111 = vmatmul.f32.gmra.mxu2 %v4771_v24 }
 0x2d8   : > { %4383 = vst [vmem:[%s6162_s15 + $0x720] sm:$0xff] %v1627_v20 }
 0x2d9   : > { %v1211_v25 = vpop.f32.mrf.mxu1  ;;  %1693 = vmatmul.f32.gmra.mxu0 %v4772_v26  ;;  %2320 = vmatmul.f32.gmra.mxu3 %v4773_v28 }
 0x2da   : > { %v1212_v27 = vadd.f32 %v1211_v25, %v1003_v23  ;;  %v1420_v29 = vpop.f32.mrf.mxu2  ;;  %v4791_v25 = vld [vmem:[%s5975_s12 + $0x1f0] sm:$0xff] }
 0x2dc   : > { %v1421_v30 = vadd.f32 %v1420_v29, %v1212_v27  ;;  %1902 = vmatmul.f32.gmra.mxu1 %v4774_v31  ;;  %v1629_v32 = vpop.f32.mrf.mxu3  ;;  %v4792_v27 = vld [vmem:[%s5975_s12 + $0x1e0] sm:$0xff]  ;;  %v4793_v29 = vld [vmem:[%s5975_s12 + $0x1f8] sm:$0xff] }
 0x2dd   : > { %v4794_v31 = vld [vmem:[%s6140_s8] sm:$0xf] }
 0x2de   : > { %v1630_v33 = vadd.f32 %v1629_v32, %v1421_v30  ;;  %v1005_v34 = vpop.f32.mrf.mxu0  ;;  %v6598_v32 = vperm.slane %v4794_v31, 1 }
 0x2df   : > { %v1006_v35 = vadd.f32 %v1005_v34, %v6144_v21  ;;  %2114 = vmatmul.f32.gmra.mxu2 %v4775_v36 }
 0x2e0   : > { %4387 = vst [vmem:[%s6162_s15 + $0x740] sm:$0xff] %v1630_v33 }
 0x2e1   : > { %v1214_v37 = vpop.f32.mrf.mxu1  ;;  %1696 = vmatmul.f32.gmra.mxu0 %v4776_v38  ;;  %2323 = vmatmul.f32.gmra.mxu3 %v4777_v40  ;;  %v4796_v38 = vld [vmem:[%s5975_s12 + $0x210] sm:$0xff] }
 0x2e2   : > { %v1215_v39 = vadd.f32 %v1214_v37, %v1006_v35  ;;  %v1423_v41 = vpop.f32.mrf.mxu2 }
 0x2e4   : > { %v1424_v42 = vadd.f32 %v1423_v41, %v1215_v39  ;;  %1905 = vmatmul.f32.gmra.mxu1 %v4778_v43  ;;  %v1632_v44 = vpop.f32.mrf.mxu3  ;;  %v715_v39 = vld [vmem:[%s5985_s4 + $0x550] sm:$0xff]  ;;  %v4797_v41 = vld [vmem:[%s5975_s12 + $0x200] sm:$0xff]  ;;  %v4798_v43 = vld [vmem:[%s5975_s12 + $0x218] sm:$0xff] }
 0x2e5   : > { %2906 = vmatpush.msra.mxu2 %v715_v39 }
 0x2e6   : > { %v1633_v45 = vadd.f32 %v1632_v44, %v1424_v42  ;;  %v1008_v46 = vpop.f32.mrf.mxu0  ;;  %v587_v44 = vld [vmem:[%s5985_s4 + $0x150] sm:$0xff] }
 0x2e7   : > { %v1009_v47 = vadd.f32 %v1008_v46, %v6144_v21  ;;  %2117 = vmatmul.f32.gmra.mxu2 %v4779_v48  ;;  %2488 = vmatpush.msra.mxu0 %v587_v44  ;;  %v4799_v48 = vld [vmem:[%s5975_s12 + $0x208] sm:$0xff] }
 0x2e8   : > { %4391 = vst [vmem:[%s6162_s15 + $0x760] sm:$0xff] %v1633_v45  ;;  %v779_v45 = vld [vmem:[%s5985_s4 + $0x750] sm:$0xff] }
 0x2e9   : > { %v1217_v50 = vpop.f32.mrf.mxu1  ;;  %1699 = vmatmul.f32.gmra.mxu0 %v4780_v51  ;;  %2326 = vmatmul.f32.gmra.mxu3 %v4781_v53 }
 0x2ea   : > { %v1218_v52 = vadd.f32 %v1217_v50, %v1009_v47  ;;  %v1426_v56 = vpop.f32.mrf.mxu2  ;;  %3115 = vmatpush.msra.mxu3 %v779_v45  ;;  %v4817_v45 = vld [vmem:[%s5975_s12 + $0x2a0] sm:$0xff] }
 0x2ec   : > { %v1427_v57 = vadd.f32 %v1426_v56, %v1218_v52  ;;  %1908 = vmatmul.f32.gmra.mxu1 %v4782_v58  ;;  %v1635_v60 = vpop.f32.mrf.mxu3  ;;  %v4801_v56 = vld [vmem:[%s5975_s12 + $0x220] sm:$0xff]  ;;  %v4802_v58 = vld [vmem:[%s5975_s12 + $0x238] sm:$0xff] }
 0x2ee   : > { %v1636_v61 = vadd.f32 %v1635_v60, %v1427_v57  ;;  %v1011_v62 = vpop.f32.mrf.mxu0 }
 0x2ef   : > { %v1012_v63 = vadd.f32 %v1011_v62, %v6144_v21  ;;  %2120 = vmatmul.f32.gmra.mxu2 %v4783_v0 }
 0x2f0   : > { %4395 = vst [vmem:[%s6162_s15 + $0x780] sm:$0xff] %v1636_v61  ;;  %v4803_v61 = vld [vmem:[%s5975_s12 + $0x228] sm:$0xff] }
 0x2f1   : > { %v1220_v1 = vpop.f32.mrf.mxu1  ;;  %1702 = vmatmul.f32.gmra.mxu0 %v4784_v2  ;;  %2329 = vmatmul.f32.gmra.mxu3 %v4785_v4  ;;  %v4804_v2 = vld [vmem:[%s5975_s12 + $0x250] sm:$0xff]  ;;  %v4805_v4 = vld [vmem:[%s5975_s12 + $0x240] sm:$0xff] }
 0x2f2   : > { %v1221_v3 = vadd.f32 %v1220_v1, %v1012_v63  ;;  %v1429_v5 = vpop.f32.mrf.mxu2 }
 0x2f4   : > { %v1430_v6 = vadd.f32 %v1429_v5, %v1221_v3  ;;  %1911 = vmatmul.f32.gmra.mxu1 %v4786_v7  ;;  %v1638_v8 = vpop.f32.mrf.mxu3 }
 0x2f6   : > { %v1639_v9 = vadd.f32 %v1638_v8, %v1430_v6  ;;  %v1014_v10 = vpop.f32.mrf.mxu0  ;;  %v4806_v6 = vld [vmem:[%s5975_s12 + $0x258] sm:$0xff] }
 0x2f7   : > { %v1015_v11 = vadd.f32 %v1014_v10, %v6144_v21  ;;  %2123 = vmatmul.f32.gmra.mxu2 %v4787_v12 }
 0x2f8   : > { %4399 = vst [vmem:[%s6162_s15 + $0x7a0] sm:$0xff] %v1639_v9  ;;  %v4807_v9 = vld [vmem:[%s5975_s12 + $0x248] sm:$0xff] }
 0x2f9   : > { %v1223_v13 = vpop.f32.mrf.mxu1  ;;  %1705 = vmatmul.f32.gmra.mxu0 %v4788_v14  ;;  %2332 = vmatmul.f32.gmra.mxu3 %v4789_v16  ;;  %v4808_v14 = vld [vmem:[%s5975_s12 + $0x270] sm:$0xff]  ;;  %v4809_v16 = vld [vmem:[%s5975_s12 + $0x260] sm:$0xff] }
 0x2fa   : > { %v1224_v15 = vadd.f32 %v1223_v13, %v1015_v11  ;;  %v1432_v17 = vpop.f32.mrf.mxu2 }
 0x2fc   : > { %v1433_v18 = vadd.f32 %v1432_v17, %v1224_v15  ;;  %1914 = vmatmul.f32.gmra.mxu1 %v4790_v19  ;;  %v1641_v20 = vpop.f32.mrf.mxu3 }
 0x2fe   : > { %v1642_v22 = vadd.f32 %v1641_v20, %v1433_v18  ;;  %v1017_v23 = vpop.f32.mrf.mxu0  ;;  %v4810_v18 = vld [vmem:[%s5975_s12 + $0x278] sm:$0xff] }
 0x2ff   : > { %v1018_v24 = vadd.f32 %v1017_v23, %v6144_v21  ;;  %2126 = vmatmul.f32.gmra.mxu2 %v4791_v25  ;;  %v4795_v21 = vld [vmem:[%s5975_s12 + $0x1e8] sm:$0xff] }
 0x300   : > { %4403 = vst [vmem:[%s6162_s15 + $0x7c0] sm:$0xff] %v1642_v22  ;;  %v4811_v22 = vld [vmem:[%s5975_s12 + $0x268] sm:$0xff] }
 0x301   : > { %v1226_v26 = vpop.f32.mrf.mxu1  ;;  %1708 = vmatmul.f32.gmra.mxu0 %v4792_v27  ;;  %2335 = vmatmul.f32.gmra.mxu3 %v4793_v29  ;;  %v4812_v27 = vld [vmem:[%s5975_s12 + $0x290] sm:$0xff] }
 0x302   : > { %v1227_v28 = vadd.f32 %v1226_v26, %v1018_v24  ;;  %v1435_v30 = vpop.f32.mrf.mxu2 }
 0x304   : > { %v1436_v33 = vadd.f32 %v1435_v30, %v1227_v28  ;;  %1917 = vmatmul.f32.gmra.mxu1 %v4795_v21  ;;  %v1644_v34 = vpop.f32.mrf.mxu3  ;;  %v711_v28 = vld [vmem:[%s5985_s4 + $0x530] sm:$0xff]  ;;  %v4813_v30 = vld [vmem:[%s5975_s12 + $0x280] sm:$0xff] }
 0x305   : > { %2907 = vmatpush.msra.mxu2 %v711_v28  ;;  %v583_v21 = vld [vmem:[%s5985_s4 + $0x130] sm:$0xff] }
 0x306   : > { %v1645_v35 = vadd.f32 %v1644_v34, %v1436_v33  ;;  %v1664_v36 = vpop.f32.mrf.mxu0  ;;  %v4814_v33 = vld [vmem:[%s5975_s12 + $0x298] sm:$0xff]  ;;  %v775_v34 = vld [vmem:[%s5985_s4 + $0x730] sm:$0xff]  ;;  %2489 = vmatpush.msra.mxu0 %v583_v21 }
 0x307   : > { %v1665_v37 = vadd.f32 %v1664_v36, %v6598_v32  ;;  %2129 = vmatmul.f32.gmra.mxu2 %v4796_v38  ;;  %3116 = vmatpush.msra.mxu3 %v775_v34  ;;  %v647_v38 = vld [vmem:[%s5985_s4 + $0x330] sm:$0xff]  ;;  %v4833_v34 = vld [vmem:[%s5975_s12 + $0x320] sm:$0xff] }
 0x308   : > { %4407 = vst [vmem:[%s6162_s15 + $0x7e0] sm:$0xff] %v1645_v35  ;;  %2698 = vmatpush.msra.mxu1 %v647_v38 }
 0x309   : > { %v1873_v40 = vpop.f32.mrf.mxu1  ;;  %1711 = vmatmul.f32.gmra.mxu0 %v4797_v41  ;;  %2338 = vmatmul.f32.gmra.mxu3 %v4798_v43  ;;  %v4816_v43 = vld [vmem:[%s5975_s12 + $0x2b0] sm:$0xff] }
 0x30a   : > { %v1874_v42 = vadd.f32 %v1873_v40, %v1665_v37  ;;  %v2082_v46 = vpop.f32.mrf.mxu2  ;;  %v4815_v37 = vld [vmem:[%s5975_s12 + $0x288] sm:$0xff] }
 0x30c   : > { %v2083_v47 = vadd.f32 %v2082_v46, %v1874_v42  ;;  %1920 = vmatmul.f32.gmra.mxu1 %v4799_v48  ;;  %v2291_v50 = vpop.f32.mrf.mxu3 }
 0x30e   : > { %v2292_v51 = vadd.f32 %v2291_v50, %v2083_v47  ;;  %v1667_v52 = vpop.f32.mrf.mxu0  ;;  %v4818_v47 = vld [vmem:[%s5975_s12 + $0x2b8] sm:$0xff]  ;;  %v4819_v50 = vld [vmem:[%s5975_s12 + $0x2a8] sm:$0xff] }
 0x30f   : > { %v1668_v53 = vadd.f32 %v1667_v52, %v6598_v32  ;;  %2132 = vmatmul.f32.gmra.mxu2 %v4800_v54 }
 0x310   : > { %4156 = vst [vmem:[%s6162_s15 + $0x8] sm:$0xff] %v2292_v51 }
 0x311   : > { %v1876_v55 = vpop.f32.mrf.mxu1  ;;  %1714 = vmatmul.f32.gmra.mxu0 %v4801_v56  ;;  %2341 = vmatmul.f32.gmra.mxu3 %v4802_v58 }
 0x312   : > { %v1877_v57 = vadd.f32 %v1876_v55, %v1668_v53  ;;  %v2085_v59 = vpop.f32.mrf.mxu2  ;;  %v4820_v55 = vld [vmem:[%s5975_s12 + $0x2d0] sm:$0xff] }
 0x314   : > { %v2086_v60 = vadd.f32 %v2085_v59, %v1877_v57  ;;  %1923 = vmatmul.f32.gmra.mxu1 %v4803_v61  ;;  %v2294_v62 = vpop.f32.mrf.mxu3  ;;  %v4821_v57 = vld [vmem:[%s5975_s12 + $0x2c0] sm:$0xff]  ;;  %v4822_v59 = vld [vmem:[%s5975_s12 + $0x2d8] sm:$0xff] }
 0x316   : > { %v2295_v63 = vadd.f32 %v2294_v62, %v2086_v60  ;;  %v1670_v0 = vpop.f32.mrf.mxu0  ;;  %v4823_v62 = vld [vmem:[%s5975_s12 + $0x2c8] sm:$0xff] }
 0x317   : > { %v1671_v1 = vadd.f32 %v1670_v0, %v6598_v32  ;;  %2135 = vmatmul.f32.gmra.mxu2 %v4804_v2 }
 0x318   : > { %4160 = vst [vmem:[%s6162_s15 + $0x28] sm:$0xff] %v2295_v63 }
 0x319   : > { %v1879_v3 = vpop.f32.mrf.mxu1  ;;  %1717 = vmatmul.f32.gmra.mxu0 %v4805_v4  ;;  %2344 = vmatmul.f32.gmra.mxu3 %v4806_v6 }
 0x31a   : > { %v1880_v5 = vadd.f32 %v1879_v3, %v1671_v1  ;;  %v2088_v7 = vpop.f32.mrf.mxu2  ;;  %v4824_v3 = vld [vmem:[%s5975_s12 + $0x2f0] sm:$0xff] }
 0x31c   : > { %v2089_v8 = vadd.f32 %v2088_v7, %v1880_v5  ;;  %1926 = vmatmul.f32.gmra.mxu1 %v4807_v9  ;;  %v2297_v10 = vpop.f32.mrf.mxu3  ;;  %v4825_v5 = vld [vmem:[%s5975_s12 + $0x2e0] sm:$0xff]  ;;  %v4826_v7 = vld [vmem:[%s5975_s12 + $0x2f8] sm:$0xff] }
 0x31e   : > { %v2298_v11 = vadd.f32 %v2297_v10, %v2089_v8  ;;  %v1673_v12 = vpop.f32.mrf.mxu0  ;;  %v4827_v10 = vld [vmem:[%s5975_s12 + $0x2e8] sm:$0xff] }
 0x31f   : > { %v1674_v13 = vadd.f32 %v1673_v12, %v6598_v32  ;;  %2138 = vmatmul.f32.gmra.mxu2 %v4808_v14 }
 0x320   : > { %4164 = vst [vmem:[%s6162_s15 + $0x48] sm:$0xff] %v2298_v11 }
 0x321   : > { %v1882_v15 = vpop.f32.mrf.mxu1  ;;  %1720 = vmatmul.f32.gmra.mxu0 %v4809_v16  ;;  %2347 = vmatmul.f32.gmra.mxu3 %v4810_v18  ;;  %v707_v16 = vld [vmem:[%s5985_s4 + $0x510] sm:$0xff]  ;;  %v4829_v18 = vld [vmem:[%s5975_s12 + $0x300] sm:$0xff] }
 0x322   : > { %v1883_v17 = vadd.f32 %v1882_v15, %v1674_v13  ;;  %v2091_v19 = vpop.f32.mrf.mxu2  ;;  %v4828_v15 = vld [vmem:[%s5975_s12 + $0x310] sm:$0xff]  ;;  %2908 = vmatpush.msra.mxu2 %v707_v16 }
 0x324   : > { %v2092_v20 = vadd.f32 %v2091_v19, %v1883_v17  ;;  %1929 = vmatmul.f32.gmra.mxu1 %v4811_v22  ;;  %v2300_v23 = vpop.f32.mrf.mxu3  ;;  %v579_v22 = vld [vmem:[%s5985_s4 + $0x110] sm:$0xff] }
 0x325   : > { %2490 = vmatpush.msra.mxu0 %v579_v22 }
 0x326   : > { %v2301_v24 = vadd.f32 %v2300_v23, %v2092_v20  ;;  %v1676_v25 = vpop.f32.mrf.mxu0  ;;  %v4830_v20 = vld [vmem:[%s5975_s12 + $0x318] sm:$0xff]  ;;  %v771_v23 = vld [vmem:[%s5985_s4 + $0x710] sm:$0xff] }
 0x327   : > { %v1677_v26 = vadd.f32 %v1676_v25, %v6598_v32  ;;  %2141 = vmatmul.f32.gmra.mxu2 %v4812_v27  ;;  %3117 = vmatpush.msra.mxu3 %v771_v23  ;;  %v643_v27 = vld [vmem:[%s5985_s4 + $0x310] sm:$0xff]  ;;  %v4849_v23 = vld [vmem:[%s5975_s12 + $0x3a0] sm:$0xff] }
 0x328   : > { %4168 = vst [vmem:[%s6162_s15 + $0x68] sm:$0xff] %v2301_v24  ;;  %2699 = vmatpush.msra.mxu1 %v643_v27 }
 0x329   : > { %v1885_v29 = vpop.f32.mrf.mxu1  ;;  %1723 = vmatmul.f32.gmra.mxu0 %v4813_v30  ;;  %2350 = vmatmul.f32.gmra.mxu3 %v4814_v33  ;;  %v4832_v33 = vld [vmem:[%s5975_s12 + $0x330] sm:$0xff] }
 0x32a   : > { %v1886_v31 = vadd.f32 %v1885_v29, %v1677_v26  ;;  %v2094_v35 = vpop.f32.mrf.mxu2  ;;  %v4831_v26 = vld [vmem:[%s5975_s12 + $0x308] sm:$0xff] }
 0x32c   : > { %v2095_v36 = vadd.f32 %v2094_v35, %v1886_v31  ;;  %1932 = vmatmul.f32.gmra.mxu1 %v4815_v37  ;;  %v2303_v39 = vpop.f32.mrf.mxu3 }
 0x32e   : > { %v2304_v40 = vadd.f32 %v2303_v39, %v2095_v36  ;;  %v1679_v41 = vpop.f32.mrf.mxu0  ;;  %v4834_v36 = vld [vmem:[%s5975_s12 + $0x338] sm:$0xff]  ;;  %v4835_v39 = vld [vmem:[%s5975_s12 + $0x328] sm:$0xff] }
 0x32f   : > { %v1680_v42 = vadd.f32 %v1679_v41, %v6598_v32  ;;  %2144 = vmatmul.f32.gmra.mxu2 %v4816_v43 }
 0x330   : > { %4172 = vst [vmem:[%s6162_s15 + $0x88] sm:$0xff] %v2304_v40 }
 0x331   : > { %v1888_v44 = vpop.f32.mrf.mxu1  ;;  %1726 = vmatmul.f32.gmra.mxu0 %v4817_v45  ;;  %2353 = vmatmul.f32.gmra.mxu3 %v4818_v47 }
 0x332   : > { %v1889_v46 = vadd.f32 %v1888_v44, %v1680_v42  ;;  %v2097_v48 = vpop.f32.mrf.mxu2  ;;  %v4836_v44 = vld [vmem:[%s5975_s12 + $0x350] sm:$0xff] }
 0x334   : > { %v2098_v49 = vadd.f32 %v2097_v48, %v1889_v46  ;;  %1935 = vmatmul.f32.gmra.mxu1 %v4819_v50  ;;  %v2306_v51 = vpop.f32.mrf.mxu3  ;;  %v4837_v46 = vld [vmem:[%s5975_s12 + $0x340] sm:$0xff]  ;;  %v4838_v48 = vld [vmem:[%s5975_s12 + $0x358] sm:$0xff] }
 0x336   : > { %v2307_v52 = vadd.f32 %v2306_v51, %v2098_v49  ;;  %v1682_v53 = vpop.f32.mrf.mxu0  ;;  %v4839_v51 = vld [vmem:[%s5975_s12 + $0x348] sm:$0xff] }
 0x337   : > { %v1683_v54 = vadd.f32 %v1682_v53, %v6598_v32  ;;  %2147 = vmatmul.f32.gmra.mxu2 %v4820_v55 }
 0x338   : > { %4176 = vst [vmem:[%s6162_s15 + $0xa8] sm:$0xff] %v2307_v52 }
 0x339   : > { %v1891_v56 = vpop.f32.mrf.mxu1  ;;  %1729 = vmatmul.f32.gmra.mxu0 %v4821_v57  ;;  %2356 = vmatmul.f32.gmra.mxu3 %v4822_v59 }
 0x33a   : > { %v1892_v58 = vadd.f32 %v1891_v56, %v1683_v54  ;;  %v2100_v60 = vpop.f32.mrf.mxu2  ;;  %v4840_v56 = vld [vmem:[%s5975_s12 + $0x370] sm:$0xff] }
 0x33c   : > { %v2101_v61 = vadd.f32 %v2100_v60, %v1892_v58  ;;  %1938 = vmatmul.f32.gmra.mxu1 %v4823_v62  ;;  %v2309_v63 = vpop.f32.mrf.mxu3  ;;  %v4841_v58 = vld [vmem:[%s5975_s12 + $0x360] sm:$0xff]  ;;  %v4842_v60 = vld [vmem:[%s5975_s12 + $0x378] sm:$0xff] }
 0x33e   : > { %v2310_v0 = vadd.f32 %v2309_v63, %v2101_v61  ;;  %v1685_v1 = vpop.f32.mrf.mxu0  ;;  %v4843_v63 = vld [vmem:[%s5975_s12 + $0x368] sm:$0xff] }
 0x33f   : > { %v1686_v2 = vadd.f32 %v1685_v1, %v6598_v32  ;;  %2150 = vmatmul.f32.gmra.mxu2 %v4824_v3 }
 0x340   : > { %4180 = vst [vmem:[%s6162_s15 + $0xc8] sm:$0xff] %v2310_v0 }
 0x341   : > { %v1894_v4 = vpop.f32.mrf.mxu1  ;;  %1732 = vmatmul.f32.gmra.mxu0 %v4825_v5  ;;  %2359 = vmatmul.f32.gmra.mxu3 %v4826_v7  ;;  %v703_v5 = vld [vmem:[%s5985_s4 + $0x4f0] sm:$0xff]  ;;  %v4845_v7 = vld [vmem:[%s5975_s12 + $0x380] sm:$0xff] }
 0x342   : > { %v1895_v6 = vadd.f32 %v1894_v4, %v1686_v2  ;;  %v2103_v8 = vpop.f32.mrf.mxu2  ;;  %v4844_v4 = vld [vmem:[%s5975_s12 + $0x390] sm:$0xff]  ;;  %2909 = vmatpush.msra.mxu2 %v703_v5 }
 0x344   : > { %v2104_v9 = vadd.f32 %v2103_v8, %v1895_v6  ;;  %1941 = vmatmul.f32.gmra.mxu1 %v4827_v10  ;;  %v2312_v11 = vpop.f32.mrf.mxu3  ;;  %v575_v10 = vld [vmem:[%s5985_s4 + $0xf0] sm:$0xff] }
 0x345   : > { %2491 = vmatpush.msra.mxu0 %v575_v10 }
 0x346   : > { %v2313_v12 = vadd.f32 %v2312_v11, %v2104_v9  ;;  %v1688_v13 = vpop.f32.mrf.mxu0  ;;  %v4846_v9 = vld [vmem:[%s5975_s12 + $0x398] sm:$0xff]  ;;  %v767_v11 = vld [vmem:[%s5985_s4 + $0x6f0] sm:$0xff] }
 0x347   : > { %v1689_v14 = vadd.f32 %v1688_v13, %v6598_v32  ;;  %2153 = vmatmul.f32.gmra.mxu2 %v4828_v15  ;;  %3118 = vmatpush.msra.mxu3 %v767_v11  ;;  %v639_v15 = vld [vmem:[%s5985_s4 + $0x2f0] sm:$0xff]  ;;  %v4865_v11 = vld [vmem:[%s5975_s12 + $0x420] sm:$0xff] }
 0x348   : > { %4184 = vst [vmem:[%s6162_s15 + $0xe8] sm:$0xff] %v2313_v12  ;;  %2700 = vmatpush.msra.mxu1 %v639_v15 }
 0x349   : > { %v1897_v17 = vpop.f32.mrf.mxu1  ;;  %1735 = vmatmul.f32.gmra.mxu0 %v4829_v18  ;;  %2362 = vmatmul.f32.gmra.mxu3 %v4830_v20  ;;  %v4848_v20 = vld [vmem:[%s5975_s12 + $0x3b0] sm:$0xff] }
 0x34a   : > { %v1898_v19 = vadd.f32 %v1897_v17, %v1689_v14  ;;  %v2106_v24 = vpop.f32.mrf.mxu2  ;;  %v4847_v14 = vld [vmem:[%s5975_s12 + $0x388] sm:$0xff] }
 0x34c   : > { %v2107_v25 = vadd.f32 %v2106_v24, %v1898_v19  ;;  %1944 = vmatmul.f32.gmra.mxu1 %v4831_v26  ;;  %v2315_v28 = vpop.f32.mrf.mxu3 }
 0x34e   : > { %v2316_v29 = vadd.f32 %v2315_v28, %v2107_v25  ;;  %v1691_v30 = vpop.f32.mrf.mxu0  ;;  %v4850_v25 = vld [vmem:[%s5975_s12 + $0x3b8] sm:$0xff]  ;;  %v4851_v28 = vld [vmem:[%s5975_s12 + $0x3a8] sm:$0xff] }
 0x34f   : > { %v1692_v31 = vadd.f32 %v1691_v30, %v6598_v32  ;;  %2156 = vmatmul.f32.gmra.mxu2 %v4832_v33 }
 0x350   : > { %4188 = vst [vmem:[%s6162_s15 + $0x108] sm:$0xff] %v2316_v29 }
 0x351   : > { %v1900_v21 = vpop.f32.mrf.mxu1  ;;  %1738 = vmatmul.f32.gmra.mxu0 %v4833_v34  ;;  %2365 = vmatmul.f32.gmra.mxu3 %v4834_v36 }
 0x352   : > { %v1901_v35 = vadd.f32 %v1900_v21, %v1692_v31  ;;  %v2109_v37 = vpop.f32.mrf.mxu2  ;;  %v4852_v21 = vld [vmem:[%s5975_s12 + $0x3d0] sm:$0xff] }
 0x354   : > { %v2110_v38 = vadd.f32 %v2109_v37, %v1901_v35  ;;  %1947 = vmatmul.f32.gmra.mxu1 %v4835_v39  ;;  %v2318_v40 = vpop.f32.mrf.mxu3  ;;  %v4853_v35 = vld [vmem:[%s5975_s12 + $0x3c0] sm:$0xff]  ;;  %v4854_v37 = vld [vmem:[%s5975_s12 + $0x3d8] sm:$0xff] }
 0x356   : > { %v2319_v41 = vadd.f32 %v2318_v40, %v2110_v38  ;;  %v1694_v42 = vpop.f32.mrf.mxu0  ;;  %v4855_v40 = vld [vmem:[%s5975_s12 + $0x3c8] sm:$0xff] }
 0x357   : > { %v1695_v43 = vadd.f32 %v1694_v42, %v6598_v32  ;;  %2159 = vmatmul.f32.gmra.mxu2 %v4836_v44 }
 0x358   : > { %4192 = vst [vmem:[%s6162_s15 + $0x128] sm:$0xff] %v2319_v41 }
 0x359   : > { %v1903_v45 = vpop.f32.mrf.mxu1  ;;  %1741 = vmatmul.f32.gmra.mxu0 %v4837_v46  ;;  %2368 = vmatmul.f32.gmra.mxu3 %v4838_v48 }
 0x35a   : > { %v1904_v47 = vadd.f32 %v1903_v45, %v1695_v43  ;;  %v2112_v49 = vpop.f32.mrf.mxu2  ;;  %v4856_v45 = vld [vmem:[%s5975_s12 + $0x3f0] sm:$0xff] }
 0x35c   : > { %v2113_v50 = vadd.f32 %v2112_v49, %v1904_v47  ;;  %1950 = vmatmul.f32.gmra.mxu1 %v4839_v51  ;;  %v2321_v52 = vpop.f32.mrf.mxu3  ;;  %v4857_v47 = vld [vmem:[%s5975_s12 + $0x3e0] sm:$0xff]  ;;  %v4858_v49 = vld [vmem:[%s5975_s12 + $0x3f8] sm:$0xff] }
 0x35e   : > { %v2322_v53 = vadd.f32 %v2321_v52, %v2113_v50  ;;  %v1697_v54 = vpop.f32.mrf.mxu0  ;;  %v4859_v52 = vld [vmem:[%s5975_s12 + $0x3e8] sm:$0xff] }
 0x35f   : > { %v1698_v55 = vadd.f32 %v1697_v54, %v6598_v32  ;;  %2162 = vmatmul.f32.gmra.mxu2 %v4840_v56 }
 0x360   : > { %4196 = vst [vmem:[%s6162_s15 + $0x148] sm:$0xff] %v2322_v53 }
 0x361   : > { %v1906_v57 = vpop.f32.mrf.mxu1  ;;  %1744 = vmatmul.f32.gmra.mxu0 %v4841_v58  ;;  %2371 = vmatmul.f32.gmra.mxu3 %v4842_v60  ;;  %v699_v58 = vld [vmem:[%s5985_s4 + $0x4d0] sm:$0xff]  ;;  %v4861_v60 = vld [vmem:[%s5975_s12 + $0x400] sm:$0xff] }
 0x362   : > { %v1907_v59 = vadd.f32 %v1906_v57, %v1698_v55  ;;  %v2115_v61 = vpop.f32.mrf.mxu2  ;;  %v4860_v57 = vld [vmem:[%s5975_s12 + $0x410] sm:$0xff]  ;;  %2910 = vmatpush.msra.mxu2 %v699_v58 }
 0x364   : > { %v2116_v62 = vadd.f32 %v2115_v61, %v1907_v59  ;;  %1953 = vmatmul.f32.gmra.mxu1 %v4843_v63  ;;  %v2324_v0 = vpop.f32.mrf.mxu3  ;;  %v571_v63 = vld [vmem:[%s5985_s4 + $0xd0] sm:$0xff] }
 0x365   : > { %2492 = vmatpush.msra.mxu0 %v571_v63 }
 0x366   : > { %v2325_v1 = vadd.f32 %v2324_v0, %v2116_v62  ;;  %v1700_v2 = vpop.f32.mrf.mxu0  ;;  %v4862_v62 = vld [vmem:[%s5975_s12 + $0x418] sm:$0xff]  ;;  %v763_v0 = vld [vmem:[%s5985_s4 + $0x6d0] sm:$0xff] }
 0x367   : > { %v1701_v3 = vadd.f32 %v1700_v2, %v6598_v32  ;;  %2165 = vmatmul.f32.gmra.mxu2 %v4844_v4  ;;  %3119 = vmatpush.msra.mxu3 %v763_v0  ;;  %v635_v4 = vld [vmem:[%s5985_s4 + $0x2d0] sm:$0xff]  ;;  %v4881_v0 = vld [vmem:[%s5975_s12 + $0x4a0] sm:$0xff] }
 0x368   : > { %4200 = vst [vmem:[%s6162_s15 + $0x168] sm:$0xff] %v2325_v1  ;;  %2701 = vmatpush.msra.mxu1 %v635_v4 }
 0x369   : > { %v1909_v6 = vpop.f32.mrf.mxu1  ;;  %1747 = vmatmul.f32.gmra.mxu0 %v4845_v7  ;;  %2374 = vmatmul.f32.gmra.mxu3 %v4846_v9  ;;  %v4864_v9 = vld [vmem:[%s5975_s12 + $0x430] sm:$0xff] }
 0x36a   : > { %v1910_v8 = vadd.f32 %v1909_v6, %v1701_v3  ;;  %v2118_v12 = vpop.f32.mrf.mxu2  ;;  %v4863_v3 = vld [vmem:[%s5975_s12 + $0x408] sm:$0xff] }
 0x36c   : > { %v2119_v13 = vadd.f32 %v2118_v12, %v1910_v8  ;;  %1956 = vmatmul.f32.gmra.mxu1 %v4847_v14  ;;  %v2327_v16 = vpop.f32.mrf.mxu3 }
 0x36e   : > { %v2328_v17 = vadd.f32 %v2327_v16, %v2119_v13  ;;  %v1703_v18 = vpop.f32.mrf.mxu0  ;;  %v4866_v13 = vld [vmem:[%s5975_s12 + $0x438] sm:$0xff]  ;;  %v4867_v16 = vld [vmem:[%s5975_s12 + $0x428] sm:$0xff] }
 0x36f   : > { %v1704_v19 = vadd.f32 %v1703_v18, %v6598_v32  ;;  %2168 = vmatmul.f32.gmra.mxu2 %v4848_v20 }
 0x370   : > { %4204 = vst [vmem:[%s6162_s15 + $0x188] sm:$0xff] %v2328_v17 }
 0x371   : > { %v1912_v22 = vpop.f32.mrf.mxu1  ;;  %1750 = vmatmul.f32.gmra.mxu0 %v4849_v23  ;;  %2377 = vmatmul.f32.gmra.mxu3 %v4850_v25 }
 0x372   : > { %v1913_v24 = vadd.f32 %v1912_v22, %v1704_v19  ;;  %v2121_v26 = vpop.f32.mrf.mxu2  ;;  %v4868_v22 = vld [vmem:[%s5975_s12 + $0x450] sm:$0xff] }
 0x374   : > { %v2122_v27 = vadd.f32 %v2121_v26, %v1913_v24  ;;  %1959 = vmatmul.f32.gmra.mxu1 %v4851_v28  ;;  %v2330_v29 = vpop.f32.mrf.mxu3  ;;  %v4869_v24 = vld [vmem:[%s5975_s12 + $0x440] sm:$0xff]  ;;  %v4870_v26 = vld [vmem:[%s5975_s12 + $0x458] sm:$0xff] }
 0x376   : > { %v2331_v30 = vadd.f32 %v2330_v29, %v2122_v27  ;;  %v1706_v31 = vpop.f32.mrf.mxu0  ;;  %v4871_v29 = vld [vmem:[%s5975_s12 + $0x448] sm:$0xff] }
 0x377   : > { %v1707_v33 = vadd.f32 %v1706_v31, %v6598_v32  ;;  %2171 = vmatmul.f32.gmra.mxu2 %v4852_v21 }
 0x378   : > { %4208 = vst [vmem:[%s6162_s15 + $0x1a8] sm:$0xff] %v2331_v30 }
 0x379   : > { %v1915_v34 = vpop.f32.mrf.mxu1  ;;  %1753 = vmatmul.f32.gmra.mxu0 %v4853_v35  ;;  %2380 = vmatmul.f32.gmra.mxu3 %v4854_v37 }
 0x37a   : > { %v1916_v36 = vadd.f32 %v1915_v34, %v1707_v33  ;;  %v2124_v38 = vpop.f32.mrf.mxu2  ;;  %v4872_v34 = vld [vmem:[%s5975_s12 + $0x470] sm:$0xff] }
 0x37c   : > { %v2125_v39 = vadd.f32 %v2124_v38, %v1916_v36  ;;  %1962 = vmatmul.f32.gmra.mxu1 %v4855_v40  ;;  %v2333_v41 = vpop.f32.mrf.mxu3  ;;  %v4873_v36 = vld [vmem:[%s5975_s12 + $0x460] sm:$0xff]  ;;  %v4874_v38 = vld [vmem:[%s5975_s12 + $0x478] sm:$0xff] }
 0x37e   : > { %v2334_v42 = vadd.f32 %v2333_v41, %v2125_v39  ;;  %v1709_v43 = vpop.f32.mrf.mxu0  ;;  %v4875_v41 = vld [vmem:[%s5975_s12 + $0x468] sm:$0xff] }
 0x37f   : > { %v1710_v44 = vadd.f32 %v1709_v43, %v6598_v32  ;;  %2174 = vmatmul.f32.gmra.mxu2 %v4856_v45 }
 0x380   : > { %4212 = vst [vmem:[%s6162_s15 + $0x1c8] sm:$0xff] %v2334_v42 }
 0x381   : > { %v1918_v46 = vpop.f32.mrf.mxu1  ;;  %1756 = vmatmul.f32.gmra.mxu0 %v4857_v47  ;;  %2383 = vmatmul.f32.gmra.mxu3 %v4858_v49  ;;  %v695_v47 = vld [vmem:[%s5985_s4 + $0x4b0] sm:$0xff]  ;;  %v4877_v49 = vld [vmem:[%s5975_s12 + $0x480] sm:$0xff] }
 0x382   : > { %v1919_v48 = vadd.f32 %v1918_v46, %v1710_v44  ;;  %v2127_v50 = vpop.f32.mrf.mxu2  ;;  %v4876_v46 = vld [vmem:[%s5975_s12 + $0x490] sm:$0xff]  ;;  %2911 = vmatpush.msra.mxu2 %v695_v47 }
 0x384   : > { %v2128_v51 = vadd.f32 %v2127_v50, %v1919_v48  ;;  %1965 = vmatmul.f32.gmra.mxu1 %v4859_v52  ;;  %v2336_v53 = vpop.f32.mrf.mxu3  ;;  %v567_v52 = vld [vmem:[%s5985_s4 + $0xb0] sm:$0xff] }
 0x385   : > { %2493 = vmatpush.msra.mxu0 %v567_v52 }
 0x386   : > { %v2337_v54 = vadd.f32 %v2336_v53, %v2128_v51  ;;  %v1712_v55 = vpop.f32.mrf.mxu0  ;;  %v4878_v51 = vld [vmem:[%s5975_s12 + $0x498] sm:$0xff]  ;;  %v759_v53 = vld [vmem:[%s5985_s4 + $0x6b0] sm:$0xff] }
 0x387   : > { %v1713_v56 = vadd.f32 %v1712_v55, %v6598_v32  ;;  %2177 = vmatmul.f32.gmra.mxu2 %v4860_v57  ;;  %3120 = vmatpush.msra.mxu3 %v759_v53  ;;  %v631_v57 = vld [vmem:[%s5985_s4 + $0x2b0] sm:$0xff]  ;;  %v4897_v53 = vld [vmem:[%s5975_s12 + $0x520] sm:$0xff] }
 0x388   : > { %4216 = vst [vmem:[%s6162_s15 + $0x1e8] sm:$0xff] %v2337_v54  ;;  %2702 = vmatpush.msra.mxu1 %v631_v57 }
 0x389   : > { %v1921_v59 = vpop.f32.mrf.mxu1  ;;  %1759 = vmatmul.f32.gmra.mxu0 %v4861_v60  ;;  %2386 = vmatmul.f32.gmra.mxu3 %v4862_v62  ;;  %v4880_v62 = vld [vmem:[%s5975_s12 + $0x4b0] sm:$0xff] }
 0x38a   : > { %v1922_v61 = vadd.f32 %v1921_v59, %v1713_v56  ;;  %v2130_v1 = vpop.f32.mrf.mxu2  ;;  %v4879_v56 = vld [vmem:[%s5975_s12 + $0x488] sm:$0xff] }
 0x38c   : > { %v2131_v2 = vadd.f32 %v2130_v1, %v1922_v61  ;;  %1968 = vmatmul.f32.gmra.mxu1 %v4863_v3  ;;  %v2339_v5 = vpop.f32.mrf.mxu3 }
 0x38e   : > { %v2340_v6 = vadd.f32 %v2339_v5, %v2131_v2  ;;  %v1715_v7 = vpop.f32.mrf.mxu0  ;;  %v4882_v2 = vld [vmem:[%s5975_s12 + $0x4b8] sm:$0xff]  ;;  %v4883_v5 = vld [vmem:[%s5975_s12 + $0x4a8] sm:$0xff] }
 0x38f   : > { %v1716_v8 = vadd.f32 %v1715_v7, %v6598_v32  ;;  %2180 = vmatmul.f32.gmra.mxu2 %v4864_v9 }
 0x390   : > { %4220 = vst [vmem:[%s6162_s15 + $0x208] sm:$0xff] %v2340_v6 }
 0x391   : > { %v1924_v10 = vpop.f32.mrf.mxu1  ;;  %1762 = vmatmul.f32.gmra.mxu0 %v4865_v11  ;;  %2389 = vmatmul.f32.gmra.mxu3 %v4866_v13 }
 0x392   : > { %v1925_v12 = vadd.f32 %v1924_v10, %v1716_v8  ;;  %v2133_v14 = vpop.f32.mrf.mxu2  ;;  %v4884_v10 = vld [vmem:[%s5975_s12 + $0x4d0] sm:$0xff] }
 0x394   : > { %v2134_v15 = vadd.f32 %v2133_v14, %v1925_v12  ;;  %1971 = vmatmul.f32.gmra.mxu1 %v4867_v16  ;;  %v2342_v17 = vpop.f32.mrf.mxu3  ;;  %v4885_v12 = vld [vmem:[%s5975_s12 + $0x4c0] sm:$0xff]  ;;  %v4886_v14 = vld [vmem:[%s5975_s12 + $0x4d8] sm:$0xff] }
 0x396   : > { %v2343_v18 = vadd.f32 %v2342_v17, %v2134_v15  ;;  %v1718_v19 = vpop.f32.mrf.mxu0  ;;  %v4887_v17 = vld [vmem:[%s5975_s12 + $0x4c8] sm:$0xff] }
 0x397   : > { %v1719_v20 = vadd.f32 %v1718_v19, %v6598_v32  ;;  %2183 = vmatmul.f32.gmra.mxu2 %v4868_v22 }
 0x398   : > { %4224 = vst [vmem:[%s6162_s15 + $0x228] sm:$0xff] %v2343_v18 }
 0x399   : > { %v1927_v23 = vpop.f32.mrf.mxu1  ;;  %1765 = vmatmul.f32.gmra.mxu0 %v4869_v24  ;;  %2392 = vmatmul.f32.gmra.mxu3 %v4870_v26 }
 0x39a   : > { %v1928_v25 = vadd.f32 %v1927_v23, %v1719_v20  ;;  %v2136_v27 = vpop.f32.mrf.mxu2  ;;  %v4888_v23 = vld [vmem:[%s5975_s12 + $0x4f0] sm:$0xff] }
 0x39c   : > { %v2137_v28 = vadd.f32 %v2136_v27, %v1928_v25  ;;  %1974 = vmatmul.f32.gmra.mxu1 %v4871_v29  ;;  %v2345_v30 = vpop.f32.mrf.mxu3  ;;  %v4889_v25 = vld [vmem:[%s5975_s12 + $0x4e0] sm:$0xff]  ;;  %v4890_v27 = vld [vmem:[%s5975_s12 + $0x4f8] sm:$0xff] }
 0x39e   : > { %v2346_v31 = vadd.f32 %v2345_v30, %v2137_v28  ;;  %v1721_v33 = vpop.f32.mrf.mxu0  ;;  %v4891_v30 = vld [vmem:[%s5975_s12 + $0x4e8] sm:$0xff] }
 0x39f   : > { %v1722_v21 = vadd.f32 %v1721_v33, %v6598_v32  ;;  %2186 = vmatmul.f32.gmra.mxu2 %v4872_v34 }
 0x3a0   : > { %4228 = vst [vmem:[%s6162_s15 + $0x248] sm:$0xff] %v2346_v31 }
 0x3a1   : > { %v1930_v35 = vpop.f32.mrf.mxu1  ;;  %1768 = vmatmul.f32.gmra.mxu0 %v4873_v36  ;;  %2395 = vmatmul.f32.gmra.mxu3 %v4874_v38  ;;  %v691_v36 = vld [vmem:[%s5985_s4 + $0x490] sm:$0xff]  ;;  %v4893_v38 = vld [vmem:[%s5975_s12 + $0x500] sm:$0xff] }
 0x3a2   : > { %v1931_v37 = vadd.f32 %v1930_v35, %v1722_v21  ;;  %v2139_v39 = vpop.f32.mrf.mxu2  ;;  %v4892_v35 = vld [vmem:[%s5975_s12 + $0x510] sm:$0xff]  ;;  %2912 = vmatpush.msra.mxu2 %v691_v36 }
 0x3a4   : > { %v2140_v40 = vadd.f32 %v2139_v39, %v1931_v37  ;;  %1977 = vmatmul.f32.gmra.mxu1 %v4875_v41  ;;  %v2348_v42 = vpop.f32.mrf.mxu3  ;;  %v563_v41 = vld [vmem:[%s5985_s4 + $0x90] sm:$0xff] }
 0x3a5   : > { %2494 = vmatpush.msra.mxu0 %v563_v41 }
 0x3a6   : > { %v2349_v43 = vadd.f32 %v2348_v42, %v2140_v40  ;;  %v1724_v44 = vpop.f32.mrf.mxu0  ;;  %v4894_v40 = vld [vmem:[%s5975_s12 + $0x518] sm:$0xff]  ;;  %v755_v42 = vld [vmem:[%s5985_s4 + $0x690] sm:$0xff] }
 0x3a7   : > { %v1725_v45 = vadd.f32 %v1724_v44, %v6598_v32  ;;  %2189 = vmatmul.f32.gmra.mxu2 %v4876_v46  ;;  %3121 = vmatpush.msra.mxu3 %v755_v42  ;;  %v627_v46 = vld [vmem:[%s5985_s4 + $0x290] sm:$0xff]  ;;  %v4913_v42 = vld [vmem:[%s5975_s12 + $0x5a0] sm:$0xff] }
 0x3a8   : > { %4232 = vst [vmem:[%s6162_s15 + $0x268] sm:$0xff] %v2349_v43  ;;  %2703 = vmatpush.msra.mxu1 %v627_v46 }
 0x3a9   : > { %v1933_v48 = vpop.f32.mrf.mxu1  ;;  %1771 = vmatmul.f32.gmra.mxu0 %v4877_v49  ;;  %2398 = vmatmul.f32.gmra.mxu3 %v4878_v51  ;;  %v4896_v51 = vld [vmem:[%s5975_s12 + $0x530] sm:$0xff] }
 0x3aa   : > { %v1934_v50 = vadd.f32 %v1933_v48, %v1725_v45  ;;  %v2142_v54 = vpop.f32.mrf.mxu2  ;;  %v4895_v45 = vld [vmem:[%s5975_s12 + $0x508] sm:$0xff] }
 0x3ac   : > { %v2143_v55 = vadd.f32 %v2142_v54, %v1934_v50  ;;  %1980 = vmatmul.f32.gmra.mxu1 %v4879_v56  ;;  %v2351_v58 = vpop.f32.mrf.mxu3 }
 0x3ae   : > { %v2352_v59 = vadd.f32 %v2351_v58, %v2143_v55  ;;  %v1727_v60 = vpop.f32.mrf.mxu0  ;;  %v4898_v55 = vld [vmem:[%s5975_s12 + $0x538] sm:$0xff]  ;;  %v4899_v58 = vld [vmem:[%s5975_s12 + $0x528] sm:$0xff] }
 0x3af   : > { %v1728_v61 = vadd.f32 %v1727_v60, %v6598_v32  ;;  %2192 = vmatmul.f32.gmra.mxu2 %v4880_v62 }
 0x3b0   : > { %4236 = vst [vmem:[%s6162_s15 + $0x288] sm:$0xff] %v2352_v59 }
 0x3b1   : > { %v1936_v63 = vpop.f32.mrf.mxu1  ;;  %1774 = vmatmul.f32.gmra.mxu0 %v4881_v0  ;;  %2401 = vmatmul.f32.gmra.mxu3 %v4882_v2 }
 0x3b2   : > { %v1937_v1 = vadd.f32 %v1936_v63, %v1728_v61  ;;  %v2145_v3 = vpop.f32.mrf.mxu2  ;;  %v4900_v63 = vld [vmem:[%s5975_s12 + $0x550] sm:$0xff] }
 0x3b4   : > { %v2146_v4 = vadd.f32 %v2145_v3, %v1937_v1  ;;  %1983 = vmatmul.f32.gmra.mxu1 %v4883_v5  ;;  %v2354_v6 = vpop.f32.mrf.mxu3  ;;  %v4901_v1 = vld [vmem:[%s5975_s12 + $0x540] sm:$0xff]  ;;  %v4902_v3 = vld [vmem:[%s5975_s12 + $0x558] sm:$0xff] }
 0x3b6   : > { %v2355_v7 = vadd.f32 %v2354_v6, %v2146_v4  ;;  %v1730_v8 = vpop.f32.mrf.mxu0  ;;  %v4903_v6 = vld [vmem:[%s5975_s12 + $0x548] sm:$0xff] }
 0x3b7   : > { %v1731_v9 = vadd.f32 %v1730_v8, %v6598_v32  ;;  %2195 = vmatmul.f32.gmra.mxu2 %v4884_v10 }
 0x3b8   : > { %4240 = vst [vmem:[%s6162_s15 + $0x2a8] sm:$0xff] %v2355_v7 }
 0x3b9   : > { %v1939_v11 = vpop.f32.mrf.mxu1  ;;  %1777 = vmatmul.f32.gmra.mxu0 %v4885_v12  ;;  %2404 = vmatmul.f32.gmra.mxu3 %v4886_v14 }
 0x3ba   : > { %v1940_v13 = vadd.f32 %v1939_v11, %v1731_v9  ;;  %v2148_v15 = vpop.f32.mrf.mxu2  ;;  %v4904_v11 = vld [vmem:[%s5975_s12 + $0x570] sm:$0xff] }
 0x3bc   : > { %v2149_v16 = vadd.f32 %v2148_v15, %v1940_v13  ;;  %1986 = vmatmul.f32.gmra.mxu1 %v4887_v17  ;;  %v2357_v18 = vpop.f32.mrf.mxu3  ;;  %v4905_v13 = vld [vmem:[%s5975_s12 + $0x560] sm:$0xff]  ;;  %v4906_v15 = vld [vmem:[%s5975_s12 + $0x578] sm:$0xff] }
 0x3be   : > { %v2358_v19 = vadd.f32 %v2357_v18, %v2149_v16  ;;  %v1733_v20 = vpop.f32.mrf.mxu0  ;;  %v4907_v18 = vld [vmem:[%s5975_s12 + $0x568] sm:$0xff] }
 0x3bf   : > { %v1734_v22 = vadd.f32 %v1733_v20, %v6598_v32  ;;  %2198 = vmatmul.f32.gmra.mxu2 %v4888_v23 }
 0x3c0   : > { %4244 = vst [vmem:[%s6162_s15 + $0x2c8] sm:$0xff] %v2358_v19 }
 0x3c1   : > { %v1942_v24 = vpop.f32.mrf.mxu1  ;;  %1780 = vmatmul.f32.gmra.mxu0 %v4889_v25  ;;  %2407 = vmatmul.f32.gmra.mxu3 %v4890_v27  ;;  %v687_v25 = vld [vmem:[%s5985_s4 + $0x470] sm:$0xff]  ;;  %v4909_v27 = vld [vmem:[%s5975_s12 + $0x580] sm:$0xff] }
 0x3c2   : > { %v1943_v26 = vadd.f32 %v1942_v24, %v1734_v22  ;;  %v2151_v28 = vpop.f32.mrf.mxu2  ;;  %v4908_v24 = vld [vmem:[%s5975_s12 + $0x590] sm:$0xff]  ;;  %2913 = vmatpush.msra.mxu2 %v687_v25 }
 0x3c4   : > { %v2152_v29 = vadd.f32 %v2151_v28, %v1943_v26  ;;  %1989 = vmatmul.f32.gmra.mxu1 %v4891_v30  ;;  %v2360_v31 = vpop.f32.mrf.mxu3  ;;  %v559_v30 = vld [vmem:[%s5985_s4 + $0x70] sm:$0xff] }
 0x3c5   : > { %2495 = vmatpush.msra.mxu0 %v559_v30 }
 0x3c6   : > { %v2361_v33 = vadd.f32 %v2360_v31, %v2152_v29  ;;  %v1736_v21 = vpop.f32.mrf.mxu0  ;;  %v4910_v29 = vld [vmem:[%s5975_s12 + $0x598] sm:$0xff]  ;;  %v751_v31 = vld [vmem:[%s5985_s4 + $0x670] sm:$0xff] }
 0x3c7   : > { %v1737_v34 = vadd.f32 %v1736_v21, %v6598_v32  ;;  %2201 = vmatmul.f32.gmra.mxu2 %v4892_v35  ;;  %3122 = vmatpush.msra.mxu3 %v751_v31  ;;  %v623_v35 = vld [vmem:[%s5985_s4 + $0x270] sm:$0xff]  ;;  %v4929_v31 = vld [vmem:[%s5975_s12 + $0x620] sm:$0xff] }
 0x3c8   : > { %4248 = vst [vmem:[%s6162_s15 + $0x2e8] sm:$0xff] %v2361_v33  ;;  %2704 = vmatpush.msra.mxu1 %v623_v35 }
 0x3c9   : > { %v1945_v37 = vpop.f32.mrf.mxu1  ;;  %1783 = vmatmul.f32.gmra.mxu0 %v4893_v38  ;;  %2410 = vmatmul.f32.gmra.mxu3 %v4894_v40  ;;  %v4912_v40 = vld [vmem:[%s5975_s12 + $0x5b0] sm:$0xff] }
 0x3ca   : > { %v1946_v39 = vadd.f32 %v1945_v37, %v1737_v34  ;;  %v2154_v43 = vpop.f32.mrf.mxu2  ;;  %v4911_v34 = vld [vmem:[%s5975_s12 + $0x588] sm:$0xff] }
 0x3cc   : > { %v2155_v44 = vadd.f32 %v2154_v43, %v1946_v39  ;;  %1992 = vmatmul.f32.gmra.mxu1 %v4895_v45  ;;  %v2363_v47 = vpop.f32.mrf.mxu3 }
 0x3ce   : > { %v2364_v48 = vadd.f32 %v2363_v47, %v2155_v44  ;;  %v1739_v49 = vpop.f32.mrf.mxu0  ;;  %v4914_v44 = vld [vmem:[%s5975_s12 + $0x5b8] sm:$0xff]  ;;  %v4915_v47 = vld [vmem:[%s5975_s12 + $0x5a8] sm:$0xff] }
 0x3cf   : > { %v1740_v50 = vadd.f32 %v1739_v49, %v6598_v32  ;;  %2204 = vmatmul.f32.gmra.mxu2 %v4896_v51 }
 0x3d0   : > { %4252 = vst [vmem:[%s6162_s15 + $0x308] sm:$0xff] %v2364_v48 }
 0x3d1   : > { %v1948_v52 = vpop.f32.mrf.mxu1  ;;  %1786 = vmatmul.f32.gmra.mxu0 %v4897_v53  ;;  %2413 = vmatmul.f32.gmra.mxu3 %v4898_v55 }
 0x3d2   : > { %v1949_v54 = vadd.f32 %v1948_v52, %v1740_v50  ;;  %v2157_v56 = vpop.f32.mrf.mxu2  ;;  %v4916_v52 = vld [vmem:[%s5975_s12 + $0x5d0] sm:$0xff] }
 0x3d4   : > { %v2158_v57 = vadd.f32 %v2157_v56, %v1949_v54  ;;  %1995 = vmatmul.f32.gmra.mxu1 %v4899_v58  ;;  %v2366_v59 = vpop.f32.mrf.mxu3  ;;  %v4917_v54 = vld [vmem:[%s5975_s12 + $0x5c0] sm:$0xff]  ;;  %v4918_v56 = vld [vmem:[%s5975_s12 + $0x5d8] sm:$0xff] }
 0x3d6   : > { %v2367_v60 = vadd.f32 %v2366_v59, %v2158_v57  ;;  %v1742_v61 = vpop.f32.mrf.mxu0  ;;  %v4919_v59 = vld [vmem:[%s5975_s12 + $0x5c8] sm:$0xff] }
 0x3d7   : > { %v1743_v62 = vadd.f32 %v1742_v61, %v6598_v32  ;;  %2207 = vmatmul.f32.gmra.mxu2 %v4900_v63 }
 0x3d8   : > { %4256 = vst [vmem:[%s6162_s15 + $0x328] sm:$0xff] %v2367_v60 }
 0x3d9   : > { %v1951_v0 = vpop.f32.mrf.mxu1  ;;  %1789 = vmatmul.f32.gmra.mxu0 %v4901_v1  ;;  %2416 = vmatmul.f32.gmra.mxu3 %v4902_v3 }
 0x3da   : > { %v1952_v2 = vadd.f32 %v1951_v0, %v1743_v62  ;;  %v2160_v4 = vpop.f32.mrf.mxu2  ;;  %v4920_v0 = vld [vmem:[%s5975_s12 + $0x5f0] sm:$0xff] }
 0x3dc   : > { %v2161_v5 = vadd.f32 %v2160_v4, %v1952_v2  ;;  %1998 = vmatmul.f32.gmra.mxu1 %v4903_v6  ;;  %v2369_v7 = vpop.f32.mrf.mxu3  ;;  %v4921_v2 = vld [vmem:[%s5975_s12 + $0x5e0] sm:$0xff]  ;;  %v4922_v4 = vld [vmem:[%s5975_s12 + $0x5f8] sm:$0xff] }
 0x3de   : > { %v2370_v8 = vadd.f32 %v2369_v7, %v2161_v5  ;;  %v1745_v9 = vpop.f32.mrf.mxu0  ;;  %v4923_v7 = vld [vmem:[%s5975_s12 + $0x5e8] sm:$0xff] }
 0x3df   : > { %v1746_v10 = vadd.f32 %v1745_v9, %v6598_v32  ;;  %2210 = vmatmul.f32.gmra.mxu2 %v4904_v11 }
 0x3e0   : > { %4260 = vst [vmem:[%s6162_s15 + $0x348] sm:$0xff] %v2370_v8 }
 0x3e1   : > { %v1954_v12 = vpop.f32.mrf.mxu1  ;;  %1792 = vmatmul.f32.gmra.mxu0 %v4905_v13  ;;  %2419 = vmatmul.f32.gmra.mxu3 %v4906_v15  ;;  %v683_v13 = vld [vmem:[%s5985_s4 + $0x450] sm:$0xff]  ;;  %v4925_v15 = vld [vmem:[%s5975_s12 + $0x600] sm:$0xff] }
 0x3e2   : > { %v1955_v14 = vadd.f32 %v1954_v12, %v1746_v10  ;;  %v2163_v16 = vpop.f32.mrf.mxu2  ;;  %v4924_v12 = vld [vmem:[%s5975_s12 + $0x610] sm:$0xff]  ;;  %2914 = vmatpush.msra.mxu2 %v683_v13 }
 0x3e4   : > { %v2164_v17 = vadd.f32 %v2163_v16, %v1955_v14  ;;  %2001 = vmatmul.f32.gmra.mxu1 %v4907_v18  ;;  %v2372_v19 = vpop.f32.mrf.mxu3  ;;  %v555_v18 = vld [vmem:[%s5985_s4 + $0x50] sm:$0xff] }
 0x3e5   : > { %2496 = vmatpush.msra.mxu0 %v555_v18 }
 0x3e6   : > { %v2373_v20 = vadd.f32 %v2372_v19, %v2164_v17  ;;  %v1748_v22 = vpop.f32.mrf.mxu0  ;;  %v4926_v17 = vld [vmem:[%s5975_s12 + $0x618] sm:$0xff]  ;;  %v747_v19 = vld [vmem:[%s5985_s4 + $0x650] sm:$0xff] }
 0x3e7   : > { %v1749_v23 = vadd.f32 %v1748_v22, %v6598_v32  ;;  %2213 = vmatmul.f32.gmra.mxu2 %v4908_v24  ;;  %3123 = vmatpush.msra.mxu3 %v747_v19  ;;  %v619_v24 = vld [vmem:[%s5985_s4 + $0x250] sm:$0xff]  ;;  %v4945_v19 = vld [vmem:[%s5975_s12 + $0x6a0] sm:$0xff] }
 0x3e8   : > { %4264 = vst [vmem:[%s6162_s15 + $0x368] sm:$0xff] %v2373_v20  ;;  %2705 = vmatpush.msra.mxu1 %v619_v24 }
 0x3e9   : > { %v1957_v26 = vpop.f32.mrf.mxu1  ;;  %1795 = vmatmul.f32.gmra.mxu0 %v4909_v27  ;;  %2422 = vmatmul.f32.gmra.mxu3 %v4910_v29  ;;  %v4928_v29 = vld [vmem:[%s5975_s12 + $0x630] sm:$0xff] }
 0x3ea   : > { %v1958_v28 = vadd.f32 %v1957_v26, %v1749_v23  ;;  %v2166_v33 = vpop.f32.mrf.mxu2  ;;  %v4927_v23 = vld [vmem:[%s5975_s12 + $0x608] sm:$0xff] }
 0x3ec   : > { %v2167_v21 = vadd.f32 %v2166_v33, %v1958_v28  ;;  %2004 = vmatmul.f32.gmra.mxu1 %v4911_v34  ;;  %v2375_v36 = vpop.f32.mrf.mxu3 }
 0x3ee   : > { %v2376_v37 = vadd.f32 %v2375_v36, %v2167_v21  ;;  %v1751_v38 = vpop.f32.mrf.mxu0  ;;  %v4930_v21 = vld [vmem:[%s5975_s12 + $0x638] sm:$0xff]  ;;  %v4931_v36 = vld [vmem:[%s5975_s12 + $0x628] sm:$0xff] }
 0x3ef   : > { %v1752_v39 = vadd.f32 %v1751_v38, %v6598_v32  ;;  %2216 = vmatmul.f32.gmra.mxu2 %v4912_v40 }
 0x3f0   : > { %4268 = vst [vmem:[%s6162_s15 + $0x388] sm:$0xff] %v2376_v37 }
 0x3f1   : > { %v1960_v41 = vpop.f32.mrf.mxu1  ;;  %1798 = vmatmul.f32.gmra.mxu0 %v4913_v42  ;;  %2425 = vmatmul.f32.gmra.mxu3 %v4914_v44 }
 0x3f2   : > { %v1961_v43 = vadd.f32 %v1960_v41, %v1752_v39  ;;  %v2169_v45 = vpop.f32.mrf.mxu2  ;;  %v4932_v41 = vld [vmem:[%s5975_s12 + $0x650] sm:$0xff] }
 0x3f4   : > { %v2170_v46 = vadd.f32 %v2169_v45, %v1961_v43  ;;  %2007 = vmatmul.f32.gmra.mxu1 %v4915_v47  ;;  %v2378_v48 = vpop.f32.mrf.mxu3  ;;  %v4933_v43 = vld [vmem:[%s5975_s12 + $0x640] sm:$0xff]  ;;  %v4934_v45 = vld [vmem:[%s5975_s12 + $0x658] sm:$0xff] }
 0x3f6   : > { %v2379_v49 = vadd.f32 %v2378_v48, %v2170_v46  ;;  %v1754_v50 = vpop.f32.mrf.mxu0  ;;  %v4935_v48 = vld [vmem:[%s5975_s12 + $0x648] sm:$0xff] }
 0x3f7   : > { %v1755_v51 = vadd.f32 %v1754_v50, %v6598_v32  ;;  %2219 = vmatmul.f32.gmra.mxu2 %v4916_v52 }
 0x3f8   : > { %4272 = vst [vmem:[%s6162_s15 + $0x3a8] sm:$0xff] %v2379_v49 }
 0x3f9   : > { %v1963_v53 = vpop.f32.mrf.mxu1  ;;  %1801 = vmatmul.f32.gmra.mxu0 %v4917_v54  ;;  %2428 = vmatmul.f32.gmra.mxu3 %v4918_v56 }
 0x3fa   : > { %v1964_v55 = vadd.f32 %v1963_v53, %v1755_v51  ;;  %v2172_v57 = vpop.f32.mrf.mxu2  ;;  %v4936_v53 = vld [vmem:[%s5975_s12 + $0x670] sm:$0xff] }
 0x3fc   : > { %v2173_v58 = vadd.f32 %v2172_v57, %v1964_v55  ;;  %2010 = vmatmul.f32.gmra.mxu1 %v4919_v59  ;;  %v2381_v60 = vpop.f32.mrf.mxu3  ;;  %v4937_v55 = vld [vmem:[%s5975_s12 + $0x660] sm:$0xff]  ;;  %v4938_v57 = vld [vmem:[%s5975_s12 + $0x678] sm:$0xff] }
 0x3fe   : > { %v2382_v61 = vadd.f32 %v2381_v60, %v2173_v58  ;;  %v1757_v62 = vpop.f32.mrf.mxu0  ;;  %v4939_v60 = vld [vmem:[%s5975_s12 + $0x668] sm:$0xff] }
 0x3ff   : > { %v1758_v63 = vadd.f32 %v1757_v62, %v6598_v32  ;;  %2222 = vmatmul.f32.gmra.mxu2 %v4920_v0 }
 0x400   : > { %4276 = vst [vmem:[%s6162_s15 + $0x3c8] sm:$0xff] %v2382_v61 }
 0x401   : > { %v1966_v1 = vpop.f32.mrf.mxu1  ;;  %1804 = vmatmul.f32.gmra.mxu0 %v4921_v2  ;;  %2431 = vmatmul.f32.gmra.mxu3 %v4922_v4  ;;  %v679_v2 = vld [vmem:[%s5985_s4 + $0x430] sm:$0xff]  ;;  %v4941_v4 = vld [vmem:[%s5975_s12 + $0x680] sm:$0xff] }
 0x402   : > { %v1967_v3 = vadd.f32 %v1966_v1, %v1758_v63  ;;  %v2175_v5 = vpop.f32.mrf.mxu2  ;;  %v4940_v1 = vld [vmem:[%s5975_s12 + $0x690] sm:$0xff]  ;;  %2915 = vmatpush.msra.mxu2 %v679_v2 }
 0x404   : > { %v2176_v6 = vadd.f32 %v2175_v5, %v1967_v3  ;;  %2013 = vmatmul.f32.gmra.mxu1 %v4923_v7  ;;  %v2384_v8 = vpop.f32.mrf.mxu3  ;;  %v551_v7 = vld [vmem:[%s5985_s4 + $0x30] sm:$0xff] }
 0x405   : > { %2497 = vmatpush.msra.mxu0 %v551_v7 }
 0x406   : > { %v2385_v9 = vadd.f32 %v2384_v8, %v2176_v6  ;;  %v1760_v10 = vpop.f32.mrf.mxu0  ;;  %v4942_v6 = vld [vmem:[%s5975_s12 + $0x698] sm:$0xff]  ;;  %v743_v8 = vld [vmem:[%s5985_s4 + $0x630] sm:$0xff] }
 0x407   : > { %v1761_v11 = vadd.f32 %v1760_v10, %v6598_v32  ;;  %2225 = vmatmul.f32.gmra.mxu2 %v4924_v12  ;;  %3124 = vmatpush.msra.mxu3 %v743_v8  ;;  %v615_v12 = vld [vmem:[%s5985_s4 + $0x230] sm:$0xff]  ;;  %v4961_v8 = vld [vmem:[%s5975_s12 + $0x720] sm:$0xff] }
 0x408   : > { %4280 = vst [vmem:[%s6162_s15 + $0x3e8] sm:$0xff] %v2385_v9  ;;  %2706 = vmatpush.msra.mxu1 %v615_v12 }
 0x409   : > { %v1969_v14 = vpop.f32.mrf.mxu1  ;;  %1807 = vmatmul.f32.gmra.mxu0 %v4925_v15  ;;  %2434 = vmatmul.f32.gmra.mxu3 %v4926_v17  ;;  %v4944_v17 = vld [vmem:[%s5975_s12 + $0x6b0] sm:$0xff] }
 0x40a   : > { %v1970_v16 = vadd.f32 %v1969_v14, %v1761_v11  ;;  %v2178_v20 = vpop.f32.mrf.mxu2  ;;  %v4943_v11 = vld [vmem:[%s5975_s12 + $0x688] sm:$0xff] }
 0x40c   : > { %v2179_v22 = vadd.f32 %v2178_v20, %v1970_v16  ;;  %2016 = vmatmul.f32.gmra.mxu1 %v4927_v23  ;;  %v2387_v25 = vpop.f32.mrf.mxu3 }
 0x40e   : > { %v2388_v26 = vadd.f32 %v2387_v25, %v2179_v22  ;;  %v1763_v27 = vpop.f32.mrf.mxu0  ;;  %v4946_v22 = vld [vmem:[%s5975_s12 + $0x6b8] sm:$0xff]  ;;  %v4947_v25 = vld [vmem:[%s5975_s12 + $0x6a8] sm:$0xff] }
 0x40f   : > { %v1764_v28 = vadd.f32 %v1763_v27, %v6598_v32  ;;  %2228 = vmatmul.f32.gmra.mxu2 %v4928_v29 }
 0x410   : > { %4284 = vst [vmem:[%s6162_s15 + $0x408] sm:$0xff] %v2388_v26 }
 0x411   : > { %v1972_v30 = vpop.f32.mrf.mxu1  ;;  %1810 = vmatmul.f32.gmra.mxu0 %v4929_v31  ;;  %2437 = vmatmul.f32.gmra.mxu3 %v4930_v21 }
 0x412   : > { %v1973_v33 = vadd.f32 %v1972_v30, %v1764_v28  ;;  %v2181_v34 = vpop.f32.mrf.mxu2  ;;  %v4948_v30 = vld [vmem:[%s5975_s12 + $0x6d0] sm:$0xff] }
 0x414   : > { %v2182_v35 = vadd.f32 %v2181_v34, %v1973_v33  ;;  %2019 = vmatmul.f32.gmra.mxu1 %v4931_v36  ;;  %v2390_v37 = vpop.f32.mrf.mxu3  ;;  %v4949_v33 = vld [vmem:[%s5975_s12 + $0x6c0] sm:$0xff]  ;;  %v4950_v34 = vld [vmem:[%s5975_s12 + $0x6d8] sm:$0xff] }
 0x416   : > { %v2391_v38 = vadd.f32 %v2390_v37, %v2182_v35  ;;  %v1766_v39 = vpop.f32.mrf.mxu0  ;;  %v4951_v37 = vld [vmem:[%s5975_s12 + $0x6c8] sm:$0xff] }
 0x417   : > { %v1767_v40 = vadd.f32 %v1766_v39, %v6598_v32  ;;  %2231 = vmatmul.f32.gmra.mxu2 %v4932_v41 }
 0x418   : > { %4288 = vst [vmem:[%s6162_s15 + $0x428] sm:$0xff] %v2391_v38 }
 0x419   : > { %v1975_v42 = vpop.f32.mrf.mxu1  ;;  %1813 = vmatmul.f32.gmra.mxu0 %v4933_v43  ;;  %2440 = vmatmul.f32.gmra.mxu3 %v4934_v45 }
 0x41a   : > { %v1976_v44 = vadd.f32 %v1975_v42, %v1767_v40  ;;  %v2184_v46 = vpop.f32.mrf.mxu2  ;;  %v4952_v42 = vld [vmem:[%s5975_s12 + $0x6f0] sm:$0xff] }
 0x41c   : > { %v2185_v47 = vadd.f32 %v2184_v46, %v1976_v44  ;;  %2022 = vmatmul.f32.gmra.mxu1 %v4935_v48  ;;  %v2393_v49 = vpop.f32.mrf.mxu3  ;;  %v4953_v44 = vld [vmem:[%s5975_s12 + $0x6e0] sm:$0xff]  ;;  %v4954_v46 = vld [vmem:[%s5975_s12 + $0x6f8] sm:$0xff] }
 0x41e   : > { %v2394_v50 = vadd.f32 %v2393_v49, %v2185_v47  ;;  %v1769_v51 = vpop.f32.mrf.mxu0  ;;  %v4955_v49 = vld [vmem:[%s5975_s12 + $0x6e8] sm:$0xff] }
 0x41f   : > { %v1770_v52 = vadd.f32 %v1769_v51, %v6598_v32  ;;  %2234 = vmatmul.f32.gmra.mxu2 %v4936_v53 }
 0x420   : > { %4292 = vst [vmem:[%s6162_s15 + $0x448] sm:$0xff] %v2394_v50 }
 0x421   : > { %v1978_v54 = vpop.f32.mrf.mxu1  ;;  %1816 = vmatmul.f32.gmra.mxu0 %v4937_v55  ;;  %2443 = vmatmul.f32.gmra.mxu3 %v4938_v57  ;;  %v675_v55 = vld [vmem:[%s5985_s4 + $0x410] sm:$0xff]  ;;  %v4957_v57 = vld [vmem:[%s5975_s12 + $0x700] sm:$0xff] }
 0x422   : > { %v1979_v56 = vadd.f32 %v1978_v54, %v1770_v52  ;;  %v2187_v58 = vpop.f32.mrf.mxu2  ;;  %v4956_v54 = vld [vmem:[%s5975_s12 + $0x710] sm:$0xff]  ;;  %2916 = vmatpush.msra.mxu2 %v675_v55 }
 0x424   : > { %v2188_v59 = vadd.f32 %v2187_v58, %v1979_v56  ;;  %2025 = vmatmul.f32.gmra.mxu1 %v4939_v60  ;;  %v2396_v61 = vpop.f32.mrf.mxu3  ;;  %v547_v60 = vld [vmem:[%s5985_s4 + $0x10] sm:$0xff] }
 0x425   : > { %2498 = vmatpush.msra.mxu0 %v547_v60 }
 0x426   : > { %v2397_v62 = vadd.f32 %v2396_v61, %v2188_v59  ;;  %v1772_v63 = vpop.f32.mrf.mxu0  ;;  %v4958_v59 = vld [vmem:[%s5975_s12 + $0x718] sm:$0xff]  ;;  %v739_v61 = vld [vmem:[%s5985_s4 + $0x610] sm:$0xff] }
 0x427   : > { %v1773_v0 = vadd.f32 %v1772_v63, %v6598_v32  ;;  %2237 = vmatmul.f32.gmra.mxu2 %v4940_v1  ;;  %3125 = vmatpush.msra.mxu3 %v739_v61  ;;  %v611_v1 = vld [vmem:[%s5985_s4 + $0x210] sm:$0xff]  ;;  %v4977_v61 = vld [vmem:[%s5975_s12 + $0x7a0] sm:$0xff] }
 0x428   : > { %4296 = vst [vmem:[%s6162_s15 + $0x468] sm:$0xff] %v2397_v62  ;;  %2707 = vmatpush.msra.mxu1 %v611_v1 }
 0x429   : > { %v1981_v3 = vpop.f32.mrf.mxu1  ;;  %1819 = vmatmul.f32.gmra.mxu0 %v4941_v4  ;;  %2446 = vmatmul.f32.gmra.mxu3 %v4942_v6  ;;  %v4960_v6 = vld [vmem:[%s5975_s12 + $0x730] sm:$0xff] }
 0x42a   : > { %v1982_v5 = vadd.f32 %v1981_v3, %v1773_v0  ;;  %v2190_v9 = vpop.f32.mrf.mxu2  ;;  %v4959_v0 = vld [vmem:[%s5975_s12 + $0x708] sm:$0xff] }
 0x42c   : > { %v2191_v10 = vadd.f32 %v2190_v9, %v1982_v5  ;;  %2028 = vmatmul.f32.gmra.mxu1 %v4943_v11  ;;  %v2399_v13 = vpop.f32.mrf.mxu3 }
 0x42e   : > { %v2400_v14 = vadd.f32 %v2399_v13, %v2191_v10  ;;  %v1775_v15 = vpop.f32.mrf.mxu0  ;;  %v4962_v10 = vld [vmem:[%s5975_s12 + $0x738] sm:$0xff]  ;;  %v4963_v13 = vld [vmem:[%s5975_s12 + $0x728] sm:$0xff] }
 0x42f   : > { %v1776_v16 = vadd.f32 %v1775_v15, %v6598_v32  ;;  %2240 = vmatmul.f32.gmra.mxu2 %v4944_v17 }
 0x430   : > { %4300 = vst [vmem:[%s6162_s15 + $0x488] sm:$0xff] %v2400_v14 }
 0x431   : > { %v1984_v18 = vpop.f32.mrf.mxu1  ;;  %1822 = vmatmul.f32.gmra.mxu0 %v4945_v19  ;;  %2449 = vmatmul.f32.gmra.mxu3 %v4946_v22 }
 0x432   : > { %v1985_v20 = vadd.f32 %v1984_v18, %v1776_v16  ;;  %v2193_v23 = vpop.f32.mrf.mxu2  ;;  %v4964_v18 = vld [vmem:[%s5975_s12 + $0x750] sm:$0xff] }
 0x434   : > { %v2194_v24 = vadd.f32 %v2193_v23, %v1985_v20  ;;  %2031 = vmatmul.f32.gmra.mxu1 %v4947_v25  ;;  %v2402_v26 = vpop.f32.mrf.mxu3  ;;  %v4965_v20 = vld [vmem:[%s5975_s12 + $0x740] sm:$0xff]  ;;  %v4966_v23 = vld [vmem:[%s5975_s12 + $0x758] sm:$0xff] }
 0x436   : > { %v2403_v27 = vadd.f32 %v2402_v26, %v2194_v24  ;;  %v1778_v28 = vpop.f32.mrf.mxu0  ;;  %v4967_v26 = vld [vmem:[%s5975_s12 + $0x748] sm:$0xff] }
 0x437   : > { %v1779_v29 = vadd.f32 %v1778_v28, %v6598_v32  ;;  %2243 = vmatmul.f32.gmra.mxu2 %v4948_v30 }
 0x438   : > { %4304 = vst [vmem:[%s6162_s15 + $0x4a8] sm:$0xff] %v2403_v27 }
 0x439   : > { %v1987_v31 = vpop.f32.mrf.mxu1  ;;  %1825 = vmatmul.f32.gmra.mxu0 %v4949_v33  ;;  %2452 = vmatmul.f32.gmra.mxu3 %v4950_v34 }
 0x43a   : > { %v1988_v21 = vadd.f32 %v1987_v31, %v1779_v29  ;;  %v2196_v35 = vpop.f32.mrf.mxu2  ;;  %v4968_v31 = vld [vmem:[%s5975_s12 + $0x770] sm:$0xff] }
 0x43c   : > { %v2197_v36 = vadd.f32 %v2196_v35, %v1988_v21  ;;  %2034 = vmatmul.f32.gmra.mxu1 %v4951_v37  ;;  %v2405_v38 = vpop.f32.mrf.mxu3  ;;  %v4969_v21 = vld [vmem:[%s5975_s12 + $0x760] sm:$0xff]  ;;  %v4970_v35 = vld [vmem:[%s5975_s12 + $0x778] sm:$0xff] }
 0x43e   : > { %v2406_v39 = vadd.f32 %v2405_v38, %v2197_v36  ;;  %v1781_v40 = vpop.f32.mrf.mxu0  ;;  %v4971_v38 = vld [vmem:[%s5975_s12 + $0x768] sm:$0xff] }
 0x43f   : > { %v1782_v41 = vadd.f32 %v1781_v40, %v6598_v32  ;;  %2246 = vmatmul.f32.gmra.mxu2 %v4952_v42 }
 0x440   : > { %4308 = vst [vmem:[%s6162_s15 + $0x4c8] sm:$0xff] %v2406_v39 }
 0x441   : > { %v1990_v43 = vpop.f32.mrf.mxu1  ;;  %1828 = vmatmul.f32.gmra.mxu0 %v4953_v44  ;;  %2455 = vmatmul.f32.gmra.mxu3 %v4954_v46  ;;  %v736_v44 = vld [vmem:[%s5985_s4 + $0x5f8] sm:$0xff]  ;;  %v4973_v46 = vld [vmem:[%s5975_s12 + $0x780] sm:$0xff] }
 0x442   : > { %v1991_v45 = vadd.f32 %v1990_v43, %v1782_v41  ;;  %v2199_v47 = vpop.f32.mrf.mxu2  ;;  %v4972_v43 = vld [vmem:[%s5975_s12 + $0x790] sm:$0xff]  ;;  %3737 = vmatpush.msrb.mxu2 %v736_v44 }
 0x444   : > { %v2200_v48 = vadd.f32 %v2199_v47, %v1991_v45  ;;  %2037 = vmatmul.f32.gmra.mxu1 %v4955_v49  ;;  %v2408_v50 = vpop.f32.mrf.mxu3  ;;  %v608_v49 = vld [vmem:[%s5985_s4 + $0x1f8] sm:$0xff] }
 0x445   : > { %3319 = vmatpush.msrb.mxu0 %v608_v49 }
 0x446   : > { %v2409_v51 = vadd.f32 %v2408_v50, %v2200_v48  ;;  %v1784_v52 = vpop.f32.mrf.mxu0  ;;  %v4974_v48 = vld [vmem:[%s5975_s12 + $0x798] sm:$0xff] }
 0x447   : > { %v1785_v53 = vadd.f32 %v1784_v52, %v6598_v32  ;;  %2249 = vmatmul.f32.gmra.mxu2 %v4956_v54  ;;  %v800_v50 = vld [vmem:[%s5985_s4 + $0x7f8] sm:$0xff] }
 0x448   : > { %4312 = vst [vmem:[%s6162_s15 + $0x4e8] sm:$0xff] %v2409_v51  ;;  %3946 = vmatpush.msrb.mxu3 %v800_v50  ;;  %v672_v54 = vld [vmem:[%s5985_s4 + $0x3f8] sm:$0xff]  ;;  %v4993_v50 = vld [vmem:[%s5975_s12 + $0x20] sm:$0xff] }
 0x449   : > { %v1993_v56 = vpop.f32.mrf.mxu1  ;;  %1831 = vmatmul.f32.gmra.mxu0 %v4957_v57  ;;  %2458 = vmatmul.f32.gmra.mxu3 %v4958_v59  ;;  %v4976_v59 = vld [vmem:[%s5975_s12 + $0x7b0] sm:$0xff] }
 0x44a   : > { %v1994_v58 = vadd.f32 %v1993_v56, %v1785_v53  ;;  %v2202_v62 = vpop.f32.mrf.mxu2  ;;  %v4975_v53 = vld [vmem:[%s5975_s12 + $0x788] sm:$0xff]  ;;  %3528 = vmatpush.msrb.mxu1 %v672_v54 }
 0x44c   : > { %v2203_v63 = vadd.f32 %v2202_v62, %v1994_v58  ;;  %2040 = vmatmul.f32.gmra.mxu1 %v4959_v0  ;;  %v2411_v2 = vpop.f32.mrf.mxu3 }
 0x44e   : > { %v2412_v3 = vadd.f32 %v2411_v2, %v2203_v63  ;;  %v1787_v4 = vpop.f32.mrf.mxu0  ;;  %v4978_v63 = vld [vmem:[%s5975_s12 + $0x7b8] sm:$0xff]  ;;  %v4979_v2 = vld [vmem:[%s5975_s12 + $0x7a8] sm:$0xff] }
 0x44f   : > { %v1788_v5 = vadd.f32 %v1787_v4, %v6598_v32  ;;  %2252 = vmatmul.f32.gmra.mxu2 %v4960_v6 }
 0x450   : > { %4316 = vst [vmem:[%s6162_s15 + $0x508] sm:$0xff] %v2412_v3 }
 0x451   : > { %v1996_v7 = vpop.f32.mrf.mxu1  ;;  %1834 = vmatmul.f32.gmra.mxu0 %v4961_v8  ;;  %2461 = vmatmul.f32.gmra.mxu3 %v4962_v10 }
 0x452   : > { %v1997_v9 = vadd.f32 %v1996_v7, %v1788_v5  ;;  %v2205_v11 = vpop.f32.mrf.mxu2  ;;  %v4980_v7 = vld [vmem:[%s5975_s12 + $0x7d0] sm:$0xff] }
 0x454   : > { %v2206_v12 = vadd.f32 %v2205_v11, %v1997_v9  ;;  %2043 = vmatmul.f32.gmra.mxu1 %v4963_v13  ;;  %v2414_v14 = vpop.f32.mrf.mxu3  ;;  %v4981_v9 = vld [vmem:[%s5975_s12 + $0x7c0] sm:$0xff]  ;;  %v4982_v11 = vld [vmem:[%s5975_s12 + $0x7d8] sm:$0xff] }
 0x456   : > { %v2415_v15 = vadd.f32 %v2414_v14, %v2206_v12  ;;  %v1790_v16 = vpop.f32.mrf.mxu0  ;;  %v4983_v14 = vld [vmem:[%s5975_s12 + $0x7c8] sm:$0xff] }
 0x457   : > { %v1791_v17 = vadd.f32 %v1790_v16, %v6598_v32  ;;  %2255 = vmatmul.f32.gmra.mxu2 %v4964_v18 }
 0x458   : > { %4320 = vst [vmem:[%s6162_s15 + $0x528] sm:$0xff] %v2415_v15 }
 0x459   : > { %v1999_v19 = vpop.f32.mrf.mxu1  ;;  %1837 = vmatmul.f32.gmra.mxu0 %v4965_v20  ;;  %2464 = vmatmul.f32.gmra.mxu3 %v4966_v23 }
 0x45a   : > { %v2000_v22 = vadd.f32 %v1999_v19, %v1791_v17  ;;  %v2208_v24 = vpop.f32.mrf.mxu2  ;;  %v4984_v19 = vld [vmem:[%s5975_s12 + $0x7f0] sm:$0xff] }
 0x45c   : > { %v2209_v25 = vadd.f32 %v2208_v24, %v2000_v22  ;;  %2046 = vmatmul.f32.gmra.mxu1 %v4967_v26  ;;  %v2417_v27 = vpop.f32.mrf.mxu3  ;;  %v4985_v22 = vld [vmem:[%s5975_s12 + $0x7e0] sm:$0xff]  ;;  %v4986_v24 = vld [vmem:[%s5975_s12 + $0x7f8] sm:$0xff] }
 0x45e   : > { %v2418_v28 = vadd.f32 %v2417_v27, %v2209_v25  ;;  %v1793_v29 = vpop.f32.mrf.mxu0  ;;  %v4987_v27 = vld [vmem:[%s5975_s12 + $0x7e8] sm:$0xff] }
 0x45f   : > { %v1794_v30 = vadd.f32 %v1793_v29, %v6598_v32  ;;  %2258 = vmatmul.f32.gmra.mxu2 %v4968_v31 }
 0x460   : > { %4324 = vst [vmem:[%s6162_s15 + $0x548] sm:$0xff] %v2418_v28 }
 0x461   : > { %v2002_v33 = vpop.f32.mrf.mxu1  ;;  %1840 = vmatmul.f32.gmra.mxu0 %v4969_v21  ;;  %2467 = vmatmul.f32.gmra.mxu3 %v4970_v35  ;;  %v732_v21 = vld [vmem:[%s5985_s4 + $0x5d8] sm:$0xff]  ;;  %v4989_v35 = vld [vmem:[%s5975_s12] sm:$0xff] }
 0x462   : > { %v2003_v34 = vadd.f32 %v2002_v33, %v1794_v30  ;;  %v2211_v36 = vpop.f32.mrf.mxu2  ;;  %v4988_v33 = vld [vmem:[%s5975_s12 + $0x10] sm:$0xff]  ;;  %3738 = vmatpush.msrb.mxu2 %v732_v21 }
 0x464   : > { %v2212_v37 = vadd.f32 %v2211_v36, %v2003_v34  ;;  %2049 = vmatmul.f32.gmra.mxu1 %v4971_v38  ;;  %v2420_v39 = vpop.f32.mrf.mxu3  ;;  %v604_v38 = vld [vmem:[%s5985_s4 + $0x1d8] sm:$0xff] }
 0x465   : > { %3320 = vmatpush.msrb.mxu0 %v604_v38 }
 0x466   : > { %v2421_v40 = vadd.f32 %v2420_v39, %v2212_v37  ;;  %v1796_v41 = vpop.f32.mrf.mxu0  ;;  %v4990_v37 = vld [vmem:[%s5975_s12 + $0x18] sm:$0xff] }
 0x467   : > { %v1797_v42 = vadd.f32 %v1796_v41, %v6598_v32  ;;  %2261 = vmatmul.f32.gmra.mxu2 %v4972_v43  ;;  %v796_v39 = vld [vmem:[%s5985_s4 + $0x7d8] sm:$0xff] }
 0x468   : > { %4328 = vst [vmem:[%s6162_s15 + $0x568] sm:$0xff] %v2421_v40  ;;  %3947 = vmatpush.msrb.mxu3 %v796_v39  ;;  %v668_v43 = vld [vmem:[%s5985_s4 + $0x3d8] sm:$0xff]  ;;  %v5009_v39 = vld [vmem:[%s5975_s12 + $0xa0] sm:$0xff] }
 0x469   : > { %v2005_v45 = vpop.f32.mrf.mxu1  ;;  %1843 = vmatmul.f32.gmra.mxu0 %v4973_v46  ;;  %2470 = vmatmul.f32.gmra.mxu3 %v4974_v48  ;;  %v4992_v48 = vld [vmem:[%s5975_s12 + $0x30] sm:$0xff] }
 0x46a   : > { %v2006_v47 = vadd.f32 %v2005_v45, %v1797_v42  ;;  %v2214_v51 = vpop.f32.mrf.mxu2  ;;  %v4991_v42 = vld [vmem:[%s5975_s12 + $0x8] sm:$0xff]  ;;  %3529 = vmatpush.msrb.mxu1 %v668_v43 }
 0x46c   : > { %v2215_v52 = vadd.f32 %v2214_v51, %v2006_v47  ;;  %2052 = vmatmul.f32.gmra.mxu1 %v4975_v53  ;;  %v2423_v55 = vpop.f32.mrf.mxu3 }
 0x46e   : > { %v2424_v56 = vadd.f32 %v2423_v55, %v2215_v52  ;;  %v1799_v57 = vpop.f32.mrf.mxu0  ;;  %v4994_v52 = vld [vmem:[%s5975_s12 + $0x38] sm:$0xff]  ;;  %v4995_v55 = vld [vmem:[%s5975_s12 + $0x28] sm:$0xff] }
 0x46f   : > { %v1800_v58 = vadd.f32 %v1799_v57, %v6598_v32  ;;  %2264 = vmatmul.f32.gmra.mxu2 %v4976_v59 }
 0x470   : > { %4332 = vst [vmem:[%s6162_s15 + $0x588] sm:$0xff] %v2424_v56 }
 0x471   : > { %v2008_v60 = vpop.f32.mrf.mxu1  ;;  %1846 = vmatmul.f32.gmra.mxu0 %v4977_v61  ;;  %2473 = vmatmul.f32.gmra.mxu3 %v4978_v63 }
 0x472   : > { %v2009_v62 = vadd.f32 %v2008_v60, %v1800_v58  ;;  %v2217_v0 = vpop.f32.mrf.mxu2  ;;  %v4996_v60 = vld [vmem:[%s5975_s12 + $0x50] sm:$0xff] }
 0x474   : > { %v2218_v1 = vadd.f32 %v2217_v0, %v2009_v62  ;;  %2055 = vmatmul.f32.gmra.mxu1 %v4979_v2  ;;  %v2426_v3 = vpop.f32.mrf.mxu3  ;;  %v4997_v62 = vld [vmem:[%s5975_s12 + $0x40] sm:$0xff]  ;;  %v4998_v0 = vld [vmem:[%s5975_s12 + $0x58] sm:$0xff] }
 0x476   : > { %v2427_v4 = vadd.f32 %v2426_v3, %v2218_v1  ;;  %v1802_v5 = vpop.f32.mrf.mxu0  ;;  %v4999_v3 = vld [vmem:[%s5975_s12 + $0x48] sm:$0xff] }
 0x477   : > { %v1803_v6 = vadd.f32 %v1802_v5, %v6598_v32  ;;  %2267 = vmatmul.f32.gmra.mxu2 %v4980_v7 }
 0x478   : > { %4336 = vst [vmem:[%s6162_s15 + $0x5a8] sm:$0xff] %v2427_v4 }
 0x479   : > { %v2011_v8 = vpop.f32.mrf.mxu1  ;;  %1849 = vmatmul.f32.gmra.mxu0 %v4981_v9  ;;  %2476 = vmatmul.f32.gmra.mxu3 %v4982_v11 }
 0x47a   : > { %v2012_v10 = vadd.f32 %v2011_v8, %v1803_v6  ;;  %v2220_v12 = vpop.f32.mrf.mxu2  ;;  %v5000_v8 = vld [vmem:[%s5975_s12 + $0x70] sm:$0xff] }
 0x47c   : > { %v2221_v13 = vadd.f32 %v2220_v12, %v2012_v10  ;;  %2058 = vmatmul.f32.gmra.mxu1 %v4983_v14  ;;  %v2429_v15 = vpop.f32.mrf.mxu3  ;;  %v5001_v10 = vld [vmem:[%s5975_s12 + $0x60] sm:$0xff]  ;;  %v5002_v12 = vld [vmem:[%s5975_s12 + $0x78] sm:$0xff] }
 0x47e   : > { %v2430_v16 = vadd.f32 %v2429_v15, %v2221_v13  ;;  %v1805_v17 = vpop.f32.mrf.mxu0  ;;  %v5003_v15 = vld [vmem:[%s5975_s12 + $0x68] sm:$0xff] }
 0x47f   : > { %v1806_v18 = vadd.f32 %v1805_v17, %v6598_v32  ;;  %2270 = vmatmul.f32.gmra.mxu2 %v4984_v19 }
 0x480   : > { %4340 = vst [vmem:[%s6162_s15 + $0x5c8] sm:$0xff] %v2430_v16 }
 0x481   : > { %v2014_v20 = vpop.f32.mrf.mxu1  ;;  %1852 = vmatmul.f32.gmra.mxu0 %v4985_v22  ;;  %2479 = vmatmul.f32.gmra.mxu3 %v4986_v24  ;;  %v728_v22 = vld [vmem:[%s5985_s4 + $0x5b8] sm:$0xff]  ;;  %v5005_v24 = vld [vmem:[%s5975_s12 + $0x80] sm:$0xff] }
 0x482   : > { %v2015_v23 = vadd.f32 %v2014_v20, %v1806_v18  ;;  %v2223_v25 = vpop.f32.mrf.mxu2  ;;  %v5004_v20 = vld [vmem:[%s5975_s12 + $0x90] sm:$0xff]  ;;  %3739 = vmatpush.msrb.mxu2 %v728_v22 }
 0x484   : > { %v2224_v26 = vadd.f32 %v2223_v25, %v2015_v23  ;;  %2061 = vmatmul.f32.gmra.mxu1 %v4987_v27  ;;  %v2432_v28 = vpop.f32.mrf.mxu3  ;;  %v600_v27 = vld [vmem:[%s5985_s4 + $0x1b8] sm:$0xff] }
 0x485   : > { %3321 = vmatpush.msrb.mxu0 %v600_v27 }
 0x486   : > { %v2433_v29 = vadd.f32 %v2432_v28, %v2224_v26  ;;  %v1808_v30 = vpop.f32.mrf.mxu0  ;;  %v5006_v26 = vld [vmem:[%s5975_s12 + $0x98] sm:$0xff] }
 0x487   : > { %v1809_v31 = vadd.f32 %v1808_v30, %v6598_v32  ;;  %2917 = vmatmul.f32.vlgmr.msra.gmra.mxu2 %v4988_v33  ;;  %v792_v28 = vld [vmem:[%s5985_s4 + $0x7b8] sm:$0xff] }
 0x488   : > { %4344 = vst [vmem:[%s6162_s15 + $0x5e8] sm:$0xff] %v2433_v29  ;;  %3948 = vmatpush.msrb.mxu3 %v792_v28  ;;  %v664_v33 = vld [vmem:[%s5985_s4 + $0x3b8] sm:$0xff]  ;;  %v5025_v28 = vld [vmem:[%s5975_s12 + $0x120] sm:$0xff] }
 0x489   : > { %v2017_v34 = vpop.f32.mrf.mxu1  ;;  %2499 = vmatmul.f32.vlgmr.msra.gmra.mxu0 %v4989_v35  ;;  %3126 = vmatmul.f32.vlgmr.msra.gmra.mxu3 %v4990_v37  ;;  %v5008_v37 = vld [vmem:[%s5975_s12 + $0xb0] sm:$0xff] }
 0x48a   : > { %v2018_v36 = vadd.f32 %v2017_v34, %v1809_v31  ;;  %v2226_v40 = vpop.f32.mrf.mxu2  ;;  %v5007_v31 = vld [vmem:[%s5975_s12 + $0x88] sm:$0xff]  ;;  %3530 = vmatpush.msrb.mxu1 %v664_v33 }
 0x48c   : > { %v2227_v41 = vadd.f32 %v2226_v40, %v2018_v36  ;;  %2708 = vmatmul.f32.vlgmr.msra.gmra.mxu1 %v4991_v42  ;;  %v2435_v44 = vpop.f32.mrf.mxu3 }
 0x48e   : > { %v2436_v45 = vadd.f32 %v2435_v44, %v2227_v41  ;;  %v1811_v46 = vpop.f32.mrf.mxu0  ;;  %v5010_v41 = vld [vmem:[%s5975_s12 + $0xb8] sm:$0xff]  ;;  %v5011_v44 = vld [vmem:[%s5975_s12 + $0xa8] sm:$0xff] }
 0x48f   : > { %v1812_v47 = vadd.f32 %v1811_v46, %v6598_v32  ;;  %2920 = vmatmul.f32.gmra.mxu2 %v4992_v48 }
 0x490   : > { %4348 = vst [vmem:[%s6162_s15 + $0x608] sm:$0xff] %v2436_v45 }
 0x491   : > { %v2020_v49 = vpop.f32.mrf.mxu1  ;;  %2502 = vmatmul.f32.gmra.mxu0 %v4993_v50  ;;  %3129 = vmatmul.f32.gmra.mxu3 %v4994_v52 }
 0x492   : > { %v2021_v51 = vadd.f32 %v2020_v49, %v1812_v47  ;;  %v2229_v53 = vpop.f32.mrf.mxu2  ;;  %v5012_v49 = vld [vmem:[%s5975_s12 + $0xd0] sm:$0xff] }
 0x494   : > { %v2230_v54 = vadd.f32 %v2229_v53, %v2021_v51  ;;  %2711 = vmatmul.f32.gmra.mxu1 %v4995_v55  ;;  %v2438_v56 = vpop.f32.mrf.mxu3  ;;  %v5013_v51 = vld [vmem:[%s5975_s12 + $0xc0] sm:$0xff]  ;;  %v5014_v53 = vld [vmem:[%s5975_s12 + $0xd8] sm:$0xff] }
 0x496   : > { %v2439_v57 = vadd.f32 %v2438_v56, %v2230_v54  ;;  %v1814_v58 = vpop.f32.mrf.mxu0  ;;  %v5015_v56 = vld [vmem:[%s5975_s12 + $0xc8] sm:$0xff] }
 0x497   : > { %v1815_v59 = vadd.f32 %v1814_v58, %v6598_v32  ;;  %2923 = vmatmul.f32.gmra.mxu2 %v4996_v60 }
 0x498   : > { %4352 = vst [vmem:[%s6162_s15 + $0x628] sm:$0xff] %v2439_v57 }
 0x499   : > { %v2023_v61 = vpop.f32.mrf.mxu1  ;;  %2505 = vmatmul.f32.gmra.mxu0 %v4997_v62  ;;  %3132 = vmatmul.f32.gmra.mxu3 %v4998_v0 }
 0x49a   : > { %v2024_v63 = vadd.f32 %v2023_v61, %v1815_v59  ;;  %v2232_v1 = vpop.f32.mrf.mxu2  ;;  %v5016_v61 = vld [vmem:[%s5975_s12 + $0xf0] sm:$0xff] }
 0x49c   : > { %v2233_v2 = vadd.f32 %v2232_v1, %v2024_v63  ;;  %2714 = vmatmul.f32.gmra.mxu1 %v4999_v3  ;;  %v2441_v4 = vpop.f32.mrf.mxu3  ;;  %v5017_v63 = vld [vmem:[%s5975_s12 + $0xe0] sm:$0xff]  ;;  %v5018_v1 = vld [vmem:[%s5975_s12 + $0xf8] sm:$0xff] }
 0x49e   : > { %v2442_v5 = vadd.f32 %v2441_v4, %v2233_v2  ;;  %v1817_v6 = vpop.f32.mrf.mxu0  ;;  %v5019_v4 = vld [vmem:[%s5975_s12 + $0xe8] sm:$0xff] }
 0x49f   : > { %v1818_v7 = vadd.f32 %v1817_v6, %v6598_v32  ;;  %2926 = vmatmul.f32.gmra.mxu2 %v5000_v8 }
 0x4a0   : > { %4356 = vst [vmem:[%s6162_s15 + $0x648] sm:$0xff] %v2442_v5 }
 0x4a1   : > { %v2026_v9 = vpop.f32.mrf.mxu1  ;;  %2508 = vmatmul.f32.gmra.mxu0 %v5001_v10  ;;  %3135 = vmatmul.f32.gmra.mxu3 %v5002_v12  ;;  %v724_v10 = vld [vmem:[%s5985_s4 + $0x598] sm:$0xff]  ;;  %v5021_v12 = vld [vmem:[%s5975_s12 + $0x100] sm:$0xff] }
 0x4a2   : > { %v2027_v11 = vadd.f32 %v2026_v9, %v1818_v7  ;;  %v2235_v13 = vpop.f32.mrf.mxu2  ;;  %v5020_v9 = vld [vmem:[%s5975_s12 + $0x110] sm:$0xff]  ;;  %3740 = vmatpush.msrb.mxu2 %v724_v10 }
 0x4a4   : > { %v2236_v14 = vadd.f32 %v2235_v13, %v2027_v11  ;;  %2717 = vmatmul.f32.gmra.mxu1 %v5003_v15  ;;  %v2444_v16 = vpop.f32.mrf.mxu3  ;;  %v596_v15 = vld [vmem:[%s5985_s4 + $0x198] sm:$0xff] }
 0x4a5   : > { %3322 = vmatpush.msrb.mxu0 %v596_v15 }
 0x4a6   : > { %v2445_v17 = vadd.f32 %v2444_v16, %v2236_v14  ;;  %v1820_v18 = vpop.f32.mrf.mxu0  ;;  %v5022_v14 = vld [vmem:[%s5975_s12 + $0x118] sm:$0xff] }
 0x4a7   : > { %v1821_v19 = vadd.f32 %v1820_v18, %v6598_v32  ;;  %2929 = vmatmul.f32.gmra.mxu2 %v5004_v20  ;;  %v788_v16 = vld [vmem:[%s5985_s4 + $0x798] sm:$0xff] }
 0x4a8   : > { %4360 = vst [vmem:[%s6162_s15 + $0x668] sm:$0xff] %v2445_v17  ;;  %3949 = vmatpush.msrb.mxu3 %v788_v16  ;;  %v660_v20 = vld [vmem:[%s5985_s4 + $0x398] sm:$0xff]  ;;  %v5041_v16 = vld [vmem:[%s5975_s12 + $0x1a0] sm:$0xff] }
 0x4a9   : > { %v2029_v23 = vpop.f32.mrf.mxu1  ;;  %2511 = vmatmul.f32.gmra.mxu0 %v5005_v24  ;;  %3138 = vmatmul.f32.gmra.mxu3 %v5006_v26  ;;  %v5024_v26 = vld [vmem:[%s5975_s12 + $0x130] sm:$0xff] }
 0x4aa   : > { %v2030_v25 = vadd.f32 %v2029_v23, %v1821_v19  ;;  %v2238_v29 = vpop.f32.mrf.mxu2  ;;  %v5023_v19 = vld [vmem:[%s5975_s12 + $0x108] sm:$0xff]  ;;  %3531 = vmatpush.msrb.mxu1 %v660_v20 }
 0x4ac   : > { %v2239_v30 = vadd.f32 %v2238_v29, %v2030_v25  ;;  %2720 = vmatmul.f32.gmra.mxu1 %v5007_v31  ;;  %v2447_v21 = vpop.f32.mrf.mxu3 }
 0x4ae   : > { %v2448_v34 = vadd.f32 %v2447_v21, %v2239_v30  ;;  %v1823_v35 = vpop.f32.mrf.mxu0  ;;  %v5026_v30 = vld [vmem:[%s5975_s12 + $0x138] sm:$0xff]  ;;  %v5027_v21 = vld [vmem:[%s5975_s12 + $0x128] sm:$0xff] }
 0x4af   : > { %v1824_v36 = vadd.f32 %v1823_v35, %v6598_v32  ;;  %2932 = vmatmul.f32.gmra.mxu2 %v5008_v37 }
 0x4b0   : > { %4364 = vst [vmem:[%s6162_s15 + $0x688] sm:$0xff] %v2448_v34 }
 0x4b1   : > { %v2032_v38 = vpop.f32.mrf.mxu1  ;;  %2514 = vmatmul.f32.gmra.mxu0 %v5009_v39  ;;  %3141 = vmatmul.f32.gmra.mxu3 %v5010_v41 }
 0x4b2   : > { %v2033_v40 = vadd.f32 %v2032_v38, %v1824_v36  ;;  %v2241_v42 = vpop.f32.mrf.mxu2  ;;  %v5028_v38 = vld [vmem:[%s5975_s12 + $0x150] sm:$0xff] }
 0x4b4   : > { %v2242_v43 = vadd.f32 %v2241_v42, %v2033_v40  ;;  %2723 = vmatmul.f32.gmra.mxu1 %v5011_v44  ;;  %v2450_v45 = vpop.f32.mrf.mxu3  ;;  %v5029_v40 = vld [vmem:[%s5975_s12 + $0x140] sm:$0xff]  ;;  %v5030_v42 = vld [vmem:[%s5975_s12 + $0x158] sm:$0xff] }
 0x4b6   : > { %v2451_v46 = vadd.f32 %v2450_v45, %v2242_v43  ;;  %v1826_v47 = vpop.f32.mrf.mxu0  ;;  %v5031_v45 = vld [vmem:[%s5975_s12 + $0x148] sm:$0xff] }
 0x4b7   : > { %v1827_v48 = vadd.f32 %v1826_v47, %v6598_v32  ;;  %2935 = vmatmul.f32.gmra.mxu2 %v5012_v49 }
 0x4b8   : > { %4368 = vst [vmem:[%s6162_s15 + $0x6a8] sm:$0xff] %v2451_v46 }
 0x4b9   : > { %v2035_v50 = vpop.f32.mrf.mxu1  ;;  %2517 = vmatmul.f32.gmra.mxu0 %v5013_v51  ;;  %3144 = vmatmul.f32.gmra.mxu3 %v5014_v53 }
 0x4ba   : > { %v2036_v52 = vadd.f32 %v2035_v50, %v1827_v48  ;;  %v2244_v54 = vpop.f32.mrf.mxu2  ;;  %v5032_v50 = vld [vmem:[%s5975_s12 + $0x170] sm:$0xff] }
 0x4bc   : > { %v2245_v55 = vadd.f32 %v2244_v54, %v2036_v52  ;;  %2726 = vmatmul.f32.gmra.mxu1 %v5015_v56  ;;  %v2453_v57 = vpop.f32.mrf.mxu3  ;;  %v5033_v52 = vld [vmem:[%s5975_s12 + $0x160] sm:$0xff]  ;;  %v5034_v54 = vld [vmem:[%s5975_s12 + $0x178] sm:$0xff] }
 0x4be   : > { %v2454_v58 = vadd.f32 %v2453_v57, %v2245_v55  ;;  %v1829_v59 = vpop.f32.mrf.mxu0  ;;  %v5035_v57 = vld [vmem:[%s5975_s12 + $0x168] sm:$0xff] }
 0x4bf   : > { %v1830_v60 = vadd.f32 %v1829_v59, %v6598_v32  ;;  %2938 = vmatmul.f32.gmra.mxu2 %v5016_v61 }
 0x4c0   : > { %4372 = vst [vmem:[%s6162_s15 + $0x6c8] sm:$0xff] %v2454_v58 }
 0x4c1   : > { %v2038_v62 = vpop.f32.mrf.mxu1  ;;  %2520 = vmatmul.f32.gmra.mxu0 %v5017_v63  ;;  %3147 = vmatmul.f32.gmra.mxu3 %v5018_v1  ;;  %v720_v63 = vld [vmem:[%s5985_s4 + $0x578] sm:$0xff]  ;;  %v5037_v1 = vld [vmem:[%s5975_s12 + $0x180] sm:$0xff] }
 0x4c2   : > { %v2039_v0 = vadd.f32 %v2038_v62, %v1830_v60  ;;  %v2247_v2 = vpop.f32.mrf.mxu2  ;;  %v5036_v62 = vld [vmem:[%s5975_s12 + $0x190] sm:$0xff]  ;;  %3741 = vmatpush.msrb.mxu2 %v720_v63  ;;  %v652_v63 = vld [vmem:[%s5985_s4 + $0x358] sm:$0xff] }
 0x4c4   : > { %v2248_v3 = vadd.f32 %v2247_v2, %v2039_v0  ;;  %2729 = vmatmul.f32.gmra.mxu1 %v5019_v4  ;;  %v2456_v5 = vpop.f32.mrf.mxu3  ;;  %v592_v4 = vld [vmem:[%s5985_s4 + $0x178] sm:$0xff] }
 0x4c5   : > { %3323 = vmatpush.msrb.mxu0 %v592_v4  ;;  %v5057_v4 = vld [vmem:[%s5975_s12 + $0x230] sm:$0xff] }
 0x4c6   : > { %v2457_v6 = vadd.f32 %v2456_v5, %v2248_v3  ;;  %v1832_v7 = vpop.f32.mrf.mxu0  ;;  %v5038_v3 = vld [vmem:[%s5975_s12 + $0x198] sm:$0xff] }
 0x4c7   : > { %v1833_v8 = vadd.f32 %v1832_v7, %v6598_v32  ;;  %2941 = vmatmul.f32.gmra.mxu2 %v5020_v9  ;;  %v784_v5 = vld [vmem:[%s5985_s4 + $0x778] sm:$0xff] }
 0x4c8   : > { %4376 = vst [vmem:[%s6162_s15 + $0x6e8] sm:$0xff] %v2457_v6  ;;  %3950 = vmatpush.msrb.mxu3 %v784_v5  ;;  %v656_v9 = vld [vmem:[%s5985_s4 + $0x378] sm:$0xff] }
 0x4c9   : > { %v2041_v11 = vpop.f32.mrf.mxu1  ;;  %2523 = vmatmul.f32.gmra.mxu0 %v5021_v12  ;;  %3150 = vmatmul.f32.gmra.mxu3 %v5022_v14  ;;  %v5040_v14 = vld [vmem:[%s5975_s12 + $0x1b0] sm:$0xff] }
 0x4ca   : > { %v2042_v13 = vadd.f32 %v2041_v11, %v1833_v8  ;;  %v2250_v17 = vpop.f32.mrf.mxu2  ;;  %v5039_v8 = vld [vmem:[%s5975_s12 + $0x188] sm:$0xff]  ;;  %3532 = vmatpush.msrb.mxu1 %v656_v9 }
 0x4cc   : > { %v2251_v18 = vadd.f32 %v2250_v17, %v2042_v13  ;;  %2732 = vmatmul.f32.gmra.mxu1 %v5023_v19  ;;  %v2459_v22 = vpop.f32.mrf.mxu3 }
 0x4cd   : > { %3533 = vmatpush.msrb.mxu1 %v652_v63 }
 0x4ce   : > { %v2460_v23 = vadd.f32 %v2459_v22, %v2251_v18  ;;  %v1835_v24 = vpop.f32.mrf.mxu0  ;;  %v5042_v18 = vld [vmem:[%s5975_s12 + $0x1b8] sm:$0xff]  ;;  %v5043_v22 = vld [vmem:[%s5975_s12 + $0x1a8] sm:$0xff] }
 0x4cf   : > { %v1836_v25 = vadd.f32 %v1835_v24, %v6598_v32  ;;  %2944 = vmatmul.f32.gmra.mxu2 %v5024_v26 }
 0x4d0   : > { %4380 = vst [vmem:[%s6162_s15 + $0x708] sm:$0xff] %v2460_v23 }
 0x4d1   : > { %v2044_v27 = vpop.f32.mrf.mxu1  ;;  %2526 = vmatmul.f32.gmra.mxu0 %v5025_v28  ;;  %3153 = vmatmul.f32.gmra.mxu3 %v5026_v30 }
 0x4d2   : > { %v2045_v29 = vadd.f32 %v2044_v27, %v1836_v25  ;;  %v2253_v31 = vpop.f32.mrf.mxu2  ;;  %v5044_v27 = vld [vmem:[%s5975_s12 + $0x1d0] sm:$0xff] }
 0x4d4   : > { %v2254_v33 = vadd.f32 %v2253_v31, %v2045_v29  ;;  %2735 = vmatmul.f32.gmra.mxu1 %v5027_v21  ;;  %v2462_v34 = vpop.f32.mrf.mxu3  ;;  %v5045_v29 = vld [vmem:[%s5975_s12 + $0x1c0] sm:$0xff]  ;;  %v5046_v31 = vld [vmem:[%s5975_s12 + $0x1d8] sm:$0xff] }
 0x4d6   : > { %v2463_v35 = vadd.f32 %v2462_v34, %v2254_v33  ;;  %v1838_v36 = vpop.f32.mrf.mxu0  ;;  %v5047_v34 = vld [vmem:[%s5975_s12 + $0x1c8] sm:$0xff] }
 0x4d7   : > { %v1839_v37 = vadd.f32 %v1838_v36, %v6598_v32  ;;  %2947 = vmatmul.f32.gmra.mxu2 %v5028_v38 }
 0x4d8   : > { %4384 = vst [vmem:[%s6162_s15 + $0x728] sm:$0xff] %v2463_v35 }
 0x4d9   : > { %v2047_v39 = vpop.f32.mrf.mxu1  ;;  %2529 = vmatmul.f32.gmra.mxu0 %v5029_v40  ;;  %3156 = vmatmul.f32.gmra.mxu3 %v5030_v42 }
 0x4da   : > { %v2048_v41 = vadd.f32 %v2047_v39, %v1839_v37  ;;  %v2256_v43 = vpop.f32.mrf.mxu2  ;;  %v5048_v39 = vld [vmem:[%s5975_s12 + $0x1f0] sm:$0xff] }
 0x4dc   : > { %v2257_v44 = vadd.f32 %v2256_v43, %v2048_v41  ;;  %2738 = vmatmul.f32.gmra.mxu1 %v5031_v45  ;;  %v2465_v46 = vpop.f32.mrf.mxu3  ;;  %v5049_v41 = vld [vmem:[%s5975_s12 + $0x1e0] sm:$0xff]  ;;  %v5050_v43 = vld [vmem:[%s5975_s12 + $0x1f8] sm:$0xff] }
 0x4dd   : > { %v5051_v45 = vld [vmem:[%s6140_s8] sm:$0xf] }
 0x4de   : > { %v2466_v47 = vadd.f32 %v2465_v46, %v2257_v44  ;;  %v1841_v48 = vpop.f32.mrf.mxu0  ;;  %v7049_v46 = vperm.slane %v5051_v45, 2 }
 0x4df   : > { %v1842_v49 = vadd.f32 %v1841_v48, %v6598_v32  ;;  %2950 = vmatmul.f32.gmra.mxu2 %v5032_v50 }
 0x4e0   : > { %4388 = vst [vmem:[%s6162_s15 + $0x748] sm:$0xff] %v2466_v47 }
 0x4e1   : > { %v2050_v51 = vpop.f32.mrf.mxu1  ;;  %2532 = vmatmul.f32.gmra.mxu0 %v5033_v52  ;;  %3159 = vmatmul.f32.gmra.mxu3 %v5034_v54  ;;  %v5053_v52 = vld [vmem:[%s5975_s12 + $0x210] sm:$0xff] }
 0x4e2   : > { %v2051_v53 = vadd.f32 %v2050_v51, %v1842_v49  ;;  %v2259_v55 = vpop.f32.mrf.mxu2 }
 0x4e4   : > { %v2260_v56 = vadd.f32 %v2259_v55, %v2051_v53  ;;  %2741 = vmatmul.f32.gmra.mxu1 %v5035_v57  ;;  %v2468_v58 = vpop.f32.mrf.mxu3  ;;  %v716_v53 = vld [vmem:[%s5985_s4 + $0x558] sm:$0xff]  ;;  %v5054_v55 = vld [vmem:[%s5975_s12 + $0x200] sm:$0xff] }
 0x4e5   : > { %3742 = vmatpush.msrb.mxu2 %v716_v53  ;;  %v5055_v57 = vld [vmem:[%s5975_s12 + $0x218] sm:$0xff] }
 0x4e6   : > { %v2469_v59 = vadd.f32 %v2468_v58, %v2260_v56  ;;  %v1844_v60 = vpop.f32.mrf.mxu0  ;;  %v588_v58 = vld [vmem:[%s5985_s4 + $0x158] sm:$0xff] }
 0x4e7   : > { %v1845_v61 = vadd.f32 %v1844_v60, %v6598_v32  ;;  %2953 = vmatmul.f32.gmra.mxu2 %v5036_v62  ;;  %3324 = vmatpush.msrb.mxu0 %v588_v58  ;;  %v5056_v62 = vld [vmem:[%s5975_s12 + $0x208] sm:$0xff] }
 0x4e8   : > { %4392 = vst [vmem:[%s6162_s15 + $0x768] sm:$0xff] %v2469_v59  ;;  %v780_v59 = vld [vmem:[%s5985_s4 + $0x758] sm:$0xff] }
 0x4e9   : > { %v2053_v0 = vpop.f32.mrf.mxu1  ;;  %2535 = vmatmul.f32.gmra.mxu0 %v5037_v1  ;;  %3162 = vmatmul.f32.gmra.mxu3 %v5038_v3 }
 0x4ea   : > { %v2054_v2 = vadd.f32 %v2053_v0, %v1845_v61  ;;  %v2262_v6 = vpop.f32.mrf.mxu2  ;;  %3951 = vmatpush.msrb.mxu3 %v780_v59  ;;  %v5074_v59 = vld [vmem:[%s5975_s12 + $0x2a0] sm:$0xff] }
 0x4ec   : > { %v2263_v7 = vadd.f32 %v2262_v6, %v2054_v2  ;;  %2744 = vmatmul.f32.gmra.mxu1 %v5039_v8  ;;  %v2471_v10 = vpop.f32.mrf.mxu3  ;;  %v5058_v6 = vld [vmem:[%s5975_s12 + $0x220] sm:$0xff]  ;;  %v5059_v8 = vld [vmem:[%s5975_s12 + $0x238] sm:$0xff] }
 0x4ee   : > { %v2472_v11 = vadd.f32 %v2471_v10, %v2263_v7  ;;  %v1847_v12 = vpop.f32.mrf.mxu0 }
 0x4ef   : > { %v1848_v13 = vadd.f32 %v1847_v12, %v6598_v32  ;;  %2956 = vmatmul.f32.gmra.mxu2 %v5040_v14 }
 0x4f0   : > { %4396 = vst [vmem:[%s6162_s15 + $0x788] sm:$0xff] %v2472_v11  ;;  %v5060_v11 = vld [vmem:[%s5975_s12 + $0x228] sm:$0xff] }
 0x4f1   : > { %v2056_v15 = vpop.f32.mrf.mxu1  ;;  %2538 = vmatmul.f32.gmra.mxu0 %v5041_v16  ;;  %3165 = vmatmul.f32.gmra.mxu3 %v5042_v18  ;;  %v5061_v16 = vld [vmem:[%s5975_s12 + $0x250] sm:$0xff]  ;;  %v5062_v18 = vld [vmem:[%s5975_s12 + $0x240] sm:$0xff] }
 0x4f2   : > { %v2057_v17 = vadd.f32 %v2056_v15, %v1848_v13  ;;  %v2265_v19 = vpop.f32.mrf.mxu2 }
 0x4f4   : > { %v2266_v20 = vadd.f32 %v2265_v19, %v2057_v17  ;;  %2747 = vmatmul.f32.gmra.mxu1 %v5043_v22  ;;  %v2474_v23 = vpop.f32.mrf.mxu3 }
 0x4f6   : > { %v2475_v24 = vadd.f32 %v2474_v23, %v2266_v20  ;;  %v1850_v25 = vpop.f32.mrf.mxu0  ;;  %v5063_v20 = vld [vmem:[%s5975_s12 + $0x258] sm:$0xff] }
 0x4f7   : > { %v1851_v26 = vadd.f32 %v1850_v25, %v6598_v32  ;;  %2959 = vmatmul.f32.gmra.mxu2 %v5044_v27 }
 0x4f8   : > { %4400 = vst [vmem:[%s6162_s15 + $0x7a8] sm:$0xff] %v2475_v24  ;;  %v5064_v24 = vld [vmem:[%s5975_s12 + $0x248] sm:$0xff] }
 0x4f9   : > { %v2059_v28 = vpop.f32.mrf.mxu1  ;;  %2541 = vmatmul.f32.gmra.mxu0 %v5045_v29  ;;  %3168 = vmatmul.f32.gmra.mxu3 %v5046_v31  ;;  %v5065_v29 = vld [vmem:[%s5975_s12 + $0x270] sm:$0xff]  ;;  %v5066_v31 = vld [vmem:[%s5975_s12 + $0x260] sm:$0xff] }
 0x4fa   : > { %v2060_v30 = vadd.f32 %v2059_v28, %v1851_v26  ;;  %v2268_v33 = vpop.f32.mrf.mxu2 }
 0x4fc   : > { %v2269_v21 = vadd.f32 %v2268_v33, %v2060_v30  ;;  %2750 = vmatmul.f32.gmra.mxu1 %v5047_v34  ;;  %v2477_v35 = vpop.f32.mrf.mxu3 }
 0x4fe   : > { %v2478_v36 = vadd.f32 %v2477_v35, %v2269_v21  ;;  %v1853_v37 = vpop.f32.mrf.mxu0  ;;  %v5067_v21 = vld [vmem:[%s5975_s12 + $0x278] sm:$0xff] }
 0x4ff   : > { %v1854_v38 = vadd.f32 %v1853_v37, %v6598_v32  ;;  %2962 = vmatmul.f32.gmra.mxu2 %v5048_v39  ;;  %v5052_v32 = vld [vmem:[%s5975_s12 + $0x1e8] sm:$0xff] }
 0x500   : > { %4404 = vst [vmem:[%s6162_s15 + $0x7c8] sm:$0xff] %v2478_v36  ;;  %v5068_v36 = vld [vmem:[%s5975_s12 + $0x268] sm:$0xff] }
 0x501   : > { %v2062_v40 = vpop.f32.mrf.mxu1  ;;  %2544 = vmatmul.f32.gmra.mxu0 %v5049_v41  ;;  %3171 = vmatmul.f32.gmra.mxu3 %v5050_v43  ;;  %v5069_v41 = vld [vmem:[%s5975_s12 + $0x290] sm:$0xff] }
 0x502   : > { %v2063_v42 = vadd.f32 %v2062_v40, %v1854_v38  ;;  %v2271_v44 = vpop.f32.mrf.mxu2 }
 0x504   : > { %v2272_v47 = vadd.f32 %v2271_v44, %v2063_v42  ;;  %2753 = vmatmul.f32.gmra.mxu1 %v5052_v32  ;;  %v2480_v48 = vpop.f32.mrf.mxu3  ;;  %v712_v42 = vld [vmem:[%s5985_s4 + $0x538] sm:$0xff]  ;;  %v5070_v44 = vld [vmem:[%s5975_s12 + $0x280] sm:$0xff] }
 0x505   : > { %3743 = vmatpush.msrb.mxu2 %v712_v42  ;;  %v584_v32 = vld [vmem:[%s5985_s4 + $0x138] sm:$0xff] }
 0x506   : > { %v2481_v49 = vadd.f32 %v2480_v48, %v2272_v47  ;;  %v2500_v50 = vpop.f32.mrf.mxu0  ;;  %v5071_v47 = vld [vmem:[%s5975_s12 + $0x298] sm:$0xff]  ;;  %3325 = vmatpush.msrb.mxu0 %v584_v32 }
 0x507   : > { %v2501_v51 = vadd.f32 %v2500_v50, %v7049_v46  ;;  %2965 = vmatmul.f32.gmra.mxu2 %v5053_v52  ;;  %v776_v48 = vld [vmem:[%s5985_s4 + $0x738] sm:$0xff] }
 0x508   : > { %4408 = vst [vmem:[%s6162_s15 + $0x7e8] sm:$0xff] %v2481_v49  ;;  %3952 = vmatpush.msrb.mxu3 %v776_v48  ;;  %v648_v52 = vld [vmem:[%s5985_s4 + $0x338] sm:$0xff]  ;;  %v5090_v48 = vld [vmem:[%s5975_s12 + $0x320] sm:$0xff] }
 0x509   : > { %v2709_v54 = vpop.f32.mrf.mxu1  ;;  %2547 = vmatmul.f32.gmra.mxu0 %v5054_v55  ;;  %3174 = vmatmul.f32.gmra.mxu3 %v5055_v57  ;;  %v5073_v57 = vld [vmem:[%s5975_s12 + $0x2b0] sm:$0xff] }
 0x50a   : > { %v2710_v56 = vadd.f32 %v2709_v54, %v2501_v51  ;;  %v2918_v60 = vpop.f32.mrf.mxu2  ;;  %v5072_v51 = vld [vmem:[%s5975_s12 + $0x288] sm:$0xff]  ;;  %3534 = vmatpush.msrb.mxu1 %v648_v52 }
 0x50c   : > { %v2919_v61 = vadd.f32 %v2918_v60, %v2710_v56  ;;  %2756 = vmatmul.f32.gmra.mxu1 %v5056_v62  ;;  %v3127_v0 = vpop.f32.mrf.mxu3 }
 0x50e   : > { %v3128_v1 = vadd.f32 %v3127_v0, %v2919_v61  ;;  %v2503_v2 = vpop.f32.mrf.mxu0  ;;  %v5075_v61 = vld [vmem:[%s5975_s12 + $0x2b8] sm:$0xff]  ;;  %v5076_v0 = vld [vmem:[%s5975_s12 + $0x2a8] sm:$0xff] }
 0x50f   : > { %v2504_v3 = vadd.f32 %v2503_v2, %v7049_v46  ;;  %2968 = vmatmul.f32.gmra.mxu2 %v5057_v4 }
 0x510   : > { %4157 = vst [vmem:[%s6162_s15 + $0x10] sm:$0xff] %v3128_v1 }
 0x511   : > { %v2712_v5 = vpop.f32.mrf.mxu1  ;;  %2550 = vmatmul.f32.gmra.mxu0 %v5058_v6  ;;  %3177 = vmatmul.f32.gmra.mxu3 %v5059_v8 }
 0x512   : > { %v2713_v7 = vadd.f32 %v2712_v5, %v2504_v3  ;;  %v2921_v9 = vpop.f32.mrf.mxu2  ;;  %v5077_v5 = vld [vmem:[%s5975_s12 + $0x2d0] sm:$0xff] }
 0x514   : > { %v2922_v10 = vadd.f32 %v2921_v9, %v2713_v7  ;;  %2759 = vmatmul.f32.gmra.mxu1 %v5060_v11  ;;  %v3130_v12 = vpop.f32.mrf.mxu3  ;;  %v5078_v7 = vld [vmem:[%s5975_s12 + $0x2c0] sm:$0xff]  ;;  %v5079_v9 = vld [vmem:[%s5975_s12 + $0x2d8] sm:$0xff] }
 0x516   : > { %v3131_v13 = vadd.f32 %v3130_v12, %v2922_v10  ;;  %v2506_v14 = vpop.f32.mrf.mxu0  ;;  %v5080_v12 = vld [vmem:[%s5975_s12 + $0x2c8] sm:$0xff] }
 0x517   : > { %v2507_v15 = vadd.f32 %v2506_v14, %v7049_v46  ;;  %2971 = vmatmul.f32.gmra.mxu2 %v5061_v16 }
 0x518   : > { %4161 = vst [vmem:[%s6162_s15 + $0x30] sm:$0xff] %v3131_v13 }
 0x519   : > { %v2715_v17 = vpop.f32.mrf.mxu1  ;;  %2553 = vmatmul.f32.gmra.mxu0 %v5062_v18  ;;  %3180 = vmatmul.f32.gmra.mxu3 %v5063_v20 }
 0x51a   : > { %v2716_v19 = vadd.f32 %v2715_v17, %v2507_v15  ;;  %v2924_v22 = vpop.f32.mrf.mxu2  ;;  %v5081_v17 = vld [vmem:[%s5975_s12 + $0x2f0] sm:$0xff] }
 0x51c   : > { %v2925_v23 = vadd.f32 %v2924_v22, %v2716_v19  ;;  %2762 = vmatmul.f32.gmra.mxu1 %v5064_v24  ;;  %v3133_v25 = vpop.f32.mrf.mxu3  ;;  %v5082_v19 = vld [vmem:[%s5975_s12 + $0x2e0] sm:$0xff]  ;;  %v5083_v22 = vld [vmem:[%s5975_s12 + $0x2f8] sm:$0xff] }
 0x51e   : > { %v3134_v26 = vadd.f32 %v3133_v25, %v2925_v23  ;;  %v2509_v27 = vpop.f32.mrf.mxu0  ;;  %v5084_v25 = vld [vmem:[%s5975_s12 + $0x2e8] sm:$0xff] }
 0x51f   : > { %v2510_v28 = vadd.f32 %v2509_v27, %v7049_v46  ;;  %2974 = vmatmul.f32.gmra.mxu2 %v5065_v29 }
 0x520   : > { %4165 = vst [vmem:[%s6162_s15 + $0x50] sm:$0xff] %v3134_v26 }
 0x521   : > { %v2718_v30 = vpop.f32.mrf.mxu1  ;;  %2556 = vmatmul.f32.gmra.mxu0 %v5066_v31  ;;  %3183 = vmatmul.f32.gmra.mxu3 %v5067_v21  ;;  %v708_v31 = vld [vmem:[%s5985_s4 + $0x518] sm:$0xff]  ;;  %v5086_v21 = vld [vmem:[%s5975_s12 + $0x300] sm:$0xff] }
 0x522   : > { %v2719_v33 = vadd.f32 %v2718_v30, %v2510_v28  ;;  %v2927_v34 = vpop.f32.mrf.mxu2  ;;  %v5085_v30 = vld [vmem:[%s5975_s12 + $0x310] sm:$0xff]  ;;  %3744 = vmatpush.msrb.mxu2 %v708_v31 }
 0x524   : > { %v2928_v35 = vadd.f32 %v2927_v34, %v2719_v33  ;;  %2765 = vmatmul.f32.gmra.mxu1 %v5068_v36  ;;  %v3136_v37 = vpop.f32.mrf.mxu3  ;;  %v580_v36 = vld [vmem:[%s5985_s4 + $0x118] sm:$0xff] }
 0x525   : > { %3326 = vmatpush.msrb.mxu0 %v580_v36 }
 0x526   : > { %v3137_v38 = vadd.f32 %v3136_v37, %v2928_v35  ;;  %v2512_v39 = vpop.f32.mrf.mxu0  ;;  %v5087_v35 = vld [vmem:[%s5975_s12 + $0x318] sm:$0xff] }
 0x527   : > { %v2513_v40 = vadd.f32 %v2512_v39, %v7049_v46  ;;  %2977 = vmatmul.f32.gmra.mxu2 %v5069_v41  ;;  %v772_v37 = vld [vmem:[%s5985_s4 + $0x718] sm:$0xff] }
 0x528   : > { %4169 = vst [vmem:[%s6162_s15 + $0x70] sm:$0xff] %v3137_v38  ;;  %3953 = vmatpush.msrb.mxu3 %v772_v37  ;;  %v644_v41 = vld [vmem:[%s5985_s4 + $0x318] sm:$0xff]  ;;  %v5106_v37 = vld [vmem:[%s5975_s12 + $0x3a0] sm:$0xff] }
 0x529   : > { %v2721_v43 = vpop.f32.mrf.mxu1  ;;  %2559 = vmatmul.f32.gmra.mxu0 %v5070_v44  ;;  %3186 = vmatmul.f32.gmra.mxu3 %v5071_v47  ;;  %v5089_v47 = vld [vmem:[%s5975_s12 + $0x330] sm:$0xff] }
 0x52a   : > { %v2722_v45 = vadd.f32 %v2721_v43, %v2513_v40  ;;  %v2930_v49 = vpop.f32.mrf.mxu2  ;;  %v5088_v40 = vld [vmem:[%s5975_s12 + $0x308] sm:$0xff]  ;;  %3535 = vmatpush.msrb.mxu1 %v644_v41 }
 0x52c   : > { %v2931_v50 = vadd.f32 %v2930_v49, %v2722_v45  ;;  %2768 = vmatmul.f32.gmra.mxu1 %v5072_v51  ;;  %v3139_v53 = vpop.f32.mrf.mxu3 }
 0x52e   : > { %v3140_v54 = vadd.f32 %v3139_v53, %v2931_v50  ;;  %v2515_v55 = vpop.f32.mrf.mxu0  ;;  %v5091_v50 = vld [vmem:[%s5975_s12 + $0x338] sm:$0xff]  ;;  %v5092_v53 = vld [vmem:[%s5975_s12 + $0x328] sm:$0xff] }
 0x52f   : > { %v2516_v56 = vadd.f32 %v2515_v55, %v7049_v46  ;;  %2980 = vmatmul.f32.gmra.mxu2 %v5073_v57 }
 0x530   : > { %4173 = vst [vmem:[%s6162_s15 + $0x90] sm:$0xff] %v3140_v54 }
 0x531   : > { %v2724_v58 = vpop.f32.mrf.mxu1  ;;  %2562 = vmatmul.f32.gmra.mxu0 %v5074_v59  ;;  %3189 = vmatmul.f32.gmra.mxu3 %v5075_v61 }
 0x532   : > { %v2725_v60 = vadd.f32 %v2724_v58, %v2516_v56  ;;  %v2933_v62 = vpop.f32.mrf.mxu2  ;;  %v5093_v58 = vld [vmem:[%s5975_s12 + $0x350] sm:$0xff] }
 0x534   : > { %v2934_v63 = vadd.f32 %v2933_v62, %v2725_v60  ;;  %2771 = vmatmul.f32.gmra.mxu1 %v5076_v0  ;;  %v3142_v1 = vpop.f32.mrf.mxu3  ;;  %v5094_v60 = vld [vmem:[%s5975_s12 + $0x340] sm:$0xff]  ;;  %v5095_v62 = vld [vmem:[%s5975_s12 + $0x358] sm:$0xff] }
 0x536   : > { %v3143_v2 = vadd.f32 %v3142_v1, %v2934_v63  ;;  %v2518_v3 = vpop.f32.mrf.mxu0  ;;  %v5096_v1 = vld [vmem:[%s5975_s12 + $0x348] sm:$0xff] }
 0x537   : > { %v2519_v4 = vadd.f32 %v2518_v3, %v7049_v46  ;;  %2983 = vmatmul.f32.gmra.mxu2 %v5077_v5 }
 0x538   : > { %4177 = vst [vmem:[%s6162_s15 + $0xb0] sm:$0xff] %v3143_v2 }
 0x539   : > { %v2727_v6 = vpop.f32.mrf.mxu1  ;;  %2565 = vmatmul.f32.gmra.mxu0 %v5078_v7  ;;  %3192 = vmatmul.f32.gmra.mxu3 %v5079_v9 }
 0x53a   : > { %v2728_v8 = vadd.f32 %v2727_v6, %v2519_v4  ;;  %v2936_v10 = vpop.f32.mrf.mxu2  ;;  %v5097_v6 = vld [vmem:[%s5975_s12 + $0x370] sm:$0xff] }
 0x53c   : > { %v2937_v11 = vadd.f32 %v2936_v10, %v2728_v8  ;;  %2774 = vmatmul.f32.gmra.mxu1 %v5080_v12  ;;  %v3145_v13 = vpop.f32.mrf.mxu3  ;;  %v5098_v8 = vld [vmem:[%s5975_s12 + $0x360] sm:$0xff]  ;;  %v5099_v10 = vld [vmem:[%s5975_s12 + $0x378] sm:$0xff] }
 0x53e   : > { %v3146_v14 = vadd.f32 %v3145_v13, %v2937_v11  ;;  %v2521_v15 = vpop.f32.mrf.mxu0  ;;  %v5100_v13 = vld [vmem:[%s5975_s12 + $0x368] sm:$0xff] }
 0x53f   : > { %v2522_v16 = vadd.f32 %v2521_v15, %v7049_v46  ;;  %2986 = vmatmul.f32.gmra.mxu2 %v5081_v17 }
 0x540   : > { %4181 = vst [vmem:[%s6162_s15 + $0xd0] sm:$0xff] %v3146_v14 }
 0x541   : > { %v2730_v18 = vpop.f32.mrf.mxu1  ;;  %2568 = vmatmul.f32.gmra.mxu0 %v5082_v19  ;;  %3195 = vmatmul.f32.gmra.mxu3 %v5083_v22  ;;  %v704_v19 = vld [vmem:[%s5985_s4 + $0x4f8] sm:$0xff]  ;;  %v5102_v22 = vld [vmem:[%s5975_s12 + $0x380] sm:$0xff] }
 0x542   : > { %v2731_v20 = vadd.f32 %v2730_v18, %v2522_v16  ;;  %v2939_v23 = vpop.f32.mrf.mxu2  ;;  %v5101_v18 = vld [vmem:[%s5975_s12 + $0x390] sm:$0xff]  ;;  %3745 = vmatpush.msrb.mxu2 %v704_v19 }
 0x544   : > { %v2940_v24 = vadd.f32 %v2939_v23, %v2731_v20  ;;  %2777 = vmatmul.f32.gmra.mxu1 %v5084_v25  ;;  %v3148_v26 = vpop.f32.mrf.mxu3  ;;  %v576_v25 = vld [vmem:[%s5985_s4 + $0xf8] sm:$0xff] }
 0x545   : > { %3327 = vmatpush.msrb.mxu0 %v576_v25 }
 0x546   : > { %v3149_v27 = vadd.f32 %v3148_v26, %v2940_v24  ;;  %v2524_v28 = vpop.f32.mrf.mxu0  ;;  %v5103_v24 = vld [vmem:[%s5975_s12 + $0x398] sm:$0xff] }
 0x547   : > { %v2525_v29 = vadd.f32 %v2524_v28, %v7049_v46  ;;  %2989 = vmatmul.f32.gmra.mxu2 %v5085_v30  ;;  %v768_v26 = vld [vmem:[%s5985_s4 + $0x6f8] sm:$0xff] }
 0x548   : > { %4185 = vst [vmem:[%s6162_s15 + $0xf0] sm:$0xff] %v3149_v27  ;;  %3954 = vmatpush.msrb.mxu3 %v768_v26  ;;  %v640_v30 = vld [vmem:[%s5985_s4 + $0x2f8] sm:$0xff]  ;;  %v5122_v26 = vld [vmem:[%s5975_s12 + $0x420] sm:$0xff] }
 0x549   : > { %v2733_v33 = vpop.f32.mrf.mxu1  ;;  %2571 = vmatmul.f32.gmra.mxu0 %v5086_v21  ;;  %3198 = vmatmul.f32.gmra.mxu3 %v5087_v35  ;;  %v5105_v35 = vld [vmem:[%s5975_s12 + $0x3b0] sm:$0xff] }
 0x54a   : > { %v2734_v34 = vadd.f32 %v2733_v33, %v2525_v29  ;;  %v2942_v38 = vpop.f32.mrf.mxu2  ;;  %v5104_v29 = vld [vmem:[%s5975_s12 + $0x388] sm:$0xff]  ;;  %3536 = vmatpush.msrb.mxu1 %v640_v30 }
 0x54c   : > { %v2943_v39 = vadd.f32 %v2942_v38, %v2734_v34  ;;  %2780 = vmatmul.f32.gmra.mxu1 %v5088_v40  ;;  %v3151_v42 = vpop.f32.mrf.mxu3 }
 0x54e   : > { %v3152_v43 = vadd.f32 %v3151_v42, %v2943_v39  ;;  %v2527_v44 = vpop.f32.mrf.mxu0  ;;  %v5107_v39 = vld [vmem:[%s5975_s12 + $0x3b8] sm:$0xff]  ;;  %v5108_v42 = vld [vmem:[%s5975_s12 + $0x3a8] sm:$0xff] }
 0x54f   : > { %v2528_v45 = vadd.f32 %v2527_v44, %v7049_v46  ;;  %2992 = vmatmul.f32.gmra.mxu2 %v5089_v47 }
 0x550   : > { %4189 = vst [vmem:[%s6162_s15 + $0x110] sm:$0xff] %v3152_v43 }
 0x551   : > { %v2736_v32 = vpop.f32.mrf.mxu1  ;;  %2574 = vmatmul.f32.gmra.mxu0 %v5090_v48  ;;  %3201 = vmatmul.f32.gmra.mxu3 %v5091_v50 }
 0x552   : > { %v2737_v49 = vadd.f32 %v2736_v32, %v2528_v45  ;;  %v2945_v51 = vpop.f32.mrf.mxu2  ;;  %v5109_v32 = vld [vmem:[%s5975_s12 + $0x3d0] sm:$0xff] }
 0x554   : > { %v2946_v52 = vadd.f32 %v2945_v51, %v2737_v49  ;;  %2783 = vmatmul.f32.gmra.mxu1 %v5092_v53  ;;  %v3154_v54 = vpop.f32.mrf.mxu3  ;;  %v5110_v49 = vld [vmem:[%s5975_s12 + $0x3c0] sm:$0xff]  ;;  %v5111_v51 = vld [vmem:[%s5975_s12 + $0x3d8] sm:$0xff] }
 0x556   : > { %v3155_v55 = vadd.f32 %v3154_v54, %v2946_v52  ;;  %v2530_v56 = vpop.f32.mrf.mxu0  ;;  %v5112_v54 = vld [vmem:[%s5975_s12 + $0x3c8] sm:$0xff] }
 0x557   : > { %v2531_v57 = vadd.f32 %v2530_v56, %v7049_v46  ;;  %2995 = vmatmul.f32.gmra.mxu2 %v5093_v58 }
 0x558   : > { %4193 = vst [vmem:[%s6162_s15 + $0x130] sm:$0xff] %v3155_v55 }
 0x559   : > { %v2739_v59 = vpop.f32.mrf.mxu1  ;;  %2577 = vmatmul.f32.gmra.mxu0 %v5094_v60  ;;  %3204 = vmatmul.f32.gmra.mxu3 %v5095_v62 }
 0x55a   : > { %v2740_v61 = vadd.f32 %v2739_v59, %v2531_v57  ;;  %v2948_v63 = vpop.f32.mrf.mxu2  ;;  %v5113_v59 = vld [vmem:[%s5975_s12 + $0x3f0] sm:$0xff] }
 0x55c   : > { %v2949_v0 = vadd.f32 %v2948_v63, %v2740_v61  ;;  %2786 = vmatmul.f32.gmra.mxu1 %v5096_v1  ;;  %v3157_v2 = vpop.f32.mrf.mxu3  ;;  %v5114_v61 = vld [vmem:[%s5975_s12 + $0x3e0] sm:$0xff]  ;;  %v5115_v63 = vld [vmem:[%s5975_s12 + $0x3f8] sm:$0xff] }
 0x55e   : > { %v3158_v3 = vadd.f32 %v3157_v2, %v2949_v0  ;;  %v2533_v4 = vpop.f32.mrf.mxu0  ;;  %v5116_v2 = vld [vmem:[%s5975_s12 + $0x3e8] sm:$0xff] }
 0x55f   : > { %v2534_v5 = vadd.f32 %v2533_v4, %v7049_v46  ;;  %2998 = vmatmul.f32.gmra.mxu2 %v5097_v6 }
 0x560   : > { %4197 = vst [vmem:[%s6162_s15 + $0x150] sm:$0xff] %v3158_v3 }
 0x561   : > { %v2742_v7 = vpop.f32.mrf.mxu1  ;;  %2580 = vmatmul.f32.gmra.mxu0 %v5098_v8  ;;  %3207 = vmatmul.f32.gmra.mxu3 %v5099_v10  ;;  %v700_v8 = vld [vmem:[%s5985_s4 + $0x4d8] sm:$0xff]  ;;  %v5118_v10 = vld [vmem:[%s5975_s12 + $0x400] sm:$0xff] }
 0x562   : > { %v2743_v9 = vadd.f32 %v2742_v7, %v2534_v5  ;;  %v2951_v11 = vpop.f32.mrf.mxu2  ;;  %v5117_v7 = vld [vmem:[%s5975_s12 + $0x410] sm:$0xff]  ;;  %3746 = vmatpush.msrb.mxu2 %v700_v8 }
 0x564   : > { %v2952_v12 = vadd.f32 %v2951_v11, %v2743_v9  ;;  %2789 = vmatmul.f32.gmra.mxu1 %v5100_v13  ;;  %v3160_v14 = vpop.f32.mrf.mxu3  ;;  %v572_v13 = vld [vmem:[%s5985_s4 + $0xd8] sm:$0xff] }
 0x565   : > { %3328 = vmatpush.msrb.mxu0 %v572_v13 }
 0x566   : > { %v3161_v15 = vadd.f32 %v3160_v14, %v2952_v12  ;;  %v2536_v16 = vpop.f32.mrf.mxu0  ;;  %v5119_v12 = vld [vmem:[%s5975_s12 + $0x418] sm:$0xff] }
 0x567   : > { %v2537_v17 = vadd.f32 %v2536_v16, %v7049_v46  ;;  %3001 = vmatmul.f32.gmra.mxu2 %v5101_v18  ;;  %v764_v14 = vld [vmem:[%s5985_s4 + $0x6d8] sm:$0xff] }
 0x568   : > { %4201 = vst [vmem:[%s6162_s15 + $0x170] sm:$0xff] %v3161_v15  ;;  %3955 = vmatpush.msrb.mxu3 %v764_v14  ;;  %v636_v18 = vld [vmem:[%s5985_s4 + $0x2d8] sm:$0xff]  ;;  %v5138_v14 = vld [vmem:[%s5975_s12 + $0x4a0] sm:$0xff] }
 0x569   : > { %v2745_v20 = vpop.f32.mrf.mxu1  ;;  %2583 = vmatmul.f32.gmra.mxu0 %v5102_v22  ;;  %3210 = vmatmul.f32.gmra.mxu3 %v5103_v24  ;;  %v5121_v24 = vld [vmem:[%s5975_s12 + $0x430] sm:$0xff] }
 0x56a   : > { %v2746_v23 = vadd.f32 %v2745_v20, %v2537_v17  ;;  %v2954_v27 = vpop.f32.mrf.mxu2  ;;  %v5120_v17 = vld [vmem:[%s5975_s12 + $0x408] sm:$0xff]  ;;  %3537 = vmatpush.msrb.mxu1 %v636_v18 }
 0x56c   : > { %v2955_v28 = vadd.f32 %v2954_v27, %v2746_v23  ;;  %2792 = vmatmul.f32.gmra.mxu1 %v5104_v29  ;;  %v3163_v31 = vpop.f32.mrf.mxu3 }
 0x56e   : > { %v3164_v33 = vadd.f32 %v3163_v31, %v2955_v28  ;;  %v2539_v21 = vpop.f32.mrf.mxu0  ;;  %v5123_v28 = vld [vmem:[%s5975_s12 + $0x438] sm:$0xff]  ;;  %v5124_v31 = vld [vmem:[%s5975_s12 + $0x428] sm:$0xff] }
 0x56f   : > { %v2540_v34 = vadd.f32 %v2539_v21, %v7049_v46  ;;  %3004 = vmatmul.f32.gmra.mxu2 %v5105_v35 }
 0x570   : > { %4205 = vst [vmem:[%s6162_s15 + $0x190] sm:$0xff] %v3164_v33 }
 0x571   : > { %v2748_v36 = vpop.f32.mrf.mxu1  ;;  %2586 = vmatmul.f32.gmra.mxu0 %v5106_v37  ;;  %3213 = vmatmul.f32.gmra.mxu3 %v5107_v39 }
 0x572   : > { %v2749_v38 = vadd.f32 %v2748_v36, %v2540_v34  ;;  %v2957_v40 = vpop.f32.mrf.mxu2  ;;  %v5125_v36 = vld [vmem:[%s5975_s12 + $0x450] sm:$0xff] }
 0x574   : > { %v2958_v41 = vadd.f32 %v2957_v40, %v2749_v38  ;;  %2795 = vmatmul.f32.gmra.mxu1 %v5108_v42  ;;  %v3166_v43 = vpop.f32.mrf.mxu3  ;;  %v5126_v38 = vld [vmem:[%s5975_s12 + $0x440] sm:$0xff]  ;;  %v5127_v40 = vld [vmem:[%s5975_s12 + $0x458] sm:$0xff] }
 0x576   : > { %v3167_v44 = vadd.f32 %v3166_v43, %v2958_v41  ;;  %v2542_v45 = vpop.f32.mrf.mxu0  ;;  %v5128_v43 = vld [vmem:[%s5975_s12 + $0x448] sm:$0xff] }
 0x577   : > { %v2543_v47 = vadd.f32 %v2542_v45, %v7049_v46  ;;  %3007 = vmatmul.f32.gmra.mxu2 %v5109_v32 }
 0x578   : > { %4209 = vst [vmem:[%s6162_s15 + $0x1b0] sm:$0xff] %v3167_v44 }
 0x579   : > { %v2751_v48 = vpop.f32.mrf.mxu1  ;;  %2589 = vmatmul.f32.gmra.mxu0 %v5110_v49  ;;  %3216 = vmatmul.f32.gmra.mxu3 %v5111_v51 }
 0x57a   : > { %v2752_v50 = vadd.f32 %v2751_v48, %v2543_v47  ;;  %v2960_v52 = vpop.f32.mrf.mxu2  ;;  %v5129_v48 = vld [vmem:[%s5975_s12 + $0x470] sm:$0xff] }
 0x57c   : > { %v2961_v53 = vadd.f32 %v2960_v52, %v2752_v50  ;;  %2798 = vmatmul.f32.gmra.mxu1 %v5112_v54  ;;  %v3169_v55 = vpop.f32.mrf.mxu3  ;;  %v5130_v50 = vld [vmem:[%s5975_s12 + $0x460] sm:$0xff]  ;;  %v5131_v52 = vld [vmem:[%s5975_s12 + $0x478] sm:$0xff] }
 0x57e   : > { %v3170_v56 = vadd.f32 %v3169_v55, %v2961_v53  ;;  %v2545_v57 = vpop.f32.mrf.mxu0  ;;  %v5132_v55 = vld [vmem:[%s5975_s12 + $0x468] sm:$0xff] }
 0x57f   : > { %v2546_v58 = vadd.f32 %v2545_v57, %v7049_v46  ;;  %3010 = vmatmul.f32.gmra.mxu2 %v5113_v59 }
 0x580   : > { %4213 = vst [vmem:[%s6162_s15 + $0x1d0] sm:$0xff] %v3170_v56 }
 0x581   : > { %v2754_v60 = vpop.f32.mrf.mxu1  ;;  %2592 = vmatmul.f32.gmra.mxu0 %v5114_v61  ;;  %3219 = vmatmul.f32.gmra.mxu3 %v5115_v63  ;;  %v696_v61 = vld [vmem:[%s5985_s4 + $0x4b8] sm:$0xff]  ;;  %v5134_v63 = vld [vmem:[%s5975_s12 + $0x480] sm:$0xff] }
 0x582   : > { %v2755_v62 = vadd.f32 %v2754_v60, %v2546_v58  ;;  %v2963_v0 = vpop.f32.mrf.mxu2  ;;  %v5133_v60 = vld [vmem:[%s5975_s12 + $0x490] sm:$0xff]  ;;  %3747 = vmatpush.msrb.mxu2 %v696_v61 }
 0x584   : > { %v2964_v1 = vadd.f32 %v2963_v0, %v2755_v62  ;;  %2801 = vmatmul.f32.gmra.mxu1 %v5116_v2  ;;  %v3172_v3 = vpop.f32.mrf.mxu3  ;;  %v568_v2 = vld [vmem:[%s5985_s4 + $0xb8] sm:$0xff] }
 0x585   : > { %3329 = vmatpush.msrb.mxu0 %v568_v2 }
 0x586   : > { %v3173_v4 = vadd.f32 %v3172_v3, %v2964_v1  ;;  %v2548_v5 = vpop.f32.mrf.mxu0  ;;  %v5135_v1 = vld [vmem:[%s5975_s12 + $0x498] sm:$0xff] }
 0x587   : > { %v2549_v6 = vadd.f32 %v2548_v5, %v7049_v46  ;;  %3013 = vmatmul.f32.gmra.mxu2 %v5117_v7  ;;  %v760_v3 = vld [vmem:[%s5985_s4 + $0x6b8] sm:$0xff] }
 0x588   : > { %4217 = vst [vmem:[%s6162_s15 + $0x1f0] sm:$0xff] %v3173_v4  ;;  %3956 = vmatpush.msrb.mxu3 %v760_v3  ;;  %v632_v7 = vld [vmem:[%s5985_s4 + $0x2b8] sm:$0xff]  ;;  %v5154_v3 = vld [vmem:[%s5975_s12 + $0x520] sm:$0xff] }
 0x589   : > { %v2757_v9 = vpop.f32.mrf.mxu1  ;;  %2595 = vmatmul.f32.gmra.mxu0 %v5118_v10  ;;  %3222 = vmatmul.f32.gmra.mxu3 %v5119_v12  ;;  %v5137_v12 = vld [vmem:[%s5975_s12 + $0x4b0] sm:$0xff] }
 0x58a   : > { %v2758_v11 = vadd.f32 %v2757_v9, %v2549_v6  ;;  %v2966_v15 = vpop.f32.mrf.mxu2  ;;  %v5136_v6 = vld [vmem:[%s5975_s12 + $0x488] sm:$0xff]  ;;  %3538 = vmatpush.msrb.mxu1 %v632_v7 }
 0x58c   : > { %v2967_v16 = vadd.f32 %v2966_v15, %v2758_v11  ;;  %2804 = vmatmul.f32.gmra.mxu1 %v5120_v17  ;;  %v3175_v19 = vpop.f32.mrf.mxu3 }
 0x58e   : > { %v3176_v20 = vadd.f32 %v3175_v19, %v2967_v16  ;;  %v2551_v22 = vpop.f32.mrf.mxu0  ;;  %v5139_v16 = vld [vmem:[%s5975_s12 + $0x4b8] sm:$0xff]  ;;  %v5140_v19 = vld [vmem:[%s5975_s12 + $0x4a8] sm:$0xff] }
 0x58f   : > { %v2552_v23 = vadd.f32 %v2551_v22, %v7049_v46  ;;  %3016 = vmatmul.f32.gmra.mxu2 %v5121_v24 }
 0x590   : > { %4221 = vst [vmem:[%s6162_s15 + $0x210] sm:$0xff] %v3176_v20 }
 0x591   : > { %v2760_v25 = vpop.f32.mrf.mxu1  ;;  %2598 = vmatmul.f32.gmra.mxu0 %v5122_v26  ;;  %3225 = vmatmul.f32.gmra.mxu3 %v5123_v28 }
 0x592   : > { %v2761_v27 = vadd.f32 %v2760_v25, %v2552_v23  ;;  %v2969_v29 = vpop.f32.mrf.mxu2  ;;  %v5141_v25 = vld [vmem:[%s5975_s12 + $0x4d0] sm:$0xff] }
 0x594   : > { %v2970_v30 = vadd.f32 %v2969_v29, %v2761_v27  ;;  %2807 = vmatmul.f32.gmra.mxu1 %v5124_v31  ;;  %v3178_v33 = vpop.f32.mrf.mxu3  ;;  %v5142_v27 = vld [vmem:[%s5975_s12 + $0x4c0] sm:$0xff]  ;;  %v5143_v29 = vld [vmem:[%s5975_s12 + $0x4d8] sm:$0xff] }
 0x596   : > { %v3179_v21 = vadd.f32 %v3178_v33, %v2970_v30  ;;  %v2554_v34 = vpop.f32.mrf.mxu0  ;;  %v5144_v33 = vld [vmem:[%s5975_s12 + $0x4c8] sm:$0xff] }
 0x597   : > { %v2555_v35 = vadd.f32 %v2554_v34, %v7049_v46  ;;  %3019 = vmatmul.f32.gmra.mxu2 %v5125_v36 }
 0x598   : > { %4225 = vst [vmem:[%s6162_s15 + $0x230] sm:$0xff] %v3179_v21 }
 0x599   : > { %v2763_v37 = vpop.f32.mrf.mxu1  ;;  %2601 = vmatmul.f32.gmra.mxu0 %v5126_v38  ;;  %3228 = vmatmul.f32.gmra.mxu3 %v5127_v40 }
 0x59a   : > { %v2764_v39 = vadd.f32 %v2763_v37, %v2555_v35  ;;  %v2972_v41 = vpop.f32.mrf.mxu2  ;;  %v5145_v37 = vld [vmem:[%s5975_s12 + $0x4f0] sm:$0xff] }
 0x59c   : > { %v2973_v42 = vadd.f32 %v2972_v41, %v2764_v39  ;;  %2810 = vmatmul.f32.gmra.mxu1 %v5128_v43  ;;  %v3181_v44 = vpop.f32.mrf.mxu3  ;;  %v5146_v39 = vld [vmem:[%s5975_s12 + $0x4e0] sm:$0xff]  ;;  %v5147_v41 = vld [vmem:[%s5975_s12 + $0x4f8] sm:$0xff] }
 0x59e   : > { %v3182_v45 = vadd.f32 %v3181_v44, %v2973_v42  ;;  %v2557_v47 = vpop.f32.mrf.mxu0  ;;  %v5148_v44 = vld [vmem:[%s5975_s12 + $0x4e8] sm:$0xff] }
 0x59f   : > { %v2558_v32 = vadd.f32 %v2557_v47, %v7049_v46  ;;  %3022 = vmatmul.f32.gmra.mxu2 %v5129_v48 }
 0x5a0   : > { %4229 = vst [vmem:[%s6162_s15 + $0x250] sm:$0xff] %v3182_v45 }
 0x5a1   : > { %v2766_v49 = vpop.f32.mrf.mxu1  ;;  %2604 = vmatmul.f32.gmra.mxu0 %v5130_v50  ;;  %3231 = vmatmul.f32.gmra.mxu3 %v5131_v52  ;;  %v692_v50 = vld [vmem:[%s5985_s4 + $0x498] sm:$0xff]  ;;  %v5150_v52 = vld [vmem:[%s5975_s12 + $0x500] sm:$0xff] }
 0x5a2   : > { %v2767_v51 = vadd.f32 %v2766_v49, %v2558_v32  ;;  %v2975_v53 = vpop.f32.mrf.mxu2  ;;  %v5149_v49 = vld [vmem:[%s5975_s12 + $0x510] sm:$0xff]  ;;  %3748 = vmatpush.msrb.mxu2 %v692_v50 }
 0x5a4   : > { %v2976_v54 = vadd.f32 %v2975_v53, %v2767_v51  ;;  %2813 = vmatmul.f32.gmra.mxu1 %v5132_v55  ;;  %v3184_v56 = vpop.f32.mrf.mxu3  ;;  %v564_v55 = vld [vmem:[%s5985_s4 + $0x98] sm:$0xff] }
 0x5a5   : > { %3330 = vmatpush.msrb.mxu0 %v564_v55 }
 0x5a6   : > { %v3185_v57 = vadd.f32 %v3184_v56, %v2976_v54  ;;  %v2560_v58 = vpop.f32.mrf.mxu0  ;;  %v5151_v54 = vld [vmem:[%s5975_s12 + $0x518] sm:$0xff] }
 0x5a7   : > { %v2561_v59 = vadd.f32 %v2560_v58, %v7049_v46  ;;  %3025 = vmatmul.f32.gmra.mxu2 %v5133_v60  ;;  %v756_v56 = vld [vmem:[%s5985_s4 + $0x698] sm:$0xff] }
 0x5a8   : > { %4233 = vst [vmem:[%s6162_s15 + $0x270] sm:$0xff] %v3185_v57  ;;  %3957 = vmatpush.msrb.mxu3 %v756_v56  ;;  %v628_v60 = vld [vmem:[%s5985_s4 + $0x298] sm:$0xff]  ;;  %v5170_v56 = vld [vmem:[%s5975_s12 + $0x5a0] sm:$0xff] }
 0x5a9   : > { %v2769_v62 = vpop.f32.mrf.mxu1  ;;  %2607 = vmatmul.f32.gmra.mxu0 %v5134_v63  ;;  %3234 = vmatmul.f32.gmra.mxu3 %v5135_v1  ;;  %v5153_v1 = vld [vmem:[%s5975_s12 + $0x530] sm:$0xff] }
 0x5aa   : > { %v2770_v0 = vadd.f32 %v2769_v62, %v2561_v59  ;;  %v2978_v4 = vpop.f32.mrf.mxu2  ;;  %v5152_v59 = vld [vmem:[%s5975_s12 + $0x508] sm:$0xff]  ;;  %3539 = vmatpush.msrb.mxu1 %v628_v60 }
 0x5ac   : > { %v2979_v5 = vadd.f32 %v2978_v4, %v2770_v0  ;;  %2816 = vmatmul.f32.gmra.mxu1 %v5136_v6  ;;  %v3187_v8 = vpop.f32.mrf.mxu3 }
 0x5ae   : > { %v3188_v9 = vadd.f32 %v3187_v8, %v2979_v5  ;;  %v2563_v10 = vpop.f32.mrf.mxu0  ;;  %v5155_v5 = vld [vmem:[%s5975_s12 + $0x538] sm:$0xff]  ;;  %v5156_v8 = vld [vmem:[%s5975_s12 + $0x528] sm:$0xff] }
 0x5af   : > { %v2564_v11 = vadd.f32 %v2563_v10, %v7049_v46  ;;  %3028 = vmatmul.f32.gmra.mxu2 %v5137_v12 }
 0x5b0   : > { %4237 = vst [vmem:[%s6162_s15 + $0x290] sm:$0xff] %v3188_v9 }
 0x5b1   : > { %v2772_v13 = vpop.f32.mrf.mxu1  ;;  %2610 = vmatmul.f32.gmra.mxu0 %v5138_v14  ;;  %3237 = vmatmul.f32.gmra.mxu3 %v5139_v16 }
 0x5b2   : > { %v2773_v15 = vadd.f32 %v2772_v13, %v2564_v11  ;;  %v2981_v17 = vpop.f32.mrf.mxu2  ;;  %v5157_v13 = vld [vmem:[%s5975_s12 + $0x550] sm:$0xff] }
 0x5b4   : > { %v2982_v18 = vadd.f32 %v2981_v17, %v2773_v15  ;;  %2819 = vmatmul.f32.gmra.mxu1 %v5140_v19  ;;  %v3190_v20 = vpop.f32.mrf.mxu3  ;;  %v5158_v15 = vld [vmem:[%s5975_s12 + $0x540] sm:$0xff]  ;;  %v5159_v17 = vld [vmem:[%s5975_s12 + $0x558] sm:$0xff] }
 0x5b6   : > { %v3191_v22 = vadd.f32 %v3190_v20, %v2982_v18  ;;  %v2566_v23 = vpop.f32.mrf.mxu0  ;;  %v5160_v20 = vld [vmem:[%s5975_s12 + $0x548] sm:$0xff] }
 0x5b7   : > { %v2567_v24 = vadd.f32 %v2566_v23, %v7049_v46  ;;  %3031 = vmatmul.f32.gmra.mxu2 %v5141_v25 }
 0x5b8   : > { %4241 = vst [vmem:[%s6162_s15 + $0x2b0] sm:$0xff] %v3191_v22 }
 0x5b9   : > { %v2775_v26 = vpop.f32.mrf.mxu1  ;;  %2613 = vmatmul.f32.gmra.mxu0 %v5142_v27  ;;  %3240 = vmatmul.f32.gmra.mxu3 %v5143_v29 }
 0x5ba   : > { %v2776_v28 = vadd.f32 %v2775_v26, %v2567_v24  ;;  %v2984_v30 = vpop.f32.mrf.mxu2  ;;  %v5161_v26 = vld [vmem:[%s5975_s12 + $0x570] sm:$0xff] }
 0x5bc   : > { %v2985_v31 = vadd.f32 %v2984_v30, %v2776_v28  ;;  %2822 = vmatmul.f32.gmra.mxu1 %v5144_v33  ;;  %v3193_v21 = vpop.f32.mrf.mxu3  ;;  %v5162_v28 = vld [vmem:[%s5975_s12 + $0x560] sm:$0xff]  ;;  %v5163_v30 = vld [vmem:[%s5975_s12 + $0x578] sm:$0xff] }
 0x5be   : > { %v3194_v34 = vadd.f32 %v3193_v21, %v2985_v31  ;;  %v2569_v35 = vpop.f32.mrf.mxu0  ;;  %v5164_v21 = vld [vmem:[%s5975_s12 + $0x568] sm:$0xff] }
 0x5bf   : > { %v2570_v36 = vadd.f32 %v2569_v35, %v7049_v46  ;;  %3034 = vmatmul.f32.gmra.mxu2 %v5145_v37 }
 0x5c0   : > { %4245 = vst [vmem:[%s6162_s15 + $0x2d0] sm:$0xff] %v3194_v34 }
 0x5c1   : > { %v2778_v38 = vpop.f32.mrf.mxu1  ;;  %2616 = vmatmul.f32.gmra.mxu0 %v5146_v39  ;;  %3243 = vmatmul.f32.gmra.mxu3 %v5147_v41  ;;  %v688_v39 = vld [vmem:[%s5985_s4 + $0x478] sm:$0xff]  ;;  %v5166_v41 = vld [vmem:[%s5975_s12 + $0x580] sm:$0xff] }
 0x5c2   : > { %v2779_v40 = vadd.f32 %v2778_v38, %v2570_v36  ;;  %v2987_v42 = vpop.f32.mrf.mxu2  ;;  %v5165_v38 = vld [vmem:[%s5975_s12 + $0x590] sm:$0xff]  ;;  %3749 = vmatpush.msrb.mxu2 %v688_v39 }
 0x5c4   : > { %v2988_v43 = vadd.f32 %v2987_v42, %v2779_v40  ;;  %2825 = vmatmul.f32.gmra.mxu1 %v5148_v44  ;;  %v3196_v45 = vpop.f32.mrf.mxu3  ;;  %v560_v44 = vld [vmem:[%s5985_s4 + $0x78] sm:$0xff] }
 0x5c5   : > { %3331 = vmatpush.msrb.mxu0 %v560_v44 }
 0x5c6   : > { %v3197_v47 = vadd.f32 %v3196_v45, %v2988_v43  ;;  %v2572_v32 = vpop.f32.mrf.mxu0  ;;  %v5167_v43 = vld [vmem:[%s5975_s12 + $0x598] sm:$0xff] }
 0x5c7   : > { %v2573_v48 = vadd.f32 %v2572_v32, %v7049_v46  ;;  %3037 = vmatmul.f32.gmra.mxu2 %v5149_v49  ;;  %v752_v45 = vld [vmem:[%s5985_s4 + $0x678] sm:$0xff] }
 0x5c8   : > { %4249 = vst [vmem:[%s6162_s15 + $0x2f0] sm:$0xff] %v3197_v47  ;;  %3958 = vmatpush.msrb.mxu3 %v752_v45  ;;  %v624_v49 = vld [vmem:[%s5985_s4 + $0x278] sm:$0xff]  ;;  %v5186_v45 = vld [vmem:[%s5975_s12 + $0x620] sm:$0xff] }
 0x5c9   : > { %v2781_v51 = vpop.f32.mrf.mxu1  ;;  %2619 = vmatmul.f32.gmra.mxu0 %v5150_v52  ;;  %3246 = vmatmul.f32.gmra.mxu3 %v5151_v54  ;;  %v5169_v54 = vld [vmem:[%s5975_s12 + $0x5b0] sm:$0xff] }
 0x5ca   : > { %v2782_v53 = vadd.f32 %v2781_v51, %v2573_v48  ;;  %v2990_v57 = vpop.f32.mrf.mxu2  ;;  %v5168_v48 = vld [vmem:[%s5975_s12 + $0x588] sm:$0xff]  ;;  %3540 = vmatpush.msrb.mxu1 %v624_v49 }
 0x5cc   : > { %v2991_v58 = vadd.f32 %v2990_v57, %v2782_v53  ;;  %2828 = vmatmul.f32.gmra.mxu1 %v5152_v59  ;;  %v3199_v61 = vpop.f32.mrf.mxu3 }
 0x5ce   : > { %v3200_v62 = vadd.f32 %v3199_v61, %v2991_v58  ;;  %v2575_v63 = vpop.f32.mrf.mxu0  ;;  %v5171_v58 = vld [vmem:[%s5975_s12 + $0x5b8] sm:$0xff]  ;;  %v5172_v61 = vld [vmem:[%s5975_s12 + $0x5a8] sm:$0xff] }
 0x5cf   : > { %v2576_v0 = vadd.f32 %v2575_v63, %v7049_v46  ;;  %3040 = vmatmul.f32.gmra.mxu2 %v5153_v1 }
 0x5d0   : > { %4253 = vst [vmem:[%s6162_s15 + $0x310] sm:$0xff] %v3200_v62 }
 0x5d1   : > { %v2784_v2 = vpop.f32.mrf.mxu1  ;;  %2622 = vmatmul.f32.gmra.mxu0 %v5154_v3  ;;  %3249 = vmatmul.f32.gmra.mxu3 %v5155_v5 }
 0x5d2   : > { %v2785_v4 = vadd.f32 %v2784_v2, %v2576_v0  ;;  %v2993_v6 = vpop.f32.mrf.mxu2  ;;  %v5173_v2 = vld [vmem:[%s5975_s12 + $0x5d0] sm:$0xff] }
 0x5d4   : > { %v2994_v7 = vadd.f32 %v2993_v6, %v2785_v4  ;;  %2831 = vmatmul.f32.gmra.mxu1 %v5156_v8  ;;  %v3202_v9 = vpop.f32.mrf.mxu3  ;;  %v5174_v4 = vld [vmem:[%s5975_s12 + $0x5c0] sm:$0xff]  ;;  %v5175_v6 = vld [vmem:[%s5975_s12 + $0x5d8] sm:$0xff] }
 0x5d6   : > { %v3203_v10 = vadd.f32 %v3202_v9, %v2994_v7  ;;  %v2578_v11 = vpop.f32.mrf.mxu0  ;;  %v5176_v9 = vld [vmem:[%s5975_s12 + $0x5c8] sm:$0xff] }
 0x5d7   : > { %v2579_v12 = vadd.f32 %v2578_v11, %v7049_v46  ;;  %3043 = vmatmul.f32.gmra.mxu2 %v5157_v13 }
 0x5d8   : > { %4257 = vst [vmem:[%s6162_s15 + $0x330] sm:$0xff] %v3203_v10 }
 0x5d9   : > { %v2787_v14 = vpop.f32.mrf.mxu1  ;;  %2625 = vmatmul.f32.gmra.mxu0 %v5158_v15  ;;  %3252 = vmatmul.f32.gmra.mxu3 %v5159_v17 }
 0x5da   : > { %v2788_v16 = vadd.f32 %v2787_v14, %v2579_v12  ;;  %v2996_v18 = vpop.f32.mrf.mxu2  ;;  %v5177_v14 = vld [vmem:[%s5975_s12 + $0x5f0] sm:$0xff] }
 0x5dc   : > { %v2997_v19 = vadd.f32 %v2996_v18, %v2788_v16  ;;  %2834 = vmatmul.f32.gmra.mxu1 %v5160_v20  ;;  %v3205_v22 = vpop.f32.mrf.mxu3  ;;  %v5178_v16 = vld [vmem:[%s5975_s12 + $0x5e0] sm:$0xff]  ;;  %v5179_v18 = vld [vmem:[%s5975_s12 + $0x5f8] sm:$0xff] }
 0x5de   : > { %v3206_v23 = vadd.f32 %v3205_v22, %v2997_v19  ;;  %v2581_v24 = vpop.f32.mrf.mxu0  ;;  %v5180_v22 = vld [vmem:[%s5975_s12 + $0x5e8] sm:$0xff] }
 0x5df   : > { %v2582_v25 = vadd.f32 %v2581_v24, %v7049_v46  ;;  %3046 = vmatmul.f32.gmra.mxu2 %v5161_v26 }
 0x5e0   : > { %4261 = vst [vmem:[%s6162_s15 + $0x350] sm:$0xff] %v3206_v23 }
 0x5e1   : > { %v2790_v27 = vpop.f32.mrf.mxu1  ;;  %2628 = vmatmul.f32.gmra.mxu0 %v5162_v28  ;;  %3255 = vmatmul.f32.gmra.mxu3 %v5163_v30  ;;  %v684_v28 = vld [vmem:[%s5985_s4 + $0x458] sm:$0xff]  ;;  %v5182_v30 = vld [vmem:[%s5975_s12 + $0x600] sm:$0xff] }
 0x5e2   : > { %v2791_v29 = vadd.f32 %v2790_v27, %v2582_v25  ;;  %v2999_v31 = vpop.f32.mrf.mxu2  ;;  %v5181_v27 = vld [vmem:[%s5975_s12 + $0x610] sm:$0xff]  ;;  %3750 = vmatpush.msrb.mxu2 %v684_v28 }
 0x5e4   : > { %v3000_v33 = vadd.f32 %v2999_v31, %v2791_v29  ;;  %2837 = vmatmul.f32.gmra.mxu1 %v5164_v21  ;;  %v3208_v34 = vpop.f32.mrf.mxu3  ;;  %v556_v21 = vld [vmem:[%s5985_s4 + $0x58] sm:$0xff] }
 0x5e5   : > { %3332 = vmatpush.msrb.mxu0 %v556_v21 }
 0x5e6   : > { %v3209_v35 = vadd.f32 %v3208_v34, %v3000_v33  ;;  %v2584_v36 = vpop.f32.mrf.mxu0  ;;  %v5183_v33 = vld [vmem:[%s5975_s12 + $0x618] sm:$0xff] }
 0x5e7   : > { %v2585_v37 = vadd.f32 %v2584_v36, %v7049_v46  ;;  %3049 = vmatmul.f32.gmra.mxu2 %v5165_v38  ;;  %v748_v34 = vld [vmem:[%s5985_s4 + $0x658] sm:$0xff] }
 0x5e8   : > { %4265 = vst [vmem:[%s6162_s15 + $0x370] sm:$0xff] %v3209_v35  ;;  %3959 = vmatpush.msrb.mxu3 %v748_v34  ;;  %v620_v38 = vld [vmem:[%s5985_s4 + $0x258] sm:$0xff]  ;;  %v5202_v34 = vld [vmem:[%s5975_s12 + $0x6a0] sm:$0xff] }
 0x5e9   : > { %v2793_v40 = vpop.f32.mrf.mxu1  ;;  %2631 = vmatmul.f32.gmra.mxu0 %v5166_v41  ;;  %3258 = vmatmul.f32.gmra.mxu3 %v5167_v43  ;;  %v5185_v43 = vld [vmem:[%s5975_s12 + $0x630] sm:$0xff] }
 0x5ea   : > { %v2794_v42 = vadd.f32 %v2793_v40, %v2585_v37  ;;  %v3002_v47 = vpop.f32.mrf.mxu2  ;;  %v5184_v37 = vld [vmem:[%s5975_s12 + $0x608] sm:$0xff]  ;;  %3541 = vmatpush.msrb.mxu1 %v620_v38 }
 0x5ec   : > { %v3003_v32 = vadd.f32 %v3002_v47, %v2794_v42  ;;  %2840 = vmatmul.f32.gmra.mxu1 %v5168_v48  ;;  %v3211_v50 = vpop.f32.mrf.mxu3 }
 0x5ee   : > { %v3212_v51 = vadd.f32 %v3211_v50, %v3003_v32  ;;  %v2587_v52 = vpop.f32.mrf.mxu0  ;;  %v5187_v32 = vld [vmem:[%s5975_s12 + $0x638] sm:$0xff]  ;;  %v5188_v50 = vld [vmem:[%s5975_s12 + $0x628] sm:$0xff] }
 0x5ef   : > { %v2588_v53 = vadd.f32 %v2587_v52, %v7049_v46  ;;  %3052 = vmatmul.f32.gmra.mxu2 %v5169_v54 }
 0x5f0   : > { %4269 = vst [vmem:[%s6162_s15 + $0x390] sm:$0xff] %v3212_v51 }
 0x5f1   : > { %v2796_v55 = vpop.f32.mrf.mxu1  ;;  %2634 = vmatmul.f32.gmra.mxu0 %v5170_v56  ;;  %3261 = vmatmul.f32.gmra.mxu3 %v5171_v58 }
 0x5f2   : > { %v2797_v57 = vadd.f32 %v2796_v55, %v2588_v53  ;;  %v3005_v59 = vpop.f32.mrf.mxu2  ;;  %v5189_v55 = vld [vmem:[%s5975_s12 + $0x650] sm:$0xff] }
 0x5f4   : > { %v3006_v60 = vadd.f32 %v3005_v59, %v2797_v57  ;;  %2843 = vmatmul.f32.gmra.mxu1 %v5172_v61  ;;  %v3214_v62 = vpop.f32.mrf.mxu3  ;;  %v5190_v57 = vld [vmem:[%s5975_s12 + $0x640] sm:$0xff]  ;;  %v5191_v59 = vld [vmem:[%s5975_s12 + $0x658] sm:$0xff] }
 0x5f6   : > { %v3215_v63 = vadd.f32 %v3214_v62, %v3006_v60  ;;  %v2590_v0 = vpop.f32.mrf.mxu0  ;;  %v5192_v62 = vld [vmem:[%s5975_s12 + $0x648] sm:$0xff] }
 0x5f7   : > { %v2591_v1 = vadd.f32 %v2590_v0, %v7049_v46  ;;  %3055 = vmatmul.f32.gmra.mxu2 %v5173_v2 }
 0x5f8   : > { %4273 = vst [vmem:[%s6162_s15 + $0x3b0] sm:$0xff] %v3215_v63 }
 0x5f9   : > { %v2799_v3 = vpop.f32.mrf.mxu1  ;;  %2637 = vmatmul.f32.gmra.mxu0 %v5174_v4  ;;  %3264 = vmatmul.f32.gmra.mxu3 %v5175_v6 }
 0x5fa   : > { %v2800_v5 = vadd.f32 %v2799_v3, %v2591_v1  ;;  %v3008_v7 = vpop.f32.mrf.mxu2  ;;  %v5193_v3 = vld [vmem:[%s5975_s12 + $0x670] sm:$0xff] }
 0x5fc   : > { %v3009_v8 = vadd.f32 %v3008_v7, %v2800_v5  ;;  %2846 = vmatmul.f32.gmra.mxu1 %v5176_v9  ;;  %v3217_v10 = vpop.f32.mrf.mxu3  ;;  %v5194_v5 = vld [vmem:[%s5975_s12 + $0x660] sm:$0xff]  ;;  %v5195_v7 = vld [vmem:[%s5975_s12 + $0x678] sm:$0xff] }
 0x5fe   : > { %v3218_v11 = vadd.f32 %v3217_v10, %v3009_v8  ;;  %v2593_v12 = vpop.f32.mrf.mxu0  ;;  %v5196_v10 = vld [vmem:[%s5975_s12 + $0x668] sm:$0xff] }
 0x5ff   : > { %v2594_v13 = vadd.f32 %v2593_v12, %v7049_v46  ;;  %3058 = vmatmul.f32.gmra.mxu2 %v5177_v14 }
 0x600   : > { %4277 = vst [vmem:[%s6162_s15 + $0x3d0] sm:$0xff] %v3218_v11 }
 0x601   : > { %v2802_v15 = vpop.f32.mrf.mxu1  ;;  %2640 = vmatmul.f32.gmra.mxu0 %v5178_v16  ;;  %3267 = vmatmul.f32.gmra.mxu3 %v5179_v18  ;;  %v680_v16 = vld [vmem:[%s5985_s4 + $0x438] sm:$0xff]  ;;  %v5198_v18 = vld [vmem:[%s5975_s12 + $0x680] sm:$0xff] }
 0x602   : > { %v2803_v17 = vadd.f32 %v2802_v15, %v2594_v13  ;;  %v3011_v19 = vpop.f32.mrf.mxu2  ;;  %v5197_v15 = vld [vmem:[%s5975_s12 + $0x690] sm:$0xff]  ;;  %3751 = vmatpush.msrb.mxu2 %v680_v16 }
 0x604   : > { %v3012_v20 = vadd.f32 %v3011_v19, %v2803_v17  ;;  %2849 = vmatmul.f32.gmra.mxu1 %v5180_v22  ;;  %v3220_v23 = vpop.f32.mrf.mxu3  ;;  %v552_v22 = vld [vmem:[%s5985_s4 + $0x38] sm:$0xff] }
 0x605   : > { %3333 = vmatpush.msrb.mxu0 %v552_v22 }
 0x606   : > { %v3221_v24 = vadd.f32 %v3220_v23, %v3012_v20  ;;  %v2596_v25 = vpop.f32.mrf.mxu0  ;;  %v5199_v20 = vld [vmem:[%s5975_s12 + $0x698] sm:$0xff] }
 0x607   : > { %v2597_v26 = vadd.f32 %v2596_v25, %v7049_v46  ;;  %3061 = vmatmul.f32.gmra.mxu2 %v5181_v27  ;;  %v744_v23 = vld [vmem:[%s5985_s4 + $0x638] sm:$0xff] }
 0x608   : > { %4281 = vst [vmem:[%s6162_s15 + $0x3f0] sm:$0xff] %v3221_v24  ;;  %3960 = vmatpush.msrb.mxu3 %v744_v23  ;;  %v616_v27 = vld [vmem:[%s5985_s4 + $0x238] sm:$0xff]  ;;  %v5218_v23 = vld [vmem:[%s5975_s12 + $0x720] sm:$0xff] }
 0x609   : > { %v2805_v29 = vpop.f32.mrf.mxu1  ;;  %2643 = vmatmul.f32.gmra.mxu0 %v5182_v30  ;;  %3270 = vmatmul.f32.gmra.mxu3 %v5183_v33  ;;  %v5201_v33 = vld [vmem:[%s5975_s12 + $0x6b0] sm:$0xff] }
 0x60a   : > { %v2806_v31 = vadd.f32 %v2805_v29, %v2597_v26  ;;  %v3014_v35 = vpop.f32.mrf.mxu2  ;;  %v5200_v26 = vld [vmem:[%s5975_s12 + $0x688] sm:$0xff]  ;;  %3542 = vmatpush.msrb.mxu1 %v616_v27 }
 0x60c   : > { %v3015_v36 = vadd.f32 %v3014_v35, %v2806_v31  ;;  %2852 = vmatmul.f32.gmra.mxu1 %v5184_v37  ;;  %v3223_v39 = vpop.f32.mrf.mxu3 }
 0x60e   : > { %v3224_v40 = vadd.f32 %v3223_v39, %v3015_v36  ;;  %v2599_v41 = vpop.f32.mrf.mxu0  ;;  %v5203_v36 = vld [vmem:[%s5975_s12 + $0x6b8] sm:$0xff]  ;;  %v5204_v39 = vld [vmem:[%s5975_s12 + $0x6a8] sm:$0xff] }
 0x60f   : > { %v2600_v42 = vadd.f32 %v2599_v41, %v7049_v46  ;;  %3064 = vmatmul.f32.gmra.mxu2 %v5185_v43 }
 0x610   : > { %4285 = vst [vmem:[%s6162_s15 + $0x410] sm:$0xff] %v3224_v40 }
 0x611   : > { %v2808_v44 = vpop.f32.mrf.mxu1  ;;  %2646 = vmatmul.f32.gmra.mxu0 %v5186_v45  ;;  %3273 = vmatmul.f32.gmra.mxu3 %v5187_v32 }
 0x612   : > { %v2809_v47 = vadd.f32 %v2808_v44, %v2600_v42  ;;  %v3017_v48 = vpop.f32.mrf.mxu2  ;;  %v5205_v44 = vld [vmem:[%s5975_s12 + $0x6d0] sm:$0xff] }
 0x614   : > { %v3018_v49 = vadd.f32 %v3017_v48, %v2809_v47  ;;  %2855 = vmatmul.f32.gmra.mxu1 %v5188_v50  ;;  %v3226_v51 = vpop.f32.mrf.mxu3  ;;  %v5206_v47 = vld [vmem:[%s5975_s12 + $0x6c0] sm:$0xff]  ;;  %v5207_v48 = vld [vmem:[%s5975_s12 + $0x6d8] sm:$0xff] }
 0x616   : > { %v3227_v52 = vadd.f32 %v3226_v51, %v3018_v49  ;;  %v2602_v53 = vpop.f32.mrf.mxu0  ;;  %v5208_v51 = vld [vmem:[%s5975_s12 + $0x6c8] sm:$0xff] }
 0x617   : > { %v2603_v54 = vadd.f32 %v2602_v53, %v7049_v46  ;;  %3067 = vmatmul.f32.gmra.mxu2 %v5189_v55 }
 0x618   : > { %4289 = vst [vmem:[%s6162_s15 + $0x430] sm:$0xff] %v3227_v52 }
 0x619   : > { %v2811_v56 = vpop.f32.mrf.mxu1  ;;  %2649 = vmatmul.f32.gmra.mxu0 %v5190_v57  ;;  %3276 = vmatmul.f32.gmra.mxu3 %v5191_v59 }
 0x61a   : > { %v2812_v58 = vadd.f32 %v2811_v56, %v2603_v54  ;;  %v3020_v60 = vpop.f32.mrf.mxu2  ;;  %v5209_v56 = vld [vmem:[%s5975_s12 + $0x6f0] sm:$0xff] }
 0x61c   : > { %v3021_v61 = vadd.f32 %v3020_v60, %v2812_v58  ;;  %2858 = vmatmul.f32.gmra.mxu1 %v5192_v62  ;;  %v3229_v63 = vpop.f32.mrf.mxu3  ;;  %v5210_v58 = vld [vmem:[%s5975_s12 + $0x6e0] sm:$0xff]  ;;  %v5211_v60 = vld [vmem:[%s5975_s12 + $0x6f8] sm:$0xff] }
 0x61e   : > { %v3230_v0 = vadd.f32 %v3229_v63, %v3021_v61  ;;  %v2605_v1 = vpop.f32.mrf.mxu0  ;;  %v5212_v63 = vld [vmem:[%s5975_s12 + $0x6e8] sm:$0xff] }
 0x61f   : > { %v2606_v2 = vadd.f32 %v2605_v1, %v7049_v46  ;;  %3070 = vmatmul.f32.gmra.mxu2 %v5193_v3 }
 0x620   : > { %4293 = vst [vmem:[%s6162_s15 + $0x450] sm:$0xff] %v3230_v0 }
 0x621   : > { %v2814_v4 = vpop.f32.mrf.mxu1  ;;  %2652 = vmatmul.f32.gmra.mxu0 %v5194_v5  ;;  %3279 = vmatmul.f32.gmra.mxu3 %v5195_v7  ;;  %v676_v5 = vld [vmem:[%s5985_s4 + $0x418] sm:$0xff]  ;;  %v5214_v7 = vld [vmem:[%s5975_s12 + $0x700] sm:$0xff] }
 0x622   : > { %v2815_v6 = vadd.f32 %v2814_v4, %v2606_v2  ;;  %v3023_v8 = vpop.f32.mrf.mxu2  ;;  %v5213_v4 = vld [vmem:[%s5975_s12 + $0x710] sm:$0xff]  ;;  %3752 = vmatpush.msrb.mxu2 %v676_v5 }
 0x623   : > { %v5233_v5 = vld [vmem:[%s5975_s12 + $0x7b0] sm:$0xff] }
 0x624   : > { %v3024_v9 = vadd.f32 %v3023_v8, %v2815_v6  ;;  %2861 = vmatmul.f32.gmra.mxu1 %v5196_v10  ;;  %v3232_v11 = vpop.f32.mrf.mxu3  ;;  %v548_v10 = vld [vmem:[%s5985_s4 + $0x18] sm:$0xff] }
 0x625   : > { %3334 = vmatpush.msrb.mxu0 %v548_v10 }
 0x626   : > { %v3233_v12 = vadd.f32 %v3232_v11, %v3024_v9  ;;  %v2608_v13 = vpop.f32.mrf.mxu0  ;;  %v5215_v9 = vld [vmem:[%s5975_s12 + $0x718] sm:$0xff] }
 0x627   : > { %v2609_v14 = vadd.f32 %v2608_v13, %v7049_v46  ;;  %3073 = vmatmul.f32.gmra.mxu2 %v5197_v15  ;;  %v740_v11 = vld [vmem:[%s5985_s4 + $0x618] sm:$0xff] }
 0x628   : > { %4297 = vst [vmem:[%s6162_s15 + $0x470] sm:$0xff] %v3233_v12  ;;  %3961 = vmatpush.msrb.mxu3 %v740_v11  ;;  %v612_v15 = vld [vmem:[%s5985_s4 + $0x218] sm:$0xff] }
 0x629   : > { %v2817_v17 = vpop.f32.mrf.mxu1  ;;  %2655 = vmatmul.f32.gmra.mxu0 %v5198_v18  ;;  %3282 = vmatmul.f32.gmra.mxu3 %v5199_v20  ;;  %v5217_v20 = vld [vmem:[%s5975_s12 + $0x730] sm:$0xff] }
 0x62a   : > { %v2818_v19 = vadd.f32 %v2817_v17, %v2609_v14  ;;  %v3026_v24 = vpop.f32.mrf.mxu2  ;;  %v5216_v14 = vld [vmem:[%s5975_s12 + $0x708] sm:$0xff]  ;;  %3543 = vmatpush.msrb.mxu1 %v612_v15 }
 0x62c   : > { %v3027_v25 = vadd.f32 %v3026_v24, %v2818_v19  ;;  %2864 = vmatmul.f32.gmra.mxu1 %v5200_v26  ;;  %v3235_v28 = vpop.f32.mrf.mxu3 }
 0x62e   : > { %v3236_v29 = vadd.f32 %v3235_v28, %v3027_v25  ;;  %v2611_v30 = vpop.f32.mrf.mxu0  ;;  %v5219_v25 = vld [vmem:[%s5975_s12 + $0x738] sm:$0xff]  ;;  %v5220_v28 = vld [vmem:[%s5975_s12 + $0x728] sm:$0xff] }
 0x62f   : > { %v2612_v31 = vadd.f32 %v2611_v30, %v7049_v46  ;;  %3076 = vmatmul.f32.gmra.mxu2 %v5201_v33 }
 0x630   : > { %4301 = vst [vmem:[%s6162_s15 + $0x490] sm:$0xff] %v3236_v29 }
 0x631   : > { %v2820_v21 = vpop.f32.mrf.mxu1  ;;  %2658 = vmatmul.f32.gmra.mxu0 %v5202_v34  ;;  %3285 = vmatmul.f32.gmra.mxu3 %v5203_v36 }
 0x632   : > { %v2821_v35 = vadd.f32 %v2820_v21, %v2612_v31  ;;  %v3029_v37 = vpop.f32.mrf.mxu2  ;;  %v5221_v21 = vld [vmem:[%s5975_s12 + $0x750] sm:$0xff] }
 0x634   : > { %v3030_v38 = vadd.f32 %v3029_v37, %v2821_v35  ;;  %2867 = vmatmul.f32.gmra.mxu1 %v5204_v39  ;;  %v3238_v40 = vpop.f32.mrf.mxu3  ;;  %v5222_v35 = vld [vmem:[%s5975_s12 + $0x740] sm:$0xff]  ;;  %v5223_v37 = vld [vmem:[%s5975_s12 + $0x758] sm:$0xff] }
 0x636   : > { %v3239_v41 = vadd.f32 %v3238_v40, %v3030_v38  ;;  %v2614_v42 = vpop.f32.mrf.mxu0  ;;  %v5224_v40 = vld [vmem:[%s5975_s12 + $0x748] sm:$0xff] }
 0x637   : > { %v2615_v43 = vadd.f32 %v2614_v42, %v7049_v46  ;;  %3079 = vmatmul.f32.gmra.mxu2 %v5205_v44 }
 0x638   : > { %4305 = vst [vmem:[%s6162_s15 + $0x4b0] sm:$0xff] %v3239_v41 }
 0x639   : > { %v2823_v45 = vpop.f32.mrf.mxu1  ;;  %2661 = vmatmul.f32.gmra.mxu0 %v5206_v47  ;;  %3288 = vmatmul.f32.gmra.mxu3 %v5207_v48 }
 0x63a   : > { %v2824_v32 = vadd.f32 %v2823_v45, %v2615_v43  ;;  %v3032_v49 = vpop.f32.mrf.mxu2  ;;  %v5225_v45 = vld [vmem:[%s5975_s12 + $0x770] sm:$0xff] }
 0x63c   : > { %v3033_v50 = vadd.f32 %v3032_v49, %v2824_v32  ;;  %2870 = vmatmul.f32.gmra.mxu1 %v5208_v51  ;;  %v3241_v52 = vpop.f32.mrf.mxu3  ;;  %v5226_v32 = vld [vmem:[%s5975_s12 + $0x760] sm:$0xff]  ;;  %v5227_v49 = vld [vmem:[%s5975_s12 + $0x778] sm:$0xff] }
 0x63e   : > { %v3242_v53 = vadd.f32 %v3241_v52, %v3033_v50  ;;  %v2617_v54 = vpop.f32.mrf.mxu0  ;;  %v5228_v52 = vld [vmem:[%s5975_s12 + $0x768] sm:$0xff] }
 0x63f   : > { %v2618_v55 = vadd.f32 %v2617_v54, %v7049_v46  ;;  %3082 = vmatmul.f32.gmra.mxu2 %v5209_v56 }
 0x640   : > { %4309 = vst [vmem:[%s6162_s15 + $0x4d0] sm:$0xff] %v3242_v53 }
 0x641   : > { %v2826_v57 = vpop.f32.mrf.mxu1  ;;  %2664 = vmatmul.f32.gmra.mxu0 %v5210_v58  ;;  %3291 = vmatmul.f32.gmra.mxu3 %v5211_v60 }
 0x642   : > { %v2827_v59 = vadd.f32 %v2826_v57, %v2618_v55  ;;  %v3035_v61 = vpop.f32.mrf.mxu2  ;;  %v5229_v57 = vld [vmem:[%s5975_s12 + $0x790] sm:$0xff] }
 0x644   : > { %v3036_v62 = vadd.f32 %v3035_v61, %v2827_v59  ;;  %2873 = vmatmul.f32.gmra.mxu1 %v5212_v63  ;;  %v3244_v0 = vpop.f32.mrf.mxu3  ;;  %v5230_v59 = vld [vmem:[%s5975_s12 + $0x780] sm:$0xff]  ;;  %v5231_v61 = vld [vmem:[%s5975_s12 + $0x798] sm:$0xff] }
 0x646   : > { %v3245_v1 = vadd.f32 %v3244_v0, %v3036_v62  ;;  %v2620_v2 = vpop.f32.mrf.mxu0  ;;  %v5232_v0 = vld [vmem:[%s5975_s12 + $0x788] sm:$0xff] }
 0x647   : > { %v2621_v3 = vadd.f32 %v2620_v2, %v7049_v46  ;;  %3085 = vmatmul.f32.gmra.mxu2 %v5213_v4 }
 0x648   : > { %4313 = vst [vmem:[%s6162_s15 + $0x4f0] sm:$0xff] %v3245_v1 }
 0x649   : > { %v2829_v6 = vpop.f32.mrf.mxu1  ;;  %2667 = vmatmul.f32.gmra.mxu0 %v5214_v7  ;;  %3294 = vmatmul.f32.gmra.mxu3 %v5215_v9  ;;  %v5234_v7 = vld [vmem:[%s5975_s12 + $0x7a0] sm:$0xff]  ;;  %v5235_v9 = vld [vmem:[%s5975_s12 + $0x7b8] sm:$0xff] }
 0x64a   : > { %v2830_v8 = vadd.f32 %v2829_v6, %v2621_v3  ;;  %v3038_v12 = vpop.f32.mrf.mxu2 }
 0x64c   : > { %v3039_v13 = vadd.f32 %v3038_v12, %v2830_v8  ;;  %2876 = vmatmul.f32.gmra.mxu1 %v5216_v14  ;;  %v3247_v16 = vpop.f32.mrf.mxu3  ;;  %v5236_v12 = vld [vmem:[%s5975_s12 + $0x7a8] sm:$0xff] }
 0x64e   : > { %v3248_v17 = vadd.f32 %v3247_v16, %v3039_v13  ;;  %v2623_v18 = vpop.f32.mrf.mxu0 }
 0x64f   : > { %v2624_v19 = vadd.f32 %v2623_v18, %v7049_v46  ;;  %3088 = vmatmul.f32.gmra.mxu2 %v5217_v20 }
 0x650   : > { %4317 = vst [vmem:[%s6162_s15 + $0x510] sm:$0xff] %v3248_v17  ;;  %v5237_v17 = vld [vmem:[%s5975_s12 + $0x7d0] sm:$0xff] }
 0x651   : > { %v2832_v22 = vpop.f32.mrf.mxu1  ;;  %2670 = vmatmul.f32.gmra.mxu0 %v5218_v23  ;;  %3297 = vmatmul.f32.gmra.mxu3 %v5219_v25  ;;  %v5240_v25 = vld [vmem:[%s5975_s12 + $0x7c8] sm:$0xff] }
 0x652   : > { %v2833_v24 = vadd.f32 %v2832_v22, %v2624_v19  ;;  %v3041_v26 = vpop.f32.mrf.mxu2  ;;  %v5238_v19 = vld [vmem:[%s5975_s12 + $0x7c0] sm:$0xff]  ;;  %v5239_v22 = vld [vmem:[%s5975_s12 + $0x7d8] sm:$0xff] }
 0x654   : > { %v3042_v27 = vadd.f32 %v3041_v26, %v2833_v24  ;;  %2879 = vmatmul.f32.gmra.mxu1 %v5220_v28  ;;  %v3250_v29 = vpop.f32.mrf.mxu3 }
 0x656   : > { %v3251_v30 = vadd.f32 %v3250_v29, %v3042_v27  ;;  %v2626_v31 = vpop.f32.mrf.mxu0 }
 0x657   : > { %v2627_v33 = vadd.f32 %v2626_v31, %v7049_v46  ;;  %3091 = vmatmul.f32.gmra.mxu2 %v5221_v21 }
 0x658   : > { %4321 = vst [vmem:[%s6162_s15 + $0x530] sm:$0xff] %v3251_v30  ;;  %v5241_v30 = vld [vmem:[%s5975_s12 + $0x7f0] sm:$0xff] }
 0x659   : > { %v2835_v34 = vpop.f32.mrf.mxu1  ;;  %2673 = vmatmul.f32.gmra.mxu0 %v5222_v35  ;;  %3300 = vmatmul.f32.gmra.mxu3 %v5223_v37  ;;  %v5244_v37 = vld [vmem:[%s5975_s12 + $0x7e8] sm:$0xff] }
 0x65a   : > { %v2836_v36 = vadd.f32 %v2835_v34, %v2627_v33  ;;  %v3044_v38 = vpop.f32.mrf.mxu2  ;;  %v5242_v33 = vld [vmem:[%s5975_s12 + $0x7e0] sm:$0xff]  ;;  %v5243_v34 = vld [vmem:[%s5975_s12 + $0x7f8] sm:$0xff] }
 0x65c   : > { %v3045_v39 = vadd.f32 %v3044_v38, %v2836_v36  ;;  %2882 = vmatmul.f32.gmra.mxu1 %v5224_v40  ;;  %v3253_v41 = vpop.f32.mrf.mxu3 }
 0x65e   : > { %v3254_v42 = vadd.f32 %v3253_v41, %v3045_v39  ;;  %v2629_v43 = vpop.f32.mrf.mxu0 }
 0x65f   : > { %v2630_v44 = vadd.f32 %v2629_v43, %v7049_v46  ;;  %3094 = vmatmul.f32.gmra.mxu2 %v5225_v45 }
 0x660   : > { %4325 = vst [vmem:[%s6162_s15 + $0x550] sm:$0xff] %v3254_v42  ;;  %v5245_v42 = vld [vmem:[%s5975_s12 + $0x10] sm:$0xff] }
 0x661   : > { %v2838_v47 = vpop.f32.mrf.mxu1  ;;  %2676 = vmatmul.f32.gmra.mxu0 %v5226_v32  ;;  %3303 = vmatmul.f32.gmra.mxu3 %v5227_v49  ;;  %v5248_v49 = vld [vmem:[%s5975_s12 + $0x8] sm:$0xff] }
 0x662   : > { %v2839_v48 = vadd.f32 %v2838_v47, %v2630_v44  ;;  %v3047_v50 = vpop.f32.mrf.mxu2  ;;  %v5246_v44 = vld [vmem:[%s5975_s12] sm:$0xff]  ;;  %v5247_v47 = vld [vmem:[%s5975_s12 + $0x18] sm:$0xff] }
 0x664   : > { %v3048_v51 = vadd.f32 %v3047_v50, %v2839_v48  ;;  %2885 = vmatmul.f32.gmra.mxu1 %v5228_v52  ;;  %v3256_v53 = vpop.f32.mrf.mxu3 }
 0x666   : > { %v3257_v54 = vadd.f32 %v3256_v53, %v3048_v51  ;;  %v2632_v55 = vpop.f32.mrf.mxu0 }
 0x667   : > { %v2633_v56 = vadd.f32 %v2632_v55, %v7049_v46  ;;  %3097 = vmatmul.f32.gmra.mxu2 %v5229_v57 }
 0x668   : > { %4329 = vst [vmem:[%s6162_s15 + $0x570] sm:$0xff] %v3257_v54  ;;  %v5249_v54 = vld [vmem:[%s5975_s12 + $0x30] sm:$0xff] }
 0x669   : > { %v2841_v58 = vpop.f32.mrf.mxu1  ;;  %2679 = vmatmul.f32.gmra.mxu0 %v5230_v59  ;;  %3306 = vmatmul.f32.gmra.mxu3 %v5231_v61  ;;  %v5252_v61 = vld [vmem:[%s5975_s12 + $0x28] sm:$0xff] }
 0x66a   : > { %v2842_v60 = vadd.f32 %v2841_v58, %v2633_v56  ;;  %v3050_v62 = vpop.f32.mrf.mxu2  ;;  %v5250_v56 = vld [vmem:[%s5975_s12 + $0x20] sm:$0xff]  ;;  %v5251_v58 = vld [vmem:[%s5975_s12 + $0x38] sm:$0xff] }
 0x66c   : > { %v3051_v63 = vadd.f32 %v3050_v62, %v2842_v60  ;;  %2888 = vmatmul.f32.gmra.mxu1 %v5232_v0  ;;  %v3259_v1 = vpop.f32.mrf.mxu3 }
 0x66e   : > { %v3260_v2 = vadd.f32 %v3259_v1, %v3051_v63  ;;  %v2635_v3 = vpop.f32.mrf.mxu0 }
 0x66f   : > { %v2636_v4 = vadd.f32 %v2635_v3, %v7049_v46  ;;  %3100 = vmatmul.f32.gmra.mxu2 %v5233_v5 }
 0x670   : > { %4333 = vst [vmem:[%s6162_s15 + $0x590] sm:$0xff] %v3260_v2  ;;  %v5253_v2 = vld [vmem:[%s5975_s12 + $0x50] sm:$0xff] }
 0x671   : > { %v2844_v6 = vpop.f32.mrf.mxu1  ;;  %2682 = vmatmul.f32.gmra.mxu0 %v5234_v7  ;;  %3309 = vmatmul.f32.gmra.mxu3 %v5235_v9  ;;  %v5256_v9 = vld [vmem:[%s5975_s12 + $0x48] sm:$0xff] }
 0x672   : > { %v2845_v8 = vadd.f32 %v2844_v6, %v2636_v4  ;;  %v3053_v10 = vpop.f32.mrf.mxu2  ;;  %v5254_v4 = vld [vmem:[%s5975_s12 + $0x40] sm:$0xff]  ;;  %v5255_v6 = vld [vmem:[%s5975_s12 + $0x58] sm:$0xff] }
 0x674   : > { %v3054_v11 = vadd.f32 %v3053_v10, %v2845_v8  ;;  %2891 = vmatmul.f32.gmra.mxu1 %v5236_v12  ;;  %v3262_v13 = vpop.f32.mrf.mxu3 }
 0x676   : > { %v3263_v14 = vadd.f32 %v3262_v13, %v3054_v11  ;;  %v2638_v15 = vpop.f32.mrf.mxu0 }
 0x677   : > { %v2639_v16 = vadd.f32 %v2638_v15, %v7049_v46  ;;  %3103 = vmatmul.f32.gmra.mxu2 %v5237_v17 }
 0x678   : > { %4337 = vst [vmem:[%s6162_s15 + $0x5b0] sm:$0xff] %v3263_v14  ;;  %v5257_v14 = vld [vmem:[%s5975_s12 + $0x70] sm:$0xff] }
 0x679   : > { %v2847_v18 = vpop.f32.mrf.mxu1  ;;  %2685 = vmatmul.f32.gmra.mxu0 %v5238_v19  ;;  %3312 = vmatmul.f32.gmra.mxu3 %v5239_v22  ;;  %v5260_v22 = vld [vmem:[%s5975_s12 + $0x68] sm:$0xff] }
 0x67a   : > { %v2848_v20 = vadd.f32 %v2847_v18, %v2639_v16  ;;  %v3056_v23 = vpop.f32.mrf.mxu2  ;;  %v5258_v16 = vld [vmem:[%s5975_s12 + $0x60] sm:$0xff]  ;;  %v5259_v18 = vld [vmem:[%s5975_s12 + $0x78] sm:$0xff] }
 0x67c   : > { %v3057_v24 = vadd.f32 %v3056_v23, %v2848_v20  ;;  %2894 = vmatmul.f32.gmra.mxu1 %v5240_v25  ;;  %v3265_v26 = vpop.f32.mrf.mxu3 }
 0x67e   : > { %v3266_v27 = vadd.f32 %v3265_v26, %v3057_v24  ;;  %v2641_v28 = vpop.f32.mrf.mxu0 }
 0x67f   : > { %v2642_v29 = vadd.f32 %v2641_v28, %v7049_v46  ;;  %3106 = vmatmul.f32.gmra.mxu2 %v5241_v30 }
 0x680   : > { %4341 = vst [vmem:[%s6162_s15 + $0x5d0] sm:$0xff] %v3266_v27  ;;  %v5261_v27 = vld [vmem:[%s5975_s12 + $0x90] sm:$0xff] }
 0x681   : > { %v2850_v31 = vpop.f32.mrf.mxu1  ;;  %2688 = vmatmul.f32.gmra.mxu0 %v5242_v33  ;;  %3315 = vmatmul.f32.gmra.mxu3 %v5243_v34  ;;  %v5264_v34 = vld [vmem:[%s5975_s12 + $0x88] sm:$0xff] }
 0x682   : > { %v2851_v21 = vadd.f32 %v2850_v31, %v2642_v29  ;;  %v3059_v35 = vpop.f32.mrf.mxu2  ;;  %v5262_v29 = vld [vmem:[%s5975_s12 + $0x80] sm:$0xff]  ;;  %v5263_v31 = vld [vmem:[%s5975_s12 + $0x98] sm:$0xff] }
 0x684   : > { %v3060_v36 = vadd.f32 %v3059_v35, %v2851_v21  ;;  %2897 = vmatmul.f32.gmra.mxu1 %v5244_v37  ;;  %v3268_v38 = vpop.f32.mrf.mxu3 }
 0x686   : > { %v3269_v39 = vadd.f32 %v3268_v38, %v3060_v36  ;;  %v2644_v40 = vpop.f32.mrf.mxu0 }
 0x687   : > { %v2645_v41 = vadd.f32 %v2644_v40, %v7049_v46  ;;  %3753 = vmatmul.f32.vlgmr.msrb.gmra.mxu2 %v5245_v42 }
 0x688   : > { %4345 = vst [vmem:[%s6162_s15 + $0x5f0] sm:$0xff] %v3269_v39  ;;  %v5265_v39 = vld [vmem:[%s5975_s12 + $0xb0] sm:$0xff] }
 0x689   : > { %v2853_v43 = vpop.f32.mrf.mxu1  ;;  %3335 = vmatmul.f32.vlgmr.msrb.gmra.mxu0 %v5246_v44  ;;  %3962 = vmatmul.f32.vlgmr.msrb.gmra.mxu3 %v5247_v47  ;;  %v5268_v47 = vld [vmem:[%s5975_s12 + $0xa8] sm:$0xff] }
 0x68a   : > { %v2854_v45 = vadd.f32 %v2853_v43, %v2645_v41  ;;  %v3062_v32 = vpop.f32.mrf.mxu2  ;;  %v5266_v41 = vld [vmem:[%s5975_s12 + $0xa0] sm:$0xff]  ;;  %v5267_v43 = vld [vmem:[%s5975_s12 + $0xb8] sm:$0xff] }
 0x68c   : > { %v3063_v48 = vadd.f32 %v3062_v32, %v2854_v45  ;;  %3544 = vmatmul.f32.vlgmr.msrb.gmra.mxu1 %v5248_v49  ;;  %v3271_v50 = vpop.f32.mrf.mxu3 }
 0x68e   : > { %v3272_v51 = vadd.f32 %v3271_v50, %v3063_v48  ;;  %v2647_v52 = vpop.f32.mrf.mxu0 }
 0x68f   : > { %v2648_v53 = vadd.f32 %v2647_v52, %v7049_v46  ;;  %3756 = vmatmul.f32.gmra.mxu2 %v5249_v54 }
 0x690   : > { %4349 = vst [vmem:[%s6162_s15 + $0x610] sm:$0xff] %v3272_v51  ;;  %v5269_v51 = vld [vmem:[%s5975_s12 + $0xd0] sm:$0xff] }
 0x691   : > { %v2856_v55 = vpop.f32.mrf.mxu1  ;;  %3338 = vmatmul.f32.gmra.mxu0 %v5250_v56  ;;  %3965 = vmatmul.f32.gmra.mxu3 %v5251_v58  ;;  %v5272_v58 = vld [vmem:[%s5975_s12 + $0xc8] sm:$0xff] }
 0x692   : > { %v2857_v57 = vadd.f32 %v2856_v55, %v2648_v53  ;;  %v3065_v59 = vpop.f32.mrf.mxu2  ;;  %v5270_v53 = vld [vmem:[%s5975_s12 + $0xc0] sm:$0xff]  ;;  %v5271_v55 = vld [vmem:[%s5975_s12 + $0xd8] sm:$0xff] }
 0x694   : > { %v3066_v60 = vadd.f32 %v3065_v59, %v2857_v57  ;;  %3547 = vmatmul.f32.gmra.mxu1 %v5252_v61  ;;  %v3274_v62 = vpop.f32.mrf.mxu3 }
 0x696   : > { %v3275_v63 = vadd.f32 %v3274_v62, %v3066_v60  ;;  %v2650_v0 = vpop.f32.mrf.mxu0 }
 0x697   : > { %v2651_v1 = vadd.f32 %v2650_v0, %v7049_v46  ;;  %3759 = vmatmul.f32.gmra.mxu2 %v5253_v2 }
 0x698   : > { %4353 = vst [vmem:[%s6162_s15 + $0x630] sm:$0xff] %v3275_v63  ;;  %v5273_v63 = vld [vmem:[%s5975_s12 + $0xf0] sm:$0xff] }
 0x699   : > { %v2859_v3 = vpop.f32.mrf.mxu1  ;;  %3341 = vmatmul.f32.gmra.mxu0 %v5254_v4  ;;  %3968 = vmatmul.f32.gmra.mxu3 %v5255_v6  ;;  %v5276_v6 = vld [vmem:[%s5975_s12 + $0xe8] sm:$0xff] }
 0x69a   : > { %v2860_v5 = vadd.f32 %v2859_v3, %v2651_v1  ;;  %v3068_v7 = vpop.f32.mrf.mxu2  ;;  %v5274_v1 = vld [vmem:[%s5975_s12 + $0xe0] sm:$0xff]  ;;  %v5275_v3 = vld [vmem:[%s5975_s12 + $0xf8] sm:$0xff] }
 0x69c   : > { %v3069_v8 = vadd.f32 %v3068_v7, %v2860_v5  ;;  %3550 = vmatmul.f32.gmra.mxu1 %v5256_v9  ;;  %v3277_v10 = vpop.f32.mrf.mxu3 }
 0x69e   : > { %v3278_v11 = vadd.f32 %v3277_v10, %v3069_v8  ;;  %v2653_v12 = vpop.f32.mrf.mxu0 }
 0x69f   : > { %v2654_v13 = vadd.f32 %v2653_v12, %v7049_v46  ;;  %3762 = vmatmul.f32.gmra.mxu2 %v5257_v14 }
 0x6a0   : > { %4357 = vst [vmem:[%s6162_s15 + $0x650] sm:$0xff] %v3278_v11  ;;  %v5277_v11 = vld [vmem:[%s5975_s12 + $0x110] sm:$0xff] }
 0x6a1   : > { %v2862_v15 = vpop.f32.mrf.mxu1  ;;  %3344 = vmatmul.f32.gmra.mxu0 %v5258_v16  ;;  %3971 = vmatmul.f32.gmra.mxu3 %v5259_v18  ;;  %v5280_v18 = vld [vmem:[%s5975_s12 + $0x108] sm:$0xff] }
 0x6a2   : > { %v2863_v17 = vadd.f32 %v2862_v15, %v2654_v13  ;;  %v3071_v19 = vpop.f32.mrf.mxu2  ;;  %v5278_v13 = vld [vmem:[%s5975_s12 + $0x100] sm:$0xff]  ;;  %v5279_v15 = vld [vmem:[%s5975_s12 + $0x118] sm:$0xff] }
 0x6a4   : > { %v3072_v20 = vadd.f32 %v3071_v19, %v2863_v17  ;;  %3553 = vmatmul.f32.gmra.mxu1 %v5260_v22  ;;  %v3280_v23 = vpop.f32.mrf.mxu3 }
 0x6a6   : > { %v3281_v24 = vadd.f32 %v3280_v23, %v3072_v20  ;;  %v2656_v25 = vpop.f32.mrf.mxu0 }
 0x6a7   : > { %v2657_v26 = vadd.f32 %v2656_v25, %v7049_v46  ;;  %3765 = vmatmul.f32.gmra.mxu2 %v5261_v27 }
 0x6a8   : > { %4361 = vst [vmem:[%s6162_s15 + $0x670] sm:$0xff] %v3281_v24  ;;  %v5281_v24 = vld [vmem:[%s5975_s12 + $0x130] sm:$0xff] }
 0x6a9   : > { %v2865_v28 = vpop.f32.mrf.mxu1  ;;  %3347 = vmatmul.f32.gmra.mxu0 %v5262_v29  ;;  %3974 = vmatmul.f32.gmra.mxu3 %v5263_v31  ;;  %v5284_v31 = vld [vmem:[%s5975_s12 + $0x128] sm:$0xff] }
 0x6aa   : > { %v2866_v30 = vadd.f32 %v2865_v28, %v2657_v26  ;;  %v3074_v33 = vpop.f32.mrf.mxu2  ;;  %v5282_v26 = vld [vmem:[%s5975_s12 + $0x120] sm:$0xff]  ;;  %v5283_v28 = vld [vmem:[%s5975_s12 + $0x138] sm:$0xff] }
 0x6ac   : > { %v3075_v21 = vadd.f32 %v3074_v33, %v2866_v30  ;;  %3556 = vmatmul.f32.gmra.mxu1 %v5264_v34  ;;  %v3283_v35 = vpop.f32.mrf.mxu3 }
 0x6ae   : > { %v3284_v36 = vadd.f32 %v3283_v35, %v3075_v21  ;;  %v2659_v37 = vpop.f32.mrf.mxu0 }
 0x6af   : > { %v2660_v38 = vadd.f32 %v2659_v37, %v7049_v46  ;;  %3768 = vmatmul.f32.gmra.mxu2 %v5265_v39 }
 0x6b0   : > { %4365 = vst [vmem:[%s6162_s15 + $0x690] sm:$0xff] %v3284_v36  ;;  %v5285_v36 = vld [vmem:[%s5975_s12 + $0x150] sm:$0xff] }
 0x6b1   : > { %v2868_v40 = vpop.f32.mrf.mxu1  ;;  %3350 = vmatmul.f32.gmra.mxu0 %v5266_v41  ;;  %3977 = vmatmul.f32.gmra.mxu3 %v5267_v43  ;;  %v5288_v43 = vld [vmem:[%s5975_s12 + $0x148] sm:$0xff] }
 0x6b2   : > { %v2869_v42 = vadd.f32 %v2868_v40, %v2660_v38  ;;  %v3077_v44 = vpop.f32.mrf.mxu2  ;;  %v5286_v38 = vld [vmem:[%s5975_s12 + $0x140] sm:$0xff]  ;;  %v5287_v40 = vld [vmem:[%s5975_s12 + $0x158] sm:$0xff] }
 0x6b4   : > { %v3078_v45 = vadd.f32 %v3077_v44, %v2869_v42  ;;  %3559 = vmatmul.f32.gmra.mxu1 %v5268_v47  ;;  %v3286_v32 = vpop.f32.mrf.mxu3 }
 0x6b6   : > { %v3287_v48 = vadd.f32 %v3286_v32, %v3078_v45  ;;  %v2662_v49 = vpop.f32.mrf.mxu0 }
 0x6b7   : > { %v2663_v50 = vadd.f32 %v2662_v49, %v7049_v46  ;;  %3771 = vmatmul.f32.gmra.mxu2 %v5269_v51 }
 0x6b8   : > { %4369 = vst [vmem:[%s6162_s15 + $0x6b0] sm:$0xff] %v3287_v48  ;;  %v5289_v48 = vld [vmem:[%s5975_s12 + $0x170] sm:$0xff] }
 0x6b9   : > { %v2871_v52 = vpop.f32.mrf.mxu1  ;;  %3353 = vmatmul.f32.gmra.mxu0 %v5270_v53  ;;  %3980 = vmatmul.f32.gmra.mxu3 %v5271_v55  ;;  %v5292_v55 = vld [vmem:[%s5975_s12 + $0x168] sm:$0xff] }
 0x6ba   : > { %v2872_v54 = vadd.f32 %v2871_v52, %v2663_v50  ;;  %v3080_v56 = vpop.f32.mrf.mxu2  ;;  %v5290_v50 = vld [vmem:[%s5975_s12 + $0x160] sm:$0xff]  ;;  %v5291_v52 = vld [vmem:[%s5975_s12 + $0x178] sm:$0xff] }
 0x6bc   : > { %v3081_v57 = vadd.f32 %v3080_v56, %v2872_v54  ;;  %3562 = vmatmul.f32.gmra.mxu1 %v5272_v58  ;;  %v3289_v59 = vpop.f32.mrf.mxu3 }
 0x6be   : > { %v3290_v60 = vadd.f32 %v3289_v59, %v3081_v57  ;;  %v2665_v61 = vpop.f32.mrf.mxu0 }
 0x6bf   : > { %v2666_v62 = vadd.f32 %v2665_v61, %v7049_v46  ;;  %3774 = vmatmul.f32.gmra.mxu2 %v5273_v63 }
 0x6c0   : > { %4373 = vst [vmem:[%s6162_s15 + $0x6d0] sm:$0xff] %v3290_v60  ;;  %v5293_v60 = vld [vmem:[%s5975_s12 + $0x190] sm:$0xff] }
 0x6c1   : > { %v2874_v0 = vpop.f32.mrf.mxu1  ;;  %3356 = vmatmul.f32.gmra.mxu0 %v5274_v1  ;;  %3983 = vmatmul.f32.gmra.mxu3 %v5275_v3  ;;  %v5296_v3 = vld [vmem:[%s5975_s12 + $0x188] sm:$0xff] }
 0x6c2   : > { %v2875_v2 = vadd.f32 %v2874_v0, %v2666_v62  ;;  %v3083_v4 = vpop.f32.mrf.mxu2  ;;  %v5294_v62 = vld [vmem:[%s5975_s12 + $0x180] sm:$0xff]  ;;  %v5295_v0 = vld [vmem:[%s5975_s12 + $0x198] sm:$0xff] }
 0x6c4   : > { %v3084_v5 = vadd.f32 %v3083_v4, %v2875_v2  ;;  %3565 = vmatmul.f32.gmra.mxu1 %v5276_v6  ;;  %v3292_v7 = vpop.f32.mrf.mxu3 }
 0x6c6   : > { %v3293_v8 = vadd.f32 %v3292_v7, %v3084_v5  ;;  %v2668_v9 = vpop.f32.mrf.mxu0 }
 0x6c7   : > { %v2669_v10 = vadd.f32 %v2668_v9, %v7049_v46  ;;  %3777 = vmatmul.f32.gmra.mxu2 %v5277_v11 }
 0x6c8   : > { %4377 = vst [vmem:[%s6162_s15 + $0x6f0] sm:$0xff] %v3293_v8  ;;  %v5297_v8 = vld [vmem:[%s5975_s12 + $0x1b0] sm:$0xff] }
 0x6c9   : > { %v2877_v12 = vpop.f32.mrf.mxu1  ;;  %3359 = vmatmul.f32.gmra.mxu0 %v5278_v13  ;;  %3986 = vmatmul.f32.gmra.mxu3 %v5279_v15  ;;  %v5300_v15 = vld [vmem:[%s5975_s12 + $0x1a8] sm:$0xff] }
 0x6ca   : > { %v2878_v14 = vadd.f32 %v2877_v12, %v2669_v10  ;;  %v3086_v16 = vpop.f32.mrf.mxu2  ;;  %v5298_v10 = vld [vmem:[%s5975_s12 + $0x1a0] sm:$0xff]  ;;  %v5299_v12 = vld [vmem:[%s5975_s12 + $0x1b8] sm:$0xff] }
 0x6cc   : > { %v3087_v17 = vadd.f32 %v3086_v16, %v2878_v14  ;;  %3568 = vmatmul.f32.gmra.mxu1 %v5280_v18  ;;  %v3295_v19 = vpop.f32.mrf.mxu3 }
 0x6ce   : > { %v3296_v20 = vadd.f32 %v3295_v19, %v3087_v17  ;;  %v2671_v22 = vpop.f32.mrf.mxu0 }
 0x6cf   : > { %v2672_v23 = vadd.f32 %v2671_v22, %v7049_v46  ;;  %3780 = vmatmul.f32.gmra.mxu2 %v5281_v24 }
 0x6d0   : > { %4381 = vst [vmem:[%s6162_s15 + $0x710] sm:$0xff] %v3296_v20  ;;  %v5301_v20 = vld [vmem:[%s5975_s12 + $0x1d0] sm:$0xff] }
 0x6d1   : > { %v2880_v25 = vpop.f32.mrf.mxu1  ;;  %3362 = vmatmul.f32.gmra.mxu0 %v5282_v26  ;;  %3989 = vmatmul.f32.gmra.mxu3 %v5283_v28  ;;  %v5304_v28 = vld [vmem:[%s5975_s12 + $0x1c8] sm:$0xff] }
 0x6d2   : > { %v2881_v27 = vadd.f32 %v2880_v25, %v2672_v23  ;;  %v3089_v29 = vpop.f32.mrf.mxu2  ;;  %v5302_v23 = vld [vmem:[%s5975_s12 + $0x1c0] sm:$0xff]  ;;  %v5303_v25 = vld [vmem:[%s5975_s12 + $0x1d8] sm:$0xff] }
 0x6d4   : > { %v3090_v30 = vadd.f32 %v3089_v29, %v2881_v27  ;;  %3571 = vmatmul.f32.gmra.mxu1 %v5284_v31  ;;  %v3298_v33 = vpop.f32.mrf.mxu3 }
 0x6d6   : > { %v3299_v21 = vadd.f32 %v3298_v33, %v3090_v30  ;;  %v2674_v34 = vpop.f32.mrf.mxu0 }
 0x6d7   : > { %v2675_v35 = vadd.f32 %v2674_v34, %v7049_v46  ;;  %3783 = vmatmul.f32.gmra.mxu2 %v5285_v36 }
 0x6d8   : > { %4385 = vst [vmem:[%s6162_s15 + $0x730] sm:$0xff] %v3299_v21  ;;  %v5305_v21 = vld [vmem:[%s5975_s12 + $0x1f0] sm:$0xff] }
 0x6d9   : > { %v2883_v37 = vpop.f32.mrf.mxu1  ;;  %3365 = vmatmul.f32.gmra.mxu0 %v5286_v38  ;;  %3992 = vmatmul.f32.gmra.mxu3 %v5287_v40 }
 0x6da   : > { %v2884_v39 = vadd.f32 %v2883_v37, %v2675_v35  ;;  %v3092_v41 = vpop.f32.mrf.mxu2  ;;  %v5306_v35 = vld [vmem:[%s5975_s12 + $0x1e0] sm:$0xff]  ;;  %v5307_v37 = vld [vmem:[%s5975_s12 + $0x1f8] sm:$0xff] }
 0x6dc   : > { %v3093_v42 = vadd.f32 %v3092_v41, %v2884_v39  ;;  %3574 = vmatmul.f32.gmra.mxu1 %v5288_v43  ;;  %v3301_v44 = vpop.f32.mrf.mxu3  ;;  %v5308_v39 = vld [vmem:[%s6140_s8] sm:$0xf] }
 0x6dd   : > { %v7480_v40 = vperm.slane %v5308_v39, 3 }
 0x6de   : > { %v3302_v45 = vadd.f32 %v3301_v44, %v3093_v42  ;;  %v2677_v47 = vpop.f32.mrf.mxu0  ;;  %v5309_v42 = vld [vmem:[%s5975_s12 + $0x1e8] sm:$0xff] }
 0x6df   : > { %v2678_v32 = vadd.f32 %v2677_v47, %v7049_v46  ;;  %3786 = vmatmul.f32.gmra.mxu2 %v5289_v48  ;;  %v5310_v47 = vld [vmem:[%s5975_s12 + $0x210] sm:$0xff]  ;;  %v5311_v48 = vld [vmem:[%s5975_s12 + $0x200] sm:$0xff] }
 0x6e0   : > { %4389 = vst [vmem:[%s6162_s15 + $0x750] sm:$0xff] %v3302_v45 }
 0x6e1   : > { %v2886_v49 = vpop.f32.mrf.mxu1  ;;  %3368 = vmatmul.f32.gmra.mxu0 %v5290_v50  ;;  %3995 = vmatmul.f32.gmra.mxu3 %v5291_v52  ;;  %v5312_v50 = vld [vmem:[%s5975_s12 + $0x218] sm:$0xff] }
 0x6e2   : > { %v2887_v51 = vadd.f32 %v2886_v49, %v2678_v32  ;;  %v3095_v53 = vpop.f32.mrf.mxu2 }
 0x6e4   : > { %v3096_v54 = vadd.f32 %v3095_v53, %v2887_v51  ;;  %3577 = vmatmul.f32.gmra.mxu1 %v5292_v55  ;;  %v3304_v56 = vpop.f32.mrf.mxu3  ;;  %v5313_v53 = vld [vmem:[%s5975_s12 + $0x208] sm:$0xff] }
 0x6e6   : > { %v3305_v57 = vadd.f32 %v3304_v56, %v3096_v54  ;;  %v2680_v58 = vpop.f32.mrf.mxu0 }
 0x6e7   : > { %v2681_v59 = vadd.f32 %v2680_v58, %v7049_v46  ;;  %3789 = vmatmul.f32.gmra.mxu2 %v5293_v60  ;;  %v5314_v58 = vld [vmem:[%s5975_s12 + $0x230] sm:$0xff]  ;;  %v5315_v60 = vld [vmem:[%s5975_s12 + $0x220] sm:$0xff] }
 0x6e8   : > { %4393 = vst [vmem:[%s6162_s15 + $0x770] sm:$0xff] %v3305_v57 }
 0x6e9   : > { %v2889_v61 = vpop.f32.mrf.mxu1  ;;  %3371 = vmatmul.f32.gmra.mxu0 %v5294_v62  ;;  %3998 = vmatmul.f32.gmra.mxu3 %v5295_v0  ;;  %v5316_v62 = vld [vmem:[%s5975_s12 + $0x238] sm:$0xff] }
 0x6ea   : > { %v2890_v63 = vadd.f32 %v2889_v61, %v2681_v59  ;;  %v3098_v1 = vpop.f32.mrf.mxu2 }
 0x6ec   : > { %v3099_v2 = vadd.f32 %v3098_v1, %v2890_v63  ;;  %3580 = vmatmul.f32.gmra.mxu1 %v5296_v3  ;;  %v3307_v4 = vpop.f32.mrf.mxu3  ;;  %v5317_v1 = vld [vmem:[%s5975_s12 + $0x228] sm:$0xff] }
 0x6ee   : > { %v3308_v5 = vadd.f32 %v3307_v4, %v3099_v2  ;;  %v2683_v6 = vpop.f32.mrf.mxu0 }
 0x6ef   : > { %v2684_v7 = vadd.f32 %v2683_v6, %v7049_v46  ;;  %3792 = vmatmul.f32.gmra.mxu2 %v5297_v8  ;;  %v5318_v6 = vld [vmem:[%s5975_s12 + $0x250] sm:$0xff]  ;;  %v5319_v8 = vld [vmem:[%s5975_s12 + $0x240] sm:$0xff] }
 0x6f0   : > { %4397 = vst [vmem:[%s6162_s15 + $0x790] sm:$0xff] %v3308_v5 }
 0x6f1   : > { %v2892_v9 = vpop.f32.mrf.mxu1  ;;  %3374 = vmatmul.f32.gmra.mxu0 %v5298_v10  ;;  %4001 = vmatmul.f32.gmra.mxu3 %v5299_v12  ;;  %v5320_v10 = vld [vmem:[%s5975_s12 + $0x258] sm:$0xff] }
 0x6f2   : > { %v2893_v11 = vadd.f32 %v2892_v9, %v2684_v7  ;;  %v3101_v13 = vpop.f32.mrf.mxu2 }
 0x6f4   : > { %v3102_v14 = vadd.f32 %v3101_v13, %v2893_v11  ;;  %3583 = vmatmul.f32.gmra.mxu1 %v5300_v15  ;;  %v3310_v16 = vpop.f32.mrf.mxu3  ;;  %v5321_v13 = vld [vmem:[%s5975_s12 + $0x248] sm:$0xff] }
 0x6f6   : > { %v3311_v17 = vadd.f32 %v3310_v16, %v3102_v14  ;;  %v2686_v18 = vpop.f32.mrf.mxu0 }
 0x6f7   : > { %v2687_v19 = vadd.f32 %v2686_v18, %v7049_v46  ;;  %3795 = vmatmul.f32.gmra.mxu2 %v5301_v20  ;;  %v5322_v18 = vld [vmem:[%s5975_s12 + $0x270] sm:$0xff]  ;;  %v5323_v20 = vld [vmem:[%s5975_s12 + $0x260] sm:$0xff] }
 0x6f8   : > { %4401 = vst [vmem:[%s6162_s15 + $0x7b0] sm:$0xff] %v3311_v17 }
 0x6f9   : > { %v2895_v22 = vpop.f32.mrf.mxu1  ;;  %3377 = vmatmul.f32.gmra.mxu0 %v5302_v23  ;;  %4004 = vmatmul.f32.gmra.mxu3 %v5303_v25  ;;  %v5324_v23 = vld [vmem:[%s5975_s12 + $0x278] sm:$0xff] }
 0x6fa   : > { %v2896_v24 = vadd.f32 %v2895_v22, %v2687_v19  ;;  %v3104_v26 = vpop.f32.mrf.mxu2 }
 0x6fc   : > { %v3105_v27 = vadd.f32 %v3104_v26, %v2896_v24  ;;  %3586 = vmatmul.f32.gmra.mxu1 %v5304_v28  ;;  %v3313_v29 = vpop.f32.mrf.mxu3  ;;  %v5325_v26 = vld [vmem:[%s5975_s12 + $0x268] sm:$0xff] }
 0x6fe   : > { %v3314_v30 = vadd.f32 %v3313_v29, %v3105_v27  ;;  %v2689_v31 = vpop.f32.mrf.mxu0 }
 0x6ff   : > { %v2690_v33 = vadd.f32 %v2689_v31, %v7049_v46  ;;  %3798 = vmatmul.f32.gmra.mxu2 %v5305_v21  ;;  %v5326_v31 = vld [vmem:[%s5975_s12 + $0x290] sm:$0xff]  ;;  %v5327_v21 = vld [vmem:[%s5975_s12 + $0x280] sm:$0xff] }
 0x700   : > { %4405 = vst [vmem:[%s6162_s15 + $0x7d0] sm:$0xff] %v3314_v30 }
 0x701   : > { %v2898_v34 = vpop.f32.mrf.mxu1  ;;  %3380 = vmatmul.f32.gmra.mxu0 %v5306_v35  ;;  %4007 = vmatmul.f32.gmra.mxu3 %v5307_v37  ;;  %v5328_v35 = vld [vmem:[%s5975_s12 + $0x298] sm:$0xff] }
 0x702   : > { %v2899_v36 = vadd.f32 %v2898_v34, %v2690_v33  ;;  %v3107_v38 = vpop.f32.mrf.mxu2 }
 0x704   : > { %v3108_v41 = vadd.f32 %v3107_v38, %v2899_v36  ;;  %3589 = vmatmul.f32.gmra.mxu1 %v5309_v42  ;;  %v3316_v46 = vpop.f32.mrf.mxu3  ;;  %v5329_v38 = vld [vmem:[%s5975_s12 + $0x288] sm:$0xff] }
 0x706   : > { %v3317_v43 = vadd.f32 %v3316_v46, %v3108_v41  ;;  %v3336_v44 = vpop.f32.mrf.mxu0 }
 0x707   : > { %v3337_v45 = vadd.f32 %v3336_v44, %v7480_v40  ;;  %3801 = vmatmul.f32.gmra.mxu2 %v5310_v47 }
 0x708   : > { %4409 = vst [vmem:[%s6162_s15 + $0x7f0] sm:$0xff] %v3317_v43  ;;  %v5330_v43 = vld [vmem:[%s5975_s12 + $0x2b0] sm:$0xff] }
 0x709   : > { %v3545_v32 = vpop.f32.mrf.mxu1  ;;  %3383 = vmatmul.f32.gmra.mxu0 %v5311_v48  ;;  %4010 = vmatmul.f32.gmra.mxu3 %v5312_v50  ;;  %v5333_v50 = vld [vmem:[%s5975_s12 + $0x2a8] sm:$0xff] }
 0x70a   : > { %v3546_v49 = vadd.f32 %v3545_v32, %v3337_v45  ;;  %v3754_v51 = vpop.f32.mrf.mxu2  ;;  %v5331_v45 = vld [vmem:[%s5975_s12 + $0x2a0] sm:$0xff]  ;;  %v5332_v32 = vld [vmem:[%s5975_s12 + $0x2b8] sm:$0xff] }
 0x70c   : > { %v3755_v52 = vadd.f32 %v3754_v51, %v3546_v49  ;;  %3592 = vmatmul.f32.gmra.mxu1 %v5313_v53  ;;  %v3963_v54 = vpop.f32.mrf.mxu3 }
 0x70e   : > { %v3964_v55 = vadd.f32 %v3963_v54, %v3755_v52  ;;  %v3339_v56 = vpop.f32.mrf.mxu0 }
 0x70f   : > { %v3340_v57 = vadd.f32 %v3339_v56, %v7480_v40  ;;  %3804 = vmatmul.f32.gmra.mxu2 %v5314_v58 }
 0x710   : > { %4158 = vst [vmem:[%s6162_s15 + $0x18] sm:$0xff] %v3964_v55  ;;  %v5334_v55 = vld [vmem:[%s5975_s12 + $0x2d0] sm:$0xff] }
 0x711   : > { %v3548_v59 = vpop.f32.mrf.mxu1  ;;  %3386 = vmatmul.f32.gmra.mxu0 %v5315_v60  ;;  %4013 = vmatmul.f32.gmra.mxu3 %v5316_v62  ;;  %v5337_v62 = vld [vmem:[%s5975_s12 + $0x2c8] sm:$0xff] }
 0x712   : > { %v3549_v61 = vadd.f32 %v3548_v59, %v3340_v57  ;;  %v3757_v63 = vpop.f32.mrf.mxu2  ;;  %v5335_v57 = vld [vmem:[%s5975_s12 + $0x2c0] sm:$0xff]  ;;  %v5336_v59 = vld [vmem:[%s5975_s12 + $0x2d8] sm:$0xff] }
 0x714   : > { %v3758_v0 = vadd.f32 %v3757_v63, %v3549_v61  ;;  %3595 = vmatmul.f32.gmra.mxu1 %v5317_v1  ;;  %v3966_v2 = vpop.f32.mrf.mxu3 }
 0x716   : > { %v3967_v3 = vadd.f32 %v3966_v2, %v3758_v0  ;;  %v3342_v4 = vpop.f32.mrf.mxu0 }
 0x717   : > { %v3343_v5 = vadd.f32 %v3342_v4, %v7480_v40  ;;  %3807 = vmatmul.f32.gmra.mxu2 %v5318_v6 }
 0x718   : > { %4162 = vst [vmem:[%s6162_s15 + $0x38] sm:$0xff] %v3967_v3  ;;  %v5338_v3 = vld [vmem:[%s5975_s12 + $0x2f0] sm:$0xff] }
 0x719   : > { %v3551_v7 = vpop.f32.mrf.mxu1  ;;  %3389 = vmatmul.f32.gmra.mxu0 %v5319_v8  ;;  %4016 = vmatmul.f32.gmra.mxu3 %v5320_v10  ;;  %v5341_v10 = vld [vmem:[%s5975_s12 + $0x2e8] sm:$0xff] }
 0x71a   : > { %v3552_v9 = vadd.f32 %v3551_v7, %v3343_v5  ;;  %v3760_v11 = vpop.f32.mrf.mxu2  ;;  %v5339_v5 = vld [vmem:[%s5975_s12 + $0x2e0] sm:$0xff]  ;;  %v5340_v7 = vld [vmem:[%s5975_s12 + $0x2f8] sm:$0xff] }
 0x71c   : > { %v3761_v12 = vadd.f32 %v3760_v11, %v3552_v9  ;;  %3598 = vmatmul.f32.gmra.mxu1 %v5321_v13  ;;  %v3969_v14 = vpop.f32.mrf.mxu3 }
 0x71e   : > { %v3970_v15 = vadd.f32 %v3969_v14, %v3761_v12  ;;  %v3345_v16 = vpop.f32.mrf.mxu0 }
 0x71f   : > { %v3346_v17 = vadd.f32 %v3345_v16, %v7480_v40  ;;  %3810 = vmatmul.f32.gmra.mxu2 %v5322_v18 }
 0x720   : > { %4166 = vst [vmem:[%s6162_s15 + $0x58] sm:$0xff] %v3970_v15  ;;  %v5342_v15 = vld [vmem:[%s5975_s12 + $0x310] sm:$0xff] }
 0x721   : > { %v3554_v19 = vpop.f32.mrf.mxu1  ;;  %3392 = vmatmul.f32.gmra.mxu0 %v5323_v20  ;;  %4019 = vmatmul.f32.gmra.mxu3 %v5324_v23  ;;  %v5345_v23 = vld [vmem:[%s5975_s12 + $0x308] sm:$0xff] }
 0x722   : > { %v3555_v22 = vadd.f32 %v3554_v19, %v3346_v17  ;;  %v3763_v24 = vpop.f32.mrf.mxu2  ;;  %v5343_v17 = vld [vmem:[%s5975_s12 + $0x300] sm:$0xff]  ;;  %v5344_v19 = vld [vmem:[%s5975_s12 + $0x318] sm:$0xff] }
 0x724   : > { %v3764_v25 = vadd.f32 %v3763_v24, %v3555_v22  ;;  %3601 = vmatmul.f32.gmra.mxu1 %v5325_v26  ;;  %v3972_v27 = vpop.f32.mrf.mxu3 }
 0x726   : > { %v3973_v28 = vadd.f32 %v3972_v27, %v3764_v25  ;;  %v3348_v29 = vpop.f32.mrf.mxu0 }
 0x727   : > { %v3349_v30 = vadd.f32 %v3348_v29, %v7480_v40  ;;  %3813 = vmatmul.f32.gmra.mxu2 %v5326_v31 }
 0x728   : > { %4170 = vst [vmem:[%s6162_s15 + $0x78] sm:$0xff] %v3973_v28  ;;  %v5346_v28 = vld [vmem:[%s5975_s12 + $0x330] sm:$0xff] }
 0x729   : > { %v3557_v33 = vpop.f32.mrf.mxu1  ;;  %3395 = vmatmul.f32.gmra.mxu0 %v5327_v21  ;;  %4022 = vmatmul.f32.gmra.mxu3 %v5328_v35  ;;  %v5349_v35 = vld [vmem:[%s5975_s12 + $0x328] sm:$0xff] }
 0x72a   : > { %v3558_v34 = vadd.f32 %v3557_v33, %v3349_v30  ;;  %v3766_v36 = vpop.f32.mrf.mxu2  ;;  %v5347_v30 = vld [vmem:[%s5975_s12 + $0x320] sm:$0xff]  ;;  %v5348_v33 = vld [vmem:[%s5975_s12 + $0x338] sm:$0xff] }
 0x72c   : > { %v3767_v37 = vadd.f32 %v3766_v36, %v3558_v34  ;;  %3604 = vmatmul.f32.gmra.mxu1 %v5329_v38  ;;  %v3975_v39 = vpop.f32.mrf.mxu3 }
 0x72e   : > { %v3976_v41 = vadd.f32 %v3975_v39, %v3767_v37  ;;  %v3351_v42 = vpop.f32.mrf.mxu0 }
 0x72f   : > { %v3352_v46 = vadd.f32 %v3351_v42, %v7480_v40  ;;  %3816 = vmatmul.f32.gmra.mxu2 %v5330_v43 }
 0x730   : > { %4174 = vst [vmem:[%s6162_s15 + $0x98] sm:$0xff] %v3976_v41  ;;  %v5350_v41 = vld [vmem:[%s5975_s12 + $0x350] sm:$0xff] }
 0x731   : > { %v3560_v44 = vpop.f32.mrf.mxu1  ;;  %3398 = vmatmul.f32.gmra.mxu0 %v5331_v45  ;;  %4025 = vmatmul.f32.gmra.mxu3 %v5332_v32  ;;  %v5353_v32 = vld [vmem:[%s5975_s12 + $0x348] sm:$0xff] }
 0x732   : > { %v3561_v47 = vadd.f32 %v3560_v44, %v3352_v46  ;;  %v3769_v48 = vpop.f32.mrf.mxu2  ;;  %v5351_v46 = vld [vmem:[%s5975_s12 + $0x340] sm:$0xff]  ;;  %v5352_v44 = vld [vmem:[%s5975_s12 + $0x358] sm:$0xff] }
 0x734   : > { %v3770_v49 = vadd.f32 %v3769_v48, %v3561_v47  ;;  %3607 = vmatmul.f32.gmra.mxu1 %v5333_v50  ;;  %v3978_v51 = vpop.f32.mrf.mxu3 }
 0x736   : > { %v3979_v52 = vadd.f32 %v3978_v51, %v3770_v49  ;;  %v3354_v53 = vpop.f32.mrf.mxu0 }
 0x737   : > { %v3355_v54 = vadd.f32 %v3354_v53, %v7480_v40  ;;  %3819 = vmatmul.f32.gmra.mxu2 %v5334_v55 }
 0x738   : > { %4178 = vst [vmem:[%s6162_s15 + $0xb8] sm:$0xff] %v3979_v52  ;;  %v5354_v52 = vld [vmem:[%s5975_s12 + $0x370] sm:$0xff] }
 0x739   : > { %v3563_v56 = vpop.f32.mrf.mxu1  ;;  %3401 = vmatmul.f32.gmra.mxu0 %v5335_v57  ;;  %4028 = vmatmul.f32.gmra.mxu3 %v5336_v59  ;;  %v5357_v59 = vld [vmem:[%s5975_s12 + $0x368] sm:$0xff] }
 0x73a   : > { %v3564_v58 = vadd.f32 %v3563_v56, %v3355_v54  ;;  %v3772_v60 = vpop.f32.mrf.mxu2  ;;  %v5355_v54 = vld [vmem:[%s5975_s12 + $0x360] sm:$0xff]  ;;  %v5356_v56 = vld [vmem:[%s5975_s12 + $0x378] sm:$0xff] }
 0x73c   : > { %v3773_v61 = vadd.f32 %v3772_v60, %v3564_v58  ;;  %3610 = vmatmul.f32.gmra.mxu1 %v5337_v62  ;;  %v3981_v63 = vpop.f32.mrf.mxu3 }
 0x73e   : > { %v3982_v0 = vadd.f32 %v3981_v63, %v3773_v61  ;;  %v3357_v1 = vpop.f32.mrf.mxu0 }
 0x73f   : > { %v3358_v2 = vadd.f32 %v3357_v1, %v7480_v40  ;;  %3822 = vmatmul.f32.gmra.mxu2 %v5338_v3 }
 0x740   : > { %4182 = vst [vmem:[%s6162_s15 + $0xd8] sm:$0xff] %v3982_v0  ;;  %v5358_v0 = vld [vmem:[%s5975_s12 + $0x390] sm:$0xff] }
 0x741   : > { %v3566_v4 = vpop.f32.mrf.mxu1  ;;  %3404 = vmatmul.f32.gmra.mxu0 %v5339_v5  ;;  %4031 = vmatmul.f32.gmra.mxu3 %v5340_v7  ;;  %v5361_v7 = vld [vmem:[%s5975_s12 + $0x388] sm:$0xff] }
 0x742   : > { %v3567_v6 = vadd.f32 %v3566_v4, %v3358_v2  ;;  %v3775_v8 = vpop.f32.mrf.mxu2  ;;  %v5359_v2 = vld [vmem:[%s5975_s12 + $0x380] sm:$0xff]  ;;  %v5360_v4 = vld [vmem:[%s5975_s12 + $0x398] sm:$0xff] }
 0x744   : > { %v3776_v9 = vadd.f32 %v3775_v8, %v3567_v6  ;;  %3613 = vmatmul.f32.gmra.mxu1 %v5341_v10  ;;  %v3984_v11 = vpop.f32.mrf.mxu3 }
 0x746   : > { %v3985_v12 = vadd.f32 %v3984_v11, %v3776_v9  ;;  %v3360_v13 = vpop.f32.mrf.mxu0 }
 0x747   : > { %v3361_v14 = vadd.f32 %v3360_v13, %v7480_v40  ;;  %3825 = vmatmul.f32.gmra.mxu2 %v5342_v15 }
 0x748   : > { %4186 = vst [vmem:[%s6162_s15 + $0xf8] sm:$0xff] %v3985_v12  ;;  %v5362_v12 = vld [vmem:[%s5975_s12 + $0x3b0] sm:$0xff] }
 0x749   : > { %v3569_v16 = vpop.f32.mrf.mxu1  ;;  %3407 = vmatmul.f32.gmra.mxu0 %v5343_v17  ;;  %4034 = vmatmul.f32.gmra.mxu3 %v5344_v19  ;;  %v5365_v19 = vld [vmem:[%s5975_s12 + $0x3a8] sm:$0xff] }
 0x74a   : > { %v3570_v18 = vadd.f32 %v3569_v16, %v3361_v14  ;;  %v3778_v20 = vpop.f32.mrf.mxu2  ;;  %v5363_v14 = vld [vmem:[%s5975_s12 + $0x3a0] sm:$0xff]  ;;  %v5364_v16 = vld [vmem:[%s5975_s12 + $0x3b8] sm:$0xff] }
 0x74c   : > { %v3779_v22 = vadd.f32 %v3778_v20, %v3570_v18  ;;  %3616 = vmatmul.f32.gmra.mxu1 %v5345_v23  ;;  %v3987_v24 = vpop.f32.mrf.mxu3 }
 0x74e   : > { %v3988_v25 = vadd.f32 %v3987_v24, %v3779_v22  ;;  %v3363_v26 = vpop.f32.mrf.mxu0 }
 0x74f   : > { %v3364_v27 = vadd.f32 %v3363_v26, %v7480_v40  ;;  %3828 = vmatmul.f32.gmra.mxu2 %v5346_v28 }
 0x750   : > { %4190 = vst [vmem:[%s6162_s15 + $0x118] sm:$0xff] %v3988_v25  ;;  %v5366_v25 = vld [vmem:[%s5975_s12 + $0x3d0] sm:$0xff] }
 0x751   : > { %v3572_v29 = vpop.f32.mrf.mxu1  ;;  %3410 = vmatmul.f32.gmra.mxu0 %v5347_v30  ;;  %4037 = vmatmul.f32.gmra.mxu3 %v5348_v33  ;;  %v5369_v33 = vld [vmem:[%s5975_s12 + $0x3c8] sm:$0xff] }
 0x752   : > { %v3573_v31 = vadd.f32 %v3572_v29, %v3364_v27  ;;  %v3781_v21 = vpop.f32.mrf.mxu2  ;;  %v5367_v27 = vld [vmem:[%s5975_s12 + $0x3c0] sm:$0xff]  ;;  %v5368_v29 = vld [vmem:[%s5975_s12 + $0x3d8] sm:$0xff] }
 0x754   : > { %v3782_v34 = vadd.f32 %v3781_v21, %v3573_v31  ;;  %3619 = vmatmul.f32.gmra.mxu1 %v5349_v35  ;;  %v3990_v36 = vpop.f32.mrf.mxu3 }
 0x756   : > { %v3991_v37 = vadd.f32 %v3990_v36, %v3782_v34  ;;  %v3366_v38 = vpop.f32.mrf.mxu0 }
 0x757   : > { %v3367_v39 = vadd.f32 %v3366_v38, %v7480_v40  ;;  %3831 = vmatmul.f32.gmra.mxu2 %v5350_v41 }
 0x758   : > { %4194 = vst [vmem:[%s6162_s15 + $0x138] sm:$0xff] %v3991_v37  ;;  %v5370_v37 = vld [vmem:[%s5975_s12 + $0x3f0] sm:$0xff] }
 0x759   : > { %v3575_v42 = vpop.f32.mrf.mxu1  ;;  %3413 = vmatmul.f32.gmra.mxu0 %v5351_v46  ;;  %4040 = vmatmul.f32.gmra.mxu3 %v5352_v44  ;;  %v5373_v44 = vld [vmem:[%s5975_s12 + $0x3e8] sm:$0xff] }
 0x75a   : > { %v3576_v43 = vadd.f32 %v3575_v42, %v3367_v39  ;;  %v3784_v45 = vpop.f32.mrf.mxu2  ;;  %v5371_v39 = vld [vmem:[%s5975_s12 + $0x3e0] sm:$0xff]  ;;  %v5372_v42 = vld [vmem:[%s5975_s12 + $0x3f8] sm:$0xff] }
 0x75c   : > { %v3785_v47 = vadd.f32 %v3784_v45, %v3576_v43  ;;  %3622 = vmatmul.f32.gmra.mxu1 %v5353_v32  ;;  %v3993_v48 = vpop.f32.mrf.mxu3 }
 0x75e   : > { %v3994_v49 = vadd.f32 %v3993_v48, %v3785_v47  ;;  %v3369_v50 = vpop.f32.mrf.mxu0 }
 0x75f   : > { %v3370_v51 = vadd.f32 %v3369_v50, %v7480_v40  ;;  %3834 = vmatmul.f32.gmra.mxu2 %v5354_v52 }
 0x760   : > { %4198 = vst [vmem:[%s6162_s15 + $0x158] sm:$0xff] %v3994_v49  ;;  %v5374_v49 = vld [vmem:[%s5975_s12 + $0x410] sm:$0xff] }
 0x761   : > { %v3578_v53 = vpop.f32.mrf.mxu1  ;;  %3416 = vmatmul.f32.gmra.mxu0 %v5355_v54  ;;  %4043 = vmatmul.f32.gmra.mxu3 %v5356_v56  ;;  %v5377_v56 = vld [vmem:[%s5975_s12 + $0x408] sm:$0xff] }
 0x762   : > { %v3579_v55 = vadd.f32 %v3578_v53, %v3370_v51  ;;  %v3787_v57 = vpop.f32.mrf.mxu2  ;;  %v5375_v51 = vld [vmem:[%s5975_s12 + $0x400] sm:$0xff]  ;;  %v5376_v53 = vld [vmem:[%s5975_s12 + $0x418] sm:$0xff] }
 0x764   : > { %v3788_v58 = vadd.f32 %v3787_v57, %v3579_v55  ;;  %3625 = vmatmul.f32.gmra.mxu1 %v5357_v59  ;;  %v3996_v60 = vpop.f32.mrf.mxu3 }
 0x766   : > { %v3997_v61 = vadd.f32 %v3996_v60, %v3788_v58  ;;  %v3372_v62 = vpop.f32.mrf.mxu0 }
 0x767   : > { %v3373_v63 = vadd.f32 %v3372_v62, %v7480_v40  ;;  %3837 = vmatmul.f32.gmra.mxu2 %v5358_v0 }
 0x768   : > { %4202 = vst [vmem:[%s6162_s15 + $0x178] sm:$0xff] %v3997_v61  ;;  %v5378_v61 = vld [vmem:[%s5975_s12 + $0x430] sm:$0xff] }
 0x769   : > { %v3581_v1 = vpop.f32.mrf.mxu1  ;;  %3419 = vmatmul.f32.gmra.mxu0 %v5359_v2  ;;  %4046 = vmatmul.f32.gmra.mxu3 %v5360_v4  ;;  %v5381_v4 = vld [vmem:[%s5975_s12 + $0x428] sm:$0xff] }
 0x76a   : > { %v3582_v3 = vadd.f32 %v3581_v1, %v3373_v63  ;;  %v3790_v5 = vpop.f32.mrf.mxu2  ;;  %v5379_v63 = vld [vmem:[%s5975_s12 + $0x420] sm:$0xff]  ;;  %v5380_v1 = vld [vmem:[%s5975_s12 + $0x438] sm:$0xff] }
 0x76c   : > { %v3791_v6 = vadd.f32 %v3790_v5, %v3582_v3  ;;  %3628 = vmatmul.f32.gmra.mxu1 %v5361_v7  ;;  %v3999_v8 = vpop.f32.mrf.mxu3 }
 0x76e   : > { %v4000_v9 = vadd.f32 %v3999_v8, %v3791_v6  ;;  %v3375_v10 = vpop.f32.mrf.mxu0 }
 0x76f   : > { %v3376_v11 = vadd.f32 %v3375_v10, %v7480_v40  ;;  %3840 = vmatmul.f32.gmra.mxu2 %v5362_v12 }
 0x770   : > { %4206 = vst [vmem:[%s6162_s15 + $0x198] sm:$0xff] %v4000_v9  ;;  %v5382_v9 = vld [vmem:[%s5975_s12 + $0x450] sm:$0xff] }
 0x771   : > { %v3584_v13 = vpop.f32.mrf.mxu1  ;;  %3422 = vmatmul.f32.gmra.mxu0 %v5363_v14  ;;  %4049 = vmatmul.f32.gmra.mxu3 %v5364_v16  ;;  %v5385_v16 = vld [vmem:[%s5975_s12 + $0x448] sm:$0xff] }
 0x772   : > { %v3585_v15 = vadd.f32 %v3584_v13, %v3376_v11  ;;  %v3793_v17 = vpop.f32.mrf.mxu2  ;;  %v5383_v11 = vld [vmem:[%s5975_s12 + $0x440] sm:$0xff]  ;;  %v5384_v13 = vld [vmem:[%s5975_s12 + $0x458] sm:$0xff] }
 0x774   : > { %v3794_v18 = vadd.f32 %v3793_v17, %v3585_v15  ;;  %3631 = vmatmul.f32.gmra.mxu1 %v5365_v19  ;;  %v4002_v20 = vpop.f32.mrf.mxu3 }
 0x776   : > { %v4003_v22 = vadd.f32 %v4002_v20, %v3794_v18  ;;  %v3378_v23 = vpop.f32.mrf.mxu0 }
 0x777   : > { %v3379_v24 = vadd.f32 %v3378_v23, %v7480_v40  ;;  %3843 = vmatmul.f32.gmra.mxu2 %v5366_v25 }
 0x778   : > { %4210 = vst [vmem:[%s6162_s15 + $0x1b8] sm:$0xff] %v4003_v22  ;;  %v5386_v22 = vld [vmem:[%s5975_s12 + $0x470] sm:$0xff] }
 0x779   : > { %v3587_v26 = vpop.f32.mrf.mxu1  ;;  %3425 = vmatmul.f32.gmra.mxu0 %v5367_v27  ;;  %4052 = vmatmul.f32.gmra.mxu3 %v5368_v29  ;;  %v5389_v29 = vld [vmem:[%s5975_s12 + $0x468] sm:$0xff] }
 0x77a   : > { %v3588_v28 = vadd.f32 %v3587_v26, %v3379_v24  ;;  %v3796_v30 = vpop.f32.mrf.mxu2  ;;  %v5387_v24 = vld [vmem:[%s5975_s12 + $0x460] sm:$0xff]  ;;  %v5388_v26 = vld [vmem:[%s5975_s12 + $0x478] sm:$0xff] }
 0x77c   : > { %v3797_v31 = vadd.f32 %v3796_v30, %v3588_v28  ;;  %3634 = vmatmul.f32.gmra.mxu1 %v5369_v33  ;;  %v4005_v21 = vpop.f32.mrf.mxu3 }
 0x77e   : > { %v4006_v34 = vadd.f32 %v4005_v21, %v3797_v31  ;;  %v3381_v35 = vpop.f32.mrf.mxu0 }
 0x77f   : > { %v3382_v36 = vadd.f32 %v3381_v35, %v7480_v40  ;;  %3846 = vmatmul.f32.gmra.mxu2 %v5370_v37 }
 0x780   : > { %4214 = vst [vmem:[%s6162_s15 + $0x1d8] sm:$0xff] %v4006_v34  ;;  %v5390_v34 = vld [vmem:[%s5975_s12 + $0x490] sm:$0xff] }
 0x781   : > { %v3590_v38 = vpop.f32.mrf.mxu1  ;;  %3428 = vmatmul.f32.gmra.mxu0 %v5371_v39  ;;  %4055 = vmatmul.f32.gmra.mxu3 %v5372_v42  ;;  %v5393_v42 = vld [vmem:[%s5975_s12 + $0x488] sm:$0xff] }
 0x782   : > { %v3591_v41 = vadd.f32 %v3590_v38, %v3382_v36  ;;  %v3799_v46 = vpop.f32.mrf.mxu2  ;;  %v5391_v36 = vld [vmem:[%s5975_s12 + $0x480] sm:$0xff]  ;;  %v5392_v38 = vld [vmem:[%s5975_s12 + $0x498] sm:$0xff] }
 0x784   : > { %v3800_v43 = vadd.f32 %v3799_v46, %v3591_v41  ;;  %3637 = vmatmul.f32.gmra.mxu1 %v5373_v44  ;;  %v4008_v45 = vpop.f32.mrf.mxu3 }
 0x786   : > { %v4009_v47 = vadd.f32 %v4008_v45, %v3800_v43  ;;  %v3384_v32 = vpop.f32.mrf.mxu0 }
 0x787   : > { %v3385_v48 = vadd.f32 %v3384_v32, %v7480_v40  ;;  %3849 = vmatmul.f32.gmra.mxu2 %v5374_v49 }
 0x788   : > { %4218 = vst [vmem:[%s6162_s15 + $0x1f8] sm:$0xff] %v4009_v47  ;;  %v5394_v47 = vld [vmem:[%s5975_s12 + $0x4b0] sm:$0xff] }
 0x789   : > { %v3593_v50 = vpop.f32.mrf.mxu1  ;;  %3431 = vmatmul.f32.gmra.mxu0 %v5375_v51  ;;  %4058 = vmatmul.f32.gmra.mxu3 %v5376_v53  ;;  %v5397_v53 = vld [vmem:[%s5975_s12 + $0x4a8] sm:$0xff] }
 0x78a   : > { %v3594_v52 = vadd.f32 %v3593_v50, %v3385_v48  ;;  %v3802_v54 = vpop.f32.mrf.mxu2  ;;  %v5395_v48 = vld [vmem:[%s5975_s12 + $0x4a0] sm:$0xff]  ;;  %v5396_v50 = vld [vmem:[%s5975_s12 + $0x4b8] sm:$0xff] }
 0x78c   : > { %v3803_v55 = vadd.f32 %v3802_v54, %v3594_v52  ;;  %3640 = vmatmul.f32.gmra.mxu1 %v5377_v56  ;;  %v4011_v57 = vpop.f32.mrf.mxu3 }
 0x78e   : > { %v4012_v58 = vadd.f32 %v4011_v57, %v3803_v55  ;;  %v3387_v59 = vpop.f32.mrf.mxu0 }
 0x78f   : > { %v3388_v60 = vadd.f32 %v3387_v59, %v7480_v40  ;;  %3852 = vmatmul.f32.gmra.mxu2 %v5378_v61 }
 0x790   : > { %4222 = vst [vmem:[%s6162_s15 + $0x218] sm:$0xff] %v4012_v58  ;;  %v5398_v58 = vld [vmem:[%s5975_s12 + $0x4d0] sm:$0xff] }
 0x791   : > { %v3596_v62 = vpop.f32.mrf.mxu1  ;;  %3434 = vmatmul.f32.gmra.mxu0 %v5379_v63  ;;  %4061 = vmatmul.f32.gmra.mxu3 %v5380_v1  ;;  %v5401_v1 = vld [vmem:[%s5975_s12 + $0x4c8] sm:$0xff] }
 0x792   : > { %v3597_v0 = vadd.f32 %v3596_v62, %v3388_v60  ;;  %v3805_v2 = vpop.f32.mrf.mxu2  ;;  %v5399_v60 = vld [vmem:[%s5975_s12 + $0x4c0] sm:$0xff]  ;;  %v5400_v62 = vld [vmem:[%s5975_s12 + $0x4d8] sm:$0xff] }
 0x794   : > { %v3806_v3 = vadd.f32 %v3805_v2, %v3597_v0  ;;  %3643 = vmatmul.f32.gmra.mxu1 %v5381_v4  ;;  %v4014_v5 = vpop.f32.mrf.mxu3 }
 0x796   : > { %v4015_v6 = vadd.f32 %v4014_v5, %v3806_v3  ;;  %v3390_v7 = vpop.f32.mrf.mxu0 }
 0x797   : > { %v3391_v8 = vadd.f32 %v3390_v7, %v7480_v40  ;;  %3855 = vmatmul.f32.gmra.mxu2 %v5382_v9 }
 0x798   : > { %4226 = vst [vmem:[%s6162_s15 + $0x238] sm:$0xff] %v4015_v6  ;;  %v5402_v6 = vld [vmem:[%s5975_s12 + $0x4f0] sm:$0xff] }
 0x799   : > { %v3599_v10 = vpop.f32.mrf.mxu1  ;;  %3437 = vmatmul.f32.gmra.mxu0 %v5383_v11  ;;  %4064 = vmatmul.f32.gmra.mxu3 %v5384_v13  ;;  %v5405_v13 = vld [vmem:[%s5975_s12 + $0x4e8] sm:$0xff] }
 0x79a   : > { %v3600_v12 = vadd.f32 %v3599_v10, %v3391_v8  ;;  %v3808_v14 = vpop.f32.mrf.mxu2  ;;  %v5403_v8 = vld [vmem:[%s5975_s12 + $0x4e0] sm:$0xff]  ;;  %v5404_v10 = vld [vmem:[%s5975_s12 + $0x4f8] sm:$0xff] }
 0x79c   : > { %v3809_v15 = vadd.f32 %v3808_v14, %v3600_v12  ;;  %3646 = vmatmul.f32.gmra.mxu1 %v5385_v16  ;;  %v4017_v17 = vpop.f32.mrf.mxu3 }
 0x79e   : > { %v4018_v18 = vadd.f32 %v4017_v17, %v3809_v15  ;;  %v3393_v19 = vpop.f32.mrf.mxu0 }
 0x79f   : > { %v3394_v20 = vadd.f32 %v3393_v19, %v7480_v40  ;;  %3858 = vmatmul.f32.gmra.mxu2 %v5386_v22 }
 0x7a0   : > { %4230 = vst [vmem:[%s6162_s15 + $0x258] sm:$0xff] %v4018_v18  ;;  %v5406_v18 = vld [vmem:[%s5975_s12 + $0x510] sm:$0xff] }
 0x7a1   : > { %v3602_v23 = vpop.f32.mrf.mxu1  ;;  %3440 = vmatmul.f32.gmra.mxu0 %v5387_v24  ;;  %4067 = vmatmul.f32.gmra.mxu3 %v5388_v26  ;;  %v5409_v26 = vld [vmem:[%s5975_s12 + $0x508] sm:$0xff] }
 0x7a2   : > { %v3603_v25 = vadd.f32 %v3602_v23, %v3394_v20  ;;  %v3811_v27 = vpop.f32.mrf.mxu2  ;;  %v5407_v20 = vld [vmem:[%s5975_s12 + $0x500] sm:$0xff]  ;;  %v5408_v23 = vld [vmem:[%s5975_s12 + $0x518] sm:$0xff] }
 0x7a4   : > { %v3812_v28 = vadd.f32 %v3811_v27, %v3603_v25  ;;  %3649 = vmatmul.f32.gmra.mxu1 %v5389_v29  ;;  %v4020_v30 = vpop.f32.mrf.mxu3 }
 0x7a6   : > { %v4021_v31 = vadd.f32 %v4020_v30, %v3812_v28  ;;  %v3396_v33 = vpop.f32.mrf.mxu0 }
 0x7a7   : > { %v3397_v21 = vadd.f32 %v3396_v33, %v7480_v40  ;;  %3861 = vmatmul.f32.gmra.mxu2 %v5390_v34 }
 0x7a8   : > { %4234 = vst [vmem:[%s6162_s15 + $0x278] sm:$0xff] %v4021_v31  ;;  %v5410_v31 = vld [vmem:[%s5975_s12 + $0x530] sm:$0xff] }
 0x7a9   : > { %v3605_v35 = vpop.f32.mrf.mxu1  ;;  %3443 = vmatmul.f32.gmra.mxu0 %v5391_v36  ;;  %4070 = vmatmul.f32.gmra.mxu3 %v5392_v38  ;;  %v5413_v38 = vld [vmem:[%s5975_s12 + $0x528] sm:$0xff] }
 0x7aa   : > { %v3606_v37 = vadd.f32 %v3605_v35, %v3397_v21  ;;  %v3814_v39 = vpop.f32.mrf.mxu2  ;;  %v5411_v21 = vld [vmem:[%s5975_s12 + $0x520] sm:$0xff]  ;;  %v5412_v35 = vld [vmem:[%s5975_s12 + $0x538] sm:$0xff] }
 0x7ac   : > { %v3815_v41 = vadd.f32 %v3814_v39, %v3606_v37  ;;  %3652 = vmatmul.f32.gmra.mxu1 %v5393_v42  ;;  %v4023_v46 = vpop.f32.mrf.mxu3 }
 0x7ae   : > { %v4024_v43 = vadd.f32 %v4023_v46, %v3815_v41  ;;  %v3399_v44 = vpop.f32.mrf.mxu0 }
 0x7af   : > { %v3400_v45 = vadd.f32 %v3399_v44, %v7480_v40  ;;  %3864 = vmatmul.f32.gmra.mxu2 %v5394_v47 }
 0x7b0   : > { %4238 = vst [vmem:[%s6162_s15 + $0x298] sm:$0xff] %v4024_v43  ;;  %v5414_v43 = vld [vmem:[%s5975_s12 + $0x550] sm:$0xff] }
 0x7b1   : > { %v3608_v32 = vpop.f32.mrf.mxu1  ;;  %3446 = vmatmul.f32.gmra.mxu0 %v5395_v48  ;;  %4073 = vmatmul.f32.gmra.mxu3 %v5396_v50  ;;  %v5417_v50 = vld [vmem:[%s5975_s12 + $0x548] sm:$0xff] }
 0x7b2   : > { %v3609_v49 = vadd.f32 %v3608_v32, %v3400_v45  ;;  %v3817_v51 = vpop.f32.mrf.mxu2  ;;  %v5415_v45 = vld [vmem:[%s5975_s12 + $0x540] sm:$0xff]  ;;  %v5416_v32 = vld [vmem:[%s5975_s12 + $0x558] sm:$0xff] }
 0x7b4   : > { %v3818_v52 = vadd.f32 %v3817_v51, %v3609_v49  ;;  %3655 = vmatmul.f32.gmra.mxu1 %v5397_v53  ;;  %v4026_v54 = vpop.f32.mrf.mxu3 }
 0x7b6   : > { %v4027_v55 = vadd.f32 %v4026_v54, %v3818_v52  ;;  %v3402_v56 = vpop.f32.mrf.mxu0 }
 0x7b7   : > { %v3403_v57 = vadd.f32 %v3402_v56, %v7480_v40  ;;  %3867 = vmatmul.f32.gmra.mxu2 %v5398_v58 }
 0x7b8   : > { %4242 = vst [vmem:[%s6162_s15 + $0x2b8] sm:$0xff] %v4027_v55  ;;  %v5418_v55 = vld [vmem:[%s5975_s12 + $0x570] sm:$0xff] }
 0x7b9   : > { %v3611_v59 = vpop.f32.mrf.mxu1  ;;  %3449 = vmatmul.f32.gmra.mxu0 %v5399_v60  ;;  %4076 = vmatmul.f32.gmra.mxu3 %v5400_v62  ;;  %v5421_v62 = vld [vmem:[%s5975_s12 + $0x568] sm:$0xff] }
 0x7ba   : > { %v3612_v61 = vadd.f32 %v3611_v59, %v3403_v57  ;;  %v3820_v63 = vpop.f32.mrf.mxu2  ;;  %v5419_v57 = vld [vmem:[%s5975_s12 + $0x560] sm:$0xff]  ;;  %v5420_v59 = vld [vmem:[%s5975_s12 + $0x578] sm:$0xff] }
 0x7bc   : > { %v3821_v0 = vadd.f32 %v3820_v63, %v3612_v61  ;;  %3658 = vmatmul.f32.gmra.mxu1 %v5401_v1  ;;  %v4029_v2 = vpop.f32.mrf.mxu3 }
 0x7be   : > { %v4030_v3 = vadd.f32 %v4029_v2, %v3821_v0  ;;  %v3405_v4 = vpop.f32.mrf.mxu0 }
 0x7bf   : > { %v3406_v5 = vadd.f32 %v3405_v4, %v7480_v40  ;;  %3870 = vmatmul.f32.gmra.mxu2 %v5402_v6 }
 0x7c0   : > { %4246 = vst [vmem:[%s6162_s15 + $0x2d8] sm:$0xff] %v4030_v3  ;;  %v5422_v3 = vld [vmem:[%s5975_s12 + $0x590] sm:$0xff] }
 0x7c1   : > { %v3614_v7 = vpop.f32.mrf.mxu1  ;;  %3452 = vmatmul.f32.gmra.mxu0 %v5403_v8  ;;  %4079 = vmatmul.f32.gmra.mxu3 %v5404_v10  ;;  %v5425_v10 = vld [vmem:[%s5975_s12 + $0x588] sm:$0xff] }
 0x7c2   : > { %v3615_v9 = vadd.f32 %v3614_v7, %v3406_v5  ;;  %v3823_v11 = vpop.f32.mrf.mxu2  ;;  %v5423_v5 = vld [vmem:[%s5975_s12 + $0x580] sm:$0xff]  ;;  %v5424_v7 = vld [vmem:[%s5975_s12 + $0x598] sm:$0xff] }
 0x7c4   : > { %v3824_v12 = vadd.f32 %v3823_v11, %v3615_v9  ;;  %3661 = vmatmul.f32.gmra.mxu1 %v5405_v13  ;;  %v4032_v14 = vpop.f32.mrf.mxu3 }
 0x7c6   : > { %v4033_v15 = vadd.f32 %v4032_v14, %v3824_v12  ;;  %v3408_v16 = vpop.f32.mrf.mxu0 }
 0x7c7   : > { %v3409_v17 = vadd.f32 %v3408_v16, %v7480_v40  ;;  %3873 = vmatmul.f32.gmra.mxu2 %v5406_v18 }
 0x7c8   : > { %4250 = vst [vmem:[%s6162_s15 + $0x2f8] sm:$0xff] %v4033_v15  ;;  %v5426_v15 = vld [vmem:[%s5975_s12 + $0x5b0] sm:$0xff] }
 0x7c9   : > { %v3617_v19 = vpop.f32.mrf.mxu1  ;;  %3455 = vmatmul.f32.gmra.mxu0 %v5407_v20  ;;  %4082 = vmatmul.f32.gmra.mxu3 %v5408_v23  ;;  %v5429_v23 = vld [vmem:[%s5975_s12 + $0x5a8] sm:$0xff] }
 0x7ca   : > { %v3618_v22 = vadd.f32 %v3617_v19, %v3409_v17  ;;  %v3826_v24 = vpop.f32.mrf.mxu2  ;;  %v5427_v17 = vld [vmem:[%s5975_s12 + $0x5a0] sm:$0xff]  ;;  %v5428_v19 = vld [vmem:[%s5975_s12 + $0x5b8] sm:$0xff] }
 0x7cc   : > { %v3827_v25 = vadd.f32 %v3826_v24, %v3618_v22  ;;  %3664 = vmatmul.f32.gmra.mxu1 %v5409_v26  ;;  %v4035_v27 = vpop.f32.mrf.mxu3 }
 0x7ce   : > { %v4036_v28 = vadd.f32 %v4035_v27, %v3827_v25  ;;  %v3411_v29 = vpop.f32.mrf.mxu0 }
 0x7cf   : > { %v3412_v30 = vadd.f32 %v3411_v29, %v7480_v40  ;;  %3876 = vmatmul.f32.gmra.mxu2 %v5410_v31 }
 0x7d0   : > { %4254 = vst [vmem:[%s6162_s15 + $0x318] sm:$0xff] %v4036_v28  ;;  %v5430_v28 = vld [vmem:[%s5975_s12 + $0x5d0] sm:$0xff] }
 0x7d1   : > { %v3620_v33 = vpop.f32.mrf.mxu1  ;;  %3458 = vmatmul.f32.gmra.mxu0 %v5411_v21  ;;  %4085 = vmatmul.f32.gmra.mxu3 %v5412_v35  ;;  %v5433_v35 = vld [vmem:[%s5975_s12 + $0x5c8] sm:$0xff] }
 0x7d2   : > { %v3621_v34 = vadd.f32 %v3620_v33, %v3412_v30  ;;  %v3829_v36 = vpop.f32.mrf.mxu2  ;;  %v5431_v30 = vld [vmem:[%s5975_s12 + $0x5c0] sm:$0xff]  ;;  %v5432_v33 = vld [vmem:[%s5975_s12 + $0x5d8] sm:$0xff] }
 0x7d4   : > { %v3830_v37 = vadd.f32 %v3829_v36, %v3621_v34  ;;  %3667 = vmatmul.f32.gmra.mxu1 %v5413_v38  ;;  %v4038_v39 = vpop.f32.mrf.mxu3 }
 0x7d6   : > { %v4039_v41 = vadd.f32 %v4038_v39, %v3830_v37  ;;  %v3414_v42 = vpop.f32.mrf.mxu0 }
 0x7d7   : > { %v3415_v46 = vadd.f32 %v3414_v42, %v7480_v40  ;;  %3879 = vmatmul.f32.gmra.mxu2 %v5414_v43 }
 0x7d8   : > { %4258 = vst [vmem:[%s6162_s15 + $0x338] sm:$0xff] %v4039_v41  ;;  %v5434_v41 = vld [vmem:[%s5975_s12 + $0x5f0] sm:$0xff] }
 0x7d9   : > { %v3623_v44 = vpop.f32.mrf.mxu1  ;;  %3461 = vmatmul.f32.gmra.mxu0 %v5415_v45  ;;  %4088 = vmatmul.f32.gmra.mxu3 %v5416_v32  ;;  %v5437_v32 = vld [vmem:[%s5975_s12 + $0x5e8] sm:$0xff] }
 0x7da   : > { %v3624_v47 = vadd.f32 %v3623_v44, %v3415_v46  ;;  %v3832_v48 = vpop.f32.mrf.mxu2  ;;  %v5435_v46 = vld [vmem:[%s5975_s12 + $0x5e0] sm:$0xff]  ;;  %v5436_v44 = vld [vmem:[%s5975_s12 + $0x5f8] sm:$0xff] }
 0x7dc   : > { %v3833_v49 = vadd.f32 %v3832_v48, %v3624_v47  ;;  %3670 = vmatmul.f32.gmra.mxu1 %v5417_v50  ;;  %v4041_v51 = vpop.f32.mrf.mxu3 }
 0x7de   : > { %v4042_v52 = vadd.f32 %v4041_v51, %v3833_v49  ;;  %v3417_v53 = vpop.f32.mrf.mxu0 }
 0x7df   : > { %v3418_v54 = vadd.f32 %v3417_v53, %v7480_v40  ;;  %3882 = vmatmul.f32.gmra.mxu2 %v5418_v55 }
 0x7e0   : > { %4262 = vst [vmem:[%s6162_s15 + $0x358] sm:$0xff] %v4042_v52  ;;  %v5438_v52 = vld [vmem:[%s5975_s12 + $0x610] sm:$0xff] }
 0x7e1   : > { %v3626_v56 = vpop.f32.mrf.mxu1  ;;  %3464 = vmatmul.f32.gmra.mxu0 %v5419_v57  ;;  %4091 = vmatmul.f32.gmra.mxu3 %v5420_v59  ;;  %v5441_v59 = vld [vmem:[%s5975_s12 + $0x608] sm:$0xff] }
 0x7e2   : > { %v3627_v58 = vadd.f32 %v3626_v56, %v3418_v54  ;;  %v3835_v60 = vpop.f32.mrf.mxu2  ;;  %v5439_v54 = vld [vmem:[%s5975_s12 + $0x600] sm:$0xff]  ;;  %v5440_v56 = vld [vmem:[%s5975_s12 + $0x618] sm:$0xff] }
 0x7e4   : > { %v3836_v61 = vadd.f32 %v3835_v60, %v3627_v58  ;;  %3673 = vmatmul.f32.gmra.mxu1 %v5421_v62  ;;  %v4044_v63 = vpop.f32.mrf.mxu3 }
 0x7e6   : > { %v4045_v0 = vadd.f32 %v4044_v63, %v3836_v61  ;;  %v3420_v1 = vpop.f32.mrf.mxu0 }
 0x7e7   : > { %v3421_v2 = vadd.f32 %v3420_v1, %v7480_v40  ;;  %3885 = vmatmul.f32.gmra.mxu2 %v5422_v3 }
 0x7e8   : > { %4266 = vst [vmem:[%s6162_s15 + $0x378] sm:$0xff] %v4045_v0  ;;  %v5442_v0 = vld [vmem:[%s5975_s12 + $0x630] sm:$0xff] }
 0x7e9   : > { %v3629_v4 = vpop.f32.mrf.mxu1  ;;  %3467 = vmatmul.f32.gmra.mxu0 %v5423_v5  ;;  %4094 = vmatmul.f32.gmra.mxu3 %v5424_v7  ;;  %v5445_v7 = vld [vmem:[%s5975_s12 + $0x628] sm:$0xff] }
 0x7ea   : > { %v3630_v6 = vadd.f32 %v3629_v4, %v3421_v2  ;;  %v3838_v8 = vpop.f32.mrf.mxu2  ;;  %v5443_v2 = vld [vmem:[%s5975_s12 + $0x620] sm:$0xff]  ;;  %v5444_v4 = vld [vmem:[%s5975_s12 + $0x638] sm:$0xff] }
 0x7ec   : > { %v3839_v9 = vadd.f32 %v3838_v8, %v3630_v6  ;;  %3676 = vmatmul.f32.gmra.mxu1 %v5425_v10  ;;  %v4047_v11 = vpop.f32.mrf.mxu3 }
 0x7ee   : > { %v4048_v12 = vadd.f32 %v4047_v11, %v3839_v9  ;;  %v3423_v13 = vpop.f32.mrf.mxu0 }
 0x7ef   : > { %v3424_v14 = vadd.f32 %v3423_v13, %v7480_v40  ;;  %3888 = vmatmul.f32.gmra.mxu2 %v5426_v15 }
 0x7f0   : > { %4270 = vst [vmem:[%s6162_s15 + $0x398] sm:$0xff] %v4048_v12  ;;  %v5446_v12 = vld [vmem:[%s5975_s12 + $0x650] sm:$0xff] }
 0x7f1   : > { %v3632_v16 = vpop.f32.mrf.mxu1  ;;  %3470 = vmatmul.f32.gmra.mxu0 %v5427_v17  ;;  %4097 = vmatmul.f32.gmra.mxu3 %v5428_v19  ;;  %v5449_v19 = vld [vmem:[%s5975_s12 + $0x648] sm:$0xff] }
 0x7f2   : > { %v3633_v18 = vadd.f32 %v3632_v16, %v3424_v14  ;;  %v3841_v20 = vpop.f32.mrf.mxu2  ;;  %v5447_v14 = vld [vmem:[%s5975_s12 + $0x640] sm:$0xff]  ;;  %v5448_v16 = vld [vmem:[%s5975_s12 + $0x658] sm:$0xff] }
 0x7f4   : > { %v3842_v22 = vadd.f32 %v3841_v20, %v3633_v18  ;;  %3679 = vmatmul.f32.gmra.mxu1 %v5429_v23  ;;  %v4050_v24 = vpop.f32.mrf.mxu3 }
 0x7f6   : > { %v4051_v25 = vadd.f32 %v4050_v24, %v3842_v22  ;;  %v3426_v26 = vpop.f32.mrf.mxu0 }
 0x7f7   : > { %v3427_v27 = vadd.f32 %v3426_v26, %v7480_v40  ;;  %3891 = vmatmul.f32.gmra.mxu2 %v5430_v28 }
 0x7f8   : > { %4274 = vst [vmem:[%s6162_s15 + $0x3b8] sm:$0xff] %v4051_v25  ;;  %v5450_v25 = vld [vmem:[%s5975_s12 + $0x670] sm:$0xff] }
 0x7f9   : > { %v3635_v29 = vpop.f32.mrf.mxu1  ;;  %3473 = vmatmul.f32.gmra.mxu0 %v5431_v30  ;;  %4100 = vmatmul.f32.gmra.mxu3 %v5432_v33  ;;  %v5453_v33 = vld [vmem:[%s5975_s12 + $0x668] sm:$0xff] }
 0x7fa   : > { %v3636_v31 = vadd.f32 %v3635_v29, %v3427_v27  ;;  %v3844_v21 = vpop.f32.mrf.mxu2  ;;  %v5451_v27 = vld [vmem:[%s5975_s12 + $0x660] sm:$0xff]  ;;  %v5452_v29 = vld [vmem:[%s5975_s12 + $0x678] sm:$0xff] }
 0x7fc   : > { %v3845_v34 = vadd.f32 %v3844_v21, %v3636_v31  ;;  %3682 = vmatmul.f32.gmra.mxu1 %v5433_v35  ;;  %v4053_v36 = vpop.f32.mrf.mxu3 }
 0x7fe   : > { %v4054_v37 = vadd.f32 %v4053_v36, %v3845_v34  ;;  %v3429_v38 = vpop.f32.mrf.mxu0 }
 0x7ff   : > { %v3430_v39 = vadd.f32 %v3429_v38, %v7480_v40  ;;  %3894 = vmatmul.f32.gmra.mxu2 %v5434_v41 }
 0x800   : > { %4278 = vst [vmem:[%s6162_s15 + $0x3d8] sm:$0xff] %v4054_v37  ;;  %v5454_v37 = vld [vmem:[%s5975_s12 + $0x690] sm:$0xff] }
 0x801   : > { %v3638_v42 = vpop.f32.mrf.mxu1  ;;  %3476 = vmatmul.f32.gmra.mxu0 %v5435_v46  ;;  %4103 = vmatmul.f32.gmra.mxu3 %v5436_v44  ;;  %v5457_v44 = vld [vmem:[%s5975_s12 + $0x688] sm:$0xff] }
 0x802   : > { %v3639_v43 = vadd.f32 %v3638_v42, %v3430_v39  ;;  %v3847_v45 = vpop.f32.mrf.mxu2  ;;  %v5455_v39 = vld [vmem:[%s5975_s12 + $0x680] sm:$0xff]  ;;  %v5456_v42 = vld [vmem:[%s5975_s12 + $0x698] sm:$0xff] }
 0x804   : > { %v3848_v47 = vadd.f32 %v3847_v45, %v3639_v43  ;;  %3685 = vmatmul.f32.gmra.mxu1 %v5437_v32  ;;  %v4056_v48 = vpop.f32.mrf.mxu3 }
 0x806   : > { %v4057_v49 = vadd.f32 %v4056_v48, %v3848_v47  ;;  %v3432_v50 = vpop.f32.mrf.mxu0 }
 0x807   : > { %v3433_v51 = vadd.f32 %v3432_v50, %v7480_v40  ;;  %3897 = vmatmul.f32.gmra.mxu2 %v5438_v52 }
 0x808   : > { %4282 = vst [vmem:[%s6162_s15 + $0x3f8] sm:$0xff] %v4057_v49  ;;  %v5458_v49 = vld [vmem:[%s5975_s12 + $0x6b0] sm:$0xff] }
 0x809   : > { %v3641_v53 = vpop.f32.mrf.mxu1  ;;  %3479 = vmatmul.f32.gmra.mxu0 %v5439_v54  ;;  %4106 = vmatmul.f32.gmra.mxu3 %v5440_v56  ;;  %v5461_v56 = vld [vmem:[%s5975_s12 + $0x6a8] sm:$0xff] }
 0x80a   : > { %v3642_v55 = vadd.f32 %v3641_v53, %v3433_v51  ;;  %v3850_v57 = vpop.f32.mrf.mxu2  ;;  %v5459_v51 = vld [vmem:[%s5975_s12 + $0x6a0] sm:$0xff]  ;;  %v5460_v53 = vld [vmem:[%s5975_s12 + $0x6b8] sm:$0xff] }
 0x80c   : > { %v3851_v58 = vadd.f32 %v3850_v57, %v3642_v55  ;;  %3688 = vmatmul.f32.gmra.mxu1 %v5441_v59  ;;  %v4059_v60 = vpop.f32.mrf.mxu3 }
 0x80e   : > { %v4060_v61 = vadd.f32 %v4059_v60, %v3851_v58  ;;  %v3435_v62 = vpop.f32.mrf.mxu0 }
 0x80f   : > { %v3436_v63 = vadd.f32 %v3435_v62, %v7480_v40  ;;  %3900 = vmatmul.f32.gmra.mxu2 %v5442_v0 }
 0x810   : > { %4286 = vst [vmem:[%s6162_s15 + $0x418] sm:$0xff] %v4060_v61  ;;  %v5462_v61 = vld [vmem:[%s5975_s12 + $0x6d0] sm:$0xff] }
 0x811   : > { %v3644_v1 = vpop.f32.mrf.mxu1  ;;  %3482 = vmatmul.f32.gmra.mxu0 %v5443_v2  ;;  %4109 = vmatmul.f32.gmra.mxu3 %v5444_v4  ;;  %v5465_v4 = vld [vmem:[%s5975_s12 + $0x6c8] sm:$0xff] }
 0x812   : > { %v3645_v3 = vadd.f32 %v3644_v1, %v3436_v63  ;;  %v3853_v5 = vpop.f32.mrf.mxu2  ;;  %v5463_v63 = vld [vmem:[%s5975_s12 + $0x6c0] sm:$0xff]  ;;  %v5464_v1 = vld [vmem:[%s5975_s12 + $0x6d8] sm:$0xff] }
 0x814   : > { %v3854_v6 = vadd.f32 %v3853_v5, %v3645_v3  ;;  %3691 = vmatmul.f32.gmra.mxu1 %v5445_v7  ;;  %v4062_v8 = vpop.f32.mrf.mxu3 }
 0x816   : > { %v4063_v9 = vadd.f32 %v4062_v8, %v3854_v6  ;;  %v3438_v10 = vpop.f32.mrf.mxu0 }
 0x817   : > { %v3439_v11 = vadd.f32 %v3438_v10, %v7480_v40  ;;  %3903 = vmatmul.f32.gmra.mxu2 %v5446_v12 }
 0x818   : > { %4290 = vst [vmem:[%s6162_s15 + $0x438] sm:$0xff] %v4063_v9  ;;  %v5466_v9 = vld [vmem:[%s5975_s12 + $0x6f0] sm:$0xff] }
 0x819   : > { %v3647_v13 = vpop.f32.mrf.mxu1  ;;  %3485 = vmatmul.f32.gmra.mxu0 %v5447_v14  ;;  %4112 = vmatmul.f32.gmra.mxu3 %v5448_v16  ;;  %v5469_v16 = vld [vmem:[%s5975_s12 + $0x6e8] sm:$0xff] }
 0x81a   : > { %v3648_v15 = vadd.f32 %v3647_v13, %v3439_v11  ;;  %v3856_v17 = vpop.f32.mrf.mxu2  ;;  %v5467_v11 = vld [vmem:[%s5975_s12 + $0x6e0] sm:$0xff]  ;;  %v5468_v13 = vld [vmem:[%s5975_s12 + $0x6f8] sm:$0xff] }
 0x81c   : > { %v3857_v18 = vadd.f32 %v3856_v17, %v3648_v15  ;;  %3694 = vmatmul.f32.gmra.mxu1 %v5449_v19  ;;  %v4065_v20 = vpop.f32.mrf.mxu3 }
 0x81e   : > { %v4066_v22 = vadd.f32 %v4065_v20, %v3857_v18  ;;  %v3441_v23 = vpop.f32.mrf.mxu0 }
 0x81f   : > { %v3442_v24 = vadd.f32 %v3441_v23, %v7480_v40  ;;  %3906 = vmatmul.f32.gmra.mxu2 %v5450_v25 }
 0x820   : > { %4294 = vst [vmem:[%s6162_s15 + $0x458] sm:$0xff] %v4066_v22  ;;  %v5470_v22 = vld [vmem:[%s5975_s12 + $0x710] sm:$0xff] }
 0x821   : > { %v3650_v26 = vpop.f32.mrf.mxu1  ;;  %3488 = vmatmul.f32.gmra.mxu0 %v5451_v27  ;;  %4115 = vmatmul.f32.gmra.mxu3 %v5452_v29  ;;  %v5473_v29 = vld [vmem:[%s5975_s12 + $0x708] sm:$0xff] }
 0x822   : > { %v3651_v28 = vadd.f32 %v3650_v26, %v3442_v24  ;;  %v3859_v30 = vpop.f32.mrf.mxu2  ;;  %v5471_v24 = vld [vmem:[%s5975_s12 + $0x700] sm:$0xff]  ;;  %v5472_v26 = vld [vmem:[%s5975_s12 + $0x718] sm:$0xff] }
 0x824   : > { %v3860_v31 = vadd.f32 %v3859_v30, %v3651_v28  ;;  %3697 = vmatmul.f32.gmra.mxu1 %v5453_v33  ;;  %v4068_v21 = vpop.f32.mrf.mxu3 }
 0x826   : > { %v4069_v34 = vadd.f32 %v4068_v21, %v3860_v31  ;;  %v3444_v35 = vpop.f32.mrf.mxu0 }
 0x827   : > { %v3445_v36 = vadd.f32 %v3444_v35, %v7480_v40  ;;  %3909 = vmatmul.f32.gmra.mxu2 %v5454_v37 }
 0x828   : > { %4298 = vst [vmem:[%s6162_s15 + $0x478] sm:$0xff] %v4069_v34  ;;  %v5474_v34 = vld [vmem:[%s5975_s12 + $0x730] sm:$0xff] }
 0x829   : > { %v3653_v38 = vpop.f32.mrf.mxu1  ;;  %3491 = vmatmul.f32.gmra.mxu0 %v5455_v39  ;;  %4118 = vmatmul.f32.gmra.mxu3 %v5456_v42  ;;  %v5477_v42 = vld [vmem:[%s5975_s12 + $0x728] sm:$0xff] }
 0x82a   : > { %v3654_v41 = vadd.f32 %v3653_v38, %v3445_v36  ;;  %v3862_v46 = vpop.f32.mrf.mxu2  ;;  %v5475_v36 = vld [vmem:[%s5975_s12 + $0x720] sm:$0xff]  ;;  %v5476_v38 = vld [vmem:[%s5975_s12 + $0x738] sm:$0xff] }
 0x82c   : > { %v3863_v43 = vadd.f32 %v3862_v46, %v3654_v41  ;;  %3700 = vmatmul.f32.gmra.mxu1 %v5457_v44  ;;  %v4071_v45 = vpop.f32.mrf.mxu3 }
 0x82e   : > { %v4072_v47 = vadd.f32 %v4071_v45, %v3863_v43  ;;  %v3447_v32 = vpop.f32.mrf.mxu0 }
 0x82f   : > { %v3448_v48 = vadd.f32 %v3447_v32, %v7480_v40  ;;  %3912 = vmatmul.f32.gmra.mxu2 %v5458_v49 }
 0x830   : > { %4302 = vst [vmem:[%s6162_s15 + $0x498] sm:$0xff] %v4072_v47  ;;  %v5478_v47 = vld [vmem:[%s5975_s12 + $0x750] sm:$0xff] }
 0x831   : > { %v3656_v50 = vpop.f32.mrf.mxu1  ;;  %3494 = vmatmul.f32.gmra.mxu0 %v5459_v51  ;;  %4121 = vmatmul.f32.gmra.mxu3 %v5460_v53  ;;  %v5481_v53 = vld [vmem:[%s5975_s12 + $0x748] sm:$0xff] }
 0x832   : > { %v3657_v52 = vadd.f32 %v3656_v50, %v3448_v48  ;;  %v3865_v54 = vpop.f32.mrf.mxu2  ;;  %v5479_v48 = vld [vmem:[%s5975_s12 + $0x740] sm:$0xff]  ;;  %v5480_v50 = vld [vmem:[%s5975_s12 + $0x758] sm:$0xff] }
 0x834   : > { %v3866_v55 = vadd.f32 %v3865_v54, %v3657_v52  ;;  %3703 = vmatmul.f32.gmra.mxu1 %v5461_v56  ;;  %v4074_v57 = vpop.f32.mrf.mxu3 }
 0x836   : > { %v4075_v58 = vadd.f32 %v4074_v57, %v3866_v55  ;;  %v3450_v59 = vpop.f32.mrf.mxu0 }
 0x837   : > { %v3451_v60 = vadd.f32 %v3450_v59, %v7480_v40  ;;  %3915 = vmatmul.f32.gmra.mxu2 %v5462_v61 }
 0x838   : > { %4306 = vst [vmem:[%s6162_s15 + $0x4b8] sm:$0xff] %v4075_v58  ;;  %v5482_v58 = vld [vmem:[%s5975_s12 + $0x770] sm:$0xff] }
 0x839   : > { %v3659_v62 = vpop.f32.mrf.mxu1  ;;  %3497 = vmatmul.f32.gmra.mxu0 %v5463_v63  ;;  %4124 = vmatmul.f32.gmra.mxu3 %v5464_v1  ;;  %v5485_v1 = vld [vmem:[%s5975_s12 + $0x768] sm:$0xff] }
 0x83a   : > { %v3660_v0 = vadd.f32 %v3659_v62, %v3451_v60  ;;  %v3868_v2 = vpop.f32.mrf.mxu2  ;;  %v5483_v60 = vld [vmem:[%s5975_s12 + $0x760] sm:$0xff]  ;;  %v5484_v62 = vld [vmem:[%s5975_s12 + $0x778] sm:$0xff] }
 0x83c   : > { %v3869_v3 = vadd.f32 %v3868_v2, %v3660_v0  ;;  %3706 = vmatmul.f32.gmra.mxu1 %v5465_v4  ;;  %v4077_v5 = vpop.f32.mrf.mxu3 }
 0x83e   : > { %v4078_v6 = vadd.f32 %v4077_v5, %v3869_v3  ;;  %v3453_v7 = vpop.f32.mrf.mxu0 }
 0x83f   : > { %v3454_v8 = vadd.f32 %v3453_v7, %v7480_v40  ;;  %3918 = vmatmul.f32.gmra.mxu2 %v5466_v9 }
 0x840   : > { %4310 = vst [vmem:[%s6162_s15 + $0x4d8] sm:$0xff] %v4078_v6  ;;  %v5486_v6 = vld [vmem:[%s5975_s12 + $0x790] sm:$0xff] }
 0x841   : > { %v3662_v10 = vpop.f32.mrf.mxu1  ;;  %3500 = vmatmul.f32.gmra.mxu0 %v5467_v11  ;;  %4127 = vmatmul.f32.gmra.mxu3 %v5468_v13  ;;  %v5489_v13 = vld [vmem:[%s5975_s12 + $0x788] sm:$0xff] }
 0x842   : > { %v3663_v12 = vadd.f32 %v3662_v10, %v3454_v8  ;;  %v3871_v14 = vpop.f32.mrf.mxu2  ;;  %v5487_v8 = vld [vmem:[%s5975_s12 + $0x780] sm:$0xff]  ;;  %v5488_v10 = vld [vmem:[%s5975_s12 + $0x798] sm:$0xff] }
 0x844   : > { %v3872_v15 = vadd.f32 %v3871_v14, %v3663_v12  ;;  %3709 = vmatmul.f32.gmra.mxu1 %v5469_v16  ;;  %v4080_v17 = vpop.f32.mrf.mxu3 }
 0x846   : > { %v4081_v18 = vadd.f32 %v4080_v17, %v3872_v15  ;;  %v3456_v19 = vpop.f32.mrf.mxu0 }
 0x847   : > { %v3457_v20 = vadd.f32 %v3456_v19, %v7480_v40  ;;  %3921 = vmatmul.f32.gmra.mxu2 %v5470_v22 }
 0x848   : > { %4314 = vst [vmem:[%s6162_s15 + $0x4f8] sm:$0xff] %v4081_v18  ;;  %v5490_v18 = vld [vmem:[%s5975_s12 + $0x7b0] sm:$0xff] }
 0x849   : > { %v3665_v23 = vpop.f32.mrf.mxu1  ;;  %3503 = vmatmul.f32.gmra.mxu0 %v5471_v24  ;;  %4130 = vmatmul.f32.gmra.mxu3 %v5472_v26  ;;  %v5493_v26 = vld [vmem:[%s5975_s12 + $0x7a8] sm:$0xff] }
 0x84a   : > { %v3666_v25 = vadd.f32 %v3665_v23, %v3457_v20  ;;  %v3874_v27 = vpop.f32.mrf.mxu2  ;;  %v5491_v20 = vld [vmem:[%s5975_s12 + $0x7a0] sm:$0xff]  ;;  %v5492_v23 = vld [vmem:[%s5975_s12 + $0x7b8] sm:$0xff] }
 0x84c   : > { %v3875_v28 = vadd.f32 %v3874_v27, %v3666_v25  ;;  %3712 = vmatmul.f32.gmra.mxu1 %v5473_v29  ;;  %v4083_v30 = vpop.f32.mrf.mxu3 }
 0x84e   : > { %v4084_v31 = vadd.f32 %v4083_v30, %v3875_v28  ;;  %v3459_v33 = vpop.f32.mrf.mxu0 }
 0x84f   : > { %v3460_v21 = vadd.f32 %v3459_v33, %v7480_v40  ;;  %3924 = vmatmul.f32.gmra.mxu2 %v5474_v34 }
 0x850   : > { %4318 = vst [vmem:[%s6162_s15 + $0x518] sm:$0xff] %v4084_v31  ;;  %v5494_v31 = vld [vmem:[%s5975_s12 + $0x7d0] sm:$0xff] }
 0x851   : > { %v3668_v35 = vpop.f32.mrf.mxu1  ;;  %3506 = vmatmul.f32.gmra.mxu0 %v5475_v36  ;;  %4133 = vmatmul.f32.gmra.mxu3 %v5476_v38  ;;  %v5497_v38 = vld [vmem:[%s5975_s12 + $0x7c8] sm:$0xff] }
 0x852   : > { %v3669_v37 = vadd.f32 %v3668_v35, %v3460_v21  ;;  %v3877_v39 = vpop.f32.mrf.mxu2  ;;  %v5495_v21 = vld [vmem:[%s5975_s12 + $0x7c0] sm:$0xff]  ;;  %v5496_v35 = vld [vmem:[%s5975_s12 + $0x7d8] sm:$0xff] }
 0x854   : > { %v3878_v41 = vadd.f32 %v3877_v39, %v3669_v37  ;;  %3715 = vmatmul.f32.gmra.mxu1 %v5477_v42  ;;  %v4086_v46 = vpop.f32.mrf.mxu3 }
 0x856   : > { %v4087_v43 = vadd.f32 %v4086_v46, %v3878_v41  ;;  %v3462_v44 = vpop.f32.mrf.mxu0 }
 0x857   : > { %v3463_v45 = vadd.f32 %v3462_v44, %v7480_v40  ;;  %3927 = vmatmul.f32.gmra.mxu2 %v5478_v47 }
 0x858   : > { %4322 = vst [vmem:[%s6162_s15 + $0x538] sm:$0xff] %v4087_v43  ;;  %v5498_v43 = vld [vmem:[%s5975_s12 + $0x7f0] sm:$0xff] }
 0x859   : > { %v3671_v32 = vpop.f32.mrf.mxu1  ;;  %3509 = vmatmul.f32.gmra.mxu0 %v5479_v48  ;;  %4136 = vmatmul.f32.gmra.mxu3 %v5480_v50  ;;  %v5501_v50 = vld [vmem:[%s5975_s12 + $0x7e8] sm:$0xff] }
 0x85a   : > { %v3672_v49 = vadd.f32 %v3671_v32, %v3463_v45  ;;  %v3880_v51 = vpop.f32.mrf.mxu2  ;;  %v5499_v45 = vld [vmem:[%s5975_s12 + $0x7e0] sm:$0xff]  ;;  %v5500_v32 = vld [vmem:[%s5975_s12 + $0x7f8] sm:$0xff]  ;;  %s4429_s12 = sshll.u32 %s4426_s1, 4  ;;  %s4430_s12 = int_to_ptr.hbm [resolvable:$true] %s4429_s12 }
 0x85b   : > { %s5606_s20 = sshra.s32 %s4430_s12, 4  ;;  %s5607_s20 = int_to_ptr.hbm [resolvable:$true] %s5606_s20 }
 0x85c   : > { %v3881_v52 = vadd.f32 %v3880_v51, %v3672_v49  ;;  %3718 = vmatmul.f32.gmra.mxu1 %v5481_v53  ;;  %v4089_v54 = vpop.f32.mrf.mxu3  ;;  %s5608_s24 = scalar_lea.hbm %s5607_s20, 2048  ;;  %p5613_p2 = scmp.lt.s32.totalorder %s5607_s20, %s7918_s11 }
 0x85d   : > { %p5609_p4 = scmp.ne.s32.totalorder %s5607_s20, %s5608_s24  ;;  %p5614_p1 = scmp.lt.s32.totalorder %s5612_s6, %s5608_s24 }
 0x85e   : > { %v4090_v55 = vadd.f32 %v4089_v54, %v3881_v52  ;;  %v3465_v56 = vpop.f32.mrf.mxu0 }
 0x85f   : > { %v3466_v57 = vadd.f32 %v3465_v56, %v7480_v40  ;;  %3930 = vmatmul.f32.gmra.mxu2 %v5482_v58  ;;  %p5610_p6 = pnand %p5609_p4, %p5941_p3  ;;  %p5615_p7 = por %p5614_p1, %p5613_p2 }
 0x860   : > { %4326 = vst [vmem:[%s6162_s15 + $0x558] sm:$0xff] %v4090_v55 }
 0x861   : > { %v3674_v59 = vpop.f32.mrf.mxu1  ;;  %3512 = vmatmul.f32.gmra.mxu0 %v5483_v60  ;;  %4139 = vmatmul.f32.gmra.mxu3 %v5484_v62  ;;  %p5611_p9 = pneg %p5610_p6 }
 0x862   : > { %v3675_v61 = vadd.f32 %v3674_v59, %v3466_v57  ;;  %v3883_v63 = vpop.f32.mrf.mxu2 }
 0x863   : > { %p5616_p8 = pnand %p5615_p7, %p5611_p9 }
 0x864   : > { %v3884_v0 = vadd.f32 %v3883_v63, %v3675_v61  ;;  %3721 = vmatmul.f32.gmra.mxu1 %v5485_v1  ;;  %v4092_v2 = vpop.f32.mrf.mxu3 }
 0x866   : > { %v4093_v3 = vadd.f32 %v4092_v2, %v3884_v0  ;;  %v3468_v4 = vpop.f32.mrf.mxu0 }
 0x867   : > { %v3469_v5 = vadd.f32 %v3468_v4, %v7480_v40  ;;  %3933 = vmatmul.f32.gmra.mxu2 %v5486_v6 }
 0x868   : > { %4330 = vst [vmem:[%s6162_s15 + $0x578] sm:$0xff] %v4093_v3 }
 0x869   : > { %v3677_v7 = vpop.f32.mrf.mxu1  ;;  %3515 = vmatmul.f32.gmra.mxu0 %v5487_v8  ;;  %4142 = vmatmul.f32.gmra.mxu3 %v5488_v10 }
 0x86a   : > { %v3678_v9 = vadd.f32 %v3677_v7, %v3469_v5  ;;  %v3886_v11 = vpop.f32.mrf.mxu2 }
 0x86c   : > { %v3887_v12 = vadd.f32 %v3886_v11, %v3678_v9  ;;  %3724 = vmatmul.f32.gmra.mxu1 %v5489_v13  ;;  %v4095_v14 = vpop.f32.mrf.mxu3 }
 0x86e   : > { %v4096_v15 = vadd.f32 %v4095_v14, %v3887_v12  ;;  %v3471_v16 = vpop.f32.mrf.mxu0 }
 0x86f   : > { %v3472_v17 = vadd.f32 %v3471_v16, %v7480_v40  ;;  %3936 = vmatmul.f32.gmra.mxu2 %v5490_v18 }
 0x870   : > { %4334 = vst [vmem:[%s6162_s15 + $0x598] sm:$0xff] %v4096_v15 }
 0x871   : > { %v3680_v19 = vpop.f32.mrf.mxu1  ;;  %3518 = vmatmul.f32.gmra.mxu0 %v5491_v20  ;;  %4145 = vmatmul.f32.gmra.mxu3 %v5492_v23 }
 0x872   : > { %v3681_v22 = vadd.f32 %v3680_v19, %v3472_v17  ;;  %v3889_v24 = vpop.f32.mrf.mxu2 }
 0x874   : > { %v3890_v25 = vadd.f32 %v3889_v24, %v3681_v22  ;;  %3727 = vmatmul.f32.gmra.mxu1 %v5493_v26  ;;  %v4098_v27 = vpop.f32.mrf.mxu3 }
 0x876   : > { %v4099_v28 = vadd.f32 %v4098_v27, %v3890_v25  ;;  %v3474_v29 = vpop.f32.mrf.mxu0 }
 0x877   : > { %v3475_v30 = vadd.f32 %v3474_v29, %v7480_v40  ;;  %3939 = vmatmul.f32.gmra.mxu2 %v5494_v31 }
 0x878   : > { %4338 = vst [vmem:[%s6162_s15 + $0x5b8] sm:$0xff] %v4099_v28 }
 0x879   : > { %v3683_v33 = vpop.f32.mrf.mxu1  ;;  %3521 = vmatmul.f32.gmra.mxu0 %v5495_v21  ;;  %4148 = vmatmul.f32.gmra.mxu3 %v5496_v35 }
 0x87a   : > { %v3684_v34 = vadd.f32 %v3683_v33, %v3475_v30  ;;  %v3892_v36 = vpop.f32.mrf.mxu2 }
 0x87c   : > { %v3893_v37 = vadd.f32 %v3892_v36, %v3684_v34  ;;  %3730 = vmatmul.f32.gmra.mxu1 %v5497_v38  ;;  %v4101_v39 = vpop.f32.mrf.mxu3 }
 0x87e   : > { %v4102_v41 = vadd.f32 %v4101_v39, %v3893_v37  ;;  %v3477_v42 = vpop.f32.mrf.mxu0 }
 0x87f   : > { %v3478_v46 = vadd.f32 %v3477_v42, %v7480_v40  ;;  %3942 = vmatmul.f32.gmra.mxu2 %v5498_v43 }
 0x880   : > { %4342 = vst [vmem:[%s6162_s15 + $0x5d8] sm:$0xff] %v4102_v41 }
 0x881   : > { %v3686_v44 = vpop.f32.mrf.mxu1  ;;  %3524 = vmatmul.f32.gmra.mxu0 %v5499_v45  ;;  %4151 = vmatmul.f32.gmra.mxu3 %v5500_v32 }
 0x882   : > { %v3687_v47 = vadd.f32 %v3686_v44, %v3478_v46  ;;  %v3895_v48 = vpop.f32.mrf.mxu2 }
 0x884   : > { %v3896_v49 = vadd.f32 %v3895_v48, %v3687_v47  ;;  %3733 = vmatmul.f32.gmra.mxu1 %v5501_v50  ;;  %v4104_v51 = vpop.f32.mrf.mxu3 }
 0x886   : > { %v4105_v52 = vadd.f32 %v4104_v51, %v3896_v49  ;;  %v3480_v53 = vpop.f32.mrf.mxu0 }
 0x887   : > { %v3481_v54 = vadd.f32 %v3480_v53, %v7480_v40 }
 0x888   : > { %4346 = vst [vmem:[%s6162_s15 + $0x5f8] sm:$0xff] %v4105_v52 }
 0x889   : > { %v3689_v55 = vpop.f32.mrf.mxu1 }
 0x88a   : > { %v3690_v56 = vadd.f32 %v3689_v55, %v3481_v54  ;;  %v3898_v57 = vpop.f32.mrf.mxu2 }
 0x88c   : > { %v3899_v58 = vadd.f32 %v3898_v57, %v3690_v56  ;;  %v4107_v59 = vpop.f32.mrf.mxu3 }
 0x88e   : > { %v4108_v60 = vadd.f32 %v4107_v59, %v3899_v58  ;;  %v3483_v61 = vpop.f32.mrf.mxu0 }
 0x88f   : > { %v3484_v62 = vadd.f32 %v3483_v61, %v7480_v40 }
 0x890   : > { %4350 = vst [vmem:[%s6162_s15 + $0x618] sm:$0xff] %v4108_v60 }
 0x891   : > { %v3692_v63 = vpop.f32.mrf.mxu1 }
 0x892   : > { %v3693_v0 = vadd.f32 %v3692_v63, %v3484_v62  ;;  %v3901_v1 = vpop.f32.mrf.mxu2 }
 0x894   : > { %v3902_v2 = vadd.f32 %v3901_v1, %v3693_v0  ;;  %v4110_v3 = vpop.f32.mrf.mxu3 }
 0x896   : > { %v4111_v4 = vadd.f32 %v4110_v3, %v3902_v2  ;;  %v3486_v5 = vpop.f32.mrf.mxu0 }
 0x897   : > { %v3487_v6 = vadd.f32 %v3486_v5, %v7480_v40 }
 0x898   : > { %4354 = vst [vmem:[%s6162_s15 + $0x638] sm:$0xff] %v4111_v4 }
 0x899   : > { %v3695_v7 = vpop.f32.mrf.mxu1 }
 0x89a   : > { %v3696_v8 = vadd.f32 %v3695_v7, %v3487_v6  ;;  %v3904_v9 = vpop.f32.mrf.mxu2 }
 0x89c   : > { %v3905_v10 = vadd.f32 %v3904_v9, %v3696_v8  ;;  %v4113_v11 = vpop.f32.mrf.mxu3 }
 0x89e   : > { %v4114_v12 = vadd.f32 %v4113_v11, %v3905_v10  ;;  %v3489_v13 = vpop.f32.mrf.mxu0 }
 0x89f   : > { %v3490_v14 = vadd.f32 %v3489_v13, %v7480_v40 }
 0x8a0   : > { %4358 = vst [vmem:[%s6162_s15 + $0x658] sm:$0xff] %v4114_v12 }
 0x8a1   : > { %v3698_v15 = vpop.f32.mrf.mxu1 }
 0x8a2   : > { %v3699_v16 = vadd.f32 %v3698_v15, %v3490_v14  ;;  %v3907_v17 = vpop.f32.mrf.mxu2 }
 0x8a4   : > { %v3908_v18 = vadd.f32 %v3907_v17, %v3699_v16  ;;  %v4116_v19 = vpop.f32.mrf.mxu3 }
 0x8a6   : > { %v4117_v20 = vadd.f32 %v4116_v19, %v3908_v18  ;;  %v3492_v22 = vpop.f32.mrf.mxu0 }
 0x8a7   : > { %v3493_v23 = vadd.f32 %v3492_v22, %v7480_v40 }
 0x8a8   : > { %4362 = vst [vmem:[%s6162_s15 + $0x678] sm:$0xff] %v4117_v20 }
 0x8a9   : > { %v3701_v24 = vpop.f32.mrf.mxu1 }
 0x8aa   : > { %v3702_v25 = vadd.f32 %v3701_v24, %v3493_v23  ;;  %v3910_v26 = vpop.f32.mrf.mxu2 }
 0x8ac   : > { %v3911_v27 = vadd.f32 %v3910_v26, %v3702_v25  ;;  %v4119_v28 = vpop.f32.mrf.mxu3 }
 0x8ae   : > { %v4120_v29 = vadd.f32 %v4119_v28, %v3911_v27  ;;  %v3495_v30 = vpop.f32.mrf.mxu0 }
 0x8af   : > { %v3496_v31 = vadd.f32 %v3495_v30, %v7480_v40 }
 0x8b0   : > { %4366 = vst [vmem:[%s6162_s15 + $0x698] sm:$0xff] %v4120_v29 }
 0x8b1   : > { %v3704_v33 = vpop.f32.mrf.mxu1 }
 0x8b2   : > { %v3705_v21 = vadd.f32 %v3704_v33, %v3496_v31  ;;  %v3913_v34 = vpop.f32.mrf.mxu2 }
 0x8b4   : > { %v3914_v35 = vadd.f32 %v3913_v34, %v3705_v21  ;;  %v4122_v36 = vpop.f32.mrf.mxu3 }
 0x8b6   : > { %v4123_v37 = vadd.f32 %v4122_v36, %v3914_v35  ;;  %v3498_v38 = vpop.f32.mrf.mxu0 }
 0x8b7   : > { %v3499_v39 = vadd.f32 %v3498_v38, %v7480_v40 }
 0x8b8   : > { %4370 = vst [vmem:[%s6162_s15 + $0x6b8] sm:$0xff] %v4123_v37 }
 0x8b9   : > { %v3707_v41 = vpop.f32.mrf.mxu1 }
 0x8ba   : > { %v3708_v42 = vadd.f32 %v3707_v41, %v3499_v39  ;;  %v3916_v46 = vpop.f32.mrf.mxu2 }
 0x8bc   : > { %v3917_v43 = vadd.f32 %v3916_v46, %v3708_v42  ;;  %v4125_v44 = vpop.f32.mrf.mxu3 }
 0x8be   : > { %v4126_v45 = vadd.f32 %v4125_v44, %v3917_v43  ;;  %v3501_v47 = vpop.f32.mrf.mxu0 }
 0x8bf   : > { %v3502_v32 = vadd.f32 %v3501_v47, %v7480_v40 }
 0x8c0   : > { %4374 = vst [vmem:[%s6162_s15 + $0x6d8] sm:$0xff] %v4126_v45 }
 0x8c1   : > { %v3710_v48 = vpop.f32.mrf.mxu1 }
 0x8c2   : > { %v3711_v49 = vadd.f32 %v3710_v48, %v3502_v32  ;;  %v3919_v50 = vpop.f32.mrf.mxu2 }
 0x8c4   : > { %v3920_v51 = vadd.f32 %v3919_v50, %v3711_v49  ;;  %v4128_v52 = vpop.f32.mrf.mxu3 }
 0x8c6   : > { %v4129_v53 = vadd.f32 %v4128_v52, %v3920_v51  ;;  %v3504_v54 = vpop.f32.mrf.mxu0 }
 0x8c7   : > { %v3505_v55 = vadd.f32 %v3504_v54, %v7480_v40 }
 0x8c8   : > { %4378 = vst [vmem:[%s6162_s15 + $0x6f8] sm:$0xff] %v4129_v53 }
 0x8c9   : > { %v3713_v56 = vpop.f32.mrf.mxu1 }
 0x8ca   : > { %v3714_v57 = vadd.f32 %v3713_v56, %v3505_v55  ;;  %v3922_v58 = vpop.f32.mrf.mxu2 }
 0x8cc   : > { %v3923_v59 = vadd.f32 %v3922_v58, %v3714_v57  ;;  %v4131_v60 = vpop.f32.mrf.mxu3 }
 0x8ce   : > { %v4132_v61 = vadd.f32 %v4131_v60, %v3923_v59  ;;  %v3507_v62 = vpop.f32.mrf.mxu0 }
 0x8cf   : > { %v3508_v63 = vadd.f32 %v3507_v62, %v7480_v40 }
 0x8d0   : > { %4382 = vst [vmem:[%s6162_s15 + $0x718] sm:$0xff] %v4132_v61 }
 0x8d1   : > { %v3716_v0 = vpop.f32.mrf.mxu1 }
 0x8d2   : > { %v3717_v1 = vadd.f32 %v3716_v0, %v3508_v63  ;;  %v3925_v2 = vpop.f32.mrf.mxu2 }
 0x8d4   : > { %v3926_v3 = vadd.f32 %v3925_v2, %v3717_v1  ;;  %v4134_v4 = vpop.f32.mrf.mxu3 }
 0x8d6   : > { %v4135_v5 = vadd.f32 %v4134_v4, %v3926_v3  ;;  %v3510_v6 = vpop.f32.mrf.mxu0 }
 0x8d7   : > { %v3511_v7 = vadd.f32 %v3510_v6, %v7480_v40 }
 0x8d8   : > { %4386 = vst [vmem:[%s6162_s15 + $0x738] sm:$0xff] %v4135_v5 }
 0x8d9   : > { %v3719_v8 = vpop.f32.mrf.mxu1 }
 0x8da   : > { %v3720_v9 = vadd.f32 %v3719_v8, %v3511_v7  ;;  %v3928_v10 = vpop.f32.mrf.mxu2 }
 0x8dc   : > { %v3929_v11 = vadd.f32 %v3928_v10, %v3720_v9  ;;  %v4137_v12 = vpop.f32.mrf.mxu3 }
 0x8de   : > { %v4138_v13 = vadd.f32 %v4137_v12, %v3929_v11  ;;  %v3513_v14 = vpop.f32.mrf.mxu0 }
 0x8df   : > { %v3514_v15 = vadd.f32 %v3513_v14, %v7480_v40 }
 0x8e0   : > { %4390 = vst [vmem:[%s6162_s15 + $0x758] sm:$0xff] %v4138_v13 }
 0x8e1   : > { %v3722_v16 = vpop.f32.mrf.mxu1 }
 0x8e2   : > { %v3723_v17 = vadd.f32 %v3722_v16, %v3514_v15  ;;  %v3931_v18 = vpop.f32.mrf.mxu2 }
 0x8e4   : > { %v3932_v19 = vadd.f32 %v3931_v18, %v3723_v17  ;;  %v4140_v20 = vpop.f32.mrf.mxu3 }
 0x8e6   : > { %v4141_v22 = vadd.f32 %v4140_v20, %v3932_v19  ;;  %v3516_v23 = vpop.f32.mrf.mxu0 }
 0x8e7   : > { %v3517_v24 = vadd.f32 %v3516_v23, %v7480_v40 }
 0x8e8   : > { %4394 = vst [vmem:[%s6162_s15 + $0x778] sm:$0xff] %v4141_v22 }
 0x8e9   : > { %v3725_v25 = vpop.f32.mrf.mxu1 }
 0x8ea   : > { %v3726_v26 = vadd.f32 %v3725_v25, %v3517_v24  ;;  %v3934_v27 = vpop.f32.mrf.mxu2 }
 0x8ec   : > { %v3935_v28 = vadd.f32 %v3934_v27, %v3726_v26  ;;  %v4143_v29 = vpop.f32.mrf.mxu3 }
 0x8ee   : > { %v4144_v30 = vadd.f32 %v4143_v29, %v3935_v28  ;;  %v3519_v31 = vpop.f32.mrf.mxu0 }
 0x8ef   : > { %v3520_v33 = vadd.f32 %v3519_v31, %v7480_v40 }
 0x8f0   : > { %4398 = vst [vmem:[%s6162_s15 + $0x798] sm:$0xff] %v4144_v30 }
 0x8f1   : > { %v3728_v21 = vpop.f32.mrf.mxu1 }
 0x8f2   : > { %v3729_v34 = vadd.f32 %v3728_v21, %v3520_v33  ;;  %v3937_v35 = vpop.f32.mrf.mxu2 }
 0x8f4   : > { %v3938_v36 = vadd.f32 %v3937_v35, %v3729_v34  ;;  %v4146_v37 = vpop.f32.mrf.mxu3 }
 0x8f6   : > { %v4147_v38 = vadd.f32 %v4146_v37, %v3938_v36  ;;  %v3522_v39 = vpop.f32.mrf.mxu0 }
 0x8f7   : > { %v3523_v41 = vadd.f32 %v3522_v39, %v7480_v40 }
 0x8f8   : > { %4402 = vst [vmem:[%s6162_s15 + $0x7b8] sm:$0xff] %v4147_v38 }
 0x8f9   : > { %v3731_v42 = vpop.f32.mrf.mxu1 }
 0x8fa   : > { %v3732_v46 = vadd.f32 %v3731_v42, %v3523_v41  ;;  %v3940_v43 = vpop.f32.mrf.mxu2 }
 0x8fc   : > { %v3941_v44 = vadd.f32 %v3940_v43, %v3732_v46  ;;  %v4149_v45 = vpop.f32.mrf.mxu3 }
 0x8fe   : > { %v4150_v47 = vadd.f32 %v4149_v45, %v3941_v44  ;;  %v3525_v32 = vpop.f32.mrf.mxu0 }
 0x8ff   : > { %v3526_v48 = vadd.f32 %v3525_v32, %v7480_v40 }
 0x900   : > { %4406 = vst [vmem:[%s6162_s15 + $0x7d8] sm:$0xff] %v4150_v47 }
 0x901   : > { %v3734_v49 = vpop.f32.mrf.mxu1 }
 0x902   : > { %v3735_v50 = vadd.f32 %v3734_v49, %v3526_v48  ;;  %v3943_v51 = vpop.f32.mrf.mxu2 }
 0x904   : > { %v3944_v52 = vadd.f32 %v3943_v51, %v3735_v50  ;;  %v4152_v53 = vpop.f32.mrf.mxu3 }
 0x906   : > { %v4153_v54 = vadd.f32 %v4152_v53, %v3944_v52 }
 0x908   : > { %4410 = vst [vmem:[%s6162_s15 + $0x7f8] sm:$0xff] %v4153_v54 }
 0x909   : > { %5619 = shalt.err (!%p5616_p8)
}
 0x90a   : > { %s5747_s10 = smov 512   ;;  %s5748_s15 = smov 1536  }
 0x90b   : > { %s5749_s9 = smov 32  }
 0x90c   : > { %4595 = dma.vmem_to_hbm [thread:$0]  (%p5941_p3), %s4428_s3, 32768, %s4430_s12, %s4412_s14, %s5747_s10, %s5748_s15, %s5749_s9  }
 0x90d PF: > { %s7919_s29 = sld [smem:[#allocation12_spill]]  ;;  %p4612_p10 = scmp.ge.s32.totalorder %s5742_s25, 2 }
 0x90f   : > { %p4608_p11 = pnand %p4612_p10, %p5948_p5 }
 0x911   : > { %p4609_p12 = pneg %p4608_p11 }
 0x913   : > { %s4444_s18 = sand.u32 1, %s7919_s29  }
 0x914   : > { %s4445_s22 = scalar_lea.sflag [#allocation4], %s4444_s18 }
 0x915   : > { %5685 = dma.done.wait (%p4609_p12), %s4445_s22, 32768  }
 0x916   : > { %5687 = vsyncadd (%p4609_p12), %s4445_s22, 4294934528  ;;  %s22_s25 = sadd.s32 1, %s5742_s25   ;;  %s7922_s28 = sld [smem:[#allocation13_spill]] }
 0x917   : > { %p7827_p13 = scmp.ge.s32.totalorder %s22_s25, 8   ;;  %s7923_s14 = sld [smem:[#allocation22_spill]] }
 0x918   : > { %s7924_s7 = sld [smem:[#allocation20_spill]]  ;;  %s7930_s12 = smov %s5694_s13 }
 0x919   : > { %s7925_s21 = sld [smem:[#allocation14_spill]]  ;;  %s7932_s15 = smov %s5706_s16 }
 0x91a   : > { %s7926_s20 = sld [smem:[#allocation21_spill]]  ;;  %s7933_s16 = smov %s5710_s17 }
 0x91b   : > { %s7927_s22 = sld [smem:[#allocation17_spill]]  ;;  %s7935_s18 = smov %s5718_s19 }
 0x91c   : > { %s7928_s1 = sld [smem:[#allocation18_spill]]  ;;  %s7931_s13 = smov %s7922_s28 }
 0x91d   : > { %s7929_s24 = sld [smem:[#allocation19_spill]] }
 0x91e   : > { %s7934_s17 = smov %s7924_s7  ;;  %21 = sbr.rel (!%p7827_p13) target bundleno = 15 (0xf), region = 101 }
 0x91f   : > { %s7936_s19 = smov %s7925_s21  ;;  %s7937_s21 = smov %s5734_s23 }
 0x922   : > { %s7938_s23 = smov %s7928_s1 }
 0x923   :  { %4451 = vsyncpa [#allocation3], 1 }
 0x924   :  { %4453 = vsyncpa [#allocation3 + $0x1], 1 }
 0x925   :  { %4454 = vsyncpa [#allocation6], 1 }
 0x926   :  { %4456 = vsyncpa [#allocation6 + $0x1], 1 }
 0x927   :  { %4457 = vsyncpa [#allocation4], 1 }
 0x928   :  { %4459 = vsyncpa [#allocation4 + $0x1], 1 }

</bundles_post_ra>
